<compile_context>
chip_gen: v7x
topology: tpu7x:2x2x1
jax: 0.10.0
libtpu: 0.0.40
codegen_flags: <defaults>
</compile_context>

<pallas_src>
import functools

import numpy as np
import jax
import jax.numpy as jnp
from jax.experimental import pallas as pl
from jax.experimental.pallas import tpu as pltpu


# ----------------------------------------------------------------------------
# Fused forward kernel (one grid step == one batch element)
# ----------------------------------------------------------------------------
def _fused_kernel(x_ref, w_in_ref, b_in_ref, w_rec_ref, b_rec_ref,
                  w_head_ref, b_head_ref, w_ds_ref, b_ds_ref,
                  w_cc_ref, b_cc_ref,
                  p0_ref, p1_ref, p2_ref, p3_ref,
                  o_val_ref, o_head_ref,
                  xs_ref, *, H, W, num_recursions, halo):
    f32 = jnp.float32
    bf16 = jnp.bfloat16
    HW = H * W

    # Zero only the halo rows (the vertical 3x3 zero padding).  Body rows are
    # fully rewritten by y0 below (lanes 79..127 included, thanks to the
    # zero-padded w_in/b_in), so no full-scratch memset is needed.  We re-zero
    # every grid step (48 rows, ~24 KiB) instead of only at program_id==0 so
    # the kernel stays correct when the batch axis is sharded across
    # TensorCores (each core owns its own scratch copy).
    zhalo = jnp.zeros((halo, 128), f32)
    xs_ref[pl.ds(0, halo), :] = zhalo
    xs_ref[pl.ds(halo + HW, halo), :] = zhalo

    # ---- merged conv_0 (lanes 0..63) + skip_compress (64..78) 1x1 proj -----
    y0 = jnp.dot(x_ref[...].astype(bf16), w_in_ref[...],
                 preferred_element_type=f32)
    xs_ref[pl.ds(halo, HW), :] = jnp.maximum(y0 + b_in_ref[...], 0.0)

    # ---- column-validity masks for the horizontal 3x3 taps ------------------
    col = jax.lax.broadcasted_iota(jnp.int32, (HW, 1), 0) % W
    m_left = (col > 0).astype(f32)        # source column w-1 is inside the map
    m_right = (col < W - 1).astype(f32)   # source column w+1 is inside the map

    def shifted_tap(k, width):
        dy, dx = k // 3, k % 3
        shift = (dy - 1) * W + (dx - 1)
        xm = xs_ref[pl.ds(halo + shift, HW), pl.ds(0, width)]
        if dx == 0:
            xm = xm * m_left               # masks stay in f32 (v5e-friendly)
        elif dx == 2:
            xm = xm * m_right
        return xm.astype(bf16)             # bf16 only at the MXU operand

    # ---- conv_2_0 recursion: fori_loop bounds live ranges; the 9-tap inner
    # ---- loop stays unrolled so loads interleave with the MXU pushes --------
    def rec_body(_, carry):
        acc = jnp.zeros((HW, 64), f32)
        for k in range(9):
            acc = acc + jnp.dot(shifted_tap(k, 64), w_rec_ref[k],
                                preferred_element_type=f32)
        xs_ref[pl.ds(halo, HW), pl.ds(0, 64)] = jnp.maximum(
            acc + b_rec_ref[...], 0.0)
        return carry

    jax.lax.fori_loop(0, num_recursions, rec_body, 0)

    # ---- fused critic_compress + actor_compress head ------------------------
    # weights packed along N as [critic 0..63 | actor 64..64+na-1 | zero pad]:
    # one (HW,128)@(128,128) dot per shared tap, half the MXU pushes and a
    # single lane-dense 128-wide output store.
    acc_h = jnp.zeros((HW, 128), f32)
    for k in range(9):
        acc_h = acc_h + jnp.dot(shifted_tap(k, 128), w_head_ref[k],
                                preferred_element_type=f32)
    acc_h = acc_h + b_head_ref[...]
    o_head_ref[...] = acc_h                         # actor logits: no relu
    v = jnp.maximum(acc_h[:, 0:64], 0.0)            # critic branch, relu

    # ---- 4x (2x2 stride-2 conv + relu) via 0/1 selection-matrix matmuls -----
    # (padded output rows of the last stages hold relu(bias) garbage that is
    #  never selected downstream; only row 0 of the final stage is read.)
    for p_ref in (p0_ref, p1_ref, p2_ref, p3_ref):
        acc = None
        for t in range(4):                           # t = 2*dy + dx
            patch = jnp.dot(p_ref[t].astype(bf16), v.astype(bf16),
                            preferred_element_type=f32)
            term = jnp.dot(patch.astype(bf16), w_ds_ref[t],
                           preferred_element_type=f32)
            acc = term if acc is None else acc + term
        v = jnp.maximum(acc + b_ds_ref[...], 0.0)

    # ---- critic_conv (1x1, 64 -> 1) on the single remaining pixel (f32 VPU) -
    val = jnp.sum(v[0:1, :] * w_cc_ref[...], axis=-1, keepdims=True)
    val = val + b_cc_ref[...]                        # (1, 1)
    o_val_ref[...] = jnp.zeros((8, 128), f32) + val  # lane/sublane-dense store


# ----------------------------------------------------------------------------
# Wrapper: packs weights, builds downsample selection matrices, calls Pallas
# ----------------------------------------------------------------------------
def _downsample_selection(hs, ws, in_rows, out_rows):
    """P[t] @ flat_input gathers the (dy,dx) tap of a 2x2/stride-2 conv."""
    ho, wo = hs // 2, ws // 2
    p = np.zeros((4, out_rows, in_rows), np.float32)
    for dy in range(2):
        for dx in range(2):
            t = 2 * dy + dx
            for oy in range(ho):
                for ox in range(wo):
                    p[t, oy * wo + ox, (2 * oy + dy) * ws + (2 * ox + dx)] = 1.0
    return p


def micropolis_forward(params, inputs_nchw, rnn_hxs, masks, num_recursions):
    del masks  # recurrent=False path of MicropolisBase_fixed
    B, cin, H, W = inputs_nchw.shape
    assert H == W == 16, "kernel is specialized to map_width=16"
    HW = H * W
    na = params["actor_compress_w"].shape[-1]
    f32, bf16 = jnp.float32, jnp.bfloat16
    halo = ((W + 1 + 7) // 8) * 8         # 24 rows; covers the max shift W+1

    x = jnp.transpose(inputs_nchw, (0, 2, 3, 1)).astype(f32).reshape(B, HW, cin)

    # conv_0 (64) + skip_compress (15) merged into one 1x1, lane-padded to 128.
    w_in = jnp.concatenate([params["conv_0_w"], params["skip_compress_w"],
                            jnp.zeros((cin, 128 - 79), f32)], axis=1).astype(bf16)
    b_in = jnp.concatenate([params["conv_0_b"], params["skip_compress_b"],
                            jnp.zeros((128 - 79,), f32)]).reshape(1, 128)

    w_rec = params["conv_2_0_w"].astype(bf16)         # (9, 64, 64), k = 3*dy+dx
    b_rec = params["conv_2_0_b"].reshape(1, 64)

    def pad_in79(w):                                  # (9, 79, C) -> (9, 128, C)
        return jnp.concatenate(
            [w, jnp.zeros((9, 128 - 79, w.shape[-1]), f32)], axis=1)

    # Fused head weights: [critic (64) | actor (na) | zero pad] along N.
    w_head = jnp.concatenate(
        [pad_in79(params["critic_compress_w"]),
         pad_in79(params["actor_compress_w"]),
         jnp.zeros((9, 128, 128 - 64 - na), f32)], axis=2).astype(bf16)
    b_head = jnp.concatenate(
        [params["critic_compress_b"], params["actor_compress_b"],
         jnp.zeros((128 - 64 - na,), f32)]).reshape(1, 128)

    w_ds = params["critic_downsize_0_w"].astype(bf16)  # (4, 64, 64), t = 2*dy+dx
    b_ds = params["critic_downsize_0_b"].reshape(1, 64)
    w_cc = params["critic_conv_w"].reshape(1, 64)      # (64,1) -> (1,64), f32
    b_cc = params["critic_conv_b"].reshape(1, 1)

    # Selection matrices for the 4 downsizes (16->8->4->2->1); small stages are
    # padded to >=8 output rows, extra rows are zero-selected and ignored.
    p0 = _downsample_selection(16, 16, 256, 64)
    p1 = _downsample_selection(8, 8, 64, 16)
    p2 = _downsample_selection(4, 4, 16, 8)
    p3 = _downsample_selection(2, 2, 8, 8)

    def const_spec(arr):
        zeros = (0,) * arr.ndim
        return pl.BlockSpec(arr.shape, lambda b, z=zeros: z)

    kernel = functools.partial(_fused_kernel, H=H, W=W,
                               num_recursions=num_recursions, halo=halo)

    # TODO(synk): for large production batches, stack 2-4 images per grid step
    # to amortize per-step overheads; B=2 already keeps both v7x cores busy.
    vals_pad, head_out = pl.pallas_call(
        kernel,
        out_shape=(jax.ShapeDtypeStruct((B, 8, 128), f32),
                   jax.ShapeDtypeStruct((B, HW, 128), f32)),
        grid=(B,),
        in_specs=[
            pl.BlockSpec((None, HW, cin), lambda b: (b, 0, 0)),
            const_spec(w_in), const_spec(b_in),
            const_spec(w_rec), const_spec(b_rec),
            const_spec(w_head), const_spec(b_head),
            const_spec(w_ds), const_spec(b_ds),
            const_spec(w_cc), const_spec(b_cc),
            const_spec(p0), const_spec(p1), const_spec(p2), const_spec(p3),
        ],
        out_specs=(pl.BlockSpec((None, 8, 128), lambda b: (b, 0, 0)),
                   pl.BlockSpec((None, HW, 128), lambda b: (b, 0, 0))),
        scratch_shapes=[pltpu.VMEM((2 * halo + HW, 128), f32)],
        compiler_params=pltpu.CompilerParams(
            dimension_semantics=("parallel",)),
    )(x, w_in, b_in, w_rec, b_rec, w_head, b_head, w_ds, b_ds, w_cc, b_cc,
      p0, p1, p2, p3)

    values = vals_pad[:, 0, 0:1]                                   # (B, 1)
    actions = head_out[:, :, 64:64 + na]                           # lane-dense out, slice actor lanes
    actions = jnp.transpose(actions.reshape(B, H, W, na), (0, 3, 1, 2))
    return values, actions, rnn_hxs


# ----------------------------------------------------------------------------
# Parameters (deterministic synthetic init matching the module's bias init)
# ----------------------------------------------------------------------------
def init_params(key, num_inputs, num_actions):
    ks = jax.random.split(key, 8)

    def w(k, shape, fan_in, gain=2.0):
        return (jax.random.normal(k, shape, jnp.float32)
                * np.float32(np.sqrt(gain / fan_in)))

    return {
        "conv_0_w": w(ks[0], (num_inputs, 64), num_inputs),
        "conv_0_b": jnp.full((64,), 0.1, jnp.float32),
        "skip_compress_w": w(ks[1], (num_inputs, 15), num_inputs),
        "skip_compress_b": jnp.full((15,), 0.1, jnp.float32),
        "conv_2_0_w": w(ks[2], (9, 64, 64), 9 * 64),
        "conv_2_0_b": jnp.full((64,), 0.1, jnp.float32),
        "critic_compress_w": w(ks[3], (9, 79, 64), 9 * 79),
        "critic_compress_b": jnp.full((64,), 0.1, jnp.float32),
        "critic_downsize_0_w": w(ks[4], (4, 64, 64), 4 * 64),
        "critic_downsize_0_b": jnp.full((64,), 0.1, jnp.float32),
        "actor_compress_w": w(ks[5], (9, 79, num_actions), 9 * 79, gain=1.0),
        "actor_compress_b": jnp.zeros((num_actions,), jnp.float32),
        "critic_conv_w": w(ks[6], (64, 1), 64, gain=1.0),
        "critic_conv_b": jnp.zeros((1,), jnp.float32),
    }


# ----------------------------------------------------------------------------
# Pure-JAX reference (lax.conv).  Matches the kernel's numerics: bf16 MXU
# operands with f32 accumulation for every conv except the final 1x1
# critic_conv, which both sides keep in f32.
# ----------------------------------------------------------------------------
def _ref_conv(x, w_hwio, b, stride, padding, apply_relu, bf16_ops=True):
    if bf16_ops:
        x = x.astype(jnp.bfloat16)
        w_hwio = w_hwio.astype(jnp.bfloat16)
        prec = None
    else:
        prec = jax.lax.Precision.HIGHEST
    y = jax.lax.conv_general_dilated(
        x, w_hwio, window_strides=(stride, stride), padding=padding,
        dimension_numbers=("NHWC", "HWIO", "NHWC"),
        preferred_element_type=jnp.float32, precision=prec) + b
    return jnp.maximum(y, 0.0) if apply_relu else y


def ref_forward(params, inputs_nchw, rnn_hxs, num_recursions):
    x_in = jnp.transpose(inputs_nchw, (0, 2, 3, 1)).astype(jnp.float32)
    ci = x_in.shape[-1]
    p = params
    x = _ref_conv(x_in, p["conv_0_w"].reshape(1, 1, ci, 64), p["conv_0_b"], 1, "VALID", True)
    skip = _ref_conv(x_in, p["skip_compress_w"].reshape(1, 1, ci, 15), p["skip_compress_b"], 1, "VALID", True)
    for _ in range(num_recursions):
        x = _ref_conv(x, p["conv_2_0_w"].reshape(3, 3, 64, 64), p["conv_2_0_b"], 1, [(1, 1), (1, 1)], True)
    x = jnp.concatenate([x, skip], axis=-1)
    values = _ref_conv(x, p["critic_compress_w"].reshape(3, 3, 79, 64), p["critic_compress_b"], 1, [(1, 1), (1, 1)], True)
    for _ in range(4):
        values = _ref_conv(values, p["critic_downsize_0_w"].reshape(2, 2, 64, 64), p["critic_downsize_0_b"], 2, "VALID", True)
    values = _ref_conv(values, p["critic_conv_w"].reshape(1, 1, 64, 1), p["critic_conv_b"], 1, "VALID", False, bf16_ops=False)
    values = jnp.transpose(values, (0, 3, 1, 2)).reshape(values.shape[0], -1)
    na = p["actor_compress_w"].shape[-1]
    actions = _ref_conv(x, p["actor_compress_w"].reshape(3, 3, 79, na), p["actor_compress_b"], 1, [(1, 1), (1, 1)], False)
    actions = jnp.transpose(actions, (0, 3, 1, 2))
    return values, actions, rnn_hxs


# ----------------------------------------------------------------------------
if __name__ == "__main__":
    B, NUM_INPUTS, MAP_W, NUM_ACTIONS, HIDDEN = 2, 4, 16, 19, 512
    # map_width=16 => num_recursions=16, and 4 stride-2 downsizes take 16 -> 1.
    key = jax.random.PRNGKey(0)
    k_in, k_p = jax.random.split(key)
    inputs = jax.random.normal(k_in, (B, NUM_INPUTS, MAP_W, MAP_W), jnp.float32)
    rnn_hxs = jnp.zeros((B, HIDDEN), jnp.float32)
    masks = jnp.ones((B, 1), jnp.float32)
    params = init_params(k_p, NUM_INPUTS, NUM_ACTIONS)

    fwd = jax.jit(micropolis_forward, static_argnames=("num_recursions",))
    values, actions, rnn_out = fwd(params, inputs, rnn_hxs, masks,
                                   num_recursions=MAP_W)
    jax.block_until_ready((values, actions, rnn_out))

    assert values.shape == (B, 1)
    assert actions.shape == (B, NUM_ACTIONS, MAP_W, MAP_W)
    assert rnn_out.shape == rnn_hxs.shape

    ref_values, ref_actions, _ = ref_forward(params, inputs, rnn_hxs,
                                             num_recursions=MAP_W)

    # Kernel and reference both use bf16 MXU operands with f32 accumulation
    # (per the performance review); they differ only in summation order, which
    # after 16+ re-quantizing conv layers yields small per-element divergence.
    # Tolerances are sized for that drift; real structural/indexing bugs
    # produce O(1) errors and are still caught.
    v_got, v_ref = np.asarray(values, np.float64), np.asarray(ref_values, np.float64)
    a_got, a_ref = np.asarray(actions, np.float64), np.asarray(ref_actions, np.float64)
    rel_l2 = np.linalg.norm(a_got - a_ref) / (np.linalg.norm(a_ref) + 1e-12)
    assert rel_l2 < 5e-2, f"actions rel-L2 error too large: {rel_l2}"
    np.testing.assert_allclose(a_got, a_ref, rtol=1e-1, atol=5e-2)
    np.testing.assert_allclose(v_got, v_ref, rtol=1e-1, atol=5e-2)

    print("KERNEL_OK")
</pallas_src>

<mosaic_0001>
module attributes {stable_mosaic.version = 11 : i64} {
  func.func @_fused_kernel(%arg0: i32, %arg1: memref<1x256x4xf32, #tpu.memory_space<vmem>>, %arg2: memref<4x128xbf16, #tpu.memory_space<vmem>>, %arg3: memref<1x128xf32, #tpu.memory_space<vmem>>, %arg4: memref<9x64x64xbf16, #tpu.memory_space<vmem>>, %arg5: memref<1x64xf32, #tpu.memory_space<vmem>>, %arg6: memref<9x128x128xbf16, #tpu.memory_space<vmem>>, %arg7: memref<1x128xf32, #tpu.memory_space<vmem>>, %arg8: memref<4x64x64xbf16, #tpu.memory_space<vmem>>, %arg9: memref<1x64xf32, #tpu.memory_space<vmem>>, %arg10: memref<1x64xf32, #tpu.memory_space<vmem>>, %arg11: memref<1x1xf32, #tpu.memory_space<vmem>>, %arg12: memref<4x64x256xf32, #tpu.memory_space<vmem>>, %arg13: memref<4x16x64xf32, #tpu.memory_space<vmem>>, %arg14: memref<4x8x16xf32, #tpu.memory_space<vmem>>, %arg15: memref<4x8x8xf32, #tpu.memory_space<vmem>>, %arg16: memref<1x8x128xf32, #tpu.memory_space<vmem>>, %arg17: memref<1x256x128xf32, #tpu.memory_space<vmem>>, %arg18: memref<304x128xf32, #tpu.memory_space<vmem>>) attributes {dimension_semantics = [#tpu.dimension_semantics<parallel>], iteration_bounds = array<i64: 2>, scalar_prefetch = 0 : i64, scratch_operands = 1 : i64, tpu.core_type = #tpu.core_type<tc>, window_params = [{transform_indices = @transform_0, window_bounds = array<i64: 1, 256, 4>}, {pipeline_mode = #tpu.pipeline_mode<synchronous>, transform_indices = @transform_1, window_bounds = array<i64: 4, 128>}, {pipeline_mode = #tpu.pipeline_mode<synchronous>, transform_indices = @transform_2, window_bounds = array<i64: 1, 128>}, {pipeline_mode = #tpu.pipeline_mode<synchronous>, transform_indices = @transform_3, window_bounds = array<i64: 9, 64, 64>}, {pipeline_mode = #tpu.pipeline_mode<synchronous>, transform_indices = @transform_4, window_bounds = array<i64: 1, 64>}, {pipeline_mode = #tpu.pipeline_mode<synchronous>, transform_indices = @transform_5, window_bounds = array<i64: 9, 128, 128>}, {pipeline_mode = #tpu.pipeline_mode<synchronous>, transform_indices = @transform_6, window_bounds = array<i64: 1, 128>}, {pipeline_mode = #tpu.pipeline_mode<synchronous>, transform_indices = @transform_7, window_bounds = array<i64: 4, 64, 64>}, {pipeline_mode = #tpu.pipeline_mode<synchronous>, transform_indices = @transform_8, window_bounds = array<i64: 1, 64>}, {pipeline_mode = #tpu.pipeline_mode<synchronous>, transform_indices = @transform_9, window_bounds = array<i64: 1, 64>}, {pipeline_mode = #tpu.pipeline_mode<synchronous>, transform_indices = @transform_10, window_bounds = array<i64: 1, 1>}, {pipeline_mode = #tpu.pipeline_mode<synchronous>, transform_indices = @transform_11, window_bounds = array<i64: 4, 64, 256>}, {pipeline_mode = #tpu.pipeline_mode<synchronous>, transform_indices = @transform_12, window_bounds = array<i64: 4, 16, 64>}, {pipeline_mode = #tpu.pipeline_mode<synchronous>, transform_indices = @transform_13, window_bounds = array<i64: 4, 8, 16>}, {pipeline_mode = #tpu.pipeline_mode<synchronous>, transform_indices = @transform_14, window_bounds = array<i64: 4, 8, 8>}, {transform_indices = @transform_15, window_bounds = array<i64: 1, 8, 128>}, {transform_indices = @transform_16, window_bounds = array<i64: 1, 256, 128>}]} {
    %cst = arith.constant 0.000000e+00 : f32
    %0 = vector.broadcast %cst : f32 to vector<24x128xf32>
    %c0 = arith.constant 0 : index
    %c0_0 = arith.constant 0 : index
    %1 = vector.load %arg18[%c0, %c0_0] : memref<304x128xf32, #tpu.memory_space<vmem>>, vector<24x128xf32>
    tpu.vector_store %arg18[%c0, %c0_0], %0 {strides = array<i32>} : memref<304x128xf32, #tpu.memory_space<vmem>>, vector<24x128xf32>,
    %c280 = arith.constant 280 : index
    %c0_1 = arith.constant 0 : index
    %2 = vector.load %arg18[%c280, %c0_1] : memref<304x128xf32, #tpu.memory_space<vmem>>, vector<24x128xf32>
    tpu.vector_store %arg18[%c280, %c0_1], %0 {strides = array<i32>} : memref<304x128xf32, #tpu.memory_space<vmem>>, vector<24x128xf32>,
    %c0_2 = arith.constant 0 : index
    %c0_3 = arith.constant 0 : index
    %c0_4 = arith.constant 0 : index
    %3 = vector.load %arg1[%c0_2, %c0_3, %c0_4] : memref<1x256x4xf32, #tpu.memory_space<vmem>>, vector<1x256x4xf32>
    %4 = vector.shape_cast %3 : vector<1x256x4xf32> to vector<256x4xf32>
    %5 = arith.truncf %4 : vector<256x4xf32> to vector<256x4xbf16>
    %c0_5 = arith.constant 0 : index
    %c0_6 = arith.constant 0 : index
    %6 = vector.load %arg2[%c0_5, %c0_6] : memref<4x128xbf16, #tpu.memory_space<vmem>>, vector<4x128xbf16>
    %cst_7 = arith.constant dense<0.000000e+00> : vector<256x128xf32>
    %7 = tpu.matmul %5, %6, %cst_7 {dimension_numbers = #tpu.dot_dimension_numbers<[1], [0], [0], [1], [0, 0, 1, 1], [], []>} : vector<256x4xbf16>, vector<4x128xbf16>, vector<256x128xf32> -> vector<256x128xf32>
    %c0_8 = arith.constant 0 : index
    %c0_9 = arith.constant 0 : index
    %8 = vector.load %arg3[%c0_8, %c0_9] : memref<1x128xf32, #tpu.memory_space<vmem>>, vector<1x128xf32>
    %9 = vector.broadcast %8 : vector<1x128xf32> to vector<256x128xf32>
    %10 = arith.addf %7, %9 : vector<256x128xf32>
    %cst_10 = arith.constant 0.000000e+00 : f32
    %11 = vector.broadcast %cst_10 : f32 to vector<256x128xf32>
    %12 = arith.maximumf %10, %11 : vector<256x128xf32>
    %c24 = arith.constant 24 : index
    %c0_11 = arith.constant 0 : index
    %13 = vector.load %arg18[%c24, %c0_11] : memref<304x128xf32, #tpu.memory_space<vmem>>, vector<256x128xf32>
    tpu.vector_store %arg18[%c24, %c0_11], %12 {strides = array<i32>} : memref<304x128xf32, #tpu.memory_space<vmem>>, vector<256x128xf32>,
    %14 = tpu.iota {dimensions = array<i32: 0>} : vector<256x1xi32>
    %c16_i32 = arith.constant 16 : i32
    %c0_i32 = arith.constant 0 : i32
    %15 = arith.cmpi eq, %c16_i32, %c0_i32 : i32
    %c1_i32 = arith.constant 1 : i32
    %16 = arith.select %15, %c1_i32, %c16_i32 : i32
    %17 = vector.broadcast %16 : i32 to vector<256x1xi32>
    %18 = arith.remsi %14, %17 : vector<256x1xi32>
    %c0_i32_12 = arith.constant 0 : i32
    %19 = vector.broadcast %c0_i32_12 : i32 to vector<256x1xi32>
    %20 = arith.cmpi ne, %18, %19 : vector<256x1xi32>
    %c0_i32_13 = arith.constant 0 : i32
    %21 = vector.broadcast %c0_i32_13 : i32 to vector<256x1xi32>
    %22 = arith.cmpi slt, %18, %21 : vector<256x1xi32>
    %c0_i32_14 = arith.constant 0 : i32
    %23 = arith.cmpi slt, %16, %c0_i32_14 : i32
    %24 = vector.broadcast %23 : i1 to vector<256x1xi1>
    %25 = vector.broadcast %24 : vector<256x1xi1> to vector<256x1xi1>
    %26 = arith.xori %22, %25 : vector<256x1xi1>
    %27 = arith.andi %26, %20 : vector<256x1xi1>
    %28 = vector.broadcast %16 : i32 to vector<256x1xi32>
    %29 = arith.addi %18, %28 : vector<256x1xi32>
    %30 = arith.select %27, %29, %18 : vector<256x1xi1>, vector<256x1xi32>
    %c0_i32_15 = arith.constant 0 : i32
    %31 = vector.broadcast %c0_i32_15 : i32 to vector<256x1xi32>
    %32 = arith.cmpi sgt, %30, %31 : vector<256x1xi32>
    %33 = arith.extui %32 : vector<256x1xi1> to vector<256x1xi32>
    %34 = arith.sitofp %33 : vector<256x1xi32> to vector<256x1xf32>
    %c15_i32 = arith.constant 15 : i32
    %35 = vector.broadcast %c15_i32 : i32 to vector<256x1xi32>
    %36 = arith.cmpi slt, %30, %35 : vector<256x1xi32>
    %37 = arith.extui %36 : vector<256x1xi1> to vector<256x1xi32>
    %38 = arith.sitofp %37 : vector<256x1xi32> to vector<256x1xf32>
    %c0_i32_16 = arith.constant 0 : i32
    %c16_i32_17 = arith.constant 16 : i32
    %39 = arith.addi %c0_i32_16, %c16_i32_17 : i32
    %c1_i32_18 = arith.constant 1 : i32
    scf.for %arg19 = %c0_i32_16 to %39 step %c1_i32_18  : i32 {
      %cst_215 = arith.constant 0.000000e+00 : f32
      %305 = vector.broadcast %cst_215 : f32 to vector<256x64xf32>
      %c7_216 = arith.constant 7 : index
      %c0_217 = arith.constant 0 : index
      %306 = vector.load %arg18[%c7_216, %c0_217] : memref<304x128xf32, #tpu.memory_space<vmem>>, vector<256x64xf32>
      %307 = vector.broadcast %34 : vector<256x1xf32> to vector<256x64xf32>
      %308 = arith.mulf %306, %307 : vector<256x64xf32>
      %309 = arith.truncf %308 : vector<256x64xf32> to vector<256x64xbf16>
      %c0_218 = arith.constant 0 : index
      %c0_219 = arith.constant 0 : index
      %c0_220 = arith.constant 0 : index
      %310 = vector.load %arg4[%c0_218, %c0_219, %c0_220] : memref<9x64x64xbf16, #tpu.memory_space<vmem>>, vector<1x64x64xbf16>
      %311 = vector.shape_cast %310 : vector<1x64x64xbf16> to vector<64x64xbf16>
      %cst_221 = arith.constant dense<0.000000e+00> : vector<256x64xf32>
      %312 = tpu.matmul %309, %311, %cst_221 {dimension_numbers = #tpu.dot_dimension_numbers<[1], [0], [0], [1], [0, 0, 1, 1], [], []>} : vector<256x64xbf16>, vector<64x64xbf16>, vector<256x64xf32> -> vector<256x64xf32>
      %313 = arith.addf %305, %312 : vector<256x64xf32>
      %c8_222 = arith.constant 8 : index
      %c0_223 = arith.constant 0 : index
      %314 = vector.load %arg18[%c8_222, %c0_223] : memref<304x128xf32, #tpu.memory_space<vmem>>, vector<256x64xf32>
      %315 = arith.truncf %314 : vector<256x64xf32> to vector<256x64xbf16>
      %c1_224 = arith.constant 1 : index
      %c0_225 = arith.constant 0 : index
      %c0_226 = arith.constant 0 : index
      %316 = vector.load %arg4[%c1_224, %c0_225, %c0_226] : memref<9x64x64xbf16, #tpu.memory_space<vmem>>, vector<1x64x64xbf16>
      %317 = vector.shape_cast %316 : vector<1x64x64xbf16> to vector<64x64xbf16>
      %cst_227 = arith.constant dense<0.000000e+00> : vector<256x64xf32>
      %318 = tpu.matmul %315, %317, %cst_227 {dimension_numbers = #tpu.dot_dimension_numbers<[1], [0], [0], [1], [0, 0, 1, 1], [], []>} : vector<256x64xbf16>, vector<64x64xbf16>, vector<256x64xf32> -> vector<256x64xf32>
      %319 = arith.addf %313, %318 : vector<256x64xf32>
      %c9_228 = arith.constant 9 : index
      %c0_229 = arith.constant 0 : index
      %320 = vector.load %arg18[%c9_228, %c0_229] : memref<304x128xf32, #tpu.memory_space<vmem>>, vector<256x64xf32>
      %321 = vector.broadcast %38 : vector<256x1xf32> to vector<256x64xf32>
      %322 = arith.mulf %320, %321 : vector<256x64xf32>
      %323 = arith.truncf %322 : vector<256x64xf32> to vector<256x64xbf16>
      %c2_230 = arith.constant 2 : index
      %c0_231 = arith.constant 0 : index
      %c0_232 = arith.constant 0 : index
      %324 = vector.load %arg4[%c2_230, %c0_231, %c0_232] : memref<9x64x64xbf16, #tpu.memory_space<vmem>>, vector<1x64x64xbf16>
      %325 = vector.shape_cast %324 : vector<1x64x64xbf16> to vector<64x64xbf16>
      %cst_233 = arith.constant dense<0.000000e+00> : vector<256x64xf32>
      %326 = tpu.matmul %323, %325, %cst_233 {dimension_numbers = #tpu.dot_dimension_numbers<[1], [0], [0], [1], [0, 0, 1, 1], [], []>} : vector<256x64xbf16>, vector<64x64xbf16>, vector<256x64xf32> -> vector<256x64xf32>
      %327 = arith.addf %319, %326 : vector<256x64xf32>
      %c23_234 = arith.constant 23 : index
      %c0_235 = arith.constant 0 : index
      %328 = vector.load %arg18[%c23_234, %c0_235] : memref<304x128xf32, #tpu.memory_space<vmem>>, vector<256x64xf32>
      %329 = vector.broadcast %34 : vector<256x1xf32> to vector<256x64xf32>
      %330 = arith.mulf %328, %329 : vector<256x64xf32>
      %331 = arith.truncf %330 : vector<256x64xf32> to vector<256x64xbf16>
      %c3_236 = arith.constant 3 : index
      %c0_237 = arith.constant 0 : index
      %c0_238 = arith.constant 0 : index
      %332 = vector.load %arg4[%c3_236, %c0_237, %c0_238] : memref<9x64x64xbf16, #tpu.memory_space<vmem>>, vector<1x64x64xbf16>
      %333 = vector.shape_cast %332 : vector<1x64x64xbf16> to vector<64x64xbf16>
      %cst_239 = arith.constant dense<0.000000e+00> : vector<256x64xf32>
      %334 = tpu.matmul %331, %333, %cst_239 {dimension_numbers = #tpu.dot_dimension_numbers<[1], [0], [0], [1], [0, 0, 1, 1], [], []>} : vector<256x64xbf16>, vector<64x64xbf16>, vector<256x64xf32> -> vector<256x64xf32>
      %335 = arith.addf %327, %334 : vector<256x64xf32>
      %c24_240 = arith.constant 24 : index
      %c0_241 = arith.constant 0 : index
      %336 = vector.load %arg18[%c24_240, %c0_241] : memref<304x128xf32, #tpu.memory_space<vmem>>, vector<256x64xf32>
      %337 = arith.truncf %336 : vector<256x64xf32> to vector<256x64xbf16>
      %c4_242 = arith.constant 4 : index
      %c0_243 = arith.constant 0 : index
      %c0_244 = arith.constant 0 : index
      %338 = vector.load %arg4[%c4_242, %c0_243, %c0_244] : memref<9x64x64xbf16, #tpu.memory_space<vmem>>, vector<1x64x64xbf16>
      %339 = vector.shape_cast %338 : vector<1x64x64xbf16> to vector<64x64xbf16>
      %cst_245 = arith.constant dense<0.000000e+00> : vector<256x64xf32>
      %340 = tpu.matmul %337, %339, %cst_245 {dimension_numbers = #tpu.dot_dimension_numbers<[1], [0], [0], [1], [0, 0, 1, 1], [], []>} : vector<256x64xbf16>, vector<64x64xbf16>, vector<256x64xf32> -> vector<256x64xf32>
      %341 = arith.addf %335, %340 : vector<256x64xf32>
      %c25_246 = arith.constant 25 : index
      %c0_247 = arith.constant 0 : index
      %342 = vector.load %arg18[%c25_246, %c0_247] : memref<304x128xf32, #tpu.memory_space<vmem>>, vector<256x64xf32>
      %343 = vector.broadcast %38 : vector<256x1xf32> to vector<256x64xf32>
      %344 = arith.mulf %342, %343 : vector<256x64xf32>
      %345 = arith.truncf %344 : vector<256x64xf32> to vector<256x64xbf16>
      %c5_248 = arith.constant 5 : index
      %c0_249 = arith.constant 0 : index
      %c0_250 = arith.constant 0 : index
      %346 = vector.load %arg4[%c5_248, %c0_249, %c0_250] : memref<9x64x64xbf16, #tpu.memory_space<vmem>>, vector<1x64x64xbf16>
      %347 = vector.shape_cast %346 : vector<1x64x64xbf16> to vector<64x64xbf16>
      %cst_251 = arith.constant dense<0.000000e+00> : vector<256x64xf32>
      %348 = tpu.matmul %345, %347, %cst_251 {dimension_numbers = #tpu.dot_dimension_numbers<[1], [0], [0], [1], [0, 0, 1, 1], [], []>} : vector<256x64xbf16>, vector<64x64xbf16>, vector<256x64xf32> -> vector<256x64xf32>
      %349 = arith.addf %341, %348 : vector<256x64xf32>
      %c39_252 = arith.constant 39 : index
      %c0_253 = arith.constant 0 : index
      %350 = vector.load %arg18[%c39_252, %c0_253] : memref<304x128xf32, #tpu.memory_space<vmem>>, vector<256x64xf32>
      %351 = vector.broadcast %34 : vector<256x1xf32> to vector<256x64xf32>
      %352 = arith.mulf %350, %351 : vector<256x64xf32>
      %353 = arith.truncf %352 : vector<256x64xf32> to vector<256x64xbf16>
      %c6_254 = arith.constant 6 : index
      %c0_255 = arith.constant 0 : index
      %c0_256 = arith.constant 0 : index
      %354 = vector.load %arg4[%c6_254, %c0_255, %c0_256] : memref<9x64x64xbf16, #tpu.memory_space<vmem>>, vector<1x64x64xbf16>
      %355 = vector.shape_cast %354 : vector<1x64x64xbf16> to vector<64x64xbf16>
      %cst_257 = arith.constant dense<0.000000e+00> : vector<256x64xf32>
      %356 = tpu.matmul %353, %355, %cst_257 {dimension_numbers = #tpu.dot_dimension_numbers<[1], [0], [0], [1], [0, 0, 1, 1], [], []>} : vector<256x64xbf16>, vector<64x64xbf16>, vector<256x64xf32> -> vector<256x64xf32>
      %357 = arith.addf %349, %356 : vector<256x64xf32>
      %c40_258 = arith.constant 40 : index
      %c0_259 = arith.constant 0 : index
      %358 = vector.load %arg18[%c40_258, %c0_259] : memref<304x128xf32, #tpu.memory_space<vmem>>, vector<256x64xf32>
      %359 = arith.truncf %358 : vector<256x64xf32> to vector<256x64xbf16>
      %c7_260 = arith.constant 7 : index
      %c0_261 = arith.constant 0 : index
      %c0_262 = arith.constant 0 : index
      %360 = vector.load %arg4[%c7_260, %c0_261, %c0_262] : memref<9x64x64xbf16, #tpu.memory_space<vmem>>, vector<1x64x64xbf16>
      %361 = vector.shape_cast %360 : vector<1x64x64xbf16> to vector<64x64xbf16>
      %cst_263 = arith.constant dense<0.000000e+00> : vector<256x64xf32>
      %362 = tpu.matmul %359, %361, %cst_263 {dimension_numbers = #tpu.dot_dimension_numbers<[1], [0], [0], [1], [0, 0, 1, 1], [], []>} : vector<256x64xbf16>, vector<64x64xbf16>, vector<256x64xf32> -> vector<256x64xf32>
      %363 = arith.addf %357, %362 : vector<256x64xf32>
      %c41_264 = arith.constant 41 : index
      %c0_265 = arith.constant 0 : index
      %364 = vector.load %arg18[%c41_264, %c0_265] : memref<304x128xf32, #tpu.memory_space<vmem>>, vector<256x64xf32>
      %365 = vector.broadcast %38 : vector<256x1xf32> to vector<256x64xf32>
      %366 = arith.mulf %364, %365 : vector<256x64xf32>
      %367 = arith.truncf %366 : vector<256x64xf32> to vector<256x64xbf16>
      %c8_266 = arith.constant 8 : index
      %c0_267 = arith.constant 0 : index
      %c0_268 = arith.constant 0 : index
      %368 = vector.load %arg4[%c8_266, %c0_267, %c0_268] : memref<9x64x64xbf16, #tpu.memory_space<vmem>>, vector<1x64x64xbf16>
      %369 = vector.shape_cast %368 : vector<1x64x64xbf16> to vector<64x64xbf16>
      %cst_269 = arith.constant dense<0.000000e+00> : vector<256x64xf32>
      %370 = tpu.matmul %367, %369, %cst_269 {dimension_numbers = #tpu.dot_dimension_numbers<[1], [0], [0], [1], [0, 0, 1, 1], [], []>} : vector<256x64xbf16>, vector<64x64xbf16>, vector<256x64xf32> -> vector<256x64xf32>
      %371 = arith.addf %363, %370 : vector<256x64xf32>
      %c0_270 = arith.constant 0 : index
      %c0_271 = arith.constant 0 : index
      %372 = vector.load %arg5[%c0_270, %c0_271] : memref<1x64xf32, #tpu.memory_space<vmem>>, vector<1x64xf32>
      %373 = vector.broadcast %372 : vector<1x64xf32> to vector<256x64xf32>
      %374 = arith.addf %371, %373 : vector<256x64xf32>
      %cst_272 = arith.constant 0.000000e+00 : f32
      %375 = vector.broadcast %cst_272 : f32 to vector<256x64xf32>
      %376 = arith.maximumf %374, %375 : vector<256x64xf32>
      %c24_273 = arith.constant 24 : index
      %c0_274 = arith.constant 0 : index
      %377 = vector.load %arg18[%c24_273, %c0_274] : memref<304x128xf32, #tpu.memory_space<vmem>>, vector<256x64xf32>
      tpu.vector_store %arg18[%c24_273, %c0_274], %376 {strides = array<i32>} : memref<304x128xf32, #tpu.memory_space<vmem>>, vector<256x64xf32>,
    }
    %cst_19 = arith.constant 0.000000e+00 : f32
    %40 = vector.broadcast %cst_19 : f32 to vector<256x128xf32>
    %c7 = arith.constant 7 : index
    %c0_20 = arith.constant 0 : index
    %41 = vector.load %arg18[%c7, %c0_20] : memref<304x128xf32, #tpu.memory_space<vmem>>, vector<256x128xf32>
    %42 = vector.broadcast %34 : vector<256x1xf32> to vector<256x128xf32>
    %43 = arith.mulf %41, %42 : vector<256x128xf32>
    %44 = arith.truncf %43 : vector<256x128xf32> to vector<256x128xbf16>
    %c0_21 = arith.constant 0 : index
    %c0_22 = arith.constant 0 : index
    %c0_23 = arith.constant 0 : index
    %45 = vector.load %arg6[%c0_21, %c0_22, %c0_23] : memref<9x128x128xbf16, #tpu.memory_space<vmem>>, vector<1x128x128xbf16>
    %46 = vector.shape_cast %45 : vector<1x128x128xbf16> to vector<128x128xbf16>
    %cst_24 = arith.constant dense<0.000000e+00> : vector<256x128xf32>
    %47 = tpu.matmul %44, %46, %cst_24 {dimension_numbers = #tpu.dot_dimension_numbers<[1], [0], [0], [1], [0, 0, 1, 1], [], []>} : vector<256x128xbf16>, vector<128x128xbf16>, vector<256x128xf32> -> vector<256x128xf32>
    %48 = arith.addf %40, %47 : vector<256x128xf32>
    %c8 = arith.constant 8 : index
    %c0_25 = arith.constant 0 : index
    %49 = vector.load %arg18[%c8, %c0_25] : memref<304x128xf32, #tpu.memory_space<vmem>>, vector<256x128xf32>
    %50 = arith.truncf %49 : vector<256x128xf32> to vector<256x128xbf16>
    %c1 = arith.constant 1 : index
    %c0_26 = arith.constant 0 : index
    %c0_27 = arith.constant 0 : index
    %51 = vector.load %arg6[%c1, %c0_26, %c0_27] : memref<9x128x128xbf16, #tpu.memory_space<vmem>>, vector<1x128x128xbf16>
    %52 = vector.shape_cast %51 : vector<1x128x128xbf16> to vector<128x128xbf16>
    %cst_28 = arith.constant dense<0.000000e+00> : vector<256x128xf32>
    %53 = tpu.matmul %50, %52, %cst_28 {dimension_numbers = #tpu.dot_dimension_numbers<[1], [0], [0], [1], [0, 0, 1, 1], [], []>} : vector<256x128xbf16>, vector<128x128xbf16>, vector<256x128xf32> -> vector<256x128xf32>
    %54 = arith.addf %48, %53 : vector<256x128xf32>
    %c9 = arith.constant 9 : index
    %c0_29 = arith.constant 0 : index
    %55 = vector.load %arg18[%c9, %c0_29] : memref<304x128xf32, #tpu.memory_space<vmem>>, vector<256x128xf32>
    %56 = vector.broadcast %38 : vector<256x1xf32> to vector<256x128xf32>
    %57 = arith.mulf %55, %56 : vector<256x128xf32>
    %58 = arith.truncf %57 : vector<256x128xf32> to vector<256x128xbf16>
    %c2 = arith.constant 2 : index
    %c0_30 = arith.constant 0 : index
    %c0_31 = arith.constant 0 : index
    %59 = vector.load %arg6[%c2, %c0_30, %c0_31] : memref<9x128x128xbf16, #tpu.memory_space<vmem>>, vector<1x128x128xbf16>
    %60 = vector.shape_cast %59 : vector<1x128x128xbf16> to vector<128x128xbf16>
    %cst_32 = arith.constant dense<0.000000e+00> : vector<256x128xf32>
    %61 = tpu.matmul %58, %60, %cst_32 {dimension_numbers = #tpu.dot_dimension_numbers<[1], [0], [0], [1], [0, 0, 1, 1], [], []>} : vector<256x128xbf16>, vector<128x128xbf16>, vector<256x128xf32> -> vector<256x128xf32>
    %62 = arith.addf %54, %61 : vector<256x128xf32>
    %c23 = arith.constant 23 : index
    %c0_33 = arith.constant 0 : index
    %63 = vector.load %arg18[%c23, %c0_33] : memref<304x128xf32, #tpu.memory_space<vmem>>, vector<256x128xf32>
    %64 = vector.broadcast %34 : vector<256x1xf32> to vector<256x128xf32>
    %65 = arith.mulf %63, %64 : vector<256x128xf32>
    %66 = arith.truncf %65 : vector<256x128xf32> to vector<256x128xbf16>
    %c3 = arith.constant 3 : index
    %c0_34 = arith.constant 0 : index
    %c0_35 = arith.constant 0 : index
    %67 = vector.load %arg6[%c3, %c0_34, %c0_35] : memref<9x128x128xbf16, #tpu.memory_space<vmem>>, vector<1x128x128xbf16>
    %68 = vector.shape_cast %67 : vector<1x128x128xbf16> to vector<128x128xbf16>
    %cst_36 = arith.constant dense<0.000000e+00> : vector<256x128xf32>
    %69 = tpu.matmul %66, %68, %cst_36 {dimension_numbers = #tpu.dot_dimension_numbers<[1], [0], [0], [1], [0, 0, 1, 1], [], []>} : vector<256x128xbf16>, vector<128x128xbf16>, vector<256x128xf32> -> vector<256x128xf32>
    %70 = arith.addf %62, %69 : vector<256x128xf32>
    %c24_37 = arith.constant 24 : index
    %c0_38 = arith.constant 0 : index
    %71 = vector.load %arg18[%c24_37, %c0_38] : memref<304x128xf32, #tpu.memory_space<vmem>>, vector<256x128xf32>
    %72 = arith.truncf %71 : vector<256x128xf32> to vector<256x128xbf16>
    %c4 = arith.constant 4 : index
    %c0_39 = arith.constant 0 : index
    %c0_40 = arith.constant 0 : index
    %73 = vector.load %arg6[%c4, %c0_39, %c0_40] : memref<9x128x128xbf16, #tpu.memory_space<vmem>>, vector<1x128x128xbf16>
    %74 = vector.shape_cast %73 : vector<1x128x128xbf16> to vector<128x128xbf16>
    %cst_41 = arith.constant dense<0.000000e+00> : vector<256x128xf32>
    %75 = tpu.matmul %72, %74, %cst_41 {dimension_numbers = #tpu.dot_dimension_numbers<[1], [0], [0], [1], [0, 0, 1, 1], [], []>} : vector<256x128xbf16>, vector<128x128xbf16>, vector<256x128xf32> -> vector<256x128xf32>
    %76 = arith.addf %70, %75 : vector<256x128xf32>
    %c25 = arith.constant 25 : index
    %c0_42 = arith.constant 0 : index
    %77 = vector.load %arg18[%c25, %c0_42] : memref<304x128xf32, #tpu.memory_space<vmem>>, vector<256x128xf32>
    %78 = vector.broadcast %38 : vector<256x1xf32> to vector<256x128xf32>
    %79 = arith.mulf %77, %78 : vector<256x128xf32>
    %80 = arith.truncf %79 : vector<256x128xf32> to vector<256x128xbf16>
    %c5 = arith.constant 5 : index
    %c0_43 = arith.constant 0 : index
    %c0_44 = arith.constant 0 : index
    %81 = vector.load %arg6[%c5, %c0_43, %c0_44] : memref<9x128x128xbf16, #tpu.memory_space<vmem>>, vector<1x128x128xbf16>
    %82 = vector.shape_cast %81 : vector<1x128x128xbf16> to vector<128x128xbf16>
    %cst_45 = arith.constant dense<0.000000e+00> : vector<256x128xf32>
    %83 = tpu.matmul %80, %82, %cst_45 {dimension_numbers = #tpu.dot_dimension_numbers<[1], [0], [0], [1], [0, 0, 1, 1], [], []>} : vector<256x128xbf16>, vector<128x128xbf16>, vector<256x128xf32> -> vector<256x128xf32>
    %84 = arith.addf %76, %83 : vector<256x128xf32>
    %c39 = arith.constant 39 : index
    %c0_46 = arith.constant 0 : index
    %85 = vector.load %arg18[%c39, %c0_46] : memref<304x128xf32, #tpu.memory_space<vmem>>, vector<256x128xf32>
    %86 = vector.broadcast %34 : vector<256x1xf32> to vector<256x128xf32>
    %87 = arith.mulf %85, %86 : vector<256x128xf32>
    %88 = arith.truncf %87 : vector<256x128xf32> to vector<256x128xbf16>
    %c6 = arith.constant 6 : index
    %c0_47 = arith.constant 0 : index
    %c0_48 = arith.constant 0 : index
    %89 = vector.load %arg6[%c6, %c0_47, %c0_48] : memref<9x128x128xbf16, #tpu.memory_space<vmem>>, vector<1x128x128xbf16>
    %90 = vector.shape_cast %89 : vector<1x128x128xbf16> to vector<128x128xbf16>
    %cst_49 = arith.constant dense<0.000000e+00> : vector<256x128xf32>
    %91 = tpu.matmul %88, %90, %cst_49 {dimension_numbers = #tpu.dot_dimension_numbers<[1], [0], [0], [1], [0, 0, 1, 1], [], []>} : vector<256x128xbf16>, vector<128x128xbf16>, vector<256x128xf32> -> vector<256x128xf32>
    %92 = arith.addf %84, %91 : vector<256x128xf32>
    %c40 = arith.constant 40 : index
    %c0_50 = arith.constant 0 : index
    %93 = vector.load %arg18[%c40, %c0_50] : memref<304x128xf32, #tpu.memory_space<vmem>>, vector<256x128xf32>
    %94 = arith.truncf %93 : vector<256x128xf32> to vector<256x128xbf16>
    %c7_51 = arith.constant 7 : index
    %c0_52 = arith.constant 0 : index
    %c0_53 = arith.constant 0 : index
    %95 = vector.load %arg6[%c7_51, %c0_52, %c0_53] : memref<9x128x128xbf16, #tpu.memory_space<vmem>>, vector<1x128x128xbf16>
    %96 = vector.shape_cast %95 : vector<1x128x128xbf16> to vector<128x128xbf16>
    %cst_54 = arith.constant dense<0.000000e+00> : vector<256x128xf32>
    %97 = tpu.matmul %94, %96, %cst_54 {dimension_numbers = #tpu.dot_dimension_numbers<[1], [0], [0], [1], [0, 0, 1, 1], [], []>} : vector<256x128xbf16>, vector<128x128xbf16>, vector<256x128xf32> -> vector<256x128xf32>
    %98 = arith.addf %92, %97 : vector<256x128xf32>
    %c41 = arith.constant 41 : index
    %c0_55 = arith.constant 0 : index
    %99 = vector.load %arg18[%c41, %c0_55] : memref<304x128xf32, #tpu.memory_space<vmem>>, vector<256x128xf32>
    %100 = vector.broadcast %38 : vector<256x1xf32> to vector<256x128xf32>
    %101 = arith.mulf %99, %100 : vector<256x128xf32>
    %102 = arith.truncf %101 : vector<256x128xf32> to vector<256x128xbf16>
    %c8_56 = arith.constant 8 : index
    %c0_57 = arith.constant 0 : index
    %c0_58 = arith.constant 0 : index
    %103 = vector.load %arg6[%c8_56, %c0_57, %c0_58] : memref<9x128x128xbf16, #tpu.memory_space<vmem>>, vector<1x128x128xbf16>
    %104 = vector.shape_cast %103 : vector<1x128x128xbf16> to vector<128x128xbf16>
    %cst_59 = arith.constant dense<0.000000e+00> : vector<256x128xf32>
    %105 = tpu.matmul %102, %104, %cst_59 {dimension_numbers = #tpu.dot_dimension_numbers<[1], [0], [0], [1], [0, 0, 1, 1], [], []>} : vector<256x128xbf16>, vector<128x128xbf16>, vector<256x128xf32> -> vector<256x128xf32>
    %106 = arith.addf %98, %105 : vector<256x128xf32>
    %c0_60 = arith.constant 0 : index
    %c0_61 = arith.constant 0 : index
    %107 = vector.load %arg7[%c0_60, %c0_61] : memref<1x128xf32, #tpu.memory_space<vmem>>, vector<1x128xf32>
    %108 = vector.broadcast %107 : vector<1x128xf32> to vector<256x128xf32>
    %109 = arith.addf %106, %108 : vector<256x128xf32>
    %c0_62 = arith.constant 0 : index
    %c0_63 = arith.constant 0 : index
    %c0_64 = arith.constant 0 : index
    %110 = vector.load %arg17[%c0_62, %c0_63, %c0_64] : memref<1x256x128xf32, #tpu.memory_space<vmem>>, vector<1x256x128xf32>
    %111 = vector.shape_cast %110 : vector<1x256x128xf32> to vector<256x128xf32>
    %112 = vector.shape_cast %109 : vector<256x128xf32> to vector<1x256x128xf32>
    tpu.vector_store %arg17[%c0_62, %c0_63, %c0_64], %112 {strides = array<i32>} : memref<1x256x128xf32, #tpu.memory_space<vmem>>, vector<1x256x128xf32>,
    %113 = vector.extract_strided_slice %109 {offsets = [0, 0], sizes = [256, 64], strides = [1, 1]} : vector<256x128xf32> to vector<256x64xf32>
    %cst_65 = arith.constant 0.000000e+00 : f32
    %114 = vector.broadcast %cst_65 : f32 to vector<256x64xf32>
    %115 = arith.maximumf %113, %114 : vector<256x64xf32>
    %c0_66 = arith.constant 0 : index
    %c0_67 = arith.constant 0 : index
    %c0_68 = arith.constant 0 : index
    %116 = vector.load %arg12[%c0_66, %c0_67, %c0_68] : memref<4x64x256xf32, #tpu.memory_space<vmem>>, vector<1x64x256xf32>
    %117 = vector.shape_cast %116 : vector<1x64x256xf32> to vector<64x256xf32>
    %118 = arith.truncf %117 : vector<64x256xf32> to vector<64x256xbf16>
    %119 = arith.truncf %115 : vector<256x64xf32> to vector<256x64xbf16>
    %cst_69 = arith.constant dense<0.000000e+00> : vector<64x64xf32>
    %120 = tpu.matmul %118, %119, %cst_69 {dimension_numbers = #tpu.dot_dimension_numbers<[1], [0], [0], [1], [0, 0, 1, 1], [], []>} : vector<64x256xbf16>, vector<256x64xbf16>, vector<64x64xf32> -> vector<64x64xf32>
    %121 = arith.truncf %120 : vector<64x64xf32> to vector<64x64xbf16>
    %c0_70 = arith.constant 0 : index
    %c0_71 = arith.constant 0 : index
    %c0_72 = arith.constant 0 : index
    %122 = vector.load %arg8[%c0_70, %c0_71, %c0_72] : memref<4x64x64xbf16, #tpu.memory_space<vmem>>, vector<1x64x64xbf16>
    %123 = vector.shape_cast %122 : vector<1x64x64xbf16> to vector<64x64xbf16>
    %cst_73 = arith.constant dense<0.000000e+00> : vector<64x64xf32>
    %124 = tpu.matmul %121, %123, %cst_73 {dimension_numbers = #tpu.dot_dimension_numbers<[1], [0], [0], [1], [0, 0, 1, 1], [], []>} : vector<64x64xbf16>, vector<64x64xbf16>, vector<64x64xf32> -> vector<64x64xf32>
    %c1_74 = arith.constant 1 : index
    %c0_75 = arith.constant 0 : index
    %c0_76 = arith.constant 0 : index
    %125 = vector.load %arg12[%c1_74, %c0_75, %c0_76] : memref<4x64x256xf32, #tpu.memory_space<vmem>>, vector<1x64x256xf32>
    %126 = vector.shape_cast %125 : vector<1x64x256xf32> to vector<64x256xf32>
    %127 = arith.truncf %126 : vector<64x256xf32> to vector<64x256xbf16>
    %128 = arith.truncf %115 : vector<256x64xf32> to vector<256x64xbf16>
    %cst_77 = arith.constant dense<0.000000e+00> : vector<64x64xf32>
    %129 = tpu.matmul %127, %128, %cst_77 {dimension_numbers = #tpu.dot_dimension_numbers<[1], [0], [0], [1], [0, 0, 1, 1], [], []>} : vector<64x256xbf16>, vector<256x64xbf16>, vector<64x64xf32> -> vector<64x64xf32>
    %130 = arith.truncf %129 : vector<64x64xf32> to vector<64x64xbf16>
    %c1_78 = arith.constant 1 : index
    %c0_79 = arith.constant 0 : index
    %c0_80 = arith.constant 0 : index
    %131 = vector.load %arg8[%c1_78, %c0_79, %c0_80] : memref<4x64x64xbf16, #tpu.memory_space<vmem>>, vector<1x64x64xbf16>
    %132 = vector.shape_cast %131 : vector<1x64x64xbf16> to vector<64x64xbf16>
    %cst_81 = arith.constant dense<0.000000e+00> : vector<64x64xf32>
    %133 = tpu.matmul %130, %132, %cst_81 {dimension_numbers = #tpu.dot_dimension_numbers<[1], [0], [0], [1], [0, 0, 1, 1], [], []>} : vector<64x64xbf16>, vector<64x64xbf16>, vector<64x64xf32> -> vector<64x64xf32>
    %134 = arith.addf %124, %133 : vector<64x64xf32>
    %c2_82 = arith.constant 2 : index
    %c0_83 = arith.constant 0 : index
    %c0_84 = arith.constant 0 : index
    %135 = vector.load %arg12[%c2_82, %c0_83, %c0_84] : memref<4x64x256xf32, #tpu.memory_space<vmem>>, vector<1x64x256xf32>
    %136 = vector.shape_cast %135 : vector<1x64x256xf32> to vector<64x256xf32>
    %137 = arith.truncf %136 : vector<64x256xf32> to vector<64x256xbf16>
    %138 = arith.truncf %115 : vector<256x64xf32> to vector<256x64xbf16>
    %cst_85 = arith.constant dense<0.000000e+00> : vector<64x64xf32>
    %139 = tpu.matmul %137, %138, %cst_85 {dimension_numbers = #tpu.dot_dimension_numbers<[1], [0], [0], [1], [0, 0, 1, 1], [], []>} : vector<64x256xbf16>, vector<256x64xbf16>, vector<64x64xf32> -> vector<64x64xf32>
    %140 = arith.truncf %139 : vector<64x64xf32> to vector<64x64xbf16>
    %c2_86 = arith.constant 2 : index
    %c0_87 = arith.constant 0 : index
    %c0_88 = arith.constant 0 : index
    %141 = vector.load %arg8[%c2_86, %c0_87, %c0_88] : memref<4x64x64xbf16, #tpu.memory_space<vmem>>, vector<1x64x64xbf16>
    %142 = vector.shape_cast %141 : vector<1x64x64xbf16> to vector<64x64xbf16>
    %cst_89 = arith.constant dense<0.000000e+00> : vector<64x64xf32>
    %143 = tpu.matmul %140, %142, %cst_89 {dimension_numbers = #tpu.dot_dimension_numbers<[1], [0], [0], [1], [0, 0, 1, 1], [], []>} : vector<64x64xbf16>, vector<64x64xbf16>, vector<64x64xf32> -> vector<64x64xf32>
    %144 = arith.addf %134, %143 : vector<64x64xf32>
    %c3_90 = arith.constant 3 : index
    %c0_91 = arith.constant 0 : index
    %c0_92 = arith.constant 0 : index
    %145 = vector.load %arg12[%c3_90, %c0_91, %c0_92] : memref<4x64x256xf32, #tpu.memory_space<vmem>>, vector<1x64x256xf32>
    %146 = vector.shape_cast %145 : vector<1x64x256xf32> to vector<64x256xf32>
    %147 = arith.truncf %146 : vector<64x256xf32> to vector<64x256xbf16>
    %148 = arith.truncf %115 : vector<256x64xf32> to vector<256x64xbf16>
    %cst_93 = arith.constant dense<0.000000e+00> : vector<64x64xf32>
    %149 = tpu.matmul %147, %148, %cst_93 {dimension_numbers = #tpu.dot_dimension_numbers<[1], [0], [0], [1], [0, 0, 1, 1], [], []>} : vector<64x256xbf16>, vector<256x64xbf16>, vector<64x64xf32> -> vector<64x64xf32>
    %150 = arith.truncf %149 : vector<64x64xf32> to vector<64x64xbf16>
    %c3_94 = arith.constant 3 : index
    %c0_95 = arith.constant 0 : index
    %c0_96 = arith.constant 0 : index
    %151 = vector.load %arg8[%c3_94, %c0_95, %c0_96] : memref<4x64x64xbf16, #tpu.memory_space<vmem>>, vector<1x64x64xbf16>
    %152 = vector.shape_cast %151 : vector<1x64x64xbf16> to vector<64x64xbf16>
    %cst_97 = arith.constant dense<0.000000e+00> : vector<64x64xf32>
    %153 = tpu.matmul %150, %152, %cst_97 {dimension_numbers = #tpu.dot_dimension_numbers<[1], [0], [0], [1], [0, 0, 1, 1], [], []>} : vector<64x64xbf16>, vector<64x64xbf16>, vector<64x64xf32> -> vector<64x64xf32>
    %154 = arith.addf %144, %153 : vector<64x64xf32>
    %c0_98 = arith.constant 0 : index
    %c0_99 = arith.constant 0 : index
    %155 = vector.load %arg9[%c0_98, %c0_99] : memref<1x64xf32, #tpu.memory_space<vmem>>, vector<1x64xf32>
    %156 = vector.broadcast %155 : vector<1x64xf32> to vector<64x64xf32>
    %157 = arith.addf %154, %156 : vector<64x64xf32>
    %cst_100 = arith.constant 0.000000e+00 : f32
    %158 = vector.broadcast %cst_100 : f32 to vector<64x64xf32>
    %159 = arith.maximumf %157, %158 : vector<64x64xf32>
    %c0_101 = arith.constant 0 : index
    %c0_102 = arith.constant 0 : index
    %c0_103 = arith.constant 0 : index
    %160 = vector.load %arg13[%c0_101, %c0_102, %c0_103] : memref<4x16x64xf32, #tpu.memory_space<vmem>>, vector<1x16x64xf32>
    %161 = vector.shape_cast %160 : vector<1x16x64xf32> to vector<16x64xf32>
    %162 = arith.truncf %161 : vector<16x64xf32> to vector<16x64xbf16>
    %163 = arith.truncf %159 : vector<64x64xf32> to vector<64x64xbf16>
    %cst_104 = arith.constant dense<0.000000e+00> : vector<16x64xf32>
    %164 = tpu.matmul %162, %163, %cst_104 {dimension_numbers = #tpu.dot_dimension_numbers<[1], [0], [0], [1], [0, 0, 1, 1], [], []>} : vector<16x64xbf16>, vector<64x64xbf16>, vector<16x64xf32> -> vector<16x64xf32>
    %165 = arith.truncf %164 : vector<16x64xf32> to vector<16x64xbf16>
    %c0_105 = arith.constant 0 : index
    %c0_106 = arith.constant 0 : index
    %c0_107 = arith.constant 0 : index
    %166 = vector.load %arg8[%c0_105, %c0_106, %c0_107] : memref<4x64x64xbf16, #tpu.memory_space<vmem>>, vector<1x64x64xbf16>
    %167 = vector.shape_cast %166 : vector<1x64x64xbf16> to vector<64x64xbf16>
    %cst_108 = arith.constant dense<0.000000e+00> : vector<16x64xf32>
    %168 = tpu.matmul %165, %167, %cst_108 {dimension_numbers = #tpu.dot_dimension_numbers<[1], [0], [0], [1], [0, 0, 1, 1], [], []>} : vector<16x64xbf16>, vector<64x64xbf16>, vector<16x64xf32> -> vector<16x64xf32>
    %c1_109 = arith.constant 1 : index
    %c0_110 = arith.constant 0 : index
    %c0_111 = arith.constant 0 : index
    %169 = vector.load %arg13[%c1_109, %c0_110, %c0_111] : memref<4x16x64xf32, #tpu.memory_space<vmem>>, vector<1x16x64xf32>
    %170 = vector.shape_cast %169 : vector<1x16x64xf32> to vector<16x64xf32>
    %171 = arith.truncf %170 : vector<16x64xf32> to vector<16x64xbf16>
    %172 = arith.truncf %159 : vector<64x64xf32> to vector<64x64xbf16>
    %cst_112 = arith.constant dense<0.000000e+00> : vector<16x64xf32>
    %173 = tpu.matmul %171, %172, %cst_112 {dimension_numbers = #tpu.dot_dimension_numbers<[1], [0], [0], [1], [0, 0, 1, 1], [], []>} : vector<16x64xbf16>, vector<64x64xbf16>, vector<16x64xf32> -> vector<16x64xf32>
    %174 = arith.truncf %173 : vector<16x64xf32> to vector<16x64xbf16>
    %c1_113 = arith.constant 1 : index
    %c0_114 = arith.constant 0 : index
    %c0_115 = arith.constant 0 : index
    %175 = vector.load %arg8[%c1_113, %c0_114, %c0_115] : memref<4x64x64xbf16, #tpu.memory_space<vmem>>, vector<1x64x64xbf16>
    %176 = vector.shape_cast %175 : vector<1x64x64xbf16> to vector<64x64xbf16>
    %cst_116 = arith.constant dense<0.000000e+00> : vector<16x64xf32>
    %177 = tpu.matmul %174, %176, %cst_116 {dimension_numbers = #tpu.dot_dimension_numbers<[1], [0], [0], [1], [0, 0, 1, 1], [], []>} : vector<16x64xbf16>, vector<64x64xbf16>, vector<16x64xf32> -> vector<16x64xf32>
    %178 = arith.addf %168, %177 : vector<16x64xf32>
    %c2_117 = arith.constant 2 : index
    %c0_118 = arith.constant 0 : index
    %c0_119 = arith.constant 0 : index
    %179 = vector.load %arg13[%c2_117, %c0_118, %c0_119] : memref<4x16x64xf32, #tpu.memory_space<vmem>>, vector<1x16x64xf32>
    %180 = vector.shape_cast %179 : vector<1x16x64xf32> to vector<16x64xf32>
    %181 = arith.truncf %180 : vector<16x64xf32> to vector<16x64xbf16>
    %182 = arith.truncf %159 : vector<64x64xf32> to vector<64x64xbf16>
    %cst_120 = arith.constant dense<0.000000e+00> : vector<16x64xf32>
    %183 = tpu.matmul %181, %182, %cst_120 {dimension_numbers = #tpu.dot_dimension_numbers<[1], [0], [0], [1], [0, 0, 1, 1], [], []>} : vector<16x64xbf16>, vector<64x64xbf16>, vector<16x64xf32> -> vector<16x64xf32>
    %184 = arith.truncf %183 : vector<16x64xf32> to vector<16x64xbf16>
    %c2_121 = arith.constant 2 : index
    %c0_122 = arith.constant 0 : index
    %c0_123 = arith.constant 0 : index
    %185 = vector.load %arg8[%c2_121, %c0_122, %c0_123] : memref<4x64x64xbf16, #tpu.memory_space<vmem>>, vector<1x64x64xbf16>
    %186 = vector.shape_cast %185 : vector<1x64x64xbf16> to vector<64x64xbf16>
    %cst_124 = arith.constant dense<0.000000e+00> : vector<16x64xf32>
    %187 = tpu.matmul %184, %186, %cst_124 {dimension_numbers = #tpu.dot_dimension_numbers<[1], [0], [0], [1], [0, 0, 1, 1], [], []>} : vector<16x64xbf16>, vector<64x64xbf16>, vector<16x64xf32> -> vector<16x64xf32>
    %188 = arith.addf %178, %187 : vector<16x64xf32>
    %c3_125 = arith.constant 3 : index
    %c0_126 = arith.constant 0 : index
    %c0_127 = arith.constant 0 : index
    %189 = vector.load %arg13[%c3_125, %c0_126, %c0_127] : memref<4x16x64xf32, #tpu.memory_space<vmem>>, vector<1x16x64xf32>
    %190 = vector.shape_cast %189 : vector<1x16x64xf32> to vector<16x64xf32>
    %191 = arith.truncf %190 : vector<16x64xf32> to vector<16x64xbf16>
    %192 = arith.truncf %159 : vector<64x64xf32> to vector<64x64xbf16>
    %cst_128 = arith.constant dense<0.000000e+00> : vector<16x64xf32>
    %193 = tpu.matmul %191, %192, %cst_128 {dimension_numbers = #tpu.dot_dimension_numbers<[1], [0], [0], [1], [0, 0, 1, 1], [], []>} : vector<16x64xbf16>, vector<64x64xbf16>, vector<16x64xf32> -> vector<16x64xf32>
    %194 = arith.truncf %193 : vector<16x64xf32> to vector<16x64xbf16>
    %c3_129 = arith.constant 3 : index
    %c0_130 = arith.constant 0 : index
    %c0_131 = arith.constant 0 : index
    %195 = vector.load %arg8[%c3_129, %c0_130, %c0_131] : memref<4x64x64xbf16, #tpu.memory_space<vmem>>, vector<1x64x64xbf16>
    %196 = vector.shape_cast %195 : vector<1x64x64xbf16> to vector<64x64xbf16>
    %cst_132 = arith.constant dense<0.000000e+00> : vector<16x64xf32>
    %197 = tpu.matmul %194, %196, %cst_132 {dimension_numbers = #tpu.dot_dimension_numbers<[1], [0], [0], [1], [0, 0, 1, 1], [], []>} : vector<16x64xbf16>, vector<64x64xbf16>, vector<16x64xf32> -> vector<16x64xf32>
    %198 = arith.addf %188, %197 : vector<16x64xf32>
    %c0_133 = arith.constant 0 : index
    %c0_134 = arith.constant 0 : index
    %199 = vector.load %arg9[%c0_133, %c0_134] : memref<1x64xf32, #tpu.memory_space<vmem>>, vector<1x64xf32>
    %200 = vector.broadcast %199 : vector<1x64xf32> to vector<16x64xf32>
    %201 = arith.addf %198, %200 : vector<16x64xf32>
    %cst_135 = arith.constant 0.000000e+00 : f32
    %202 = vector.broadcast %cst_135 : f32 to vector<16x64xf32>
    %203 = arith.maximumf %201, %202 : vector<16x64xf32>
    %c0_136 = arith.constant 0 : index
    %c0_137 = arith.constant 0 : index
    %c0_138 = arith.constant 0 : index
    %204 = vector.load %arg14[%c0_136, %c0_137, %c0_138] : memref<4x8x16xf32, #tpu.memory_space<vmem>>, vector<1x8x16xf32>
    %205 = vector.shape_cast %204 : vector<1x8x16xf32> to vector<8x16xf32>
    %206 = arith.truncf %205 : vector<8x16xf32> to vector<8x16xbf16>
    %207 = arith.truncf %203 : vector<16x64xf32> to vector<16x64xbf16>
    %cst_139 = arith.constant dense<0.000000e+00> : vector<8x64xf32>
    %208 = tpu.matmul %206, %207, %cst_139 {dimension_numbers = #tpu.dot_dimension_numbers<[1], [0], [0], [1], [0, 0, 1, 1], [], []>} : vector<8x16xbf16>, vector<16x64xbf16>, vector<8x64xf32> -> vector<8x64xf32>
    %209 = arith.truncf %208 : vector<8x64xf32> to vector<8x64xbf16>
    %c0_140 = arith.constant 0 : index
    %c0_141 = arith.constant 0 : index
    %c0_142 = arith.constant 0 : index
    %210 = vector.load %arg8[%c0_140, %c0_141, %c0_142] : memref<4x64x64xbf16, #tpu.memory_space<vmem>>, vector<1x64x64xbf16>
    %211 = vector.shape_cast %210 : vector<1x64x64xbf16> to vector<64x64xbf16>
    %cst_143 = arith.constant dense<0.000000e+00> : vector<8x64xf32>
    %212 = tpu.matmul %209, %211, %cst_143 {dimension_numbers = #tpu.dot_dimension_numbers<[1], [0], [0], [1], [0, 0, 1, 1], [], []>} : vector<8x64xbf16>, vector<64x64xbf16>, vector<8x64xf32> -> vector<8x64xf32>
    %c1_144 = arith.constant 1 : index
    %c0_145 = arith.constant 0 : index
    %c0_146 = arith.constant 0 : index
    %213 = vector.load %arg14[%c1_144, %c0_145, %c0_146] : memref<4x8x16xf32, #tpu.memory_space<vmem>>, vector<1x8x16xf32>
    %214 = vector.shape_cast %213 : vector<1x8x16xf32> to vector<8x16xf32>
    %215 = arith.truncf %214 : vector<8x16xf32> to vector<8x16xbf16>
    %216 = arith.truncf %203 : vector<16x64xf32> to vector<16x64xbf16>
    %cst_147 = arith.constant dense<0.000000e+00> : vector<8x64xf32>
    %217 = tpu.matmul %215, %216, %cst_147 {dimension_numbers = #tpu.dot_dimension_numbers<[1], [0], [0], [1], [0, 0, 1, 1], [], []>} : vector<8x16xbf16>, vector<16x64xbf16>, vector<8x64xf32> -> vector<8x64xf32>
    %218 = arith.truncf %217 : vector<8x64xf32> to vector<8x64xbf16>
    %c1_148 = arith.constant 1 : index
    %c0_149 = arith.constant 0 : index
    %c0_150 = arith.constant 0 : index
    %219 = vector.load %arg8[%c1_148, %c0_149, %c0_150] : memref<4x64x64xbf16, #tpu.memory_space<vmem>>, vector<1x64x64xbf16>
    %220 = vector.shape_cast %219 : vector<1x64x64xbf16> to vector<64x64xbf16>
    %cst_151 = arith.constant dense<0.000000e+00> : vector<8x64xf32>
    %221 = tpu.matmul %218, %220, %cst_151 {dimension_numbers = #tpu.dot_dimension_numbers<[1], [0], [0], [1], [0, 0, 1, 1], [], []>} : vector<8x64xbf16>, vector<64x64xbf16>, vector<8x64xf32> -> vector<8x64xf32>
    %222 = arith.addf %212, %221 : vector<8x64xf32>
    %c2_152 = arith.constant 2 : index
    %c0_153 = arith.constant 0 : index
    %c0_154 = arith.constant 0 : index
    %223 = vector.load %arg14[%c2_152, %c0_153, %c0_154] : memref<4x8x16xf32, #tpu.memory_space<vmem>>, vector<1x8x16xf32>
    %224 = vector.shape_cast %223 : vector<1x8x16xf32> to vector<8x16xf32>
    %225 = arith.truncf %224 : vector<8x16xf32> to vector<8x16xbf16>
    %226 = arith.truncf %203 : vector<16x64xf32> to vector<16x64xbf16>
    %cst_155 = arith.constant dense<0.000000e+00> : vector<8x64xf32>
    %227 = tpu.matmul %225, %226, %cst_155 {dimension_numbers = #tpu.dot_dimension_numbers<[1], [0], [0], [1], [0, 0, 1, 1], [], []>} : vector<8x16xbf16>, vector<16x64xbf16>, vector<8x64xf32> -> vector<8x64xf32>
    %228 = arith.truncf %227 : vector<8x64xf32> to vector<8x64xbf16>
    %c2_156 = arith.constant 2 : index
    %c0_157 = arith.constant 0 : index
    %c0_158 = arith.constant 0 : index
    %229 = vector.load %arg8[%c2_156, %c0_157, %c0_158] : memref<4x64x64xbf16, #tpu.memory_space<vmem>>, vector<1x64x64xbf16>
    %230 = vector.shape_cast %229 : vector<1x64x64xbf16> to vector<64x64xbf16>
    %cst_159 = arith.constant dense<0.000000e+00> : vector<8x64xf32>
    %231 = tpu.matmul %228, %230, %cst_159 {dimension_numbers = #tpu.dot_dimension_numbers<[1], [0], [0], [1], [0, 0, 1, 1], [], []>} : vector<8x64xbf16>, vector<64x64xbf16>, vector<8x64xf32> -> vector<8x64xf32>
    %232 = arith.addf %222, %231 : vector<8x64xf32>
    %c3_160 = arith.constant 3 : index
    %c0_161 = arith.constant 0 : index
    %c0_162 = arith.constant 0 : index
    %233 = vector.load %arg14[%c3_160, %c0_161, %c0_162] : memref<4x8x16xf32, #tpu.memory_space<vmem>>, vector<1x8x16xf32>
    %234 = vector.shape_cast %233 : vector<1x8x16xf32> to vector<8x16xf32>
    %235 = arith.truncf %234 : vector<8x16xf32> to vector<8x16xbf16>
    %236 = arith.truncf %203 : vector<16x64xf32> to vector<16x64xbf16>
    %cst_163 = arith.constant dense<0.000000e+00> : vector<8x64xf32>
    %237 = tpu.matmul %235, %236, %cst_163 {dimension_numbers = #tpu.dot_dimension_numbers<[1], [0], [0], [1], [0, 0, 1, 1], [], []>} : vector<8x16xbf16>, vector<16x64xbf16>, vector<8x64xf32> -> vector<8x64xf32>
    %238 = arith.truncf %237 : vector<8x64xf32> to vector<8x64xbf16>
    %c3_164 = arith.constant 3 : index
    %c0_165 = arith.constant 0 : index
    %c0_166 = arith.constant 0 : index
    %239 = vector.load %arg8[%c3_164, %c0_165, %c0_166] : memref<4x64x64xbf16, #tpu.memory_space<vmem>>, vector<1x64x64xbf16>
    %240 = vector.shape_cast %239 : vector<1x64x64xbf16> to vector<64x64xbf16>
    %cst_167 = arith.constant dense<0.000000e+00> : vector<8x64xf32>
    %241 = tpu.matmul %238, %240, %cst_167 {dimension_numbers = #tpu.dot_dimension_numbers<[1], [0], [0], [1], [0, 0, 1, 1], [], []>} : vector<8x64xbf16>, vector<64x64xbf16>, vector<8x64xf32> -> vector<8x64xf32>
    %242 = arith.addf %232, %241 : vector<8x64xf32>
    %c0_168 = arith.constant 0 : index
    %c0_169 = arith.constant 0 : index
    %243 = vector.load %arg9[%c0_168, %c0_169] : memref<1x64xf32, #tpu.memory_space<vmem>>, vector<1x64xf32>
    %244 = vector.broadcast %243 : vector<1x64xf32> to vector<8x64xf32>
    %245 = arith.addf %242, %244 : vector<8x64xf32>
    %cst_170 = arith.constant 0.000000e+00 : f32
    %246 = vector.broadcast %cst_170 : f32 to vector<8x64xf32>
    %247 = arith.maximumf %245, %246 : vector<8x64xf32>
    %c0_171 = arith.constant 0 : index
    %c0_172 = arith.constant 0 : index
    %c0_173 = arith.constant 0 : index
    %248 = vector.load %arg15[%c0_171, %c0_172, %c0_173] : memref<4x8x8xf32, #tpu.memory_space<vmem>>, vector<1x8x8xf32>
    %249 = vector.shape_cast %248 : vector<1x8x8xf32> to vector<8x8xf32>
    %250 = arith.truncf %249 : vector<8x8xf32> to vector<8x8xbf16>
    %251 = arith.truncf %247 : vector<8x64xf32> to vector<8x64xbf16>
    %cst_174 = arith.constant dense<0.000000e+00> : vector<8x64xf32>
    %252 = tpu.matmul %250, %251, %cst_174 {dimension_numbers = #tpu.dot_dimension_numbers<[1], [0], [0], [1], [0, 0, 1, 1], [], []>} : vector<8x8xbf16>, vector<8x64xbf16>, vector<8x64xf32> -> vector<8x64xf32>
    %253 = arith.truncf %252 : vector<8x64xf32> to vector<8x64xbf16>
    %c0_175 = arith.constant 0 : index
    %c0_176 = arith.constant 0 : index
    %c0_177 = arith.constant 0 : index
    %254 = vector.load %arg8[%c0_175, %c0_176, %c0_177] : memref<4x64x64xbf16, #tpu.memory_space<vmem>>, vector<1x64x64xbf16>
    %255 = vector.shape_cast %254 : vector<1x64x64xbf16> to vector<64x64xbf16>
    %cst_178 = arith.constant dense<0.000000e+00> : vector<8x64xf32>
    %256 = tpu.matmul %253, %255, %cst_178 {dimension_numbers = #tpu.dot_dimension_numbers<[1], [0], [0], [1], [0, 0, 1, 1], [], []>} : vector<8x64xbf16>, vector<64x64xbf16>, vector<8x64xf32> -> vector<8x64xf32>
    %c1_179 = arith.constant 1 : index
    %c0_180 = arith.constant 0 : index
    %c0_181 = arith.constant 0 : index
    %257 = vector.load %arg15[%c1_179, %c0_180, %c0_181] : memref<4x8x8xf32, #tpu.memory_space<vmem>>, vector<1x8x8xf32>
    %258 = vector.shape_cast %257 : vector<1x8x8xf32> to vector<8x8xf32>
    %259 = arith.truncf %258 : vector<8x8xf32> to vector<8x8xbf16>
    %260 = arith.truncf %247 : vector<8x64xf32> to vector<8x64xbf16>
    %cst_182 = arith.constant dense<0.000000e+00> : vector<8x64xf32>
    %261 = tpu.matmul %259, %260, %cst_182 {dimension_numbers = #tpu.dot_dimension_numbers<[1], [0], [0], [1], [0, 0, 1, 1], [], []>} : vector<8x8xbf16>, vector<8x64xbf16>, vector<8x64xf32> -> vector<8x64xf32>
    %262 = arith.truncf %261 : vector<8x64xf32> to vector<8x64xbf16>
    %c1_183 = arith.constant 1 : index
    %c0_184 = arith.constant 0 : index
    %c0_185 = arith.constant 0 : index
    %263 = vector.load %arg8[%c1_183, %c0_184, %c0_185] : memref<4x64x64xbf16, #tpu.memory_space<vmem>>, vector<1x64x64xbf16>
    %264 = vector.shape_cast %263 : vector<1x64x64xbf16> to vector<64x64xbf16>
    %cst_186 = arith.constant dense<0.000000e+00> : vector<8x64xf32>
    %265 = tpu.matmul %262, %264, %cst_186 {dimension_numbers = #tpu.dot_dimension_numbers<[1], [0], [0], [1], [0, 0, 1, 1], [], []>} : vector<8x64xbf16>, vector<64x64xbf16>, vector<8x64xf32> -> vector<8x64xf32>
    %266 = arith.addf %256, %265 : vector<8x64xf32>
    %c2_187 = arith.constant 2 : index
    %c0_188 = arith.constant 0 : index
    %c0_189 = arith.constant 0 : index
    %267 = vector.load %arg15[%c2_187, %c0_188, %c0_189] : memref<4x8x8xf32, #tpu.memory_space<vmem>>, vector<1x8x8xf32>
    %268 = vector.shape_cast %267 : vector<1x8x8xf32> to vector<8x8xf32>
    %269 = arith.truncf %268 : vector<8x8xf32> to vector<8x8xbf16>
    %270 = arith.truncf %247 : vector<8x64xf32> to vector<8x64xbf16>
    %cst_190 = arith.constant dense<0.000000e+00> : vector<8x64xf32>
    %271 = tpu.matmul %269, %270, %cst_190 {dimension_numbers = #tpu.dot_dimension_numbers<[1], [0], [0], [1], [0, 0, 1, 1], [], []>} : vector<8x8xbf16>, vector<8x64xbf16>, vector<8x64xf32> -> vector<8x64xf32>
    %272 = arith.truncf %271 : vector<8x64xf32> to vector<8x64xbf16>
    %c2_191 = arith.constant 2 : index
    %c0_192 = arith.constant 0 : index
    %c0_193 = arith.constant 0 : index
    %273 = vector.load %arg8[%c2_191, %c0_192, %c0_193] : memref<4x64x64xbf16, #tpu.memory_space<vmem>>, vector<1x64x64xbf16>
    %274 = vector.shape_cast %273 : vector<1x64x64xbf16> to vector<64x64xbf16>
    %cst_194 = arith.constant dense<0.000000e+00> : vector<8x64xf32>
    %275 = tpu.matmul %272, %274, %cst_194 {dimension_numbers = #tpu.dot_dimension_numbers<[1], [0], [0], [1], [0, 0, 1, 1], [], []>} : vector<8x64xbf16>, vector<64x64xbf16>, vector<8x64xf32> -> vector<8x64xf32>
    %276 = arith.addf %266, %275 : vector<8x64xf32>
    %c3_195 = arith.constant 3 : index
    %c0_196 = arith.constant 0 : index
    %c0_197 = arith.constant 0 : index
    %277 = vector.load %arg15[%c3_195, %c0_196, %c0_197] : memref<4x8x8xf32, #tpu.memory_space<vmem>>, vector<1x8x8xf32>
    %278 = vector.shape_cast %277 : vector<1x8x8xf32> to vector<8x8xf32>
    %279 = arith.truncf %278 : vector<8x8xf32> to vector<8x8xbf16>
    %280 = arith.truncf %247 : vector<8x64xf32> to vector<8x64xbf16>
    %cst_198 = arith.constant dense<0.000000e+00> : vector<8x64xf32>
    %281 = tpu.matmul %279, %280, %cst_198 {dimension_numbers = #tpu.dot_dimension_numbers<[1], [0], [0], [1], [0, 0, 1, 1], [], []>} : vector<8x8xbf16>, vector<8x64xbf16>, vector<8x64xf32> -> vector<8x64xf32>
    %282 = arith.truncf %281 : vector<8x64xf32> to vector<8x64xbf16>
    %c3_199 = arith.constant 3 : index
    %c0_200 = arith.constant 0 : index
    %c0_201 = arith.constant 0 : index
    %283 = vector.load %arg8[%c3_199, %c0_200, %c0_201] : memref<4x64x64xbf16, #tpu.memory_space<vmem>>, vector<1x64x64xbf16>
    %284 = vector.shape_cast %283 : vector<1x64x64xbf16> to vector<64x64xbf16>
    %cst_202 = arith.constant dense<0.000000e+00> : vector<8x64xf32>
    %285 = tpu.matmul %282, %284, %cst_202 {dimension_numbers = #tpu.dot_dimension_numbers<[1], [0], [0], [1], [0, 0, 1, 1], [], []>} : vector<8x64xbf16>, vector<64x64xbf16>, vector<8x64xf32> -> vector<8x64xf32>
    %286 = arith.addf %276, %285 : vector<8x64xf32>
    %c0_203 = arith.constant 0 : index
    %c0_204 = arith.constant 0 : index
    %287 = vector.load %arg9[%c0_203, %c0_204] : memref<1x64xf32, #tpu.memory_space<vmem>>, vector<1x64xf32>
    %288 = vector.broadcast %287 : vector<1x64xf32> to vector<8x64xf32>
    %289 = arith.addf %286, %288 : vector<8x64xf32>
    %cst_205 = arith.constant 0.000000e+00 : f32
    %290 = vector.broadcast %cst_205 : f32 to vector<8x64xf32>
    %291 = arith.maximumf %289, %290 : vector<8x64xf32>
    %292 = vector.extract_strided_slice %291 {offsets = [0, 0], sizes = [1, 64], strides = [1, 1]} : vector<8x64xf32> to vector<1x64xf32>
    %c0_206 = arith.constant 0 : index
    %c0_207 = arith.constant 0 : index
    %293 = vector.load %arg10[%c0_206, %c0_207] : memref<1x64xf32, #tpu.memory_space<vmem>>, vector<1x64xf32>
    %294 = arith.mulf %292, %293 : vector<1x64xf32>
    %cst_208 = arith.constant dense<0.000000e+00> : vector<1xf32>
    %295 = vector.multi_reduction <add>, %294, %cst_208 [1] : vector<1x64xf32> to vector<1xf32>
    %296 = vector.shape_cast %295 : vector<1xf32> to vector<1x1xf32>
    %c0_209 = arith.constant 0 : index
    %c0_210 = arith.constant 0 : index
    %297 = vector.load %arg11[%c0_209, %c0_210] : memref<1x1xf32, #tpu.memory_space<vmem>>, vector<1x1xf32>
    %298 = arith.addf %296, %297 : vector<1x1xf32>
    %cst_211 = arith.constant 0.000000e+00 : f32
    %299 = vector.broadcast %cst_211 : f32 to vector<8x128xf32>
    %300 = vector.broadcast %298 : vector<1x1xf32> to vector<8x128xf32>
    %301 = arith.addf %299, %300 : vector<8x128xf32>
    %c0_212 = arith.constant 0 : index
    %c0_213 = arith.constant 0 : index
    %c0_214 = arith.constant 0 : index
    %302 = vector.load %arg16[%c0_212, %c0_213, %c0_214] : memref<1x8x128xf32, #tpu.memory_space<vmem>>, vector<1x8x128xf32>
    %303 = vector.shape_cast %302 : vector<1x8x128xf32> to vector<8x128xf32>
    %304 = vector.shape_cast %301 : vector<8x128xf32> to vector<1x8x128xf32>
    tpu.vector_store %arg16[%c0_212, %c0_213, %c0_214], %304 {strides = array<i32>} : memref<1x8x128xf32, #tpu.memory_space<vmem>>, vector<1x8x128xf32>,
    return
  }
  func.func @transform_0(%arg0: i32) -> (i32, i32, i32) {
    %c0_i32 = arith.constant 0 : i32
    %c0_i32_0 = arith.constant 0 : i32
    %c0_i32_1 = arith.constant 0 : i32
    return %arg0, %c0_i32, %c0_i32_0 : i32, i32, i32
  }
  func.func @transform_1(%arg0: i32) -> (i32, i32) {
    %c0_i32 = arith.constant 0 : i32
    %c0_i32_0 = arith.constant 0 : i32
    %c0_i32_1 = arith.constant 0 : i32
    return %c0_i32, %c0_i32_0 : i32, i32
  }
  func.func @transform_2(%arg0: i32) -> (i32, i32) {
    %c0_i32 = arith.constant 0 : i32
    %c0_i32_0 = arith.constant 0 : i32
    %c0_i32_1 = arith.constant 0 : i32
    return %c0_i32, %c0_i32_0 : i32, i32
  }
  func.func @transform_3(%arg0: i32) -> (i32, i32, i32) {
    %c0_i32 = arith.constant 0 : i32
    %c0_i32_0 = arith.constant 0 : i32
    %c0_i32_1 = arith.constant 0 : i32
    %c0_i32_2 = arith.constant 0 : i32
    return %c0_i32, %c0_i32_0, %c0_i32_1 : i32, i32, i32
  }
  func.func @transform_4(%arg0: i32) -> (i32, i32) {
    %c0_i32 = arith.constant 0 : i32
    %c0_i32_0 = arith.constant 0 : i32
    %c0_i32_1 = arith.constant 0 : i32
    return %c0_i32, %c0_i32_0 : i32, i32
  }
  func.func @transform_5(%arg0: i32) -> (i32, i32, i32) {
    %c0_i32 = arith.constant 0 : i32
    %c0_i32_0 = arith.constant 0 : i32
    %c0_i32_1 = arith.constant 0 : i32
    %c0_i32_2 = arith.constant 0 : i32
    return %c0_i32, %c0_i32_0, %c0_i32_1 : i32, i32, i32
  }
  func.func @transform_6(%arg0: i32) -> (i32, i32) {
    %c0_i32 = arith.constant 0 : i32
    %c0_i32_0 = arith.constant 0 : i32
    %c0_i32_1 = arith.constant 0 : i32
    return %c0_i32, %c0_i32_0 : i32, i32
  }
  func.func @transform_7(%arg0: i32) -> (i32, i32, i32) {
    %c0_i32 = arith.constant 0 : i32
    %c0_i32_0 = arith.constant 0 : i32
    %c0_i32_1 = arith.constant 0 : i32
    %c0_i32_2 = arith.constant 0 : i32
    return %c0_i32, %c0_i32_0, %c0_i32_1 : i32, i32, i32
  }
  func.func @transform_8(%arg0: i32) -> (i32, i32) {
    %c0_i32 = arith.constant 0 : i32
    %c0_i32_0 = arith.constant 0 : i32
    %c0_i32_1 = arith.constant 0 : i32
    return %c0_i32, %c0_i32_0 : i32, i32
  }
  func.func @transform_9(%arg0: i32) -> (i32, i32) {
    %c0_i32 = arith.constant 0 : i32
    %c0_i32_0 = arith.constant 0 : i32
    %c0_i32_1 = arith.constant 0 : i32
    return %c0_i32, %c0_i32_0 : i32, i32
  }
  func.func @transform_10(%arg0: i32) -> (i32, i32) {
    %c0_i32 = arith.constant 0 : i32
    %c0_i32_0 = arith.constant 0 : i32
    %c0_i32_1 = arith.constant 0 : i32
    return %c0_i32, %c0_i32_0 : i32, i32
  }
  func.func @transform_11(%arg0: i32) -> (i32, i32, i32) {
    %c0_i32 = arith.constant 0 : i32
    %c0_i32_0 = arith.constant 0 : i32
    %c0_i32_1 = arith.constant 0 : i32
    %c0_i32_2 = arith.constant 0 : i32
    return %c0_i32, %c0_i32_0, %c0_i32_1 : i32, i32, i32
  }
  func.func @transform_12(%arg0: i32) -> (i32, i32, i32) {
    %c0_i32 = arith.constant 0 : i32
    %c0_i32_0 = arith.constant 0 : i32
    %c0_i32_1 = arith.constant 0 : i32
    %c0_i32_2 = arith.constant 0 : i32
    return %c0_i32, %c0_i32_0, %c0_i32_1 : i32, i32, i32
  }
  func.func @transform_13(%arg0: i32) -> (i32, i32, i32) {
    %c0_i32 = arith.constant 0 : i32
    %c0_i32_0 = arith.constant 0 : i32
    %c0_i32_1 = arith.constant 0 : i32
    %c0_i32_2 = arith.constant 0 : i32
    return %c0_i32, %c0_i32_0, %c0_i32_1 : i32, i32, i32
  }
  func.func @transform_14(%arg0: i32) -> (i32, i32, i32) {
    %c0_i32 = arith.constant 0 : i32
    %c0_i32_0 = arith.constant 0 : i32
    %c0_i32_1 = arith.constant 0 : i32
    %c0_i32_2 = arith.constant 0 : i32
    return %c0_i32, %c0_i32_0, %c0_i32_1 : i32, i32, i32
  }
  func.func @transform_15(%arg0: i32) -> (i32, i32, i32) {
    %c0_i32 = arith.constant 0 : i32
    %c0_i32_0 = arith.constant 0 : i32
    %c0_i32_1 = arith.constant 0 : i32
    return %arg0, %c0_i32, %c0_i32_0 : i32, i32, i32
  }
  func.func @transform_16(%arg0: i32) -> (i32, i32, i32) {
    %c0_i32 = arith.constant 0 : i32
    %c0_i32_0 = arith.constant 0 : i32
    %c0_i32_1 = arith.constant 0 : i32
    return %arg0, %c0_i32, %c0_i32_0 : i32, i32, i32
  }
}

</mosaic_0001>

<bundles_post_ra>
// kernel: micropolis_forward.1
= control target key start
LH: loop header
LB: loop body
LE: loop exit
PB: predicated region body
PF: predicated region fallthrough
CT: control target
= control target key end

     0   :  { %s13003_s23 = smov 0   ;;  %s15829_s0 = inlined_call_operand.vmem [shape: f32[2,256,4], index: 0, kind: input, shape index: {}]   ;;  %s15830_s1 = inlined_call_operand.vmem [shape: bf16[4,128], index: 1, kind: input, shape index: {}]   ;;  %s15831_s2 = inlined_call_operand.vmem [shape: f32[1,128], index: 2, kind: input, shape index: {}]   ;;  %s15832_s3 = inlined_call_operand.vmem [shape: bf16[9,64,64], index: 3, kind: input, shape index: {}]   ;;  %s15833_s4 = inlined_call_operand.vmem [shape: f32[1,64], index: 4, kind: input, shape index: {}]   ;;  %s15834_s5 = inlined_call_operand.vmem [shape: bf16[9,128,128], index: 5, kind: input, shape index: {}]   ;;  %s15835_s6 = inlined_call_operand.vmem [shape: f32[1,128], index: 6, kind: input, shape index: {}]   ;;  %s15836_s7 = inlined_call_operand.vmem [shape: bf16[4,64,64], index: 7, kind: input, shape index: {}]   ;;  %s15837_s8 = inlined_call_operand.vmem [shape: f32[1,64], index: 8, kind: input, shape index: {}]   ;;  %s15838_s9 = inlined_call_operand.vmem [shape: f32[1,64], index: 9, kind: input, shape index: {}]   ;;  %s15839_s10 = inlined_call_operand.<no memory space> [shape: f32[1,1], index: 10, kind: input, shape index: {}]   ;;  %s15840_s11 = inlined_call_operand.vmem [shape: f32[4,64,256], index: 11, kind: input, shape index: {}]   ;;  %s15841_s12 = inlined_call_operand.vmem [shape: f32[4,16,64], index: 12, kind: input, shape index: {}]   ;;  %s15842_s13 = inlined_call_operand.vmem [shape: f32[4,8,16], index: 13, kind: input, shape index: {}]   ;;  %s15843_s14 = inlined_call_operand.vmem [shape: f32[4,8,8], index: 14, kind: input, shape index: {}]   ;;  %s15844_s15 = inlined_call_operand.vmem [shape: f32[2,8,128], index: 15, kind: output, shape index: {0}]   ;;  %s15845_s16 = inlined_call_operand.vmem [shape: f32[2,256,128], index: 16, kind: output, shape index: {1}]  }
   0x1   :  { %15968 = sst [smem:[#allocation103_spill]] %s15829_s0  ;;  %v22_v0 = vstv %s15839_s10 }
   0x2   :  { %23 = vst [vmem:[#allocation3] sm:$0x1] %v22_v0 }
   0x3 LB: > { %s9696_s24 = sadd.s32 4294967295, %s12907_s23   ;;  %p9700_p0 = scmp.ge.s32.totalorder %s12907_s23, 1  ;;  %s12907_s23 = sphi %s13003_s23, %s29_s23  }
   0x4   : > { %p467_p1 = scmp.lt.s32.totalorder %s12907_s23, 3 }
   0x6   : > { %p468_p2 = pnand %p9700_p0, %p467_p1 }
   0x8   : > { %471 = sbr.rel (%p468_p2) target bundleno = 5558 (0x15b6), region = 80 }
   0xf   : > { %v590_v1 = vld [vmem:[%s15830_s1] sm:$0x3]  ;;  %vm647_vm0 = vcmask 1041408   ;;  %p521_p3 = scmp.lt.s32.totalorder %s9696_s24, 1  ;;  %v15846_v2 = vmov 0.0   ;;  %s15969_s30 = sld [smem:[#allocation103_spill]]  ;;  %v876_v52 = vlaneseq }
  0x10   : > { %536 = vst [vmem:[#allocation2] sm:$0xff] %v15846_v2  ;;  %537 = vst [vmem:[#allocation2 + $0x8] sm:$0xff] %v15846_v2  ;;  %12739 = vmatprep.subr.msk.bf16.mxu0 %vm647_vm0, %v590_v1  ;;  %12740 = vmatprep.subr.msk.bf16.mxu1 %vm647_vm0, %v590_v1  ;;  %v649_v3 = vsel %vm647_vm0, %v590_v1, 0  ;;  %vm598_vm1 = vcmask 31744   ;;  %s13495_s26 = smov 0  }
  0x11   : > { %538 = vst [vmem:[#allocation2 + $0x10] sm:$0xff] %v15846_v2  ;;  %539 = vst [vmem:[#allocation2 + $0x118] sm:$0xff] %v15846_v2  ;;  %11048 = vmatpush3.bf16.msra.mxu0 %v649_v3  ;;  %12178 = vmatpush3.bf16.msra.mxu1 %v649_v3  ;;  %s16276_s24 = smov (!%p521_p3, %s9696_s24), 1  ;;  %v13083_v53 = vshrl.u32 %v876_v52, 7 }
  0x12   : > { %540 = vst [vmem:[#allocation2 + $0x120] sm:$0xff] %v15846_v2  ;;  %541 = vst [vmem:[#allocation2 + $0x128] sm:$0xff] %v15846_v2  ;;  %s10344_s10 = sshll.u32 %s16276_s24, 8  ;;  %s9703_s27 = sshll.u32 %s16276_s24, 3 }
  0x13   : > { %s13028_s19 = scalar_lea.vmem %s15844_s15, %s9703_s27  ;;  %s13033_s22 = scalar_lea.vmem %s15845_s16, %s10344_s10  ;;  %v13086_v54 = vadd.s32 8, %v13083_v53  ;;  %v13089_v55 = vadd.s32 16, %v13083_v53  ;;  %v13092_v56 = vadd.s32 24, %v13083_v53  ;;  %v881_v57 = vadd.s32 32, %v13083_v53 }
  0x14   : > { %v13096_v58 = vadd.s32 40, %v13083_v53  ;;  %v883_v59 = vadd.s32 48, %v13083_v53  ;;  %v13100_v60 = vadd.s32 56, %v13083_v53  ;;  %v885_v61 = vadd.s32 64, %v13083_v53 }
  0x15   : > { %s13023_s0 = scalar_lea.vmem %s15969_s30, %s10344_s10  ;;  %v13104_v62 = vadd.s32 72, %v13083_v53  ;;  %v887_v63 = vadd.s32 80, %v13083_v53  ;;  %v13108_v0 = vadd.s32 88, %v13083_v53  ;;  %v889_v1 = vadd.s32 96, %v13083_v53 }
  0x16   : > { %v542_v4 = vld [vmem:[%s13023_s0] sm:$0xff]  ;;  %v543_v5 = vld [vmem:[%s13023_s0 + $0x8] sm:$0xff]  ;;  %v544_v9 = vld [vmem:[%s13023_s0 + $0x10] sm:$0xff]  ;;  %v13112_v3 = vadd.s32 104, %v13083_v53 }
  0x17   : > { %v558_v6 = vld [vmem:[%s13023_s0 + $0x80] sm:$0xff]  ;;  %v574_v7 = vpack.c.bf16 %v543_v5, %v542_v4  ;;  %v559_v8 = vld [vmem:[%s13023_s0 + $0x88] sm:$0xff]  ;;  %v545_v10 = vld [vmem:[%s13023_s0 + $0x18] sm:$0xff]  ;;  %v891_v4 = vadd.s32 112, %v13083_v53  ;;  %v13116_v5 = vadd.s32 120, %v13083_v53 }
  0x18   : > { %v582_v11 = vpack.c.bf16 %v559_v8, %v558_v6  ;;  %v575_v12 = vpack.c.bf16 %v545_v10, %v544_v9  ;;  %v560_v13 = vld [vmem:[%s13023_s0 + $0x90] sm:$0xff]  ;;  %v561_v14 = vld [vmem:[%s13023_s0 + $0x98] sm:$0xff]  ;;  %v546_v15 = vld [vmem:[%s13023_s0 + $0x20] sm:$0xff]  ;;  %v893_v6 = vadd.s32 128, %v13083_v53  ;;  %v895_v8 = vadd.s32 144, %v13083_v53 }
  0x19   : > { %11049 = vmatprep.mubr.msk.bf16.mxu0 %vm598_vm1, %v574_v7  ;;  %v583_v16 = vpack.c.bf16 %v561_v14, %v560_v13  ;;  %v547_v17 = vld [vmem:[%s13023_s0 + $0x28] sm:$0xff]  ;;  %v562_v18 = vld [vmem:[%s13023_s0 + $0xa0] sm:$0xff]  ;;  %v548_v22 = vld [vmem:[%s13023_s0 + $0x30] sm:$0xff]  ;;  %v13120_v7 = vadd.s32 136, %v13083_v53  ;;  %v13124_v9 = vadd.s32 152, %v13083_v53  ;;  %v897_v10 = vadd.s32 160, %v13083_v53 }
  0x1a   : > { %v563_v19 = vld [vmem:[%s13023_s0 + $0xa8] sm:$0xff]  ;;  %11065 = vmatprep.mubr.msk.bf16.mxu1 %vm598_vm1, %v582_v11  ;;  %11050 = vmatmul.mubr.msk.bf16.vlgmr.msra.gmra.mrb[0].mxu0 %vm598_vm1, %v575_v12  ;;  %v576_v20 = vpack.c.bf16 %v547_v17, %v546_v15  ;;  %v549_v23 = vld [vmem:[%s13023_s0 + $0x38] sm:$0xff]  ;;  %v564_v24 = vld [vmem:[%s13023_s0 + $0xb0] sm:$0xff]  ;;  %v13128_v11 = vadd.s32 168, %v13083_v53  ;;  %v899_v12 = vadd.s32 176, %v13083_v53  ;;  %v13132_v13 = vadd.s32 184, %v13083_v53 }
  0x1b   : > { %v584_v21 = vpack.c.bf16 %v563_v19, %v562_v18  ;;  %11066 = vmatmul.mubr.msk.bf16.vlgmr.msra.gmra.mrb[0].mxu1 %vm598_vm1, %v583_v16  ;;  %v565_v25 = vld [vmem:[%s13023_s0 + $0xb8] sm:$0xff]  ;;  %v550_v26 = vld [vmem:[%s13023_s0 + $0x40] sm:$0xff]  ;;  %v551_v27 = vld [vmem:[%s13023_s0 + $0x48] sm:$0xff]  ;;  %v577_v30 = vpack.c.bf16 %v549_v23, %v548_v22  ;;  %v901_v14 = vadd.s32 192, %v13083_v53  ;;  %v13136_v15 = vadd.s32 200, %v13083_v53 }
  0x1c   : > { %11053 = vmatprep.mubr.msk.bf16.mxu0 %vm598_vm1, %v576_v20  ;;  %v566_v28 = vld [vmem:[%s13023_s0 + $0xc0] sm:$0xff]  ;;  %v567_v29 = vld [vmem:[%s13023_s0 + $0xc8] sm:$0xff]  ;;  %v585_v31 = vpack.c.bf16 %v565_v25, %v564_v24  ;;  %v578_v32 = vpack.c.bf16 %v551_v27, %v550_v26  ;;  %v552_v34 = vld [vmem:[%s13023_s0 + $0x50] sm:$0xff]  ;;  %v903_v16 = vadd.s32 208, %v13083_v53  ;;  %v13140_v17 = vadd.s32 216, %v13083_v53 }
  0x1d   : > { %11069 = vmatprep.mubr.msk.bf16.mxu1 %vm598_vm1, %v584_v21  ;;  %v586_v33 = vpack.c.bf16 %v567_v29, %v566_v28  ;;  %v553_v35 = vld [vmem:[%s13023_s0 + $0x58] sm:$0xff]  ;;  %v568_v36 = vld [vmem:[%s13023_s0 + $0xd0] sm:$0xff]  ;;  %v554_v38 = vld [vmem:[%s13023_s0 + $0x60] sm:$0xff]  ;;  %v905_v18 = vadd.s32 224, %v13083_v53  ;;  %v13144_v19 = vadd.s32 232, %v13083_v53  ;;  %v907_v20 = vadd.s32 240, %v13083_v53 }
  0x1e   : > { %v569_v37 = vld [vmem:[%s13023_s0 + $0xd8] sm:$0xff]  ;;  %v555_v39 = vld [vmem:[%s13023_s0 + $0x68] sm:$0xff]  ;;  %v570_v40 = vld [vmem:[%s13023_s0 + $0xe0] sm:$0xff]  ;;  %v579_v42 = vpack.c.bf16 %v553_v35, %v552_v34  ;;  %v13148_v21 = vadd.s32 248, %v13083_v53  ;;  %v913_v22 = vand.u32 15, %v13083_v53  ;;  %v920_v23 = vand.u32 15, %v13086_v54 }
  0x1f   : > { %v571_v41 = vld [vmem:[%s13023_s0 + $0xe8] sm:$0xff]  ;;  %v587_v43 = vpack.c.bf16 %v569_v37, %v568_v36  ;;  %v580_v44 = vpack.c.bf16 %v555_v39, %v554_v38  ;;  %v556_v46 = vld [vmem:[%s13023_s0 + $0x70] sm:$0xff]  ;;  %v557_v47 = vld [vmem:[%s13023_s0 + $0x78] sm:$0xff]  ;;  %v927_v24 = vand.u32 15, %v13089_v55  ;;  %v934_v25 = vand.u32 15, %v13092_v56 }
  0x20   : > { %v588_v45 = vpack.c.bf16 %v571_v41, %v570_v40  ;;  %v572_v48 = vld [vmem:[%s13023_s0 + $0xf0] sm:$0xff]  ;;  %v573_v49 = vld [vmem:[%s13023_s0 + $0xf8] sm:$0xff]  ;;  %v581_v50 = vpack.c.bf16 %v557_v47, %v556_v46  ;;  %v941_v26 = vand.u32 15, %v881_v57  ;;  %v948_v27 = vand.u32 15, %v13096_v58  ;;  %v13461_v56 = vld [vmem:[%s15831_s2] ss:$0 sm:$0xff] }
  0x21   : > { %v589_v51 = vpack.c.bf16 %v573_v49, %v572_v48  ;;  %v955_v28 = vand.u32 15, %v883_v59  ;;  %v962_v29 = vand.u32 15, %v13100_v60  ;;  %v997_v34 = vand.u32 15, %v889_v1 }
  0x22   : > { %11054 = vmatmul.mubr.msk.bf16.gmra.mrb[4].mxu0 %vm598_vm1, %v577_v30  ;;  %v969_v30 = vand.u32 15, %v885_v61  ;;  %v1004_v35 = vand.u32 15, %v13112_v3  ;;  %v1011_v36 = vand.u32 15, %v891_v4  ;;  %v1018_v37 = vand.u32 15, %v13116_v5 }
  0x23   : > { %11070 = vmatmul.mubr.msk.bf16.gmra.mrb[4].mxu1 %vm598_vm1, %v585_v31  ;;  %11057 = vmatprep.mubr.msk.bf16.mxu0 %vm598_vm1, %v578_v32  ;;  %v976_v31 = vand.u32 15, %v13104_v62  ;;  %v983_v32 = vand.u32 15, %v887_v63  ;;  %v1025_v38 = vand.u32 15, %v893_v6  ;;  %v1032_v39 = vand.u32 15, %v13120_v7 }
  0x24   : > { %11073 = vmatprep.mubr.msk.bf16.mxu1 %vm598_vm1, %v586_v33  ;;  %v990_v33 = vand.u32 15, %v13108_v0  ;;  %v1039_v40 = vand.u32 15, %v895_v8  ;;  %v1046_v41 = vand.u32 15, %v13124_v9  ;;  %v1081_v46 = vand.u32 15, %v901_v14 }
  0x25   : > { %v1088_v47 = vand.u32 15, %v13136_v15  ;;  %v1095_v48 = vand.u32 15, %v903_v16  ;;  %v1102_v49 = vand.u32 15, %v13140_v17  ;;  %v1123_v52 = vand.u32 15, %v907_v20 }
  0x26   : > { %v1130_v53 = vand.u32 15, %v13148_v21  ;;  %vm13168_vm2 = vcmp.gt.s32.totalorder %v913_v22, 0  ;;  %vm13172_vm3 = vcmp.gt.s32.totalorder %v927_v24, 0  ;;  %vm13176_vm4 = vcmp.gt.s32.totalorder %v941_v26, 0 }
  0x27   : > { %vm13180_vm5 = vcmp.gt.s32.totalorder %v955_v28, 0  ;;  %vm13184_vm6 = vcmp.gt.s32.totalorder %v969_v30, 0  ;;  %vm13188_vm7 = vcmp.gt.s32.totalorder %v983_v32, 0  ;;  %vm13192_vm8 = vcmp.gt.s32.totalorder %v997_v34, 0 }
  0x28   : > { %vm13196_vm9 = vcmp.gt.s32.totalorder %v1011_v36, 0  ;;  %vm13200_vm10 = vcmp.gt.s32.totalorder %v1025_v38, 0  ;;  %vm13204_vm11 = vcmp.gt.s32.totalorder %v1039_v40, 0  ;;  %vm13216_vm14 = vcmp.gt.s32.totalorder %v1081_v46, 0 }
  0x29   : > { %vm13220_vm15 = vcmp.gt.s32.totalorder %v1095_v48, 0  ;;  %v13235_v8 = vsel %vm13168_vm2, 1.0, %v15846_v2  ;;  %v13240_v9 = vsel %vm13172_vm3, 1.0, %v15846_v2  ;;  %v13265_v14 = vsel %vm13192_vm8, 1.0, %v15846_v2 }
  0x2a   : > { %11058 = vmatmul.mubr.msk.bf16.gmra.mrb[8].mxu0 %vm598_vm1, %v579_v42  ;;  %v1053_v42 = vand.u32 15, %v897_v10  ;;  %16002 = vst [vmem:[#allocation4_spill] sm:$0xff] %v13235_v8  ;;  %16003 = vst [vmem:[#allocation5_spill] sm:$0xff] %v13240_v9  ;;  %v13245_v10 = vsel %vm13176_vm4, 1.0, %v15846_v2  ;;  %v13270_v15 = vsel %vm13196_vm9, 1.0, %v15846_v2  ;;  %v13275_v16 = vsel %vm13200_vm10, 1.0, %v15846_v2 }
  0x2b   : > { %11074 = vmatmul.mubr.msk.bf16.gmra.mrb[8].mxu1 %vm598_vm1, %v587_v43  ;;  %11061 = vmatprep.mubr.msk.bf16.mxu0 %vm598_vm1, %v580_v44  ;;  %v1060_v43 = vand.u32 15, %v13128_v11  ;;  %v1067_v44 = vand.u32 15, %v899_v12  ;;  %16004 = vst [vmem:[#allocation6_spill] sm:$0xff] %v13245_v10  ;;  %v13250_v11 = vsel %vm13180_vm5, 1.0, %v15846_v2  ;;  %v13255_v12 = vsel %vm13184_vm6, 1.0, %v15846_v2  ;;  %16008 = vst [vmem:[#allocation10_spill] sm:$0xff] %v13265_v14 }
  0x2c   : > { %11077 = vmatprep.mubr.msk.bf16.mxu1 %vm598_vm1, %v588_v45  ;;  %v1074_v45 = vand.u32 15, %v13132_v13  ;;  %vm13208_vm12 = vcmp.gt.s32.totalorder %v1053_v42, 0  ;;  %16005 = vst [vmem:[#allocation7_spill] sm:$0xff] %v13250_v11  ;;  %16006 = vst [vmem:[#allocation8_spill] sm:$0xff] %v13255_v12  ;;  %v13260_v13 = vsel %vm13188_vm7, 1.0, %v15846_v2  ;;  %v13280_v17 = vsel %vm13204_vm11, 1.0, %v15846_v2 }
  0x2d   : > { %vm13212_vm13 = vcmp.gt.s32.totalorder %v1067_v44, 0  ;;  %16007 = vst [vmem:[#allocation9_spill] sm:$0xff] %v13260_v13  ;;  %16009 = vst [vmem:[#allocation11_spill] sm:$0xff] %v13270_v15  ;;  %v13295_v20 = vsel %vm13216_vm14, 1.0, %v15846_v2  ;;  %v13300_v21 = vsel %vm13220_vm15, 1.0, %v15846_v2  ;;  %vm13314_vm2 = vcmp.lt.s32.totalorder %v920_v23, 15 }
  0x2e   : > { %16010 = vst [vmem:[#allocation12_spill] sm:$0xff] %v13275_v16  ;;  %16011 = vst [vmem:[#allocation13_spill] sm:$0xff] %v13280_v17  ;;  %vm13318_vm3 = vcmp.lt.s32.totalorder %v934_v25, 15  ;;  %vm13322_vm4 = vcmp.lt.s32.totalorder %v948_v27, 15  ;;  %vm13326_vm5 = vcmp.lt.s32.totalorder %v962_v29, 15  ;;  %vm13330_vm6 = vcmp.lt.s32.totalorder %v976_v31, 15 }
  0x2f   : > { %vm13334_vm7 = vcmp.lt.s32.totalorder %v990_v33, 15  ;;  %vm13338_vm8 = vcmp.lt.s32.totalorder %v1004_v35, 15  ;;  %vm13342_vm9 = vcmp.lt.s32.totalorder %v1018_v37, 15  ;;  %vm13346_vm10 = vcmp.lt.s32.totalorder %v1032_v39, 15 }
  0x30   : > { %vm13350_vm11 = vcmp.lt.s32.totalorder %v1046_v41, 15  ;;  %vm13362_vm14 = vcmp.lt.s32.totalorder %v1088_v47, 15  ;;  %vm13366_vm15 = vcmp.lt.s32.totalorder %v1102_v49, 15  ;;  %v13381_v39 = vsel %vm13314_vm2, 1.0, %v15846_v2 }
  0x31   : > { %16044 = vst [vmem:[#allocation14_spill] sm:$0xff] %v13381_v39  ;;  %v13386_v40 = vsel %vm13318_vm3, 1.0, %v15846_v2  ;;  %v13391_v41 = vsel %vm13322_vm4, 1.0, %v15846_v2  ;;  %v13396_v42 = vsel %vm13326_vm5, 1.0, %v15846_v2  ;;  %v13406_v44 = vsel %vm13334_vm7, 1.0, %v15846_v2 }
  0x32   : > { %11062 = vmatmul.mubr.msk.bf16.gmra.mrb[12].mxu0 %vm598_vm1, %v581_v50  ;;  %v1109_v50 = vand.u32 15, %v905_v18  ;;  %v13285_v18 = vsel %vm13208_vm12, 1.0, %v15846_v2  ;;  %vm13354_vm12 = vcmp.lt.s32.totalorder %v1060_v43, 15  ;;  %16045 = vst [vmem:[#allocation15_spill] sm:$0xff] %v13386_v40  ;;  %16046 = vst [vmem:[#allocation16_spill] sm:$0xff] %v13391_v41  ;;  %v13401_v43 = vsel %vm13330_vm6, 1.0, %v15846_v2 }
  0x33   : > { %11078 = vmatmul.mubr.msk.bf16.gmra.mrb[12].mxu1 %vm598_vm1, %v589_v51  ;;  %v1116_v51 = vand.u32 15, %v13144_v19  ;;  %vm13228_vm1 = vcmp.gt.s32.totalorder %v1123_v52, 0  ;;  %v13290_v19 = vsel %vm13212_vm13, 1.0, %v15846_v2  ;;  %vm13358_vm13 = vcmp.lt.s32.totalorder %v1074_v45, 15  ;;  %16047 = vst [vmem:[#allocation17_spill] sm:$0xff] %v13396_v42  ;;  %16048 = vst [vmem:[#allocation18_spill] sm:$0xff] %v13401_v43 }
  0x34   : > { %vm13224_vm0 = vcmp.gt.s32.totalorder %v1109_v50, 0  ;;  %v13310_v24 = vsel %vm13228_vm1, 1.0, %v15846_v2  ;;  %vm13374_vm1 = vcmp.lt.s32.totalorder %v1130_v53, 15  ;;  %16049 = vst [vmem:[#allocation19_spill] sm:$0xff] %v13406_v44  ;;  %v13411_v45 = vsel %vm13338_vm8, 1.0, %v15846_v2 }
  0x35   : > { %v13305_v22 = vsel %vm13224_vm0, 1.0, %v15846_v2  ;;  %vm13370_vm0 = vcmp.lt.s32.totalorder %v1116_v51, 15  ;;  %16050 = vst [vmem:[#allocation20_spill] sm:$0xff] %v13411_v45  ;;  %v13416_v46 = vsel %vm13342_vm9, 1.0, %v15846_v2  ;;  %v13421_v47 = vsel %vm13346_vm10, 1.0, %v15846_v2 }
  0x36   : > { %16051 = vst [vmem:[#allocation21_spill] sm:$0xff] %v13416_v46  ;;  %16052 = vst [vmem:[#allocation22_spill] sm:$0xff] %v13421_v47  ;;  %v13426_v48 = vsel %vm13350_vm11, 1.0, %v15846_v2  ;;  %v13431_v49 = vsel %vm13354_vm12, 1.0, %v15846_v2  ;;  %v13436_v50 = vsel %vm13358_vm13, 1.0, %v15846_v2  ;;  %v13441_v51 = vsel %vm13362_vm14, 1.0, %v15846_v2 }
  0x37   : > { %16053 = vst [vmem:[#allocation23_spill] sm:$0xff] %v13426_v48  ;;  %16054 = vst [vmem:[#allocation24_spill] sm:$0xff] %v13431_v49  ;;  %v13446_v52 = vsel %vm13366_vm15, 1.0, %v15846_v2  ;;  %v13451_v53 = vsel %vm13370_vm0, 1.0, %v15846_v2  ;;  %v13456_v55 = vsel %vm13374_vm1, 1.0, %v15846_v2 }
  0x38   : > { %16055 = vst [vmem:[#allocation25_spill] sm:$0xff] %v13436_v50  ;;  %16056 = vst [vmem:[#allocation26_spill] sm:$0xff] %v13441_v51 }
  0x39   : > { %16057 = vst [vmem:[#allocation27_spill] sm:$0xff] %v13446_v52  ;;  %16058 = vst [vmem:[#allocation28_spill] sm:$0xff] %v13451_v53 }
  0x3a   : > { %16059 = vst [vmem:[#allocation29_spill] sm:$0xff] %v13456_v55 }
  0xed   : > { %v11051_v57 = vpop.f32.mrb[0].mxu0 }
  0xee   : > { %v694_v58 = vadd.f32 %v11051_v57, %v13461_v56  ;;  %v11067_v59 = vpop.f32.mrb[0].mxu1  ;;  %v685_v60 = vpop.f32.mrb[1].mxu0 }
  0xef   : > { %v758_v61 = vadd.f32 %v11067_v59, %v13461_v56  ;;  %v686_v62 = vadd.f32 %v13461_v56, %v685_v60  ;;  %v749_v63 = vpop.f32.mrb[1].mxu1  ;;  %v11052_v0 = vpop.f32.mrb[2].mxu0 }
  0xf0   : > { %v814_v1 = vmax.f32 %v694_v58, 0.0  ;;  %v750_v3 = vadd.f32 %v13461_v56, %v749_v63  ;;  %v697_v4 = vadd.f32 %v11052_v0, %v13461_v56  ;;  %v11068_v5 = vpop.f32.mrb[2].mxu1  ;;  %v688_v6 = vpop.f32.mrb[3].mxu0 }
  0xf1   : > { %v830_v7 = vmax.f32 %v758_v61, 0.0  ;;  %v812_v26 = vmax.f32 %v686_v62, 0.0  ;;  %v761_v28 = vadd.f32 %v11068_v5, %v13461_v56  ;;  %v689_v30 = vadd.f32 %v13461_v56, %v688_v6  ;;  %v752_v32 = vpop.f32.mrb[3].mxu1 }
  0xf2   : > { %846 = vst [vmem:[#allocation2 + $0x28] sm:$0xff] %v814_v1  ;;  %v828_v34 = vmax.f32 %v750_v3, 0.0  ;;  %v815_v54 = vmax.f32 %v697_v4, 0.0  ;;  %v753_v23 = vadd.f32 %v13461_v56, %v752_v32 }
  0xf3   : > { %862 = vst [vmem:[#allocation2 + $0xa8] sm:$0xff] %v830_v7  ;;  %844 = vst [vmem:[#allocation2 + $0x18] sm:$0xff] %v812_v26  ;;  %v831_v25 = vmax.f32 %v761_v28, 0.0  ;;  %v813_v27 = vmax.f32 %v689_v30, 0.0 }
  0xf4   : > { %860 = vst [vmem:[#allocation2 + $0x98] sm:$0xff] %v828_v34  ;;  %847 = vst [vmem:[#allocation2 + $0x30] sm:$0xff] %v815_v54  ;;  %v829_v29 = vmax.f32 %v753_v23, 0.0 }
  0xf5   : > { %863 = vst [vmem:[#allocation2 + $0xb0] sm:$0xff] %v831_v25  ;;  %845 = vst [vmem:[#allocation2 + $0x20] sm:$0xff] %v813_v27  ;;  %v11055_v31 = vpop.f32.mrb[4].mxu0 }
  0xf6   : > { %861 = vst [vmem:[#allocation2 + $0xa0] sm:$0xff] %v829_v29  ;;  %v710_v33 = vadd.f32 %v11055_v31, %v13461_v56  ;;  %v11071_v35 = vpop.f32.mrb[4].mxu1  ;;  %v701_v36 = vpop.f32.mrb[5].mxu0 }
  0xf7   : > { %v774_v37 = vadd.f32 %v11071_v35, %v13461_v56  ;;  %v702_v38 = vadd.f32 %v13461_v56, %v701_v36  ;;  %v765_v57 = vpop.f32.mrb[5].mxu1  ;;  %v11056_v58 = vpop.f32.mrb[6].mxu0 }
  0xf8   : > { %v818_v59 = vmax.f32 %v710_v33, 0.0  ;;  %v766_v60 = vadd.f32 %v13461_v56, %v765_v57  ;;  %v713_v61 = vadd.f32 %v11056_v58, %v13461_v56  ;;  %v11072_v62 = vpop.f32.mrb[6].mxu1  ;;  %v704_v63 = vpop.f32.mrb[7].mxu0 }
  0xf9   : > { %v834_v0 = vmax.f32 %v774_v37, 0.0  ;;  %v816_v1 = vmax.f32 %v702_v38, 0.0  ;;  %v777_v3 = vadd.f32 %v11072_v62, %v13461_v56  ;;  %v705_v4 = vadd.f32 %v13461_v56, %v704_v63  ;;  %v768_v5 = vpop.f32.mrb[7].mxu1 }
  0xfa   : > { %850 = vst [vmem:[#allocation2 + $0x48] sm:$0xff] %v818_v59  ;;  %v832_v6 = vmax.f32 %v766_v60, 0.0  ;;  %v819_v7 = vmax.f32 %v713_v61, 0.0  ;;  %v769_v26 = vadd.f32 %v13461_v56, %v768_v5 }
  0xfb   : > { %866 = vst [vmem:[#allocation2 + $0xc8] sm:$0xff] %v834_v0  ;;  %848 = vst [vmem:[#allocation2 + $0x38] sm:$0xff] %v816_v1  ;;  %v835_v28 = vmax.f32 %v777_v3, 0.0  ;;  %v817_v30 = vmax.f32 %v705_v4, 0.0 }
  0xfc   : > { %864 = vst [vmem:[#allocation2 + $0xb8] sm:$0xff] %v832_v6  ;;  %851 = vst [vmem:[#allocation2 + $0x50] sm:$0xff] %v819_v7  ;;  %v833_v32 = vmax.f32 %v769_v26, 0.0 }
  0xfd   : > { %867 = vst [vmem:[#allocation2 + $0xd0] sm:$0xff] %v835_v28  ;;  %849 = vst [vmem:[#allocation2 + $0x40] sm:$0xff] %v817_v30  ;;  %v11059_v34 = vpop.f32.mrb[8].mxu0 }
  0xfe   : > { %865 = vst [vmem:[#allocation2 + $0xc0] sm:$0xff] %v833_v32  ;;  %v726_v54 = vadd.f32 %v11059_v34, %v13461_v56  ;;  %v11075_v23 = vpop.f32.mrb[8].mxu1  ;;  %v717_v25 = vpop.f32.mrb[9].mxu0 }
  0xff   : > { %v790_v27 = vadd.f32 %v11075_v23, %v13461_v56  ;;  %v718_v29 = vadd.f32 %v13461_v56, %v717_v25  ;;  %v781_v31 = vpop.f32.mrb[9].mxu1  ;;  %v11060_v33 = vpop.f32.mrb[10].mxu0 }
 0x100   : > { %v822_v35 = vmax.f32 %v726_v54, 0.0  ;;  %v782_v36 = vadd.f32 %v13461_v56, %v781_v31  ;;  %v729_v37 = vadd.f32 %v11060_v33, %v13461_v56  ;;  %v11076_v38 = vpop.f32.mrb[10].mxu1  ;;  %v720_v57 = vpop.f32.mrb[11].mxu0 }
 0x101   : > { %v838_v58 = vmax.f32 %v790_v27, 0.0  ;;  %v820_v59 = vmax.f32 %v718_v29, 0.0  ;;  %v793_v60 = vadd.f32 %v11076_v38, %v13461_v56  ;;  %v721_v61 = vadd.f32 %v13461_v56, %v720_v57  ;;  %v784_v62 = vpop.f32.mrb[11].mxu1 }
 0x102   : > { %854 = vst [vmem:[#allocation2 + $0x68] sm:$0xff] %v822_v35  ;;  %v836_v63 = vmax.f32 %v782_v36, 0.0  ;;  %v823_v0 = vmax.f32 %v729_v37, 0.0  ;;  %v785_v1 = vadd.f32 %v13461_v56, %v784_v62 }
 0x103   : > { %870 = vst [vmem:[#allocation2 + $0xe8] sm:$0xff] %v838_v58  ;;  %852 = vst [vmem:[#allocation2 + $0x58] sm:$0xff] %v820_v59  ;;  %v839_v3 = vmax.f32 %v793_v60, 0.0  ;;  %v821_v4 = vmax.f32 %v721_v61, 0.0 }
 0x104   : > { %868 = vst [vmem:[#allocation2 + $0xd8] sm:$0xff] %v836_v63  ;;  %855 = vst [vmem:[#allocation2 + $0x70] sm:$0xff] %v823_v0  ;;  %v837_v5 = vmax.f32 %v785_v1, 0.0 }
 0x105   : > { %871 = vst [vmem:[#allocation2 + $0xf0] sm:$0xff] %v839_v3  ;;  %853 = vst [vmem:[#allocation2 + $0x60] sm:$0xff] %v821_v4  ;;  %v11063_v6 = vpop.f32.mrb[12].mxu0 }
 0x106   : > { %869 = vst [vmem:[#allocation2 + $0xe0] sm:$0xff] %v837_v5  ;;  %v742_v7 = vadd.f32 %v11063_v6, %v13461_v56  ;;  %v11079_v26 = vpop.f32.mrb[12].mxu1  ;;  %v733_v28 = vpop.f32.mrb[13].mxu0 }
 0x107   : > { %v806_v30 = vadd.f32 %v11079_v26, %v13461_v56  ;;  %v734_v32 = vadd.f32 %v13461_v56, %v733_v28  ;;  %v797_v34 = vpop.f32.mrb[13].mxu1  ;;  %v11064_v54 = vpop.f32.mrb[14].mxu0 }
 0x108   : > { %v826_v23 = vmax.f32 %v742_v7, 0.0  ;;  %v798_v25 = vadd.f32 %v13461_v56, %v797_v34  ;;  %v745_v27 = vadd.f32 %v11064_v54, %v13461_v56  ;;  %v11080_v29 = vpop.f32.mrb[14].mxu1  ;;  %v736_v31 = vpop.f32.mrb[15].mxu0 }
 0x109   : > { %v842_v33 = vmax.f32 %v806_v30, 0.0  ;;  %v824_v35 = vmax.f32 %v734_v32, 0.0  ;;  %v809_v36 = vadd.f32 %v11080_v29, %v13461_v56  ;;  %v737_v37 = vadd.f32 %v13461_v56, %v736_v31  ;;  %v800_v38 = vpop.f32.mrb[15].mxu1 }
 0x10a   : > { %858 = vst [vmem:[#allocation2 + $0x88] sm:$0xff] %v826_v23  ;;  %v840_v57 = vmax.f32 %v798_v25, 0.0  ;;  %v827_v58 = vmax.f32 %v745_v27, 0.0  ;;  %v801_v59 = vadd.f32 %v13461_v56, %v800_v38 }
 0x10b   : > { %874 = vst [vmem:[#allocation2 + $0x108] sm:$0xff] %v842_v33  ;;  %856 = vst [vmem:[#allocation2 + $0x78] sm:$0xff] %v824_v35  ;;  %v843_v60 = vmax.f32 %v809_v36, 0.0  ;;  %v825_v61 = vmax.f32 %v737_v37, 0.0 }
 0x10c   : > { %872 = vst [vmem:[#allocation2 + $0xf8] sm:$0xff] %v840_v57  ;;  %859 = vst [vmem:[#allocation2 + $0x90] sm:$0xff] %v827_v58  ;;  %v841_v62 = vmax.f32 %v801_v59, 0.0 }
 0x10d   : > { %875 = vst [vmem:[#allocation2 + $0x110] sm:$0xff] %v843_v60  ;;  %857 = vst [vmem:[#allocation2 + $0x80] sm:$0xff] %v825_v61 }
 0x10e   : > { %873 = vst [vmem:[#allocation2 + $0x100] sm:$0xff] %v841_v62 }
 0x10f LB: >> { %v16060_v13 = vld [vmem:[#allocation9_spill] sm:$0xff]  ;;  %v16061_v11 = vld [vmem:[#allocation7_spill] sm:$0xff]  ;;  %vm1660_vm2 = vcmask 523264   ;;  %v16081_v47 = vld [vmem:[#allocation22_spill] sm:$0xff]  ;;  %s1490_s26 = sadd.s32 1, %s12911_s26   ;;  %s12911_s26 = sphi %s13495_s26, %s1490_s26  }
 0x110   : >> { %v12761_v56 = vld [vmem:[%s15832_s3 + $0x20] sm:$0xff]   ;;  %v12763_v0 = vld [vmem:[%s15832_s3 + $0x28] sm:$0xff]   ;;  %v12765_v3 = vld [vmem:[%s15832_s3 + $0x30] sm:$0xff]   ;;  %p1487_p4 = scmp.ge.s32.totalorder %s1490_s26, 16  }
 0x111   : >> { %v13506_v63 = vld [vmem:[%s15832_s3 + $0x80] sm:$0xff]   ;;  %11081 = vmatprep.subr.bf16.mxu1 %v12761_v56  ;;  %v12764_v1 = vld [vmem:[%s15832_s3 + $0x88] sm:$0xff]   ;;  %v12766_v4 = vld [vmem:[%s15832_s3 + $0x90] sm:$0xff]   ;;  %vm12914_vm3 = vmmov (%p1487_p4), 0   ;;  %vm8860_vm4 = vcmask (%p1487_p4), 130048   ;;  %vm9229_vm5 = vcmask (%p1487_p4), 1043456  }
 0x112   : >> { %11241 = vmatprep.subr.bf16.mxu0 %v13506_v63  ;;  %11082 = vmatpush3.bf16.msra.mxu1 %v12761_v56  ;;  %v12767_v5 = vld [vmem:[%s15832_s3 + $0x38] sm:$0xff]   ;;  %v1579_v7 = vld [vmem:[#allocation2 + $0x8] sm:$0xff]  ;;  %v1580_v26 = vld [vmem:[#allocation2 + $0x10] sm:$0xff]  ;;  %vm9225_vm6 = vcmask (%p1487_p4), 64512   ;;  %vm9593_vm7 = vcmask (%p1487_p4), 516096  }
 0x113   : >> { %11242 = vmatpush3.bf16.msra.mxu0 %v13506_v63  ;;  %11083 = vmatprep.subr.bf16.mxu1 %v12763_v0  ;;  %v12768_v6 = vld [vmem:[%s15832_s3 + $0x98] sm:$0xff]   ;;  %v1611_v30 = vpack.c.bf16 %v1580_v26, %v1579_v7  ;;  %v2812_v32 = vld [vmem:[#allocation2 + $0x20] sm:$0xff]  ;;  %v2813_v23 = vld [vmem:[#allocation2 + $0x28] sm:$0xff] }
 0x114   : >> { %11243 = vmatprep.subr.bf16.mxu0 %v12764_v1  ;;  %v2811_v28 = vld [vmem:[#allocation2 + $0x18] sm:$0xff]  ;;  %v12769_v54 = vld [vmem:[%s15832_s3] sm:$0xff]   ;;  %v2814_v25 = vld [vmem:[#allocation2 + $0x30] sm:$0xff] }
 0x115   : >> { %v2843_v34 = vpack.c.bf16 %v2812_v32, %v2811_v28  ;;  %11089 = vmatprep.mubr.msk.bf16.mxu1 %vm1660_vm2, %v1611_v30  ;;  %v12770_v27 = vld [vmem:[%s15832_s3 + $0xa0] sm:$0xff]   ;;  %v2815_v29 = vld [vmem:[#allocation2 + $0x38] sm:$0xff]  ;;  %v13536_v33 = vpack.c.bf16 %v2814_v25, %v2813_v23  ;;  %v12771_v36 = vld [vmem:[%s15832_s3 + $0xa8] sm:$0xff]  }
 0x116   : >> { %11084 = vmatpush3.bf16.msra.mxu1 %v12763_v0  ;;  %v2816_v31 = vld [vmem:[#allocation2 + $0x40] sm:$0xff]  ;;  %v12772_v37 = vld [vmem:[%s15832_s3 + $0x8] sm:$0xff]   ;;  %v2818_v57 = vld [vmem:[#allocation2 + $0x50] sm:$0xff] }
 0x117   : >> { %11244 = vmatpush3.bf16.msra.mxu0 %v12764_v1  ;;  %11085 = vmatprep.subr.bf16.mxu1 %v12765_v3  ;;  %16062 = vst [vmem:[#allocation30_spill] sm:$0xff] %v13536_v33  ;;  %v13538_v35 = vpack.c.bf16 %v2816_v31, %v2815_v29  ;;  %v2817_v38 = vld [vmem:[#allocation2 + $0x48] sm:$0xff]  ;;  %v2819_v58 = vld [vmem:[#allocation2 + $0x58] sm:$0xff]  ;;  %v2820_v59 = vld [vmem:[#allocation2 + $0x60] sm:$0xff] }
 0x118   : >> { %11245 = vmatprep.subr.bf16.mxu0 %v12766_v4  ;;  %11249 = vmatprep.mubr.msk.bf16.mxu0 %vm1660_vm2, %v2843_v34  ;;  %v12773_v60 = vld [vmem:[%s15832_s3 + $0xb0] sm:$0xff]   ;;  %v13559_v62 = vpack.c.bf16 %v2818_v57, %v2817_v38  ;;  %v13561_v56 = vpack.c.bf16 %v2820_v59, %v2819_v58  ;;  %v12774_v0 = vld [vmem:[%s15832_s3 + $0xb8] sm:$0xff]   ;;  %v2821_v1 = vld [vmem:[#allocation2 + $0x68] sm:$0xff] }
 0x119   : >> { %16063 = vst [vmem:[#allocation31_spill] sm:$0xff] %v13538_v35  ;;  %v12775_v61 = vld [vmem:[%s15832_s3 + $0x10] sm:$0xff]   ;;  %v12777_v7 = vld [vmem:[%s15832_s3 + $0x18] sm:$0xff]   ;;  %v13584_v30 = vld [vmem:[#allocation2 + $0x21] sm:$0xff] }
 0x11a   : >> { %11086 = vmatpush3.bf16.msra.mxu1 %v12765_v3  ;;  %16064 = vst [vmem:[#allocation32_spill] sm:$0xff] %v13559_v62  ;;  %16065 = vst [vmem:[#allocation33_spill] sm:$0xff] %v13561_v56  ;;  %v2822_v3 = vld [vmem:[#allocation2 + $0x70] sm:$0xff]  ;;  %v2825_v32 = vld [vmem:[#allocation2 + $0x88] sm:$0xff] }
 0x11b   : >> { %11246 = vmatpush3.bf16.msra.mxu0 %v12766_v4  ;;  %11087 = vmatprep.subr.bf16.mxu1 %v12767_v5  ;;  %v2823_v4 = vld [vmem:[#allocation2 + $0x78] sm:$0xff]  ;;  %v13580_v26 = vpack.c.bf16 %v2822_v3, %v2821_v1  ;;  %v13599_v23 = vld [vmem:[%s15832_s3 + $0x40] sm:$0xff]   ;;  %v13620_v58 = vld [vmem:[#allocation2 + $0x29] sm:$0xff] }
 0x11c   : >> { %11247 = vmatprep.subr.bf16.mxu0 %v12768_v6  ;;  %v13601_v25 = vld [vmem:[#allocation2 + $0x19] sm:$0xff]  ;;  %v13607_v31 = vld [vmem:[#allocation2 + $0x31] sm:$0xff]  ;;  %v1599_v59 = vld [vmem:[#allocation2 + $0xa8] sm:$0xff] }
 0x11d   : >> { %16066 = vst [vmem:[#allocation34_spill] sm:$0xff] %v13580_v26  ;;  %v1598_v38 = vld [vmem:[#allocation2 + $0xa0] sm:$0xff]  ;;  %v3168_v57 = vmul.f32 %v13386_v40, %v13607_v31  ;;  %v16089_v48 = vld [vmem:[#allocation23_spill] sm:$0xff]  ;;  %v16091_v49 = vld [vmem:[#allocation24_spill] sm:$0xff] }
 0x11e   : >> { %11088 = vmatpush3.bf16.msra.mxu1 %v12767_v5  ;;  %v2824_v5 = vld [vmem:[#allocation2 + $0x80] sm:$0xff]  ;;  %v16108_v52 = vld [vmem:[#allocation27_spill] sm:$0xff]  ;;  %v16111_v53 = vld [vmem:[#allocation28_spill] sm:$0xff] }
 0x11f   : >> { %11248 = vmatpush3.bf16.msra.mxu0 %v12768_v6  ;;  %11121 = vmatprep.subr.bf16.mxu1 %v12769_v54  ;;  %v12776_v6 = vld [vmem:[%s15832_s3 + $0xc0] sm:$0xff]   ;;  %v13582_v28 = vpack.c.bf16 %v2824_v5, %v2823_v4  ;;  %v3198_v3 = vpack.c.bf16 %v3168_v57, %v13620_v58  ;;  %v1603_v57 = vld [vmem:[#allocation2 + $0xc8] sm:$0xff] }
 0x120   : >> { %11281 = vmatprep.subr.bf16.mxu0 %v12770_v27  ;;  %v16080_v46 = vld [vmem:[#allocation21_spill] sm:$0xff]  ;;  %v16101_v51 = vld [vmem:[#allocation26_spill] sm:$0xff] }
 0x121   : >> { %11090 = vmatmul.mubr.msk.bf16.vlgmr.msra.gmra.mrb[0].mxu1 %vm1660_vm2, %v2843_v34  ;;  %16067 = vst [vmem:[#allocation35_spill] sm:$0xff] %v13582_v28  ;;  %v2826_v34 = vld [vmem:[#allocation2 + $0x90] sm:$0xff]  ;;  %v16098_v50 = vld [vmem:[#allocation25_spill] sm:$0xff] }
 0x122   : >> { %11250 = vmatmul.mubr.msk.bf16.vlgmr.msra.gmra.mrb[0].mxu0 %vm1660_vm2, %v13536_v33  ;;  %11122 = vmatpush3.bf16.msra.mxu1 %v12769_v54  ;;  %v3166_v54 = vmul.f32 %v13381_v39, %v13584_v30  ;;  %v16114_v55 = vld [vmem:[#allocation29_spill] sm:$0xff] }
 0x123   : >> { %11282 = vmatpush3.bf16.msra.mxu0 %v12770_v27  ;;  %11093 = vmatprep.mubr.msk.bf16.mxu1 %vm1660_vm2, %v13536_v33  ;;  %v13604_v27 = vpack.c.bf16 %v2826_v34, %v2825_v32  ;;  %v13634_v32 = vld [vmem:[#allocation2 + $0x61] sm:$0xff]  ;;  %v1609_v33 = vld [vmem:[#allocation2 + $0xf8] sm:$0xff] }
 0x124   : >> { %11253 = vmatprep.mubr.msk.bf16.mxu0 %vm1660_vm2, %v13538_v35  ;;  %11283 = vmatprep.subr.bf16.mxu0 %v12771_v36  ;;  %v3197_v29 = vpack.c.bf16 %v3166_v54, %v13601_v25  ;;  %v12778_v34 = vld [vmem:[%s15832_s3 + $0xc8] sm:$0xff]   ;;  %v1601_v54 = vld [vmem:[#allocation2 + $0xb8] sm:$0xff] }
 0x125   : >> { %11123 = vmatprep.subr.bf16.mxu1 %v12772_v37  ;;  %16068 = vst [vmem:[#allocation36_spill] sm:$0xff] %v13604_v27 }
 0x126   : >> { %11124 = vmatpush3.bf16.msra.mxu1 %v12772_v37  ;;  %v1597_v37 = vld [vmem:[#allocation2 + $0x98] sm:$0xff] }
 0x127   : >> { %11284 = vmatpush3.bf16.msra.mxu0 %v12771_v36  ;;  %11125 = vmatprep.subr.bf16.mxu1 %v12775_v61  ;;  %v13609_v36 = vld [vmem:[#allocation2 + $0x41] sm:$0xff]  ;;  %v13626_v1 = vpack.c.bf16 %v1598_v38, %v1597_v37  ;;  %v13647_v38 = vld [vmem:[#allocation2 + $0x49] sm:$0xff] }
 0x128   : >> { %11285 = vmatprep.subr.bf16.mxu0 %v12773_v60 }
 0x129   : >> { %11094 = vmatmul.mubr.msk.bf16.gmra.mrb[4].mxu1 %vm1660_vm2, %v13538_v35  ;;  %16069 = vst [vmem:[#allocation37_spill] sm:$0xff] %v13626_v1  ;;  %v1491_v35 = vld [vmem:[#allocation2 + $0x7] sm:$0xff] }
 0x12a   : >> { %11254 = vmatmul.mubr.msk.bf16.gmra.mrb[4].mxu0 %vm1660_vm2, %v13559_v62  ;;  %11097 = vmatprep.mubr.msk.bf16.mxu1 %vm1660_vm2, %v13559_v62  ;;  %v13693_v62 = vld [vmem:[#allocation2 + $0x91] sm:$0xff] }
 0x12b   : >> { %11257 = vmatprep.mubr.msk.bf16.mxu0 %vm1660_vm2, %v13561_v56  ;;  %11286 = vmatpush3.bf16.msra.mxu0 %v12773_v60  ;;  %v1600_v60 = vld [vmem:[#allocation2 + $0xb0] sm:$0xff]  ;;  %16077 = vst [vmem:[#allocation45_spill] sm:$0xff] %v13693_v62 }
 0x12c   : >> { %11287 = vmatprep.subr.bf16.mxu0 %v12774_v0  ;;  %11126 = vmatpush3.bf16.msra.mxu1 %v12775_v61  ;;  %v3170_v61 = vmul.f32 %v13391_v41, %v13609_v36  ;;  %v13629_v4 = vpack.c.bf16 %v1600_v60, %v1599_v59  ;;  %v1604_v59 = vld [vmem:[#allocation2 + $0xd0] sm:$0xff]  ;;  %v3174_v60 = vmul.f32 %v13401_v43, %v13634_v32 }
 0x12d   : >> { %11127 = vmatprep.subr.bf16.mxu1 %v12777_v7 }
 0x12e   : >> { %16070 = vst [vmem:[#allocation38_spill] sm:$0xff] %v13629_v4 }
 0x12f   : >> { %11288 = vmatpush3.bf16.msra.mxu0 %v12774_v0  ;;  %v13624_v0 = vld [vmem:[#allocation2 + $0x39] sm:$0xff] }
 0x130   : >> { %11321 = vmatprep.subr.bf16.mxu0 %v12776_v6  ;;  %11128 = vmatpush3.bf16.msra.mxu1 %v12777_v7  ;;  %v3199_v5 = vpack.c.bf16 %v3170_v61, %v13624_v0  ;;  %v13632_v7 = vld [vmem:[#allocation2 + $0x51] sm:$0xff]  ;;  %v13651_v61 = vld [vmem:[#allocation2 + $0x59] sm:$0xff] }
 0x131   : >> { %11098 = vmatmul.mubr.msk.bf16.gmra.mrb[8].mxu1 %vm1660_vm2, %v13561_v56  ;;  %11161 = vmatprep.subr.bf16.mxu1 %v13599_v23  ;;  %v3172_v37 = vmul.f32 %v13396_v42, %v13632_v7  ;;  %v12782_v56 = vld [vmem:[%s15832_s3 + $0xd8] sm:$0xff]  }
 0x132   : >> { %11258 = vmatmul.mubr.msk.bf16.gmra.mrb[8].mxu0 %vm1660_vm2, %v13580_v26  ;;  %11101 = vmatprep.mubr.msk.bf16.mxu1 %vm1660_vm2, %v13580_v26  ;;  %v13664_v26 = vld [vmem:[#allocation2 + $0x81] sm:$0xff] }
 0x133   : >> { %11261 = vmatprep.mubr.msk.bf16.mxu0 %vm1660_vm2, %v13582_v28  ;;  %16073 = vst [vmem:[#allocation41_spill] sm:$0xff] %v13664_v26 }
 0x139   : >> { %11102 = vmatmul.mubr.msk.bf16.gmra.mrb[12].mxu1 %vm1660_vm2, %v13582_v28  ;;  %v1606_v28 = vld [vmem:[#allocation2 + $0xe0] sm:$0xff] }
 0x13a   : >> { %11262 = vmatmul.mubr.msk.bf16.gmra.mrb[12].mxu0 %vm1660_vm2, %v13604_v27  ;;  %11105 = vmatprep.mubr.msk.bf16.mxu1 %vm1660_vm2, %v13604_v27  ;;  %v1605_v27 = vld [vmem:[#allocation2 + $0xd8] sm:$0xff] }
 0x13b   : >> { %11289 = vmatprep.mubr.msk.bf16.mxu0 %vm1660_vm2, %v3197_v29  ;;  %v1602_v29 = vld [vmem:[#allocation2 + $0xc0] sm:$0xff] }
 0x13c   : >> { %v13656_v2 = vpack.c.bf16 %v1602_v29, %v1601_v54  ;;  %v13671_v54 = vld [vmem:[#allocation2 + $0x69] sm:$0xff] }
 0x13d   : >> { %v1607_v29 = vld [vmem:[#allocation2 + $0xe8] sm:$0xff] }
 0x13e   : >> { %16071 = vst [vmem:[#allocation39_spill] sm:$0xff] %v13656_v2 }
 0x141   : >> { %11106 = vmatmul.mubr.msk.bf16.gmra.mrb[16].mxu1 %vm1660_vm2, %v13626_v1  ;;  %v13662_v1 = vld [vmem:[#allocation2 + $0x71] sm:$0xff] }
 0x142   : >> { %11290 = vmatmul.mubr.msk.bf16.vlgmr.msra.gmra.mrb[0].mxu0 %vm1660_vm2, %v3198_v3  ;;  %11109 = vmatprep.mubr.msk.bf16.mxu1 %vm1660_vm2, %v13629_v4  ;;  %v12780_v3 = vld [vmem:[%s15832_s3 + $0xd0] sm:$0xff]   ;;  %v13659_v4 = vpack.c.bf16 %v1604_v59, %v1603_v57  ;;  %v13679_v57 = vld [vmem:[#allocation2 + $0x79] sm:$0xff]  ;;  %v3178_v59 = vmul.f32 %v13411_v45, %v13664_v26  ;;  %v13696_v26 = vld [vmem:[#allocation2 + $0xa1] sm:$0xff] }
 0x143   : >> { %11322 = vmatpush3.bf16.msra.mxu0 %v12776_v6  ;;  %11293 = vmatprep.mubr.msk.bf16.mxu0 %vm1660_vm2, %v3199_v5  ;;  %v3200_v6 = vpack.c.bf16 %v3172_v37, %v13647_v38  ;;  %v3201_v5 = vpack.c.bf16 %v3174_v60, %v13651_v61  ;;  %v1608_v37 = vld [vmem:[#allocation2 + $0xf0] sm:$0xff]  ;;  %16074 = vst [vmem:[#allocation42_spill] sm:$0xff] %v13679_v57  ;;  %v13686_v60 = vld [vmem:[%s15832_s3 + $0xe0] sm:$0xff]   ;;  %16078 = vst [vmem:[#allocation46_spill] sm:$0xff] %v13696_v26 }
 0x144   : >> { %11323 = vmatprep.subr.bf16.mxu0 %v12778_v34  ;;  %16072 = vst [vmem:[#allocation40_spill] sm:$0xff] %v13659_v4 }
 0x147   : >> { %11324 = vmatpush3.bf16.msra.mxu0 %v12778_v34  ;;  %v3176_v34 = vmul.f32 %v13406_v44, %v13662_v1 }
 0x148   : >> { %11325 = vmatprep.subr.bf16.mxu0 %v12780_v3 }
 0x149   : >> { %11110 = vmatmul.mubr.msk.bf16.gmra.mrb[20].mxu1 %vm1660_vm2, %v13656_v2  ;;  %v13691_v2 = vpack.c.bf16 %v1608_v37, %v1607_v29  ;;  %v1523_v29 = vmul.f32 %v13235_v8, %v1491_v35  ;;  %v13712_v37 = vld [vmem:[#allocation2 + $0x99] sm:$0xff]  ;;  %v13724_v35 = vld [vmem:[#allocation2 + $0xc1] sm:$0xff] }
 0x14a   : >> { %11294 = vmatmul.mubr.msk.bf16.gmra.mrb[4].mxu0 %vm1660_vm2, %v3200_v6  ;;  %11113 = vmatprep.mubr.msk.bf16.mxu1 %vm1660_vm2, %v13659_v4  ;;  %v13688_v6 = vpack.c.bf16 %v1606_v28, %v1605_v27  ;;  %v3202_v4 = vpack.c.bf16 %v3176_v34, %v13671_v54  ;;  %v13701_v28 = vld [vmem:[#allocation2 + $0x89] sm:$0xff]  ;;  %v3180_v27 = vmul.f32 %v16080_v46, %v13693_v62  ;;  %v13720_v62 = vld [vmem:[#allocation2 + $0xb1] sm:$0xff] }
 0x14b   : >> { %11297 = vmatprep.mubr.msk.bf16.mxu0 %vm1660_vm2, %v3201_v5  ;;  %11326 = vmatpush3.bf16.msra.mxu0 %v12780_v3  ;;  %16076 = vst [vmem:[#allocation44_spill] sm:$0xff] %v13691_v2  ;;  %v3203_v5 = vpack.c.bf16 %v3178_v59, %v13679_v57  ;;  %v1610_v3 = vld [vmem:[#allocation2 + $0x100] sm:$0xff]  ;;  %16079 = vst [vmem:[#allocation47_spill] sm:$0xff] %v13701_v28  ;;  %v3182_v34 = vmul.f32 %v16081_v47, %v13696_v26  ;;  %v13717_v57 = vld [vmem:[#allocation2 + $0x17] sm:$0xff] }
 0x14c   : >> { %11327 = vmatprep.subr.bf16.mxu0 %v12782_v56  ;;  %16075 = vst [vmem:[#allocation43_spill] sm:$0xff] %v13688_v6  ;;  %16082 = vst [vmem:[#allocation48_spill] sm:$0xff] %v13712_v37  ;;  %v13714_v59 = vpack.c.bf16 %v1610_v3, %v1609_v33  ;;  %v13722_v46 = vld [vmem:[#allocation2 + $0x27] sm:$0xff]  ;;  %v1525_v33 = vmul.f32 %v13240_v9, %v13717_v57  ;;  %v3184_v3 = vmul.f32 %v16089_v48, %v13720_v62 }
 0x14d   : >> { %16084 = vst [vmem:[#allocation50_spill] sm:$0xff] %v13717_v57  ;;  %16085 = vst [vmem:[#allocation51_spill] sm:$0xff] %v13720_v62  ;;  %v13749_v57 = vld [vmem:[#allocation2 + $0x37] sm:$0xff]  ;;  %v13755_v48 = vld [vmem:[#allocation2 + $0x47] sm:$0xff] }
 0x14e   : >> { %16083 = vst [vmem:[#allocation49_spill] sm:$0xff] %v13714_v59  ;;  %16086 = vst [vmem:[#allocation52_spill] sm:$0xff] %v13722_v46  ;;  %v13753_v62 = vld [vmem:[#allocation2 + $0xd1] sm:$0xff]  ;;  %v13757_v26 = vld [vmem:[#allocation2 + $0xe1] sm:$0xff] }
 0x14f   : >> { %11328 = vmatpush3.bf16.msra.mxu0 %v12782_v56  ;;  %v1492_v56 = vld [vmem:[#allocation2 + $0xf] sm:$0xff]  ;;  %16087 = vst [vmem:[#allocation53_spill] sm:$0xff] %v13724_v35  ;;  %16094 = vst [vmem:[#allocation58_spill] sm:$0xff] %v13749_v57 }
 0x150   : >> { %11361 = vmatprep.subr.bf16.mxu0 %v13686_v60  ;;  %16095 = vst [vmem:[#allocation59_spill] sm:$0xff] %v13753_v62  ;;  %16096 = vst [vmem:[#allocation60_spill] sm:$0xff] %v13755_v48 }
 0x151   : >> { %11114 = vmatmul.mubr.msk.bf16.gmra.mrb[24].mxu1 %vm1660_vm2, %v13688_v6  ;;  %v1555_v6 = vpack.c.bf16 %v1492_v56, %v1523_v29  ;;  %v1527_v56 = vmul.f32 %v13245_v10, %v13722_v46  ;;  %v3186_v29 = vmul.f32 %v16091_v49, %v13724_v35  ;;  %16097 = vst [vmem:[#allocation61_spill] sm:$0xff] %v13757_v26  ;;  %v12781_v35 = vld [vmem:[%s15832_s3 + $0x48] sm:$0xff]   ;;  %v13792_v49 = vld [vmem:[#allocation2 + $0xf1] sm:$0xff] }
 0x152   : >> { %11298 = vmatmul.mubr.msk.bf16.gmra.mrb[8].mxu0 %vm1660_vm2, %v3202_v4  ;;  %11117 = vmatprep.mubr.msk.bf16.mxu1 %vm1660_vm2, %v13691_v2  ;;  %v3204_v4 = vpack.c.bf16 %v3180_v27, %v13701_v28  ;;  %v3205_v2 = vpack.c.bf16 %v3182_v34, %v13712_v37  ;;  %v13737_v27 = vld [vmem:[#allocation2 + $0xa9] sm:$0xff]  ;;  %16104 = vst [vmem:[#allocation66_spill] sm:$0xff] %v13792_v49  ;;  %v13829_v28 = vld [vmem:[#allocation2 + $0x77] sm:$0xff] }
 0x153   : >> { %11301 = vmatprep.mubr.msk.bf16.mxu0 %vm1660_vm2, %v3203_v5  ;;  %v13732_v5 = vld [vmem:[#allocation2 + $0x1f] sm:$0xff]  ;;  %16090 = vst [vmem:[#allocation55_spill] sm:$0xff] %v13737_v27  ;;  %v13743_v34 = vld [vmem:[#allocation2 + $0x2f] sm:$0xff]  ;;  %16113 = vst [vmem:[#allocation73_spill] sm:$0xff] %v13829_v28 }
 0x154   : >> { %16088 = vst [vmem:[#allocation54_spill] sm:$0xff] %v13732_v5  ;;  %16092 = vst [vmem:[#allocation56_spill] sm:$0xff] %v13743_v34 }
 0x159   : >> { %11118 = vmatmul.mubr.msk.bf16.gmra.mrb[28].mxu1 %vm1660_vm2, %v13714_v59  ;;  %v3206_v59 = vpack.c.bf16 %v3184_v3, %v13737_v27  ;;  %v13767_v3 = vld [vmem:[#allocation2 + $0x3f] sm:$0xff] }
 0x15a   : >> { %11302 = vmatmul.mubr.msk.bf16.gmra.mrb[12].mxu0 %vm1660_vm2, %v3204_v4  ;;  %11129 = vmatprep.mubr.msk.bf16.mxu1 %vm1660_vm2, %v1555_v6  ;;  %v13745_v4 = vld [vmem:[#allocation2 + $0xb9] sm:$0xff]  ;;  %v1556_v6 = vpack.c.bf16 %v13732_v5, %v1525_v33  ;;  %v1529_v33 = vmul.f32 %v16061_v11, %v13749_v57  ;;  %v13777_v5 = vld [vmem:[#allocation2 + $0x4f] sm:$0xff] }
 0x15b   : >> { %11305 = vmatprep.mubr.msk.bf16.mxu0 %vm1660_vm2, %v3205_v2  ;;  %16093 = vst [vmem:[#allocation57_spill] sm:$0xff] %v13745_v4  ;;  %v1557_v2 = vpack.c.bf16 %v13743_v34, %v1527_v56  ;;  %v3207_v37 = vpack.c.bf16 %v3186_v29, %v13745_v4  ;;  %v3188_v56 = vmul.f32 %v16098_v50, %v13753_v62  ;;  %16100 = vst [vmem:[#allocation63_spill] sm:$0xff] %v13777_v5  ;;  %v13784_v4 = vld [vmem:[#allocation2 + $0xd9] sm:$0xff] }
 0x15c   : >> { %v1531_v29 = vmul.f32 %v13255_v12, %v13755_v48  ;;  %16102 = vst [vmem:[#allocation64_spill] sm:$0xff] %v13784_v4  ;;  %v1558_v62 = vpack.c.bf16 %v13767_v3, %v1529_v33  ;;  %v13789_v50 = vld [vmem:[#allocation2 + $0x57] sm:$0xff] }
 0x15d   : >> { %16103 = vst [vmem:[#allocation65_spill] sm:$0xff] %v13789_v50  ;;  %v12785_v33 = vld [vmem:[%s15832_s3 + $0x58] sm:$0xff]  }
 0x161   : >> { %11130 = vmatmul.mubr.msk.bf16.vlgmr.msra.gmra.mrb[0].mxu1 %vm1660_vm2, %v1556_v6  ;;  %v13775_v6 = vld [vmem:[#allocation2 + $0xc9] sm:$0xff] }
 0x162   : >> { %11306 = vmatmul.mubr.msk.bf16.gmra.mrb[16].mxu0 %vm1660_vm2, %v3206_v59  ;;  %11162 = vmatpush3.bf16.msra.mxu1 %v13599_v23  ;;  %16099 = vst [vmem:[#allocation62_spill] sm:$0xff] %v13775_v6  ;;  %v3190_v59 = vmul.f32 %v16101_v51, %v13757_v26  ;;  %v12783_v23 = vld [vmem:[%s15832_s3 + $0x50] sm:$0xff]   ;;  %v13794_v26 = vld [vmem:[#allocation2 + $0x67] sm:$0xff] }
 0x163   : >> { %11133 = vmatprep.mubr.msk.bf16.mxu1 %vm1660_vm2, %v1557_v2  ;;  %11309 = vmatprep.mubr.msk.bf16.mxu0 %vm1660_vm2, %v3207_v37  ;;  %v3208_v2 = vpack.c.bf16 %v3188_v56, %v13775_v6  ;;  %v1559_v37 = vpack.c.bf16 %v13777_v5, %v1531_v29  ;;  %16105 = vst [vmem:[#allocation67_spill] sm:$0xff] %v13794_v26  ;;  %v13796_v51 = vld [vmem:[#allocation2 + $0x101] sm:$0xff] }
 0x164   : >> { %11163 = vmatprep.subr.bf16.mxu1 %v12781_v35  ;;  %v3209_v27 = vpack.c.bf16 %v3190_v59, %v13784_v4  ;;  %16106 = vst [vmem:[#allocation68_spill] sm:$0xff] %v13796_v51  ;;  %v1533_v56 = vmul.f32 %v16060_v13, %v13789_v50  ;;  %v3192_v29 = vmul.f32 %v16108_v52, %v13792_v49  ;;  %v13813_v4 = vld [vmem:[#allocation2 + $0xe9] sm:$0xff] }
 0x165   : >> { %v1535_v59 = vmul.f32 %v13265_v14, %v13794_v26  ;;  %16109 = vst [vmem:[#allocation70_spill] sm:$0xff] %v13813_v4  ;;  %v3194_v6 = vmul.f32 %v16111_v53, %v13796_v51  ;;  %v3164_v51 = vld [vmem:[#allocation2 + $0x111] sm:$0xff]  ;;  %v1537_v53 = vmul.f32 %v13270_v15, %v13829_v28 }
 0x166   : >> { %11164 = vmatpush3.bf16.msra.mxu1 %v12781_v35  ;;  %v13806_v35 = vld [vmem:[#allocation2 + $0x5f] sm:$0xff] }
 0x167   : >> { %11165 = vmatprep.subr.bf16.mxu1 %v12783_v23  ;;  %16107 = vst [vmem:[#allocation69_spill] sm:$0xff] %v13806_v35  ;;  %v1560_v49 = vpack.c.bf16 %v13806_v35, %v1533_v56  ;;  %v13840_v56 = vld [vmem:[#allocation2 + $0x7f] sm:$0xff] }
 0x169   : >> { %11134 = vmatmul.mubr.msk.bf16.gmra.mrb[4].mxu1 %vm1660_vm2, %v1558_v62  ;;  %v13815_v62 = vld [vmem:[#allocation2 + $0x6f] sm:$0xff] }
 0x16a   : >> { %11310 = vmatmul.mubr.msk.bf16.gmra.mrb[20].mxu0 %vm1660_vm2, %v3208_v2  ;;  %11137 = vmatprep.mubr.msk.bf16.mxu1 %vm1660_vm2, %v1559_v37  ;;  %16110 = vst [vmem:[#allocation71_spill] sm:$0xff] %v13815_v62  ;;  %v13819_v2 = vld [vmem:[#allocation2 + $0xf9] sm:$0xff]  ;;  %v1561_v52 = vpack.c.bf16 %v13815_v62, %v1535_v59  ;;  %v13846_v59 = vld [vmem:[#allocation2 + $0x8f] sm:$0xff] }
 0x16b   : >> { %11313 = vmatprep.mubr.msk.bf16.mxu0 %vm1660_vm2, %v3209_v27  ;;  %11166 = vmatpush3.bf16.msra.mxu1 %v12783_v23  ;;  %16112 = vst [vmem:[#allocation72_spill] sm:$0xff] %v13819_v2  ;;  %v13824_v37 = vld [vmem:[%s15832_s3 + $0x60] sm:$0xff]   ;;  %v3210_v27 = vpack.c.bf16 %v3192_v29, %v13813_v4  ;;  %v3211_v47 = vpack.c.bf16 %v3194_v6, %v13819_v2  ;;  %16115 = vst [vmem:[#allocation74_spill] sm:$0xff] %v13846_v59  ;;  %v13852_v4 = vld [vmem:[#allocation2 + $0x97] sm:$0xff] }
 0x16c   : >> { %11167 = vmatprep.subr.bf16.mxu1 %v12785_v33  ;;  %v13832_v23 = vld [vmem:[#allocation2 + $0x87] sm:$0xff]  ;;  %v3196_v29 = vmul.f32 %v16114_v55, %v3164_v51  ;;  %v1562_v2 = vpack.c.bf16 %v13840_v56, %v1537_v53  ;;  %16116 = vst [vmem:[#allocation75_spill] sm:$0xff] %v13852_v4  ;;  %v3521_v53 = vmul.f32 %v13240_v9, %v13749_v57 }
 0x16d   : >> { %v1539_v6 = vmul.f32 %v13275_v16, %v13832_v23  ;;  %v13855_v55 = vld [vmem:[#allocation2 + $0xa7] sm:$0xff] }
 0x16e   : >> { %v13879_v57 = vld [vmem:[#allocation2 + $0xc7] sm:$0xff] }
 0x16f   : >> { %11168 = vmatpush3.bf16.msra.mxu1 %v12785_v33  ;;  %v3163_v33 = vld [vmem:[#allocation2 + $0x109] sm:$0xff] }
 0x170   : >> { %11201 = vmatprep.subr.bf16.mxu1 %v13824_v37 }
 0x171   : >> { %11138 = vmatmul.mubr.msk.bf16.gmra.mrb[8].mxu1 %vm1660_vm2, %v1560_v49  ;;  %v3519_v49 = vmul.f32 %v13235_v8, %v13722_v46  ;;  %v13862_v46 = vld [vmem:[#allocation2 + $0x9f] sm:$0xff] }
 0x172   : >> { %11314 = vmatmul.mubr.msk.bf16.gmra.mrb[24].mxu0 %vm1660_vm2, %v3210_v27  ;;  %11141 = vmatprep.mubr.msk.bf16.mxu1 %vm1660_vm2, %v1561_v52  ;;  %v3212_v27 = vpack.c.bf16 %v3196_v29, %v3163_v33  ;;  %v1563_v52 = vpack.c.bf16 %v13846_v59, %v1539_v6  ;;  %v1543_v29 = vmul.f32 %v13285_v18, %v13855_v55  ;;  %v13869_v6 = vld [vmem:[#allocation2 + $0xaf] sm:$0xff] }
 0x173   : >> { %11317 = vmatprep.mubr.msk.bf16.mxu0 %vm1660_vm2, %v3211_v47  ;;  %v3551_v51 = vpack.c.bf16 %v13743_v34, %v3519_v49  ;;  %v1541_v47 = vmul.f32 %v13280_v17, %v13852_v4  ;;  %v3552_v49 = vpack.c.bf16 %v13767_v3, %v3521_v53  ;;  %v3525_v53 = vmul.f32 %v16061_v11, %v13789_v50  ;;  %v13907_v11 = vld [vmem:[#allocation2 + $0xd7] sm:$0xff] }
 0x175   : >> { %v1564_v33 = vpack.c.bf16 %v13862_v46, %v1541_v47  ;;  %v13889_v47 = vld [vmem:[#allocation2 + $0xbf] sm:$0xff] }
 0x179   : >> { %11142 = vmatmul.mubr.msk.bf16.gmra.mrb[12].mxu1 %vm1660_vm2, %v1562_v2  ;;  %v3523_v2 = vmul.f32 %v13245_v10, %v13755_v48 }
 0x17a   : >> { %11318 = vmatmul.mubr.msk.bf16.gmra.mrb[28].mxu0 %vm1660_vm2, %v3212_v27  ;;  %11145 = vmatprep.mubr.msk.bf16.mxu1 %vm1660_vm2, %v1563_v52  ;;  %v1565_v27 = vpack.c.bf16 %v13869_v6, %v1543_v29  ;;  %v13876_v52 = vld [vmem:[#allocation2 + $0xb7] sm:$0xff]  ;;  %v1547_v29 = vmul.f32 %v13295_v20, %v13879_v57 }
 0x17b   : >> { %11329 = vmatprep.mubr.msk.bf16.mxu0 %vm1660_vm2, %v3551_v51  ;;  %v3553_v34 = vpack.c.bf16 %v13777_v5, %v3523_v2  ;;  %v12786_v51 = vld [vmem:[%s15832_s3 + $0xe8] sm:$0xff]   ;;  %v1545_v48 = vmul.f32 %v13290_v19, %v13876_v52  ;;  %v3554_v5 = vpack.c.bf16 %v13806_v35, %v3525_v53  ;;  %v13920_v53 = vld [vmem:[#allocation2 + $0xdf] sm:$0xff]  ;;  %v2104_v35 = vld [vmem:[#allocation2 + $0x11] sm:$0xff] }
 0x17c   : >> { %v13897_v2 = vld [vmem:[#allocation2 + $0xcf] sm:$0xff] }
 0x17d   : >> { %v1567_v50 = vpack.c.bf16 %v13897_v2, %v1547_v29 }
 0x181   : >> { %11146 = vmatmul.mubr.msk.bf16.gmra.mrb[16].mxu1 %vm1660_vm2, %v1564_v33  ;;  %v3527_v33 = vmul.f32 %v13255_v12, %v13794_v26  ;;  %v12790_v26 = vld [vmem:[%s15832_s3 + $0xf8] sm:$0xff]  }
 0x182   : >> { %11330 = vmatmul.mubr.msk.bf16.vlgmr.msra.gmra.mrb[0].mxu0 %vm1660_vm2, %v3552_v49  ;;  %11149 = vmatprep.mubr.msk.bf16.mxu1 %vm1660_vm2, %v1565_v27  ;;  %v12788_v49 = vld [vmem:[%s15832_s3 + $0xf0] sm:$0xff]   ;;  %v1566_v27 = vpack.c.bf16 %v13889_v47, %v1545_v48  ;;  %v1549_v48 = vmul.f32 %v13300_v21, %v13907_v11 }
 0x183   : >> { %11362 = vmatpush3.bf16.msra.mxu0 %v13686_v60  ;;  %11333 = vmatprep.mubr.msk.bf16.mxu0 %vm1660_vm2, %v3553_v34  ;;  %v3555_v60 = vpack.c.bf16 %v13815_v62, %v3527_v33  ;;  %v13910_v34 = vld [vmem:[#allocation2 + $0xe7] sm:$0xff]  ;;  %v13927_v33 = vld [vmem:[#allocation2 + $0xef] sm:$0xff] }
 0x184   : >> { %11363 = vmatprep.subr.bf16.mxu0 %v12786_v51  ;;  %v1551_v29 = vmul.f32 %v13305_v22, %v13910_v34 }
 0x187   : >> { %11364 = vmatpush3.bf16.msra.mxu0 %v12786_v51  ;;  %v3529_v51 = vmul.f32 %v16060_v13, %v13829_v28  ;;  %v1569_v28 = vpack.c.bf16 %v13927_v33, %v1551_v29  ;;  %v13939_v13 = vld [vmem:[#allocation2 + $0xf7] sm:$0xff]  ;;  %v2136_v29 = vmul.f32 %v13381_v39, %v2104_v35  ;;  %v3537_v35 = vmul.f32 %v13280_v17, %v13876_v52 }
 0x188   : >> { %11365 = vmatprep.subr.bf16.mxu0 %v12788_v49 }
 0x189   : >> { %11150 = vmatmul.mubr.msk.bf16.gmra.mrb[20].mxu1 %vm1660_vm2, %v1566_v27  ;;  %v3531_v27 = vmul.f32 %v13265_v14, %v13832_v23  ;;  %v3556_v62 = vpack.c.bf16 %v13840_v56, %v3529_v51  ;;  %v3533_v51 = vmul.f32 %v13270_v15, %v13852_v4  ;;  %v2138_v4 = vmul.f32 %v13386_v40, %v13584_v30 }
 0x18a   : >> { %11334 = vmatmul.mubr.msk.bf16.gmra.mrb[4].mxu0 %vm1660_vm2, %v3554_v5  ;;  %11153 = vmatprep.mubr.msk.bf16.mxu1 %vm1660_vm2, %v1567_v50  ;;  %v13934_v50 = vld [vmem:[%s15832_s3 + $0x100] sm:$0xff]   ;;  %v1568_v5 = vpack.c.bf16 %v13920_v53, %v1549_v48 }
 0x18b   : >> { %11337 = vmatprep.mubr.msk.bf16.mxu0 %vm1660_vm2, %v3555_v60  ;;  %11366 = vmatpush3.bf16.msra.mxu0 %v12788_v49  ;;  %v3557_v60 = vpack.c.bf16 %v13846_v59, %v3531_v27  ;;  %v1553_v49 = vmul.f32 %v13310_v24, %v13939_v13  ;;  %v13948_v48 = vld [vmem:[#allocation2 + $0xff] sm:$0xff]  ;;  %v3535_v27 = vmul.f32 %v13275_v16, %v13855_v55 }
 0x18c   : >> { %11367 = vmatprep.subr.bf16.mxu0 %v12790_v26  ;;  %v3558_v59 = vpack.c.bf16 %v13862_v46, %v3533_v51  ;;  %v2168_v51 = vpack.c.bf16 %v2138_v4, %v13601_v25  ;;  %v3541_v25 = vmul.f32 %v13290_v19, %v13907_v11  ;;  %v3543_v4 = vmul.f32 %v13295_v20, %v13910_v34 }
 0x18f   : >> { %11368 = vmatpush3.bf16.msra.mxu0 %v12790_v26  ;;  %v2103_v26 = vld [vmem:[#allocation2 + $0x9] sm:$0xff] }
 0x190   : >> { %11401 = vmatprep.subr.bf16.mxu0 %v13934_v50 }
 0x191   : >> { %11154 = vmatmul.mubr.msk.bf16.gmra.mrb[24].mxu1 %vm1660_vm2, %v1568_v5  ;;  %v1570_v5 = vpack.c.bf16 %v13948_v48, %v1553_v49  ;;  %v3539_v49 = vmul.f32 %v13285_v18, %v13879_v57 }
 0x192   : >> { %11338 = vmatmul.mubr.msk.bf16.gmra.mrb[8].mxu0 %vm1660_vm2, %v3556_v62  ;;  %11157 = vmatprep.mubr.msk.bf16.mxu1 %vm1660_vm2, %v1569_v28  ;;  %v2167_v62 = vpack.c.bf16 %v2136_v29, %v2103_v26  ;;  %v3559_v28 = vpack.c.bf16 %v13869_v6, %v3535_v27  ;;  %v3560_v29 = vpack.c.bf16 %v13889_v47, %v3537_v35  ;;  %v12789_v26 = vld [vmem:[%s15832_s3 + $0x68] sm:$0xff]  }
 0x193   : >> { %11341 = vmatprep.mubr.msk.bf16.mxu0 %vm1660_vm2, %v3557_v60  ;;  %v2140_v60 = vmul.f32 %v13391_v41, %v13607_v31  ;;  %v2142_v31 = vmul.f32 %v13396_v42, %v13609_v36  ;;  %v12791_v36 = vld [vmem:[%s15832_s3 + $0x70] sm:$0xff]   ;;  %v3562_v27 = vpack.c.bf16 %v13920_v53, %v3541_v25  ;;  %v2146_v35 = vmul.f32 %v13406_v44, %v13634_v32 }
 0x194   : >> { %v16119_v25 = vld [vmem:[#allocation45_spill] sm:$0xff] }
 0x195   : >> { %v2169_v30 = vpack.c.bf16 %v2140_v60, %v13620_v58  ;;  %v2144_v58 = vmul.f32 %v13401_v43, %v13632_v7  ;;  %v3563_v7 = vpack.c.bf16 %v13927_v33, %v3543_v4  ;;  %v2172_v32 = vpack.c.bf16 %v2146_v35, %v13651_v61  ;;  %v3518_v4 = vld [vmem:[#allocation2 + $0x11f] sm:$0xff] }
 0x199   : >> { %11158 = vmatmul.mubr.msk.bf16.gmra.mrb[28].mxu1 %vm1660_vm2, %v1570_v5  ;;  %v2171_v5 = vpack.c.bf16 %v2144_v58, %v13647_v38  ;;  %v2148_v38 = vmul.f32 %v13411_v45, %v13662_v1  ;;  %v16117_v1 = vld [vmem:[#allocation41_spill] sm:$0xff]  ;;  %v16120_v58 = vld [vmem:[#allocation22_spill] sm:$0xff] }
 0x19a   : >> { %11342 = vmatmul.mubr.msk.bf16.gmra.mrb[12].mxu0 %vm1660_vm2, %v3558_v59  ;;  %11169 = vmatprep.mubr.msk.bf16.mxu1 %vm1660_vm2, %v2167_v62  ;;  %v3561_v59 = vpack.c.bf16 %v13897_v2, %v3539_v49  ;;  %v13998_v62 = vld [vmem:[#allocation2 + $0x107] sm:$0xff]  ;;  %v14015_v49 = vld [vmem:[#allocation2 + $0x10f] sm:$0xff] }
 0x19b   : >> { %11345 = vmatprep.mubr.msk.bf16.mxu0 %vm1660_vm2, %v3559_v28  ;;  %v12793_v28 = vld [vmem:[%s15832_s3 + $0x78] sm:$0xff]   ;;  %v3547_v60 = vmul.f32 %v13305_v22, %v13998_v62 }
 0x1a1   : >> { %11170 = vmatmul.mubr.msk.bf16.vlgmr.msra.gmra.mrb[0].mxu1 %vm1660_vm2, %v2168_v51 }
 0x1a2   : >> { %11346 = vmatmul.mubr.msk.bf16.gmra.mrb[16].mxu0 %vm1660_vm2, %v3560_v29  ;;  %11202 = vmatpush3.bf16.msra.mxu1 %v13824_v37  ;;  %v2170_v37 = vpack.c.bf16 %v2142_v31, %v13624_v0  ;;  %v3545_v0 = vmul.f32 %v13300_v21, %v13939_v13  ;;  %v2173_v29 = vpack.c.bf16 %v2148_v38, %v13671_v54  ;;  %v16126_v38 = vld [vmem:[#allocation24_spill] sm:$0xff] }
 0x1a3   : >> { %11173 = vmatprep.mubr.msk.bf16.mxu1 %vm1660_vm2, %v2169_v30  ;;  %11349 = vmatprep.mubr.msk.bf16.mxu0 %vm1660_vm2, %v3561_v59  ;;  %v3565_v30 = vpack.c.bf16 %v14015_v49, %v3547_v60  ;;  %v3517_v59 = vld [vmem:[#allocation2 + $0x117] sm:$0xff]  ;;  %v2152_v54 = vmul.f32 %v16120_v58, %v16119_v25 }
 0x1a4   : >> { %11203 = vmatprep.subr.bf16.mxu1 %v12789_v26  ;;  %v3564_v51 = vpack.c.bf16 %v13948_v48, %v3545_v0  ;;  %v3549_v61 = vmul.f32 %v13310_v24, %v3517_v59  ;;  %v16125_v0 = vld [vmem:[#allocation51_spill] sm:$0xff] }
 0x1a5   : >> { %v2156_v60 = vmul.f32 %v16126_v38, %v16125_v0 }
 0x1a6   : >> { %11204 = vmatpush3.bf16.msra.mxu1 %v12789_v26  ;;  %v16118_v26 = vld [vmem:[#allocation21_spill] sm:$0xff] }
 0x1a7   : >> { %11205 = vmatprep.subr.bf16.mxu1 %v12791_v36  ;;  %v2150_v31 = vmul.f32 %v16118_v26, %v16117_v1  ;;  %v12794_v1 = vld [vmem:[%s15832_s3 + $0x108] sm:$0xff]  }
 0x1a9   : >> { %11174 = vmatmul.mubr.msk.bf16.gmra.mrb[4].mxu1 %vm1660_vm2, %v2170_v37 }
 0x1aa   : >> { %11350 = vmatmul.mubr.msk.bf16.gmra.mrb[20].mxu0 %vm1660_vm2, %v3562_v27  ;;  %11177 = vmatprep.mubr.msk.bf16.mxu1 %vm1660_vm2, %v2171_v5  ;;  %v16122_v27 = vld [vmem:[#allocation47_spill] sm:$0xff] }
 0x1ab   : >> { %11353 = vmatprep.mubr.msk.bf16.mxu0 %vm1660_vm2, %v3563_v7  ;;  %11206 = vmatpush3.bf16.msra.mxu1 %v12791_v36  ;;  %v16121_v36 = vld [vmem:[#allocation42_spill] sm:$0xff]  ;;  %v2175_v5 = vpack.c.bf16 %v2152_v54, %v16122_v27  ;;  %v16132_v54 = vld [vmem:[#allocation31_spill] sm:$0xff]  ;;  %v12795_v27 = vld [vmem:[%s15832_s3 + $0x110] sm:$0xff]  }
 0x1ac   : >> { %11207 = vmatprep.subr.bf16.mxu1 %v12793_v28  ;;  %v2174_v37 = vpack.c.bf16 %v2150_v31, %v16121_v36  ;;  %v16123_v7 = vld [vmem:[#allocation46_spill] sm:$0xff]  ;;  %v16130_v31 = vld [vmem:[#allocation53_spill] sm:$0xff]  ;;  %v16134_v36 = vld [vmem:[#allocation26_spill] sm:$0xff] }
 0x1af   : >> { %11208 = vmatpush3.bf16.msra.mxu1 %v12793_v28  ;;  %v16124_v28 = vld [vmem:[#allocation23_spill] sm:$0xff] }
 0x1b0   : >> { %12179 = vmatprep.subr.bf16.mxu1 %v13506_v63  ;;  %v3566_v63 = vpack.c.bf16 %v3518_v4, %v3549_v61  ;;  %v2154_v35 = vmul.f32 %v16124_v28, %v16123_v7  ;;  %v16131_v61 = vld [vmem:[#allocation25_spill] sm:$0xff]  ;;  %v16133_v4 = vld [vmem:[#allocation59_spill] sm:$0xff] }
 0x1b1   : >> { %11178 = vmatmul.mubr.msk.bf16.gmra.mrb[8].mxu1 %vm1660_vm2, %v2172_v32  ;;  %v16127_v32 = vld [vmem:[#allocation30_spill] sm:$0xff]  ;;  %v2158_v25 = vmul.f32 %v16131_v61, %v16130_v31 }
 0x1b2   : >> { %11354 = vmatmul.mubr.msk.bf16.gmra.mrb[24].mxu0 %vm1660_vm2, %v3564_v51  ;;  %11181 = vmatprep.mubr.msk.bf16.mxu1 %vm1660_vm2, %v2173_v29  ;;  %v16128_v51 = vld [vmem:[#allocation48_spill] sm:$0xff] }
 0x1b3   : >> { %11357 = vmatprep.mubr.msk.bf16.mxu0 %vm1660_vm2, %v3565_v30  ;;  %v2176_v29 = vpack.c.bf16 %v2154_v35, %v16128_v51  ;;  %v16129_v30 = vld [vmem:[#allocation55_spill] sm:$0xff]  ;;  %v16137_v35 = vld [vmem:[#allocation62_spill] sm:$0xff] }
 0x1b4   : >> { %v2177_v59 = vpack.c.bf16 %v2156_v60, %v16129_v30  ;;  %v12796_v60 = vld [vmem:[%s15832_s3 + $0x118] sm:$0xff]  }
 0x1b5   : >> { %v16141_v30 = vld [vmem:[#allocation66_spill] sm:$0xff] }
 0x1b9   : >> { %11182 = vmatmul.mubr.msk.bf16.gmra.mrb[12].mxu1 %vm1660_vm2, %v2174_v37  ;;  %v2160_v37 = vmul.f32 %v16134_v36, %v16133_v4  ;;  %v16145_v4 = vld [vmem:[#allocation70_spill] sm:$0xff] }
 0x1ba   : >> { %11358 = vmatmul.mubr.msk.bf16.gmra.mrb[28].mxu0 %vm1660_vm2, %v3566_v63  ;;  %11185 = vmatprep.mubr.msk.bf16.mxu1 %vm1660_vm2, %v2175_v5  ;;  %v16135_v63 = vld [vmem:[#allocation32_spill] sm:$0xff]  ;;  %v16136_v5 = vld [vmem:[#allocation57_spill] sm:$0xff] }
 0x1bb   : >> { %11369 = vmatprep.mubr.msk.bf16.mxu0 %vm1660_vm2, %v16127_v32  ;;  %v2178_v7 = vpack.c.bf16 %v2158_v25, %v16136_v5  ;;  %v2179_v0 = vpack.c.bf16 %v2160_v37, %v16137_v35  ;;  %v16139_v32 = vld [vmem:[#allocation27_spill] sm:$0xff]  ;;  %v16143_v25 = vld [vmem:[#allocation34_spill] sm:$0xff]  ;;  %v16148_v35 = vld [vmem:[#allocation35_spill] sm:$0xff] }
 0x1bc   : >> { %v16147_v5 = vld [vmem:[#allocation29_spill] sm:$0xff] }
 0x1c1   : >> { %11186 = vmatmul.mubr.msk.bf16.gmra.mrb[16].mxu1 %vm1660_vm2, %v2176_v29  ;;  %v16140_v29 = vld [vmem:[#allocation33_spill] sm:$0xff] }
 0x1c2   : >> { %11370 = vmatmul.mubr.msk.bf16.vlgmr.msra.gmra.mrb[0].mxu0 %vm1660_vm2, %v16132_v54  ;;  %11189 = vmatprep.mubr.msk.bf16.mxu1 %vm1660_vm2, %v2177_v59  ;;  %v16142_v59 = vld [vmem:[#allocation28_spill] sm:$0xff] }
 0x1c3   : >> { %11402 = vmatpush3.bf16.msra.mxu0 %v13934_v50  ;;  %11373 = vmatprep.mubr.msk.bf16.mxu0 %vm1660_vm2, %v16135_v63  ;;  %v16138_v50 = vld [vmem:[#allocation61_spill] sm:$0xff]  ;;  %v2164_v31 = vmul.f32 %v16142_v59, %v16141_v30  ;;  %v16146_v63 = vld [vmem:[#allocation68_spill] sm:$0xff]  ;;  %v16152_v30 = vld [vmem:[#allocation54_spill] sm:$0xff] }
 0x1c4   : >> { %11403 = vmatprep.subr.bf16.mxu0 %v12794_v1  ;;  %v2162_v51 = vmul.f32 %v16139_v32, %v16138_v50 }
 0x1c5   : >> { %v2181_v37 = vpack.c.bf16 %v2164_v31, %v16145_v4  ;;  %v16153_v31 = vld [vmem:[#allocation52_spill] sm:$0xff]  ;;  %v16156_v4 = vld [vmem:[#allocation58_spill] sm:$0xff] }
 0x1c7   : >> { %11404 = vmatpush3.bf16.msra.mxu0 %v12794_v1  ;;  %v16144_v1 = vld [vmem:[#allocation64_spill] sm:$0xff] }
 0x1c8   : >> { %11405 = vmatprep.subr.bf16.mxu0 %v12795_v27  ;;  %v2180_v54 = vpack.c.bf16 %v2162_v51, %v16144_v1  ;;  %v16151_v51 = vld [vmem:[#allocation72_spill] sm:$0xff]  ;;  %v16154_v1 = vld [vmem:[#allocation37_spill] sm:$0xff] }
 0x1c9   : >> { %11190 = vmatmul.mubr.msk.bf16.gmra.mrb[20].mxu1 %vm1660_vm2, %v2178_v7  ;;  %v2166_v7 = vmul.f32 %v16147_v5, %v16146_v63  ;;  %v16157_v63 = vld [vmem:[#allocation56_spill] sm:$0xff] }
 0x1ca   : >> { %11374 = vmatmul.mubr.msk.bf16.gmra.mrb[4].mxu0 %vm1660_vm2, %v16140_v29  ;;  %11193 = vmatprep.mubr.msk.bf16.mxu1 %vm1660_vm2, %v2179_v0  ;;  %v16149_v0 = vld [vmem:[#allocation50_spill] sm:$0xff] }
 0x1cb   : >> { %11377 = vmatprep.mubr.msk.bf16.mxu0 %vm1660_vm2, %v16143_v25  ;;  %11406 = vmatpush3.bf16.msra.mxu0 %v12795_v27  ;;  %v2489_v50 = vmul.f32 %v13235_v8, %v16149_v0  ;;  %v16150_v27 = vld [vmem:[#allocation36_spill] sm:$0xff]  ;;  %v2182_v29 = vpack.c.bf16 %v2166_v7, %v16151_v51  ;;  %v2491_v25 = vmul.f32 %v13240_v9, %v16153_v31  ;;  %v16160_v51 = vld [vmem:[#allocation39_spill] sm:$0xff] }
 0x1cc   : >> { %11407 = vmatprep.subr.bf16.mxu0 %v12796_v60  ;;  %v16158_v0 = vld [vmem:[#allocation60_spill] sm:$0xff] }
 0x1cd   : >> { %v2522_v7 = vpack.c.bf16 %v16157_v63, %v2491_v25  ;;  %v16162_v31 = vld [vmem:[#allocation40_spill] sm:$0xff]  ;;  %v16163_v25 = vld [vmem:[#allocation63_spill] sm:$0xff] }
 0x1ce   : >> { %v16165_v63 = vld [vmem:[#allocation67_spill] sm:$0xff] }
 0x1cf   : >> { %11408 = vmatpush3.bf16.msra.mxu0 %v12796_v60  ;;  %v2521_v60 = vpack.c.bf16 %v16152_v30, %v2489_v50  ;;  %v16159_v50 = vld [vmem:[#allocation7_spill] sm:$0xff]  ;;  %v16161_v30 = vld [vmem:[#allocation65_spill] sm:$0xff] }
 0x1d1   : >> { %11194 = vmatmul.mubr.msk.bf16.gmra.mrb[24].mxu1 %vm1660_vm2, %v2180_v54  ;;  %v16155_v54 = vld [vmem:[#allocation38_spill] sm:$0xff] }
 0x1d2   : >> { %11378 = vmatmul.mubr.msk.bf16.gmra.mrb[8].mxu0 %vm1660_vm2, %v16148_v35  ;;  %11197 = vmatprep.mubr.msk.bf16.mxu1 %vm1660_vm2, %v2181_v37  ;;  %v2493_v37 = vmul.f32 %v13245_v10, %v16156_v4 }
 0x1d3   : >> { %11381 = vmatprep.mubr.msk.bf16.mxu0 %vm1660_vm2, %v16150_v27  ;;  %v2495_v27 = vmul.f32 %v16159_v50, %v16158_v0  ;;  %v16167_v0 = vld [vmem:[#allocation43_spill] sm:$0xff]  ;;  %v16168_v50 = vld [vmem:[#allocation73_spill] sm:$0xff] }
 0x1d4   : >> { %v2523_v35 = vpack.c.bf16 %v13767_v3, %v2493_v37  ;;  %v12798_v3 = vld [vmem:[%s15832_s3 + $0x88] sm:$0xff]   ;;  %v12799_v37 = vld [vmem:[%s15832_s3 + $0x90] sm:$0xff]  }
 0x1d9   : >> { %11198 = vmatmul.mubr.msk.bf16.gmra.mrb[28].mxu1 %vm1660_vm2, %v2182_v29  ;;  %v12797_v29 = vld [vmem:[%s15832_s3 + $0x80] sm:$0xff]  }
 0x1da   : >> { %11382 = vmatmul.mubr.msk.bf16.gmra.mrb[12].mxu0 %vm1660_vm2, %v16154_v1  ;;  %11209 = vmatprep.mubr.msk.bf16.mxu1 %vm1660_vm2, %v2521_v60  ;;  %v2497_v60 = vmul.f32 %v13255_v12, %v16161_v30  ;;  %v2524_v1 = vpack.c.bf16 %v16163_v25, %v2495_v27  ;;  %v2501_v27 = vmul.f32 %v13265_v14, %v16168_v50  ;;  %v3870_v30 = vld [vmem:[#allocation2 + $0x110] sm:$0xff] }
 0x1db   : >> { %11385 = vmatprep.mubr.msk.bf16.mxu0 %vm1660_vm2, %v16155_v54  ;;  %v16164_v54 = vld [vmem:[#allocation69_spill] sm:$0xff]  ;;  %v4163_v50 = vld [vmem:[#allocation2 + $0x29] sm:$0xff] }
 0x1dc   : >> { %v2525_v4 = vpack.c.bf16 %v16164_v54, %v2497_v60  ;;  %v12800_v60 = vld [vmem:[%s15832_s3 + $0x98] sm:$0xff]   ;;  %v2527_v25 = vpack.c.bf16 %v13840_v56, %v2501_v27 }
 0x1dd   : >> { %v4164_v54 = vld [vmem:[#allocation2 + $0x31] sm:$0xff]  ;;  %v16173_v27 = vld [vmem:[#allocation74_spill] sm:$0xff] }
 0x1de   : >> { %v3871_v56 = vld [vmem:[#allocation2 + $0x118] sm:$0xff] }
 0x1e1   : >> { %11210 = vmatmul.mubr.msk.bf16.vlgmr.msra.gmra.mrb[0].mxu1 %vm1660_vm2, %v2522_v7  ;;  %v16166_v7 = vld [vmem:[#allocation9_spill] sm:$0xff] }
 0x1e2   : >> { %11386 = vmatmul.mubr.msk.bf16.gmra.mrb[16].mxu0 %vm1660_vm2, %v16160_v51  ;;  %12183 = vmatpush3.bf16.msra.mxu1 %v12797_v29  ;;  %v16169_v51 = vld [vmem:[#allocation44_spill] sm:$0xff] }
 0x1e3   : >> { %11213 = vmatprep.mubr.msk.bf16.mxu1 %vm1660_vm2, %v2523_v35  ;;  %11389 = vmatprep.mubr.msk.bf16.mxu0 %vm1660_vm2, %v16162_v31  ;;  %v2499_v35 = vmul.f32 %v16166_v7, %v16165_v63  ;;  %v3869_v29 = vld [vmem:[#allocation2 + $0x108] sm:$0xff] }
 0x1e4   : >> { %12180 = vmatprep.subr.bf16.mxu1 %v12798_v3  ;;  %v16170_v31 = vld [vmem:[#allocation71_spill] sm:$0xff] }
 0x1e5   : >> { %v16172_v63 = vld [vmem:[#allocation75_spill] sm:$0xff] }
 0x1e6   : >> { %12184 = vmatpush3.bf16.msra.mxu1 %v12798_v3  ;;  %v2526_v3 = vpack.c.bf16 %v16170_v31, %v2499_v35  ;;  %v2505_v7 = vmul.f32 %v13275_v16, %v16172_v63  ;;  %v3872_v35 = vld [vmem:[#allocation2 + $0x120] sm:$0xff]  ;;  %v4168_v31 = vld [vmem:[#allocation2 + $0x51] sm:$0xff] }
 0x1e7   : >> { %12181 = vmatprep.subr.bf16.mxu1 %v12799_v37 }
 0x1e9   : >> { %11214 = vmatmul.mubr.msk.bf16.gmra.mrb[4].mxu1 %vm1660_vm2, %v2524_v1  ;;  %v14138_v1 = vpack.c.bf16 %v3870_v30, %v3869_v29  ;;  %v3888_v29 = vpack.c.bf16 %v3872_v35, %v3871_v56  ;;  %v4170_v35 = vld [vmem:[#allocation2 + $0x61] sm:$0xff] }
 0x1ea   : >> { %11390 = vmatmul.mubr.msk.bf16.gmra.mrb[20].mxu0 %vm1660_vm2, %v16167_v0  ;;  %11217 = vmatprep.mubr.msk.bf16.mxu1 %vm1660_vm2, %v2525_v4  ;;  %v2503_v4 = vmul.f32 %v13270_v15, %v13832_v23  ;;  %v4196_v0 = vmul.f32 %v13381_v39, %v4164_v54  ;;  %v2529_v23 = vpack.c.bf16 %v13862_v46, %v2505_v7  ;;  %v4165_v46 = vld [vmem:[#allocation2 + $0x39] sm:$0xff] }
 0x1eb   : >> { %11393 = vmatprep.mubr.msk.bf16.mxu0 %vm1660_vm2, %v16169_v51  ;;  %12185 = vmatpush3.bf16.msra.mxu1 %v12799_v37  ;;  %v16171_v37 = vld [vmem:[#allocation49_spill] sm:$0xff]  ;;  %v2509_v54 = vmul.f32 %v13285_v18, %v13876_v52  ;;  %v4202_v52 = vmul.f32 %v13396_v42, %v4170_v35  ;;  %v2828_v35 = vld [vmem:[#allocation2 + $0xa0] sm:$0xff] }
 0x1ec   : >> { %12182 = vmatprep.subr.bf16.mxu1 %v12800_v60  ;;  %v2528_v51 = vpack.c.bf16 %v16173_v27, %v2503_v4  ;;  %v4227_v30 = vpack.c.bf16 %v4196_v0, %v4163_v50  ;;  %v4200_v4 = vmul.f32 %v13391_v41, %v4168_v31  ;;  %v4172_v0 = vld [vmem:[#allocation2 + $0x71] sm:$0xff]  ;;  %v2511_v50 = vmul.f32 %v13290_v19, %v13879_v57 }
 0x1ed   : >> { %v4204_v27 = vmul.f32 %v13401_v43, %v4172_v0  ;;  %v4176_v31 = vld [vmem:[#allocation2 + $0x91] sm:$0xff]  ;;  %v4179_v0 = vld [vmem:[#allocation2 + $0xa9] sm:$0xff] }
 0x1ef   : >> { %12186 = vmatpush3.bf16.msra.mxu1 %v12800_v60  ;;  %v4166_v60 = vld [vmem:[#allocation2 + $0x41] sm:$0xff] }
 0x1f1   : >> { %11218 = vmatmul.mubr.msk.bf16.gmra.mrb[8].mxu1 %vm1660_vm2, %v2526_v3  ;;  %v2507_v3 = vmul.f32 %v13280_v17, %v13855_v55  ;;  %v2531_v55 = vpack.c.bf16 %v13889_v47, %v2509_v54  ;;  %v4169_v47 = vld [vmem:[#allocation2 + $0x59] sm:$0xff]  ;;  %v4175_v54 = vld [vmem:[#allocation2 + $0x89] sm:$0xff] }
 0x1f2   : >> { %11394 = vmatmul.mubr.msk.bf16.gmra.mrb[24].mxu0 %vm1660_vm2, %v16171_v37  ;;  %11221 = vmatprep.mubr.msk.bf16.mxu1 %vm1660_vm2, %v2527_v25  ;;  %v4198_v25 = vmul.f32 %v13386_v40, %v4166_v60  ;;  %v4167_v37 = vld [vmem:[#allocation2 + $0x49] sm:$0xff]  ;;  %v4174_v60 = vld [vmem:[#allocation2 + $0x81] sm:$0xff] }
 0x1f3   : >> { %11397 = vmatprep.mubr.msk.bf16.mxu0 %vm1660_vm2, %v14138_v1  ;;  %v2530_v63 = vpack.c.bf16 %v13869_v6, %v2507_v3  ;;  %v4229_v56 = vpack.c.bf16 %v4200_v4, %v4167_v37  ;;  %v2513_v6 = vmul.f32 %v13295_v20, %v13907_v11  ;;  %v2515_v3 = vmul.f32 %v13300_v21, %v13910_v34 }
 0x1f4   : >> { %v4228_v7 = vpack.c.bf16 %v4198_v25, %v4165_v46  ;;  %v4206_v11 = vmul.f32 %v13406_v44, %v4174_v60  ;;  %v4208_v25 = vmul.f32 %v13411_v45, %v4176_v31 }
 0x1f5   : >> { %v2533_v57 = vpack.c.bf16 %v13920_v53, %v2513_v6  ;;  %v4173_v53 = vld [vmem:[#allocation2 + $0x79] sm:$0xff]  ;;  %v2534_v46 = vpack.c.bf16 %v13927_v33, %v2515_v3 }
 0x1f6   : >> { %v4232_v4 = vpack.c.bf16 %v4206_v11, %v4173_v53  ;;  %v4233_v37 = vpack.c.bf16 %v4208_v25, %v4175_v54  ;;  %v4177_v33 = vld [vmem:[#allocation2 + $0x99] sm:$0xff]  ;;  %v4188_v53 = vld [vmem:[#allocation2 + $0xf1] sm:$0xff] }
 0x1f7   : >> { %v2834_v25 = vld [vmem:[#allocation2 + $0xd0] sm:$0xff] }
 0x1f9   : >> { %11222 = vmatmul.mubr.msk.bf16.gmra.mrb[12].mxu1 %vm1660_vm2, %v2528_v51  ;;  %v4171_v51 = vld [vmem:[#allocation2 + $0x69] sm:$0xff] }
 0x1fa   : >> { %11398 = vmatmul.mubr.msk.bf16.gmra.mrb[28].mxu0 %vm1660_vm2, %v3888_v29  ;;  %11225 = vmatprep.mubr.msk.bf16.mxu1 %vm1660_vm2, %v2529_v23  ;;  %v2532_v29 = vpack.c.bf16 %v13897_v2, %v2511_v50  ;;  %v4230_v23 = vpack.c.bf16 %v4202_v52, %v4169_v47  ;;  %v2517_v2 = vmul.f32 %v13305_v22, %v13939_v13 }
 0x1fb   : >> { %11409 = vmatprep.mubr.msk.bf16.mxu0 %vm1660_vm2, %v4227_v30  ;;  %v4231_v30 = vpack.c.bf16 %v4204_v27, %v4171_v51  ;;  %v4184_v27 = vld [vmem:[#allocation2 + $0xd1] sm:$0xff] }
 0x1fc   : >> { %v2535_v34 = vpack.c.bf16 %v13948_v48, %v2517_v2  ;;  %v2830_v51 = vld [vmem:[#allocation2 + $0xb0] sm:$0xff]  ;;  %v4186_v2 = vld [vmem:[#allocation2 + $0xe1] sm:$0xff] }
 0x1fd   : >> { %v4218_v54 = vmul.f32 %v16131_v61, %v4186_v2  ;;  %v2837_v61 = vld [vmem:[#allocation2 + $0xe8] sm:$0xff] }
 0x201   : >> { %11226 = vmatmul.mubr.msk.bf16.gmra.mrb[16].mxu1 %vm1660_vm2, %v2530_v63  ;;  %v4178_v63 = vld [vmem:[#allocation2 + $0xa1] sm:$0xff] }
 0x202   : >> { %11410 = vmatmul.mubr.msk.bf16.vlgmr.msra.gmra.mrb[0].mxu0 %vm1660_vm2, %v4228_v7  ;;  %11229 = vmatprep.mubr.msk.bf16.mxu1 %vm1660_vm2, %v2531_v55  ;;  %v4180_v7 = vld [vmem:[#allocation2 + $0xb1] sm:$0xff]  ;;  %v2519_v55 = vmul.f32 %v13310_v24, %v13998_v62  ;;  %v4210_v13 = vmul.f32 %v16118_v26, %v4178_v63  ;;  %v4182_v62 = vld [vmem:[#allocation2 + $0xc1] sm:$0xff] }
 0x203   : >> { %11413 = vmatprep.mubr.msk.bf16.mxu0 %vm1660_vm2, %v4229_v56  ;;  %v2827_v56 = vld [vmem:[#allocation2 + $0x98] sm:$0xff]  ;;  %v4212_v48 = vmul.f32 %v16120_v58, %v4180_v7  ;;  %v2829_v26 = vld [vmem:[#allocation2 + $0xa8] sm:$0xff] }
 0x204   : >> { %v2536_v50 = vpack.c.bf16 %v14015_v49, %v2519_v55  ;;  %v4234_v52 = vpack.c.bf16 %v4210_v13, %v4177_v33  ;;  %v2851_v6 = vpack.c.bf16 %v2828_v35, %v2827_v56  ;;  %v4181_v58 = vld [vmem:[#allocation2 + $0xb9] sm:$0xff]  ;;  %v2852_v60 = vpack.c.bf16 %v2830_v51, %v2829_v26  ;;  %v4190_v33 = vld [vmem:[#allocation2 + $0x101] sm:$0xff]  ;;  %v4192_v56 = vld [vmem:[#allocation2 + $0x111] sm:$0xff] }
 0x205   : >> { %v4235_v47 = vpack.c.bf16 %v4212_v48, %v4179_v0  ;;  %v2832_v49 = vld [vmem:[#allocation2 + $0xc0] sm:$0xff]  ;;  %v2838_v35 = vld [vmem:[#allocation2 + $0xf0] sm:$0xff]  ;;  %v4222_v48 = vmul.f32 %v16139_v32, %v4190_v33  ;;  %v2839_v0 = vld [vmem:[#allocation2 + $0xf8] sm:$0xff] }
 0x206   : >> { %v4194_v51 = vld [vmem:[#allocation2 + $0x121] sm:$0xff] }
 0x207   : >> { %v4226_v32 = vmul.f32 %v16147_v5, %v4194_v51 }
 0x209   : >> { %11230 = vmatmul.mubr.msk.bf16.gmra.mrb[20].mxu1 %vm1660_vm2, %v2532_v29  ;;  %v4214_v29 = vmul.f32 %v16124_v28, %v4182_v62  ;;  %v2833_v28 = vld [vmem:[#allocation2 + $0xc8] sm:$0xff] }
 0x20a   : >> { %11414 = vmatmul.mubr.msk.bf16.gmra.mrb[4].mxu0 %vm1660_vm2, %v4230_v23  ;;  %11233 = vmatprep.mubr.msk.bf16.mxu1 %vm1660_vm2, %v2533_v57  ;;  %v2831_v23 = vld [vmem:[#allocation2 + $0xb8] sm:$0xff]  ;;  %v4216_v57 = vmul.f32 %v16126_v38, %v4184_v27  ;;  %v2854_v63 = vpack.c.bf16 %v2834_v25, %v2833_v28 }
 0x20b   : >> { %11417 = vmatprep.mubr.msk.bf16.mxu0 %vm1660_vm2, %v4231_v30  ;;  %v4183_v30 = vld [vmem:[#allocation2 + $0xc9] sm:$0xff]  ;;  %v4236_v31 = vpack.c.bf16 %v4214_v29, %v4181_v58  ;;  %v2853_v3 = vpack.c.bf16 %v2832_v49, %v2831_v23  ;;  %v4185_v38 = vld [vmem:[#allocation2 + $0xd9] sm:$0xff] }
 0x20c   : >> { %v4237_v11 = vpack.c.bf16 %v4216_v57, %v4183_v30  ;;  %v4238_v7 = vpack.c.bf16 %v4218_v54, %v4185_v38  ;;  %v4193_v29 = vld [vmem:[#allocation2 + $0x119] sm:$0xff] }
 0x20d   : >> { %v4242_v58 = vpack.c.bf16 %v4226_v32, %v4193_v29 }
 0x211   : >> { %11234 = vmatmul.mubr.msk.bf16.gmra.mrb[24].mxu1 %vm1660_vm2, %v2534_v46  ;;  %v2835_v46 = vld [vmem:[#allocation2 + $0xd8] sm:$0xff] }
 0x212   : >> { %11418 = vmatmul.mubr.msk.bf16.gmra.mrb[8].mxu0 %vm1660_vm2, %v4232_v4  ;;  %11237 = vmatprep.mubr.msk.bf16.mxu1 %vm1660_vm2, %v2535_v34  ;;  %v2836_v4 = vld [vmem:[#allocation2 + $0xe0] sm:$0xff]  ;;  %v4220_v34 = vmul.f32 %v16134_v36, %v4188_v53 }
 0x213   : >> { %11421 = vmatprep.mubr.msk.bf16.mxu0 %vm1660_vm2, %v4233_v37  ;;  %v4187_v37 = vld [vmem:[#allocation2 + $0xe9] sm:$0xff]  ;;  %v2855_v55 = vpack.c.bf16 %v2836_v4, %v2835_v46  ;;  %v4189_v36 = vld [vmem:[#allocation2 + $0xf9] sm:$0xff] }
 0x214   : >> { %v4239_v13 = vpack.c.bf16 %v4220_v34, %v4187_v37  ;;  %v4240_v62 = vpack.c.bf16 %v4222_v48, %v4189_v36  ;;  %v14235_v46 = vld [vmem:[%s15833_s4] ss:$0 sm:$0xff] }
 0x219   : >> { %11238 = vmatmul.mubr.msk.bf16.gmra.mrb[28].mxu1 %vm1660_vm2, %v2536_v50  ;;  %v2840_v50 = vld [vmem:[#allocation2 + $0x100] sm:$0xff] }
 0x21a   : >> { %11422 = vmatmul.mubr.msk.bf16.gmra.mrb[12].mxu0 %vm1660_vm2, %v4234_v52  ;;  %11265 = vmatprep.mubr.msk.bf16.mxu1 %vm1660_vm2, %v2851_v6  ;;  %v4224_v52 = vmul.f32 %v16142_v59, %v4192_v56  ;;  %v4191_v6 = vld [vmem:[#allocation2 + $0x109] sm:$0xff]  ;;  %v2857_v27 = vpack.c.bf16 %v2840_v50, %v2839_v0 }
 0x21b   : >> { %11425 = vmatprep.mubr.msk.bf16.mxu0 %vm1660_vm2, %v4235_v47  ;;  %v2856_v47 = vpack.c.bf16 %v2838_v35, %v2837_v61 }
 0x21c   : >> { %v4241_v26 = vpack.c.bf16 %v4224_v52, %v4191_v6 }
 0x221   : >> { %11266 = vmatmul.mubr.msk.bf16.vlgmr.msra.gmra.mrb[16].mxu1 %vm1660_vm2, %v2852_v60 }
 0x222   : >> { %11426 = vmatmul.mubr.msk.bf16.gmra.mrb[16].mxu0 %vm1660_vm2, %v4236_v31  ;;  %11269 = vmatprep.mubr.msk.bf16.mxu1 %vm1660_vm2, %v2853_v3 }
 0x223   : >> { %11429 = vmatprep.mubr.msk.bf16.mxu0 %vm1660_vm2, %v4237_v11 }
 0x229   : >> { %11270 = vmatmul.mubr.msk.bf16.gmra.mrb[20].mxu1 %vm1660_vm2, %v2854_v63 }
 0x22a   : >> { %11430 = vmatmul.mubr.msk.bf16.gmra.mrb[20].mxu0 %vm1660_vm2, %v4238_v7  ;;  %11273 = vmatprep.mubr.msk.bf16.mxu1 %vm1660_vm2, %v2855_v55 }
 0x22b   : >> { %11433 = vmatprep.mubr.msk.bf16.mxu0 %vm1660_vm2, %v4239_v13 }
 0x231   : >> { %11274 = vmatmul.mubr.msk.bf16.gmra.mrb[24].mxu1 %vm1660_vm2, %v2856_v47 }
 0x232   : >> { %11434 = vmatmul.mubr.msk.bf16.gmra.mrb[24].mxu0 %vm1660_vm2, %v4240_v62  ;;  %11277 = vmatprep.mubr.msk.bf16.mxu1 %vm1660_vm2, %v2857_v27 }
 0x233   : >> { %11437 = vmatprep.mubr.msk.bf16.mxu0 %vm1660_vm2, %v4241_v26 }
 0x239   : >> { %11278 = vmatmul.mubr.msk.bf16.gmra.mrb[28].mxu1 %vm1660_vm2, %v14138_v1 }
 0x23a   : >> { %11438 = vmatmul.mubr.msk.bf16.gmra.mrb[28].mxu0 %vm1660_vm2, %v4242_v58 }
 0x2b4   : >> { %v11211_v59 = vpop.f32.mrb[0].mxu1 }
 0x2b5   : >> { %v2652_v23 = vpop.f32.mrb[1].mxu1 }
 0x2b6   : >> { %v11212_v49 = vpop.f32.mrb[2].mxu1 }
 0x2b7   : >> { %v2655_v57 = vpop.f32.mrb[3].mxu1 }
 0x2bc   : >> { %v11215_v30 = vpop.f32.mrb[4].mxu1 }
 0x2bd   : >> { %v2668_v60 = vpop.f32.mrb[5].mxu1 }
 0x2be   : >> { %v11216_v31 = vpop.f32.mrb[6].mxu1 }
 0x2bf   : >> { %v2671_v3 = vpop.f32.mrb[7].mxu1 }
 0x2c4   : >> { %v11219_v11 = vpop.f32.mrb[8].mxu1 }
 0x2c5   : >> { %v2684_v2 = vpop.f32.mrb[9].mxu1 }
 0x2c6   : >> { %v11220_v5 = vpop.f32.mrb[10].mxu1 }
 0x2c7   : >> { %v2687_v53 = vpop.f32.mrb[11].mxu1 }
 0x2cc   : >> { %v14224_v28 = vpop.f32.mrb[12].mxu1 }
 0x2cd   : >> { %v14226_v25 = vpop.f32.mrb[13].mxu1 }
 0x2ce   : >> { %v14228_v54 = vpop.f32.mrb[14].mxu1 }
 0x2cf   : >> { %v14230_v1 = vpop.f32.mrb[15].mxu1 }
 0x2d5   : >> { %v11411_v38 = vpop.f32.mrb[0].mxu0 }
 0x2d6   : >> { %v12187_v4 = vadd.f32 %v11411_v38, %v11211_v59  ;;  %v4358_v34 = vpop.f32.mrb[1].mxu0 }
 0x2d7   : >> { %v12188_v37 = vadd.f32 %v4358_v34, %v2652_v23  ;;  %v11412_v63 = vpop.f32.mrb[2].mxu0 }
 0x2d8   : >> { %v4526_v7 = vadd.f32 %v12187_v4, %v14235_v46  ;;  %v12189_v55 = vadd.f32 %v11412_v63, %v11212_v49  ;;  %v4361_v13 = vpop.f32.mrb[3].mxu0 }
 0x2d9   : >> { %v4524_v33 = vadd.f32 %v12188_v37, %v14235_v46  ;;  %v12190_v56 = vadd.f32 %v4361_v13, %v2655_v57 }
 0x2da   : >> { %v4558_v61 = vmax.f32 %v4526_v7, 0.0  ;;  %v4527_v35 = vadd.f32 %v12189_v55, %v14235_v46 }
 0x2db   : >> { %v4556_v48 = vmax.f32 %v4524_v33, 0.0  ;;  %v4525_v36 = vadd.f32 %v12190_v56, %v14235_v46 }
 0x2dc   : >> { %4590 = vst.msk [vmem:[#allocation2 + $0x28] sm:$0xff] %vm1660_vm2, %v4558_v61  ;;  %v4559_v0 = vmax.f32 %v4527_v35, 0.0 }
 0x2dd   : >> { %4588 = vst.msk [vmem:[#allocation2 + $0x18] sm:$0xff] %vm1660_vm2, %v4556_v48  ;;  %v4557_v50 = vmax.f32 %v4525_v36, 0.0  ;;  %v11415_v52 = vpop.f32.mrb[4].mxu0 }
 0x2de   : >> { %4591 = vst.msk [vmem:[#allocation2 + $0x30] sm:$0xff] %vm1660_vm2, %v4559_v0  ;;  %v12191_v6 = vadd.f32 %v11415_v52, %v11215_v30  ;;  %v4374_v47 = vpop.f32.mrb[5].mxu0 }
 0x2df   : >> { %4589 = vst.msk [vmem:[#allocation2 + $0x20] sm:$0xff] %vm1660_vm2, %v4557_v50  ;;  %v12192_v62 = vadd.f32 %v4374_v47, %v2668_v60  ;;  %v11416_v27 = vpop.f32.mrb[6].mxu0 }
 0x2e0   : >> { %v4530_v26 = vadd.f32 %v12191_v6, %v14235_v46  ;;  %v12193_v51 = vadd.f32 %v11416_v27, %v11216_v31  ;;  %v4377_v32 = vpop.f32.mrb[7].mxu0 }
 0x2e1   : >> { %v4528_v29 = vadd.f32 %v12192_v62, %v14235_v46  ;;  %v12194_v58 = vadd.f32 %v4377_v32, %v2671_v3 }
 0x2e2   : >> { %v4562_v59 = vmax.f32 %v4530_v26, 0.0  ;;  %v4531_v23 = vadd.f32 %v12193_v51, %v14235_v46 }
 0x2e3   : >> { %v4560_v49 = vmax.f32 %v4528_v29, 0.0  ;;  %v4529_v57 = vadd.f32 %v12194_v58, %v14235_v46 }
 0x2e4   : >> { %4594 = vst.msk [vmem:[#allocation2 + $0x48] sm:$0xff] %vm1660_vm2, %v4562_v59  ;;  %v4563_v30 = vmax.f32 %v4531_v23, 0.0 }
 0x2e5   : >> { %4592 = vst.msk [vmem:[#allocation2 + $0x38] sm:$0xff] %vm1660_vm2, %v4560_v49  ;;  %v4561_v60 = vmax.f32 %v4529_v57, 0.0  ;;  %v11419_v38 = vpop.f32.mrb[8].mxu0 }
 0x2e6   : >> { %4595 = vst.msk [vmem:[#allocation2 + $0x50] sm:$0xff] %vm1660_vm2, %v4563_v30  ;;  %v12195_v31 = vadd.f32 %v11419_v38, %v11219_v11  ;;  %v4390_v4 = vpop.f32.mrb[9].mxu0 }
 0x2e7   : >> { %4593 = vst.msk [vmem:[#allocation2 + $0x40] sm:$0xff] %vm1660_vm2, %v4561_v60  ;;  %v12196_v3 = vadd.f32 %v4390_v4, %v2684_v2  ;;  %v11420_v34 = vpop.f32.mrb[10].mxu0 }
 0x2e8   : >> { %v4534_v37 = vadd.f32 %v12195_v31, %v14235_v46  ;;  %v12197_v63 = vadd.f32 %v11420_v34, %v11220_v5  ;;  %v4393_v7 = vpop.f32.mrb[11].mxu0 }
 0x2e9   : >> { %v4532_v55 = vadd.f32 %v12196_v3, %v14235_v46  ;;  %v12198_v13 = vadd.f32 %v4393_v7, %v2687_v53 }
 0x2ea   : >> { %v4566_v33 = vmax.f32 %v4534_v37, 0.0  ;;  %v4535_v56 = vadd.f32 %v12197_v63, %v14235_v46 }
 0x2eb   : >> { %v4564_v61 = vmax.f32 %v4532_v55, 0.0  ;;  %v4533_v35 = vadd.f32 %v12198_v13, %v14235_v46 }
 0x2ec   : >> { %4598 = vst.msk [vmem:[#allocation2 + $0x68] sm:$0xff] %vm1660_vm2, %v4566_v33  ;;  %v4567_v11 = vmax.f32 %v4535_v56, 0.0 }
 0x2ed   : >> { %4596 = vst.msk [vmem:[#allocation2 + $0x58] sm:$0xff] %vm1660_vm2, %v4564_v61  ;;  %v4565_v2 = vmax.f32 %v4533_v35, 0.0  ;;  %v11423_v48 = vpop.f32.mrb[12].mxu0 }
 0x2ee   : >> { %4599 = vst.msk [vmem:[#allocation2 + $0x70] sm:$0xff] %vm1660_vm2, %v4567_v11  ;;  %v12199_v5 = vadd.f32 %v11423_v48, %v14224_v28  ;;  %v4406_v36 = vpop.f32.mrb[13].mxu0 }
 0x2ef   : >> { %4597 = vst.msk [vmem:[#allocation2 + $0x60] sm:$0xff] %vm1660_vm2, %v4565_v2  ;;  %v12200_v53 = vadd.f32 %v4406_v36, %v14226_v25  ;;  %v11424_v0 = vpop.f32.mrb[14].mxu0 }
 0x2f0   : >> { %v4538_v50 = vadd.f32 %v12199_v5, %v14235_v46  ;;  %v12201_v52 = vadd.f32 %v11424_v0, %v14228_v54  ;;  %v4409_v6 = vpop.f32.mrb[15].mxu0 }
 0x2f1   : >> { %v4536_v47 = vadd.f32 %v12200_v53, %v14235_v46  ;;  %v12202_v62 = vadd.f32 %v4409_v6, %v14230_v1 }
 0x2f2   : >> { %v4570_v27 = vmax.f32 %v4538_v50, 0.0  ;;  %v4539_v26 = vadd.f32 %v12201_v52, %v14235_v46 }
 0x2f3   : >> { %v4568_v51 = vmax.f32 %v4536_v47, 0.0  ;;  %v4537_v28 = vadd.f32 %v12202_v62, %v14235_v46 }
 0x2f4   : >> { %4602 = vst.msk [vmem:[#allocation2 + $0x88] sm:$0xff] %vm1660_vm2, %v4570_v27  ;;  %v4571_v32 = vmax.f32 %v4539_v26, 0.0  ;;  %v11267_v25 = vpop.f32.mrb[16].mxu1 }
 0x2f5   : >> { %4600 = vst.msk [vmem:[#allocation2 + $0x78] sm:$0xff] %vm1660_vm2, %v4568_v51  ;;  %v4569_v29 = vmax.f32 %v4537_v28, 0.0  ;;  %v11427_v58 = vpop.f32.mrb[16].mxu0  ;;  %v3038_v54 = vpop.f32.mrb[17].mxu1 }
 0x2f6   : >> { %4603 = vst.msk [vmem:[#allocation2 + $0x90] sm:$0xff] %vm1660_vm2, %v4571_v32  ;;  %v12203_v59 = vadd.f32 %v11427_v58, %v11267_v25  ;;  %v4422_v23 = vpop.f32.mrb[17].mxu0  ;;  %v11268_v1 = vpop.f32.mrb[18].mxu1 }
 0x2f7   : >> { %4601 = vst.msk [vmem:[#allocation2 + $0x80] sm:$0xff] %vm1660_vm2, %v4569_v29  ;;  %v12204_v49 = vadd.f32 %v4422_v23, %v3038_v54  ;;  %v11428_v57 = vpop.f32.mrb[18].mxu0  ;;  %v3041_v30 = vpop.f32.mrb[19].mxu1 }
 0x2f8   : >> { %v4542_v60 = vadd.f32 %v12203_v59, %v14235_v46  ;;  %v12205_v38 = vadd.f32 %v11428_v57, %v11268_v1  ;;  %v4425_v31 = vpop.f32.mrb[19].mxu0 }
 0x2f9   : >> { %v4540_v4 = vadd.f32 %v12204_v49, %v14235_v46  ;;  %v12206_v3 = vadd.f32 %v4425_v31, %v3041_v30 }
 0x2fa   : >> { %v4574_v34 = vmax.f32 %v4542_v60, 0.0  ;;  %v4543_v37 = vadd.f32 %v12205_v38, %v14235_v46 }
 0x2fb   : >> { %v4572_v63 = vmax.f32 %v4540_v4, 0.0  ;;  %v4541_v7 = vadd.f32 %v12206_v3, %v14235_v46 }
 0x2fc   : >> { %4606 = vst.msk [vmem:[#allocation2 + $0xa8] sm:$0xff] %vm1660_vm2, %v4574_v34  ;;  %v4575_v55 = vmax.f32 %v4543_v37, 0.0  ;;  %v11271_v13 = vpop.f32.mrb[20].mxu1 }
 0x2fd   : >> { %4604 = vst.msk [vmem:[#allocation2 + $0x98] sm:$0xff] %vm1660_vm2, %v4572_v63  ;;  %v4573_v33 = vmax.f32 %v4541_v7, 0.0  ;;  %v11431_v56 = vpop.f32.mrb[20].mxu0  ;;  %v3054_v61 = vpop.f32.mrb[21].mxu1 }
 0x2fe   : >> { %4607 = vst.msk [vmem:[#allocation2 + $0xb0] sm:$0xff] %vm1660_vm2, %v4575_v55  ;;  %v12207_v35 = vadd.f32 %v11431_v56, %v11271_v13  ;;  %v4438_v11 = vpop.f32.mrb[21].mxu0  ;;  %v11272_v2 = vpop.f32.mrb[22].mxu1 }
 0x2ff   : >> { %4605 = vst.msk [vmem:[#allocation2 + $0xa0] sm:$0xff] %vm1660_vm2, %v4573_v33  ;;  %v12208_v48 = vadd.f32 %v4438_v11, %v3054_v61  ;;  %v11432_v5 = vpop.f32.mrb[22].mxu0  ;;  %v3057_v36 = vpop.f32.mrb[23].mxu1 }
 0x300   : >> { %v4546_v53 = vadd.f32 %v12207_v35, %v14235_v46  ;;  %v12209_v0 = vadd.f32 %v11432_v5, %v11272_v2  ;;  %v4441_v50 = vpop.f32.mrb[23].mxu0 }
 0x301   : >> { %v4544_v52 = vadd.f32 %v12208_v48, %v14235_v46  ;;  %v12210_v6 = vadd.f32 %v4441_v50, %v3057_v36 }
 0x302   : >> { %v4578_v47 = vmax.f32 %v4546_v53, 0.0  ;;  %v4547_v62 = vadd.f32 %v12209_v0, %v14235_v46 }
 0x303   : >> { %v4576_v27 = vmax.f32 %v4544_v52, 0.0  ;;  %v4545_v26 = vadd.f32 %v12210_v6, %v14235_v46 }
 0x304   : >> { %4610 = vst.msk [vmem:[#allocation2 + $0xc8] sm:$0xff] %vm1660_vm2, %v4578_v47  ;;  %v4579_v51 = vmax.f32 %v4547_v62, 0.0  ;;  %v11275_v28 = vpop.f32.mrb[24].mxu1 }
 0x305   : >> { %4608 = vst.msk [vmem:[#allocation2 + $0xb8] sm:$0xff] %vm1660_vm2, %v4576_v27  ;;  %v4577_v32 = vmax.f32 %v4545_v26, 0.0  ;;  %v11435_v25 = vpop.f32.mrb[24].mxu0  ;;  %v3070_v29 = vpop.f32.mrb[25].mxu1 }
 0x306   : >> { %4611 = vst.msk [vmem:[#allocation2 + $0xd0] sm:$0xff] %vm1660_vm2, %v4579_v51  ;;  %v12211_v58 = vadd.f32 %v11435_v25, %v11275_v28  ;;  %v4454_v54 = vpop.f32.mrb[25].mxu0  ;;  %v11276_v59 = vpop.f32.mrb[26].mxu1  ;;  %v12802_v51 = vld [vmem:[%s15834_s5 + $0x48] sm:$0xff] (%p1487_p4)   ;;  %v12803_v28 = vld [vmem:[%s15834_s5 + $0x50] sm:$0xff] (%p1487_p4)  }
 0x307   : >> { %4609 = vst.msk [vmem:[#allocation2 + $0xc0] sm:$0xff] %vm1660_vm2, %v4577_v32  ;;  %v12212_v23 = vadd.f32 %v4454_v54, %v3070_v29  ;;  %v11436_v1 = vpop.f32.mrb[26].mxu0  ;;  %v3073_v49 = vpop.f32.mrb[27].mxu1  ;;  %v12804_v32 = vld [vmem:[%s15834_s5 + $0x58] sm:$0xff] (%p1487_p4)   ;;  %v4716_v25 = vld [vmem:[#allocation2 + $0x8] sm:$0xff] (%p1487_p4)  ;;  %v4717_v29 = vld [vmem:[#allocation2 + $0x10] sm:$0xff] (%p1487_p4) }
 0x308   : >> { %v4550_v57 = vadd.f32 %v12211_v58, %v14235_v46  ;;  %v12213_v30 = vadd.f32 %v11436_v1, %v11276_v59  ;;  %v4457_v60 = vpop.f32.mrb[27].mxu0  ;;  %v4748_v58 = vpack.c.bf16 (%p1487_p4), %v4717_v29, %v4716_v25  ;;  %v12805_v54 = vld [vmem:[%s15834_s5 + $0x60] sm:$0xff] (%p1487_p4)   ;;  %v12806_v59 = vld [vmem:[%s15834_s5 + $0x68] sm:$0xff] (%p1487_p4)   ;;  %v12808_v1 = vld [vmem:[%s15834_s5 + $0x78] sm:$0xff] (%p1487_p4)  }
 0x309   : >> { %v4548_v38 = vadd.f32 %v12212_v23, %v14235_v46  ;;  %v12214_v31 = vadd.f32 %v4457_v60, %v3073_v49  ;;  %v12807_v23 = vld [vmem:[%s15834_s5 + $0x70] sm:$0xff] (%p1487_p4)   ;;  %v4718_v49 = vld [vmem:[#allocation2 + $0x18] sm:$0xff] (%p1487_p4)  ;;  %v4720_v60 = vld [vmem:[#allocation2 + $0x28] sm:$0xff] (%p1487_p4) }
 0x30a   : >> { %v4582_v4 = vmax.f32 %v4550_v57, 0.0  ;;  %v4551_v3 = vadd.f32 %v12213_v30, %v14235_v46  ;;  %11457 = vmatprep.mubr.bf16.mxu0 (%p1487_p4), %v4748_v58  ;;  %v4719_v57 = vld [vmem:[#allocation2 + $0x20] sm:$0xff] (%p1487_p4)  ;;  %v14381_v29 = vld [vmem:[#allocation2 + $0x2f] sm:$0xff] (%p1487_p4) }
 0x30b   : >> { %v4580_v34 = vmax.f32 %v4548_v38, 0.0  ;;  %v4549_v37 = vadd.f32 %v12214_v31, %v14235_v46  ;;  %v12809_v30 = vld [vmem:[%s15834_s5] sm:$0xff] (%p1487_p4)   ;;  %v4721_v38 = vld [vmem:[#allocation2 + $0x30] sm:$0xff] (%p1487_p4)  ;;  %v14335_v31 = vpack.c.bf16 (%p1487_p4), %v4719_v57, %v4718_v49 }
 0x30c   : >> { %4614 = vst.msk [vmem:[#allocation2 + $0xe8] sm:$0xff] %vm1660_vm2, %v4582_v4  ;;  %v4583_v63 = vmax.f32 %v4551_v3, 0.0  ;;  %v11279_v7 = vpop.f32.mrb[28].mxu1  ;;  %v14337_v4 = vpack.c.bf16 (%p1487_p4), %v4721_v38, %v4720_v60  ;;  %v12810_v3 = vld [vmem:[%s15834_s5 + $0x8] sm:$0xff] (%p1487_p4)   ;;  %v12817_v58 = vld [vmem:[%s15834_s5 + $0x80] sm:$0xff] (%p1487_p4)   ;;  %v4626_v49 = vld [vmem:[#allocation2 + $0x37] sm:$0xff] (%p1487_p4) }
 0x30d   : >> { %4612 = vst.msk [vmem:[#allocation2 + $0xd8] sm:$0xff] %vm1660_vm2, %v4580_v34  ;;  %v4581_v55 = vmax.f32 %v4549_v37, 0.0  ;;  %v11439_v13 = vpop.f32.mrb[28].mxu0  ;;  %v3086_v33 = vpop.f32.mrb[29].mxu1  ;;  %v4722_v34 = vld [vmem:[#allocation2 + $0x38] sm:$0xff] (%p1487_p4)  ;;  %v4723_v37 = vld [vmem:[#allocation2 + $0x40] sm:$0xff] (%p1487_p4) }
 0x30e   : >> { %4615 = vst.msk [vmem:[#allocation2 + $0xf0] sm:$0xff] %vm1660_vm2, %v4583_v63  ;;  %v12215_v56 = vadd.f32 %v11439_v13, %v11279_v7  ;;  %v4470_v61 = vpop.f32.mrb[29].mxu0  ;;  %v11280_v35 = vpop.f32.mrb[30].mxu1  ;;  %v12811_v63 = vld [vmem:[%s15834_s5 + $0x10] sm:$0xff] (%p1487_p4)   ;;  %v4724_v7 = vld [vmem:[#allocation2 + $0x48] sm:$0xff] (%p1487_p4)  ;;  %v14347_v13 = vpack.c.bf16 (%p1487_p4), %v4723_v37, %v4722_v34  ;;  %v14402_v34 = vld [vmem:[#allocation2 + $0x3f] sm:$0xff] (%p1487_p4) }
 0x30f   : >> { %4613 = vst.msk [vmem:[#allocation2 + $0xe0] sm:$0xff] %vm1660_vm2, %v4581_v55  ;;  %v12216_v11 = vadd.f32 %v4470_v61, %v3086_v33  ;;  %v11440_v2 = vpop.f32.mrb[30].mxu0  ;;  %v3089_v48 = vpop.f32.mrb[31].mxu1  ;;  %v4725_v55 = vld [vmem:[#allocation2 + $0x50] sm:$0xff] (%p1487_p4)  ;;  %v4726_v61 = vld [vmem:[#allocation2 + $0x58] sm:$0xff] (%p1487_p4)  ;;  %v4628_v60 = vld [vmem:[#allocation2 + $0x47] sm:$0xff] (%p1487_p4) }
 0x310   : >> { %v4554_v5 = vadd.f32 %v12215_v56, %v14235_v46  ;;  %v12217_v36 = vadd.f32 %v11440_v2, %v11280_v35  ;;  %v4473_v53 = vpop.f32.mrb[31].mxu0  ;;  %v14349_v33 = vpack.c.bf16 (%p1487_p4), %v4725_v55, %v4724_v7  ;;  %v12812_v56 = vld [vmem:[%s15834_s5 + $0x18] sm:$0xff] (%p1487_p4)   ;;  %v4727_v35 = vld [vmem:[#allocation2 + $0x60] sm:$0xff] (%p1487_p4)  ;;  %v4728_v2 = vld [vmem:[#allocation2 + $0x68] sm:$0xff] (%p1487_p4) }
 0x311   : >> { %v4552_v0 = vadd.f32 %v12216_v11, %v14235_v46  ;;  %v12218_v50 = vadd.f32 %v4473_v53, %v3089_v48  ;;  %1489 = sbr.rel (!%p1487_p4) target bundleno = 271 (0x10f), region = 160  ;;  %v12813_v11 = vld [vmem:[%s15834_s5 + $0x20] sm:$0xff] (%p1487_p4)   ;;  %v4729_v48 = vld [vmem:[#allocation2 + $0x70] sm:$0xff] (%p1487_p4)  ;;  %v12814_v53 = vld [vmem:[%s15834_s5 + $0x28] sm:$0xff] (%p1487_p4)  }
 0x312   : >> { %v4586_v52 = vmax.f32 %v4554_v5, 0.0  ;;  %v4555_v6 = vadd.f32 %v12217_v36, %v14235_v46  ;;  %v14359_v5 = vpack.c.bf16 (%p1487_p4), %v4727_v35, %v4726_v61  ;;  %v14361_v36 = vpack.c.bf16 (%p1487_p4), %v4729_v48, %v4728_v2  ;;  %v12818_v38 = vld [vmem:[%s15834_s5 + $0x88] sm:$0xff] (%p1487_p4)   ;;  %v12819_v55 = vld [vmem:[%s15834_s5 + $0x90] sm:$0xff] (%p1487_p4)  }
 0x313   : >> { %v4584_v47 = vmax.f32 %v4552_v0, 0.0  ;;  %v4553_v62 = vadd.f32 %v12218_v50, %v14235_v46  ;;  %v12801_v46 = vld [vmem:[%s15834_s5 + $0x40] sm:$0xff] (%p1487_p4)   ;;  %v4730_v50 = vld [vmem:[#allocation2 + $0x78] sm:$0xff] (%p1487_p4)  ;;  %v16174_v37 = vld [vmem:[#allocation7_spill] sm:$0xff] (%p1487_p4)  ;;  %v4660_v61 = vmul.f32 (%p1487_p4), %v13255_v12, %v4628_v60 }
 0x314   : >> { %4618 = vst.msk [vmem:[#allocation2 + $0x108] sm:$0xff] %vm1660_vm2, %v4586_v52  ;;  %v4587_v27 = vmax.f32 %v4555_v6, 0.0  ;;  %11441 = vmatprep.subr.bf16.mxu0 (%p1487_p4), %v12801_v46  ;;  %12443 = vmatprep.subr.bf16.mxu1 (%p1487_p4), %v12801_v46  ;;  %v4620_v0 = vld [vmem:[#allocation2 + $0x7] sm:$0xff] (%p1487_p4)  ;;  %v14405_v7 = vld [vmem:[#allocation2 + $0x4f] sm:$0xff] (%p1487_p4)  ;;  %v14415_v35 = vmul.f32 (%p1487_p4), %v16174_v37, %v4628_v60  ;;  %v4630_v2 = vld [vmem:[#allocation2 + $0x57] sm:$0xff] (%p1487_p4) }
 0x315   : >> { %4616 = vst.msk [vmem:[#allocation2 + $0xf8] sm:$0xff] %vm1660_vm2, %v4584_v47  ;;  %v4585_v26 = vmax.f32 %v4553_v62, 0.0  ;;  %11442 = vmatpush3.bf16.msra.mxu0 (%p1487_p4), %v12801_v46  ;;  %12451 = vmatpush3.bf16.msra.mxu1 (%p1487_p4), %v12801_v46  ;;  %v4731_v52 = vld [vmem:[#allocation2 + $0x80] sm:$0xff] (%p1487_p4)  ;;  %v4652_v6 = vmul.f32 (%p1487_p4), %v13235_v8, %v4620_v0  ;;  %v12815_v47 = vld [vmem:[%s15834_s5 + $0x30] sm:$0xff] (%p1487_p4)  }
 0x316   : >> { %4619 = vst.msk [vmem:[#allocation2 + $0x110] sm:$0xff] %vm1660_vm2, %v4587_v27  ;;  %11443 = vmatprep.subr.bf16.mxu0 (%p1487_p4), %v12802_v51  ;;  %12444 = vmatprep.subr.bf16.mxu1 (%p1487_p4), %v12802_v51  ;;  %v4621_v62 = vld [vmem:[#allocation2 + $0xf] sm:$0xff] (%p1487_p4)  ;;  %v14372_v27 = vpack.c.bf16 (%p1487_p4), %v4731_v52, %v4730_v50  ;;  %v4622_v46 = vld [vmem:[#allocation2 + $0x17] sm:$0xff] (%p1487_p4)  ;;  %v4632_v0 = vld [vmem:[#allocation2 + $0x67] sm:$0xff] (%p1487_p4)  ;;  %v4688_v52 = vpack.c.bf16 (%p1487_p4), %v14405_v7, %v4660_v61 }
 0x317   : >> { %4617 = vst.msk [vmem:[#allocation2 + $0x100] sm:$0xff] %vm1660_vm2, %v4585_v26  ;;  %v4684_v26 = vpack.c.bf16 (%p1487_p4), %v4621_v62, %v4652_v6  ;;  %v4654_v25 = vmul.f32 (%p1487_p4), %v13240_v9, %v4622_v46  ;;  %v12820_v50 = vld [vmem:[%s15834_s5 + $0x98] sm:$0xff] (%p1487_p4)   ;;  %v4636_v60 = vld [vmem:[#allocation2 + $0x87] sm:$0xff] (%p1487_p4)  ;;  %v14453_v61 = vld [vmem:[#allocation2 + $0x8f] sm:$0xff] (%p1487_p4) }
 0x318   : > { %v14426_v6 = vld [vmem:[#allocation2 + $0x5f] sm:$0xff]  ;;  %v14505_v57 = vld [vmem:[#allocation2 + $0xcf] sm:$0xff]  ;;  %v14511_v48 = vld [vmem:[#allocation2 + $0xe7] sm:$0xff] }
 0x319   : > { %11444 = vmatpush3.bf16.msra.mxu0 %v12802_v51  ;;  %12452 = vmatpush3.bf16.msra.mxu1 %v12802_v51  ;;  %v12816_v51 = vld [vmem:[%s15834_s5 + $0x38] sm:$0xff]  }
 0x31a   : > { %11445 = vmatprep.subr.bf16.mxu0 %v12803_v28  ;;  %12445 = vmatprep.subr.bf16.mxu1 %v12803_v28 }
 0x31d   : > { %11446 = vmatpush3.bf16.msra.mxu0 %v12803_v28  ;;  %12453 = vmatpush3.bf16.msra.mxu1 %v12803_v28  ;;  %v4624_v28 = vld [vmem:[#allocation2 + $0x27] sm:$0xff] }
 0x31e   : > { %11447 = vmatprep.subr.bf16.mxu0 %v12804_v32  ;;  %12446 = vmatprep.subr.bf16.mxu1 %v12804_v32 }
 0x321   : > { %11448 = vmatpush3.bf16.msra.mxu0 %v12804_v32  ;;  %12454 = vmatpush3.bf16.msra.mxu1 %v12804_v32  ;;  %v14377_v32 = vld [vmem:[#allocation2 + $0x1f] sm:$0xff] }
 0x322   : > { %11449 = vmatprep.subr.bf16.mxu0 %v12805_v54  ;;  %12447 = vmatprep.subr.bf16.mxu1 %v12805_v54 }
 0x325   : > { %11450 = vmatpush3.bf16.msra.mxu0 %v12805_v54  ;;  %12455 = vmatpush3.bf16.msra.mxu1 %v12805_v54  ;;  %v14387_v54 = vmul.f32 %v13235_v8, %v4622_v46  ;;  %v12821_v46 = vld [vmem:[%s15834_s5 + $0xa0] sm:$0xff]  }
 0x326   : > { %11451 = vmatprep.subr.bf16.mxu0 %v12806_v59  ;;  %12448 = vmatprep.subr.bf16.mxu1 %v12806_v59  ;;  %v14554_v8 = vld [vmem:[#allocation2 + $0x39] sm:$0xff] }
 0x327   : > { %16182 = vst [vmem:[#allocation82_spill] sm:$0xff] %v14554_v8 }
 0x329   : > { %11452 = vmatpush3.bf16.msra.mxu0 %v12806_v59  ;;  %12456 = vmatpush3.bf16.msra.mxu1 %v12806_v59  ;;  %v4656_v59 = vmul.f32 %v13245_v10, %v4624_v28 }
 0x32a   : > { %11453 = vmatprep.subr.bf16.mxu0 %v12807_v23  ;;  %12449 = vmatprep.subr.bf16.mxu1 %v12807_v23 }
 0x32d   : > { %11454 = vmatpush3.bf16.msra.mxu0 %v12807_v23  ;;  %12457 = vmatpush3.bf16.msra.mxu1 %v12807_v23  ;;  %v14391_v23 = vmul.f32 %v13240_v9, %v4624_v28  ;;  %v4664_v28 = vmul.f32 %v13265_v14, %v4632_v0  ;;  %v14541_v9 = vld [vmem:[#allocation2 + $0x29] sm:$0xff] }
 0x32e   : > { %11455 = vmatprep.subr.bf16.mxu0 %v12808_v1  ;;  %12450 = vmatprep.subr.bf16.mxu1 %v12808_v1  ;;  %16179 = vst [vmem:[#allocation79_spill] sm:$0xff] %v14541_v9 }
 0x331   : > { %11456 = vmatpush3.bf16.msra.mxu0 %v12808_v1  ;;  %12458 = vmatpush3.bf16.msra.mxu1 %v12808_v1  ;;  %v4680_v1 = vmul.f32 %v13305_v22, %v14511_v48 }
 0x332   : > { %11489 = vmatprep.subr.bf16.mxu0 %v12809_v30 }
 0x334   : > { %11458 = vmatmul.mubr.bf16.vlgmr.msra.gmra.mrb[0].mxu0 %v14335_v31 }
 0x335   : > { %11490 = vmatpush3.bf16.msra.mxu0 %v12809_v30  ;;  %11461 = vmatprep.mubr.bf16.mxu0 %v14337_v4  ;;  %v4685_v30 = vpack.c.bf16 %v14377_v32, %v4654_v25 }
 0x336   : > { %11491 = vmatprep.subr.bf16.mxu0 %v12810_v3 }
 0x339   : > { %11492 = vmatpush3.bf16.msra.mxu0 %v12810_v3  ;;  %v4686_v3 = vpack.c.bf16 %v14381_v29, %v4656_v59  ;;  %v4634_v59 = vld [vmem:[#allocation2 + $0x77] sm:$0xff] }
 0x33a   : > { %11493 = vmatprep.subr.bf16.mxu0 %v12811_v63 }
 0x33c   : > { %11462 = vmatmul.mubr.bf16.gmra.mrb[4].mxu0 %v14347_v13 }
 0x33d   : > { %11494 = vmatpush3.bf16.msra.mxu0 %v12811_v63  ;;  %11465 = vmatprep.mubr.bf16.mxu0 %v14349_v33  ;;  %v4658_v63 = vmul.f32 %v16174_v37, %v4626_v49 }
 0x33e   : > { %11495 = vmatprep.subr.bf16.mxu0 %v12812_v56 }
 0x341   : > { %11496 = vmatpush3.bf16.msra.mxu0 %v12812_v56  ;;  %v14411_v56 = vmul.f32 %v13245_v10, %v4626_v49  ;;  %v4640_v49 = vld [vmem:[#allocation2 + $0xa7] sm:$0xff] }
 0x342   : > { %11497 = vmatprep.subr.bf16.mxu0 %v12813_v11  ;;  %v14531_v10 = vld [vmem:[#allocation2 + $0x21] sm:$0xff] }
 0x343   : > { %16176 = vst [vmem:[#allocation76_spill] sm:$0xff] %v14531_v10 }
 0x344   : > { %11466 = vmatmul.mubr.bf16.gmra.mrb[8].mxu0 %v14359_v5 }
 0x345   : > { %11498 = vmatpush3.bf16.msra.mxu0 %v12813_v11  ;;  %11469 = vmatprep.mubr.bf16.mxu0 %v14361_v36 }
 0x346   : > { %11499 = vmatprep.subr.bf16.mxu0 %v12814_v53 }
 0x349   : > { %11500 = vmatpush3.bf16.msra.mxu0 %v12814_v53  ;;  %v4687_v53 = vpack.c.bf16 %v14402_v34, %v4658_v63  ;;  %v14450_v63 = vld [vmem:[#allocation2 + $0x7f] sm:$0xff] }
 0x34a   : > { %11501 = vmatprep.subr.bf16.mxu0 %v12815_v47 }
 0x34c   : > { %11470 = vmatmul.mubr.bf16.gmra.mrb[12].mxu0 %v14372_v27 }
 0x34d   : > { %11502 = vmatpush3.bf16.msra.mxu0 %v12815_v47  ;;  %11505 = vmatprep.mubr.bf16.mxu0 %v4684_v26  ;;  %v16175_v47 = vld [vmem:[#allocation9_spill] sm:$0xff]  ;;  %v14429_v26 = vld [vmem:[#allocation2 + $0x6f] sm:$0xff] }
 0x34e   : > { %11503 = vmatprep.subr.bf16.mxu0 %v12816_v51  ;;  %v4662_v62 = vmul.f32 %v16175_v47, %v4630_v2  ;;  %v14439_v25 = vmul.f32 %v16175_v47, %v4632_v0  ;;  %v4668_v0 = vmul.f32 %v13275_v16, %v4636_v60  ;;  %v5199_v47 = vld [vmem:[#allocation2 + $0x9] sm:$0xff] }
 0x351   : > { %11504 = vmatpush3.bf16.msra.mxu0 %v12816_v51  ;;  %v14435_v51 = vmul.f32 %v13255_v12, %v4630_v2  ;;  %v12823_v2 = vld [vmem:[%s15834_s5 + $0xb0] sm:$0xff]  }
 0x352   : > { %11537 = vmatprep.subr.bf16.mxu0 %v12817_v58 }
 0x354   : > { %11506 = vmatmul.mubr.bf16.vlgmr.msra.gmra.mrb[0].mxu0 %v4685_v30  ;;  %v4689_v30 = vpack.c.bf16 %v14426_v6, %v4662_v62  ;;  %v4638_v62 = vld [vmem:[#allocation2 + $0x97] sm:$0xff] }
 0x355   : > { %11509 = vmatprep.mubr.bf16.mxu0 %v4686_v3  ;;  %11538 = vmatpush3.bf16.msra.mxu0 %v12817_v58  ;;  %v4690_v3 = vpack.c.bf16 %v14429_v26, %v4664_v28  ;;  %v14483_v28 = vmul.f32 %v13275_v16, %v4638_v62  ;;  %v4672_v58 = vmul.f32 %v13285_v18, %v4640_v49  ;;  %v14523_v16 = vld [vmem:[#allocation2 + $0xf7] sm:$0xff] }
 0x356   : > { %11539 = vmatprep.subr.bf16.mxu0 %v12818_v38 }
 0x359   : > { %11540 = vmatpush3.bf16.msra.mxu0 %v12818_v38  ;;  %v12822_v38 = vld [vmem:[%s15834_s5 + $0xa8] sm:$0xff]  }
 0x35a   : > { %11541 = vmatprep.subr.bf16.mxu0 %v12819_v55 }
 0x35c   : > { %11510 = vmatmul.mubr.bf16.gmra.mrb[4].mxu0 %v4687_v53  ;;  %v14459_v53 = vmul.f32 %v13265_v14, %v4634_v59 }
 0x35d   : > { %11513 = vmatprep.mubr.bf16.mxu0 %v4688_v52  ;;  %11542 = vmatpush3.bf16.msra.mxu0 %v12819_v55  ;;  %v4666_v55 = vmul.f32 %v13270_v15, %v4634_v59  ;;  %v12824_v59 = vld [vmem:[%s15834_s5 + $0xb8] sm:$0xff]   ;;  %v14477_v52 = vld [vmem:[#allocation2 + $0xaf] sm:$0xff] }
 0x35e   : > { %11543 = vmatprep.subr.bf16.mxu0 %v12820_v50 }
 0x361   : > { %11544 = vmatpush3.bf16.msra.mxu0 %v12820_v50  ;;  %v14463_v50 = vmul.f32 %v13270_v15, %v4636_v60  ;;  %v14474_v60 = vld [vmem:[#allocation2 + $0x9f] sm:$0xff]  ;;  %v5200_v15 = vld [vmem:[#allocation2 + $0x11] sm:$0xff] }
 0x362   : > { %11545 = vmatprep.subr.bf16.mxu0 %v12821_v46  ;;  %v5232_v14 = vmul.f32 %v13381_v39, %v5200_v15 }
 0x364   : > { %11514 = vmatmul.mubr.bf16.gmra.mrb[8].mxu0 %v4689_v30  ;;  %v4691_v30 = vpack.c.bf16 %v14450_v63, %v4666_v55  ;;  %v12825_v55 = vld [vmem:[%s15834_s5 + $0xc0] sm:$0xff]   ;;  %v5263_v37 = vpack.c.bf16 %v5232_v14, %v5199_v47 }
 0x365   : > { %11517 = vmatprep.mubr.bf16.mxu0 %v4690_v3  ;;  %11546 = vmatpush3.bf16.msra.mxu0 %v12821_v46  ;;  %v4692_v46 = vpack.c.bf16 %v14453_v61, %v4668_v0  ;;  %v4670_v3 = vmul.f32 %v13280_v17, %v4638_v62  ;;  %v4694_v62 = vpack.c.bf16 %v14477_v52, %v4672_v58  ;;  %v14545_v47 = vld [vmem:[#allocation2 + $0x41] sm:$0xff] }
 0x366   : > { %11547 = vmatprep.subr.bf16.mxu0 %v12822_v38  ;;  %16180 = vst [vmem:[#allocation80_spill] sm:$0xff] %v14545_v47 }
 0x367   : > { %v4693_v11 = vpack.c.bf16 %v14474_v60, %v4670_v3 }
 0x369   : > { %11548 = vmatpush3.bf16.msra.mxu0 %v12822_v38  ;;  %v14487_v38 = vmul.f32 %v13280_v17, %v4640_v49  ;;  %v14519_v17 = vld [vmem:[#allocation2 + $0xef] sm:$0xff] }
 0x36a   : > { %11549 = vmatprep.subr.bf16.mxu0 %v12823_v2 }
 0x36c   : > { %11518 = vmatmul.mubr.bf16.gmra.mrb[12].mxu0 %v4691_v30  ;;  %v14491_v30 = vld [vmem:[#allocation2 + $0xb7] sm:$0xff] }
 0x36d   : > { %11521 = vmatprep.mubr.bf16.mxu0 %v4692_v46  ;;  %11550 = vmatpush3.bf16.msra.mxu0 %v12823_v2  ;;  %v14497_v46 = vld [vmem:[#allocation2 + $0xc7] sm:$0xff]  ;;  %v4674_v49 = vmul.f32 %v13290_v19, %v14491_v30  ;;  %v14501_v2 = vld [vmem:[#allocation2 + $0xbf] sm:$0xff] }
 0x36e   : > { %11551 = vmatprep.subr.bf16.mxu0 %v12824_v59  ;;  %v4676_v0 = vmul.f32 %v13295_v20, %v14497_v46 }
 0x36f   : > { %v4695_v3 = vpack.c.bf16 %v14501_v2, %v4674_v49 }
 0x370   : > { %v4696_v58 = vpack.c.bf16 %v14505_v57, %v4676_v0  ;;  %v4698_v0 = vpack.c.bf16 %v14519_v17, %v4680_v1  ;;  %v5234_v1 = vmul.f32 %v13386_v40, %v14531_v10  ;;  %v14565_v40 = vld [vmem:[#allocation2 + $0x61] sm:$0xff] }
 0x371   : > { %11552 = vmatpush3.bf16.msra.mxu0 %v12824_v59  ;;  %v14509_v59 = vld [vmem:[#allocation2 + $0xd7] sm:$0xff]  ;;  %16184 = vst [vmem:[#allocation84_spill] sm:$0xff] %v14565_v40  ;;  %v5901_v10 = vld [vmem:[#allocation2 + $0xe8] sm:$0xff] }
 0x372   : > { %11585 = vmatprep.subr.bf16.mxu0 %v12825_v55 }
 0x374   : > { %11522 = vmatmul.mubr.bf16.gmra.mrb[16].mxu0 %v4693_v11  ;;  %v4678_v11 = vmul.f32 %v13300_v21, %v14509_v59 }
 0x375   : > { %11525 = vmatprep.mubr.bf16.mxu0 %v4694_v62  ;;  %v14515_v62 = vld [vmem:[#allocation2 + $0xdf] sm:$0xff] }
 0x376   : > { %v4697_v49 = vpack.c.bf16 %v14515_v62, %v4678_v11  ;;  %v14533_v11 = vld [vmem:[#allocation2 + $0x31] sm:$0xff] }
 0x377   : > { %16177 = vst [vmem:[#allocation77_spill] sm:$0xff] %v14533_v11 }
 0x37c   : > { %11526 = vmatmul.mubr.bf16.gmra.mrb[20].mxu0 %v4695_v3  ;;  %v4682_v3 = vmul.f32 %v13310_v24, %v14523_v16 }
 0x37d   : > { %11529 = vmatprep.mubr.bf16.mxu0 %v4696_v58  ;;  %v14527_v58 = vld [vmem:[#allocation2 + $0xff] sm:$0xff] }
 0x37e   : > { %v4699_v12 = vpack.c.bf16 %v14527_v58, %v4682_v3  ;;  %v14547_v3 = vld [vmem:[#allocation2 + $0x51] sm:$0xff] }
 0x37f   : > { %16181 = vst [vmem:[#allocation81_spill] sm:$0xff] %v14547_v3 }
 0x384   : > { %11530 = vmatmul.mubr.bf16.gmra.mrb[24].mxu0 %v4697_v49  ;;  %v14537_v49 = vld [vmem:[#allocation2 + $0x19] sm:$0xff] }
 0x385   : > { %11533 = vmatprep.mubr.bf16.mxu0 %v4698_v0  ;;  %16178 = vst [vmem:[#allocation78_spill] sm:$0xff] %v14537_v49  ;;  %v5236_v0 = vmul.f32 %v13391_v41, %v14533_v11  ;;  %v5264_v15 = vpack.c.bf16 %v5234_v1, %v14537_v49  ;;  %v5240_v1 = vmul.f32 %v13401_v43, %v14547_v3  ;;  %v14585_v3 = vld [vmem:[#allocation2 + $0x81] sm:$0xff]  ;;  %v14623_v11 = vld [vmem:[#allocation2 + $0xa9] sm:$0xff] }
 0x386   : > { %v5242_v43 = vmul.f32 %v13406_v44, %v14565_v40  ;;  %16188 = vst [vmem:[#allocation88_spill] sm:$0xff] %v14585_v3  ;;  %v12831_v40 = vld [vmem:[%s15834_s5 + $0xf0] sm:$0xff]   ;;  %16199 = vst [vmem:[#allocation95_spill] sm:$0xff] %v14623_v11 }
 0x387   : > { %v5265_v14 = vpack.c.bf16 %v5236_v0, %v14541_v9  ;;  %v14558_v0 = vld [vmem:[#allocation2 + $0x49] sm:$0xff] }
 0x388   : > { %16183 = vst [vmem:[#allocation83_spill] sm:$0xff] %v14558_v0  ;;  %v12827_v9 = vld [vmem:[%s15834_s5 + $0xd0] sm:$0xff]  }
 0x38c   : > { %11534 = vmatmul.mubr.bf16.gmra.mrb[28].mxu0 %v4699_v12  ;;  %v12826_v12 = vld [vmem:[%s15834_s5 + $0xc8] sm:$0xff]  }
 0x38d   : > { %11553 = vmatprep.mubr.bf16.mxu0 %v5263_v37  ;;  %v5238_v37 = vmul.f32 %v13396_v42, %v14545_v47  ;;  %v14574_v42 = vld [vmem:[#allocation2 + $0x59] sm:$0xff]  ;;  %v5894_v47 = vld [vmem:[#allocation2 + $0xb0] sm:$0xff] }
 0x38e   : > { %16186 = vst [vmem:[#allocation86_spill] sm:$0xff] %v14574_v42 }
 0x38f   : > { %v5266_v41 = vpack.c.bf16 %v5238_v37, %v14554_v8  ;;  %v5893_v8 = vld [vmem:[#allocation2 + $0xa8] sm:$0xff] }
 0x394   : > { %11554 = vmatmul.mubr.bf16.vlgmr.msra.gmra.mrb[0].mxu0 %v5264_v15  ;;  %v5267_v15 = vpack.c.bf16 %v5240_v1, %v14558_v0  ;;  %v14578_v1 = vld [vmem:[#allocation2 + $0x69] sm:$0xff]  ;;  %v5268_v0 = vpack.c.bf16 %v5242_v43, %v14574_v42  ;;  %v16192_v43 = vld [vmem:[#allocation22_spill] sm:$0xff] }
 0x395   : > { %11557 = vmatprep.mubr.bf16.mxu0 %v5265_v14  ;;  %11586 = vmatpush3.bf16.msra.mxu0 %v12825_v55  ;;  %v14567_v14 = vld [vmem:[#allocation2 + $0x71] sm:$0xff]  ;;  %16187 = vst [vmem:[#allocation87_spill] sm:$0xff] %v14578_v1  ;;  %v14598_v42 = vld [vmem:[#allocation2 + $0x89] sm:$0xff] }
 0x396   : > { %11587 = vmatprep.subr.bf16.mxu0 %v12826_v12  ;;  %16185 = vst [vmem:[#allocation85_spill] sm:$0xff] %v14567_v14  ;;  %v12828_v55 = vld [vmem:[%s15834_s5 + $0xd8] sm:$0xff]   ;;  %v5244_v37 = vmul.f32 %v13411_v45, %v14567_v14  ;;  %16193 = vst [vmem:[#allocation91_spill] sm:$0xff] %v14598_v42 }
 0x397   : > { %v16190_v45 = vld [vmem:[#allocation21_spill] sm:$0xff] }
 0x398   : > { %v5246_v44 = vmul.f32 %v16190_v45, %v14585_v3  ;;  %v14594_v14 = vld [vmem:[#allocation2 + $0x79] sm:$0xff]  ;;  %v14608_v3 = vld [vmem:[#allocation2 + $0xa1] sm:$0xff] }
 0x399   : > { %11588 = vmatpush3.bf16.msra.mxu0 %v12826_v12  ;;  %v12829_v12 = vld [vmem:[%s15834_s5 + $0xe0] sm:$0xff]   ;;  %16191 = vst [vmem:[#allocation90_spill] sm:$0xff] %v14594_v14  ;;  %16194 = vst [vmem:[#allocation92_spill] sm:$0xff] %v14608_v3 }
 0x39a   : > { %11589 = vmatprep.subr.bf16.mxu0 %v12827_v9  ;;  %v5270_v45 = vpack.c.bf16 %v5246_v44, %v14594_v14  ;;  %v5892_v44 = vld [vmem:[#allocation2 + $0xa0] sm:$0xff] }
 0x39b   : > { %v14617_v14 = vld [vmem:[#allocation2 + $0x99] sm:$0xff] }
 0x39c   : > { %11558 = vmatmul.mubr.bf16.gmra.mrb[4].mxu0 %v5266_v41  ;;  %v5269_v41 = vpack.c.bf16 %v5244_v37, %v14578_v1  ;;  %v5889_v1 = vld [vmem:[#allocation2 + $0x88] sm:$0xff]  ;;  %16197 = vst [vmem:[#allocation94_spill] sm:$0xff] %v14617_v14 }
 0x39d   : > { %11561 = vmatprep.mubr.bf16.mxu0 %v5267_v15  ;;  %11590 = vmatpush3.bf16.msra.mxu0 %v12827_v9  ;;  %v14587_v15 = vld [vmem:[#allocation2 + $0x91] sm:$0xff]  ;;  %v12830_v9 = vld [vmem:[%s15834_s5 + $0xe8] sm:$0xff]  }
 0x39e   : > { %11591 = vmatprep.subr.bf16.mxu0 %v12828_v55  ;;  %16189 = vst [vmem:[#allocation89_spill] sm:$0xff] %v14587_v15  ;;  %v5248_v37 = vmul.f32 %v16192_v43, %v14587_v15  ;;  %v12832_v43 = vld [vmem:[%s15834_s5 + $0xf8] sm:$0xff]  }
 0x39f   : > { %v5891_v15 = vld [vmem:[#allocation2 + $0x98] sm:$0xff] }
 0x3a1   : > { %11592 = vmatpush3.bf16.msra.mxu0 %v12828_v55  ;;  %v5890_v55 = vld [vmem:[#allocation2 + $0x90] sm:$0xff] }
 0x3a2   : > { %11593 = vmatprep.subr.bf16.mxu0 %v12829_v12 }
 0x3a4   : > { %11562 = vmatmul.mubr.bf16.gmra.mrb[8].mxu0 %v5268_v0  ;;  %v14603_v0 = vpack.c.bf16 %v5890_v55, %v5889_v1  ;;  %v16196_v1 = vld [vmem:[#allocation23_spill] sm:$0xff] }
 0x3a5   : > { %11565 = vmatprep.mubr.bf16.mxu0 %v5269_v41  ;;  %11594 = vmatpush3.bf16.msra.mxu0 %v12829_v12  ;;  %v5271_v41 = vpack.c.bf16 %v5248_v37, %v14598_v42  ;;  %v14610_v12 = vld [vmem:[#allocation2 + $0xb1] sm:$0xff]  ;;  %v5250_v55 = vmul.f32 %v16196_v1, %v14608_v3  ;;  %v14628_v1 = vpack.c.bf16 %v5894_v47, %v5893_v8  ;;  %v5896_v47 = vld [vmem:[#allocation2 + $0xc0] sm:$0xff] }
 0x3a6   : > { %11595 = vmatprep.subr.bf16.mxu0 %v12830_v9  ;;  %11473 = vmatprep.mubr.bf16.mxu1 %v14603_v0  ;;  %16195 = vst [vmem:[#allocation93_spill] sm:$0xff] %v14610_v12  ;;  %v16198_v37 = vld [vmem:[#allocation24_spill] sm:$0xff]  ;;  %v14640_v3 = vld [vmem:[#allocation2 + $0xb9] sm:$0xff] }
 0x3a7   : > { %v5252_v42 = vmul.f32 %v16198_v37, %v14610_v12  ;;  %v16202_v37 = vld [vmem:[#allocation25_spill] sm:$0xff]  ;;  %16203 = vst [vmem:[#allocation98_spill] sm:$0xff] %v14640_v3 }
 0x3a8   : > { %v5895_v8 = vld [vmem:[#allocation2 + $0xb8] sm:$0xff] }
 0x3a9   : > { %11596 = vmatpush3.bf16.msra.mxu0 %v12830_v9  ;;  %v14621_v9 = vpack.c.bf16 %v5892_v44, %v5891_v15  ;;  %v14634_v15 = vld [vmem:[#allocation2 + $0xc1] sm:$0xff]  ;;  %v14636_v44 = vld [vmem:[#allocation2 + $0xd1] sm:$0xff]  ;;  %v14644_v49 = vpack.c.bf16 %v5896_v47, %v5895_v8  ;;  %v16209_v8 = vld [vmem:[#allocation27_spill] sm:$0xff] }
 0x3aa   : > { %11597 = vmatprep.subr.bf16.mxu0 %v12831_v40  ;;  %16200 = vst [vmem:[#allocation96_spill] sm:$0xff] %v14634_v15  ;;  %16201 = vst [vmem:[#allocation97_spill] sm:$0xff] %v14636_v44  ;;  %v5254_v12 = vmul.f32 %v16202_v37, %v14634_v15  ;;  %v14654_v37 = vld [vmem:[#allocation2 + $0xe1] sm:$0xff]  ;;  %v14656_v15 = vld [vmem:[#allocation2 + $0xf1] sm:$0xff] }
 0x3ab   : > { %11474 = vmatmul.mubr.bf16.vlgmr.msra.gmra.mrb[0].mxu1 %v14621_v9  ;;  %16207 = vst [vmem:[#allocation101_spill] sm:$0xff] %v14654_v37  ;;  %16208 = vst [vmem:[#allocation102_spill] sm:$0xff] %v14656_v15  ;;  %v5258_v47 = vmul.f32 %v16209_v8, %v14654_v37  ;;  %v14674_v8 = vld [vmem:[#allocation2 + $0x101] sm:$0xff]  ;;  %v14678_v37 = vld [vmem:[#allocation2 + $0xf9] sm:$0xff] }
 0x3ac   : > { %11566 = vmatmul.mubr.bf16.gmra.mrb[12].mxu0 %v5270_v45  ;;  %v12833_v45 = vld [vmem:[%s15834_s5 + $0x100] sm:$0xff]   ;;  %11477 = vmatprep.mubr.bf16.mxu1 %v14628_v1 }
 0x3ad   : > { %11569 = vmatprep.mubr.bf16.mxu0 %v5271_v41  ;;  %11598 = vmatpush3.bf16.msra.mxu0 %v12831_v40  ;;  %v5272_v41 = vpack.c.bf16 %v5250_v55, %v14617_v14  ;;  %v5273_v40 = vpack.c.bf16 %v5252_v42, %v14623_v11  ;;  %v16204_v55 = vld [vmem:[#allocation26_spill] sm:$0xff]  ;;  %v5898_v11 = vld [vmem:[#allocation2 + $0xd0] sm:$0xff] }
 0x3ae   : > { %11599 = vmatprep.subr.bf16.mxu0 %v12832_v43  ;;  %v5256_v14 = vmul.f32 %v16204_v55, %v14636_v44  ;;  %v5897_v42 = vld [vmem:[#allocation2 + $0xc8] sm:$0xff]  ;;  %v5899_v55 = vld [vmem:[#allocation2 + $0xd8] sm:$0xff]  ;;  %v5900_v44 = vld [vmem:[#allocation2 + $0xe0] sm:$0xff] }
 0x3af   : > { %v14648_v39 = vpack.c.bf16 %v5898_v11, %v5897_v42  ;;  %v14660_v11 = vld [vmem:[#allocation2 + $0xd9] sm:$0xff]  ;;  %v16210_v42 = vld [vmem:[#allocation28_spill] sm:$0xff] }
 0x3b1   : > { %11600 = vmatpush3.bf16.msra.mxu0 %v12832_v43  ;;  %v14646_v43 = vld [vmem:[#allocation2 + $0xc9] sm:$0xff]  ;;  %16206 = vst [vmem:[#allocation100_spill] sm:$0xff] %v14648_v39 }
 0x3b2   : > { %11633 = vmatprep.subr.bf16.mxu0 %v12833_v45  ;;  %16205 = vst [vmem:[#allocation99_spill] sm:$0xff] %v14646_v43 }
 0x3b3   : > { %11478 = vmatmul.mubr.bf16.gmra.mrb[4].mxu1 %v14644_v49 }
 0x3b4   : > { %11570 = vmatmul.mubr.bf16.gmra.mrb[16].mxu0 %v5272_v41  ;;  %v5274_v41 = vpack.c.bf16 %v5254_v12, %v14640_v3  ;;  %11481 = vmatprep.mubr.bf16.mxu1 %v14648_v39  ;;  %v5260_v12 = vmul.f32 %v16210_v42, %v14656_v15  ;;  %v14664_v3 = vpack.c.bf16 %v5900_v44, %v5899_v55  ;;  %v16211_v44 = vld [vmem:[#allocation29_spill] sm:$0xff] }
 0x3b5   : > { %11573 = vmatprep.mubr.bf16.mxu0 %v5273_v40  ;;  %v5275_v40 = vpack.c.bf16 %v5256_v14, %v14646_v43  ;;  %v5902_v14 = vld [vmem:[#allocation2 + $0xf0] sm:$0xff]  ;;  %v5262_v55 = vmul.f32 %v16211_v44, %v14674_v8  ;;  %v5903_v42 = vld [vmem:[#allocation2 + $0xf8] sm:$0xff]  ;;  %v5904_v15 = vld [vmem:[#allocation2 + $0x100] sm:$0xff] }
 0x3b6   : > { %v14666_v43 = vld [vmem:[#allocation2 + $0xe9] sm:$0xff]  ;;  %v14668_v39 = vpack.c.bf16 %v5902_v14, %v5901_v10  ;;  %v14680_v10 = vpack.c.bf16 %v5904_v15, %v5903_v42  ;;  %v16214_v15 = vpack.c.bf16 %v14402_v34, %v14411_v56  ;;  %v16218_v56 = vpack.c.bf16 %v14450_v63, %v14459_v53  ;;  %v12841_v63 = vld [vmem:[%s15834_s5 + $0x140] sm:$0xff]  }
 0x3b7   : > { %v12834_v14 = vld [vmem:[%s15834_s5 + $0x108] sm:$0xff]   ;;  %v12835_v42 = vld [vmem:[%s15834_s5 + $0x110] sm:$0xff]  }
 0x3b8   : > { %v12838_v34 = vld [vmem:[%s15834_s5 + $0x128] sm:$0xff]  }
 0x3bb   : > { %11482 = vmatmul.mubr.bf16.gmra.mrb[8].mxu1 %v14664_v3 }
 0x3bc   : > { %11574 = vmatmul.mubr.bf16.gmra.mrb[20].mxu0 %v5274_v41  ;;  %v5276_v41 = vpack.c.bf16 %v5258_v47, %v14660_v11  ;;  %11485 = vmatprep.mubr.bf16.mxu1 %v14668_v39  ;;  %v5278_v47 = vpack.c.bf16 %v5262_v55, %v14678_v37  ;;  %v16224_v55 = vld [vmem:[#allocation14_spill] sm:$0xff] }
 0x3bd   : > { %11577 = vmatprep.mubr.bf16.mxu0 %v5275_v40  ;;  %v5277_v40 = vpack.c.bf16 %v5260_v12, %v14666_v43  ;;  %v16212_v12 = vpack.c.bf16 %v14377_v32, %v14387_v54  ;;  %v12836_v32 = vld [vmem:[%s15834_s5 + $0x118] sm:$0xff]   ;;  %v16216_v54 = vpack.c.bf16 %v14426_v6, %v14435_v51  ;;  %v16220_v51 = vpack.c.bf16 %v14474_v60, %v14483_v28 }
 0x3be   : > { %v12840_v6 = vld [vmem:[%s15834_s5 + $0x138] sm:$0xff]   ;;  %v5593_v28 = vmul.f32 %v13295_v20, %v14509_v59  ;;  %v14757_v59 = vld [vmem:[#allocation2 + $0x10f] sm:$0xff] }
 0x3c3   : > { %11486 = vmatmul.mubr.bf16.gmra.mrb[12].mxu1 %v14680_v10 }
 0x3c4   : > { %11578 = vmatmul.mubr.bf16.gmra.mrb[24].mxu0 %v5276_v41  ;;  %v16213_v41 = vpack.c.bf16 %v14381_v29, %v14391_v23  ;;  %v16215_v29 = vpack.c.bf16 %v14405_v7, %v14415_v35  ;;  %v12837_v23 = vld [vmem:[%s15834_s5 + $0x120] sm:$0xff]   ;;  %v16217_v7 = vpack.c.bf16 %v14429_v26, %v14439_v25  ;;  %v12839_v35 = vld [vmem:[%s15834_s5 + $0x130] sm:$0xff]   ;;  %v16219_v26 = vpack.c.bf16 %v14453_v61, %v14463_v50 }
 0x3c5   : > { %11581 = vmatprep.mubr.bf16.mxu0 %v5277_v40  ;;  %v5589_v25 = vmul.f32 %v13285_v18, %v14491_v30  ;;  %v16221_v61 = vpack.c.bf16 %v14477_v52, %v14487_v38  ;;  %v5591_v50 = vmul.f32 %v13290_v19, %v14497_v46  ;;  %v5613_v30 = vpack.c.bf16 %v14515_v62, %v5593_v28  ;;  %v16223_v40 = vld [vmem:[#allocation76_spill] sm:$0xff]  ;;  %v16236_v28 = vld [vmem:[#allocation83_spill] sm:$0xff] }
 0x3c6   : > { %v5597_v52 = vmul.f32 %v13305_v22, %v14523_v16  ;;  %v12842_v16 = vld [vmem:[%s15834_s5 + $0x148] sm:$0xff]  }
 0x3c7   : > { %v5611_v53 = vpack.c.bf16 %v14501_v2, %v5589_v25  ;;  %v5612_v60 = vpack.c.bf16 %v14505_v57, %v5591_v50  ;;  %v5595_v2 = vmul.f32 %v13300_v21, %v14511_v48  ;;  %v5905_v48 = vld [vmem:[#allocation2 + $0x108] sm:$0xff]  ;;  %v12851_v50 = vld [vmem:[%s15834_s5 + $0x190] sm:$0xff]  }
 0x3c8   : > { %v5615_v46 = vpack.c.bf16 %v14527_v58, %v5597_v52  ;;  %v5906_v58 = vld [vmem:[#allocation2 + $0x110] sm:$0xff]  ;;  %v12852_v52 = vld [vmem:[%s15834_s5 + $0x198] sm:$0xff]  }
 0x3c9   : > { %v5614_v38 = vpack.c.bf16 %v14519_v17, %v5595_v2  ;;  %v12843_v17 = vld [vmem:[%s15834_s5 + $0x150] sm:$0xff]  }
 0x3cc   : > { %11582 = vmatmul.mubr.bf16.gmra.mrb[28].mxu0 %v5278_v47  ;;  %v6214_v47 = vmul.f32 %v16224_v55, %v16223_v40 }
 0x3cd   : > { %11601 = vmatprep.mubr.bf16.mxu0 %v16212_v12  ;;  %v14801_v12 = vpack.c.bf16 %v5906_v58, %v5905_v48  ;;  %v16244_v48 = vld [vmem:[#allocation89_spill] sm:$0xff]  ;;  %v16245_v58 = vld [vmem:[#allocation21_spill] sm:$0xff] }
 0x3ce   : > { %v6228_v40 = vmul.f32 %v16245_v58, %v16244_v48  ;;  %v16263_v48 = vld [vmem:[#allocation28_spill] sm:$0xff] }
 0x3d4   : > { %11602 = vmatmul.mubr.bf16.vlgmr.msra.gmra.mrb[0].mxu0 %v16213_v41 }
 0x3d5   : > { %11605 = vmatprep.mubr.bf16.mxu0 %v16214_v15  ;;  %11634 = vmatpush3.bf16.msra.mxu0 %v12833_v45  ;;  %v14753_v45 = vld [vmem:[#allocation2 + $0x107] sm:$0xff] }
 0x3d6   : > { %11635 = vmatprep.subr.bf16.mxu0 %v12834_v14  ;;  %v5599_v57 = vmul.f32 %v13310_v24, %v14753_v45  ;;  %v16226_v15 = vld [vmem:[#allocation77_spill] sm:$0xff] }
 0x3d8   : > { %v5616_v62 = vpack.c.bf16 %v14757_v59, %v5599_v57 }
 0x3d9   : > { %11636 = vmatpush3.bf16.msra.mxu0 %v12834_v14  ;;  %v16225_v14 = vld [vmem:[#allocation78_spill] sm:$0xff] }
 0x3da   : > { %11637 = vmatprep.subr.bf16.mxu0 %v12835_v42  ;;  %v6245_v41 = vpack.c.bf16 %v6214_v47, %v16225_v14  ;;  %v16246_v47 = vld [vmem:[#allocation92_spill] sm:$0xff] }
 0x3db   : > { %v16247_v14 = vld [vmem:[#allocation22_spill] sm:$0xff] }
 0x3dc   : > { %11606 = vmatmul.mubr.bf16.gmra.mrb[4].mxu0 %v16215_v29  ;;  %v16228_v29 = vld [vmem:[#allocation80_spill] sm:$0xff] }
 0x3dd   : > { %11609 = vmatprep.mubr.bf16.mxu0 %v16216_v54  ;;  %11638 = vmatpush3.bf16.msra.mxu0 %v12835_v42  ;;  %v16227_v42 = vld [vmem:[#allocation15_spill] sm:$0xff]  ;;  %v16229_v54 = vld [vmem:[#allocation16_spill] sm:$0xff] }
 0x3de   : > { %11639 = vmatprep.subr.bf16.mxu0 %v12836_v32 }
 0x3e1   : > { %11640 = vmatpush3.bf16.msra.mxu0 %v12836_v32  ;;  %v6216_v32 = vmul.f32 %v16227_v42, %v16226_v15  ;;  %v12855_v15 = vld [vmem:[%s15834_s5 + $0x1b0] sm:$0xff]  }
 0x3e2   : > { %11641 = vmatprep.subr.bf16.mxu0 %v12837_v23 }
 0x3e4   : > { %11610 = vmatmul.mubr.bf16.gmra.mrb[8].mxu0 %v16217_v7 }
 0x3e5   : > { %11613 = vmatprep.mubr.bf16.mxu0 %v16218_v56  ;;  %11642 = vmatpush3.bf16.msra.mxu0 %v12837_v23  ;;  %v6218_v23 = vmul.f32 %v16229_v54, %v16228_v29  ;;  %v16231_v56 = vld [vmem:[#allocation82_spill] sm:$0xff] }
 0x3e6   : > { %11643 = vmatprep.subr.bf16.mxu0 %v12838_v34 }
 0x3e9   : > { %11644 = vmatpush3.bf16.msra.mxu0 %v12838_v34  ;;  %v16230_v34 = vld [vmem:[#allocation79_spill] sm:$0xff] }
 0x3ea   : > { %11645 = vmatprep.subr.bf16.mxu0 %v12839_v35  ;;  %v6246_v7 = vpack.c.bf16 %v6216_v32, %v16230_v34  ;;  %v16248_v32 = vld [vmem:[#allocation91_spill] sm:$0xff] }
 0x3eb   : > { %v6252_v29 = vpack.c.bf16 %v6228_v40, %v16248_v32  ;;  %v6242_v40 = vmul.f32 %v16263_v48, %v14674_v8  ;;  %v6519_v32 = vld [vmem:[#allocation2 + $0x27] sm:$0xff] }
 0x3ec   : > { %11614 = vmatmul.mubr.bf16.gmra.mrb[12].mxu0 %v16219_v26  ;;  %v16232_v26 = vld [vmem:[#allocation81_spill] sm:$0xff] }
 0x3ed   : > { %11617 = vmatprep.mubr.bf16.mxu0 %v16220_v51  ;;  %11646 = vmatpush3.bf16.msra.mxu0 %v12839_v35  ;;  %v6247_v35 = vpack.c.bf16 %v6218_v23, %v16231_v56  ;;  %v16233_v51 = vld [vmem:[#allocation17_spill] sm:$0xff]  ;;  %v16249_v23 = vld [vmem:[#allocation94_spill] sm:$0xff]  ;;  %v16250_v56 = vld [vmem:[#allocation93_spill] sm:$0xff] }
 0x3ee   : > { %11647 = vmatprep.subr.bf16.mxu0 %v12840_v6  ;;  %v6220_v25 = vmul.f32 %v16233_v51, %v16232_v26  ;;  %v16252_v26 = vld [vmem:[#allocation96_spill] sm:$0xff] }
 0x3f1   : > { %11648 = vmatpush3.bf16.msra.mxu0 %v12840_v6  ;;  %v12850_v6 = vld [vmem:[%s15834_s5 + $0x188] sm:$0xff]  }
 0x3f2   : > { %11681 = vmatprep.subr.bf16.mxu0 %v12841_v63 }
 0x3f4   : > { %11618 = vmatmul.mubr.bf16.gmra.mrb[16].mxu0 %v16221_v61 }
 0x3f5   : > { %11621 = vmatprep.mubr.bf16.mxu0 %v5611_v53  ;;  %v16235_v53 = vld [vmem:[#allocation18_spill] sm:$0xff] }
 0x3fc   : > { %11622 = vmatmul.mubr.bf16.gmra.mrb[20].mxu0 %v5612_v60  ;;  %v6248_v60 = vpack.c.bf16 %v6220_v25, %v16236_v28  ;;  %v16253_v25 = vld [vmem:[#allocation24_spill] sm:$0xff] }
 0x3fd   : > { %11625 = vmatprep.mubr.bf16.mxu0 %v5613_v30  ;;  %v16237_v30 = vld [vmem:[#allocation86_spill] sm:$0xff] }
 0x404   : > { %11626 = vmatmul.mubr.bf16.gmra.mrb[24].mxu0 %v5614_v38  ;;  %v16238_v38 = vld [vmem:[#allocation85_spill] sm:$0xff] }
 0x405   : > { %11629 = vmatprep.mubr.bf16.mxu0 %v5615_v46  ;;  %v16239_v46 = vld [vmem:[#allocation19_spill] sm:$0xff] }
 0x406   : > { %v6224_v57 = vmul.f32 %v16239_v46, %v16238_v38 }
 0x40c   : > { %11630 = vmatmul.mubr.bf16.gmra.mrb[28].mxu0 %v5616_v62  ;;  %v16240_v62 = vld [vmem:[#allocation88_spill] sm:$0xff] }
 0x40d   : > { %11649 = vmatprep.mubr.bf16.mxu0 %v14335_v31  ;;  %v12844_v31 = vld [vmem:[%s15834_s5 + $0x158] sm:$0xff]  }
 0x414   : > { %11650 = vmatmul.mubr.bf16.vlgmr.msra.gmra.mrb[0].mxu0 %v14337_v4  ;;  %v12845_v4 = vld [vmem:[%s15834_s5 + $0x160] sm:$0xff]  }
 0x415   : > { %11653 = vmatprep.mubr.bf16.mxu0 %v14347_v13  ;;  %11682 = vmatpush3.bf16.msra.mxu0 %v12841_v63  ;;  %v12846_v13 = vld [vmem:[%s15834_s5 + $0x168] sm:$0xff]  }
 0x416   : > { %11683 = vmatprep.subr.bf16.mxu0 %v12842_v16  ;;  %v16234_v63 = vld [vmem:[#allocation84_spill] sm:$0xff] }
 0x417   : > { %v6222_v61 = vmul.f32 %v16235_v53, %v16234_v63  ;;  %v6234_v63 = vmul.f32 %v16253_v25, %v16252_v26 }
 0x419   : > { %11684 = vmatpush3.bf16.msra.mxu0 %v12842_v16  ;;  %v6249_v2 = vpack.c.bf16 %v6222_v61, %v16237_v30  ;;  %v16241_v16 = vld [vmem:[#allocation20_spill] sm:$0xff]  ;;  %v12857_v61 = vld [vmem:[%s15834_s5 + $0x1c0] sm:$0xff]  }
 0x41a   : > { %11685 = vmatprep.subr.bf16.mxu0 %v12843_v17 }
 0x41c   : > { %11654 = vmatmul.mubr.bf16.gmra.mrb[4].mxu0 %v14349_v33  ;;  %v12847_v33 = vld [vmem:[%s15834_s5 + $0x170] sm:$0xff]  }
 0x41d   : > { %11657 = vmatprep.mubr.bf16.mxu0 %v14359_v5  ;;  %11686 = vmatpush3.bf16.msra.mxu0 %v12843_v17  ;;  %v12848_v5 = vld [vmem:[%s15834_s5 + $0x178] sm:$0xff]   ;;  %v6226_v17 = vmul.f32 %v16241_v16, %v16240_v62  ;;  %v16259_v62 = vld [vmem:[#allocation26_spill] sm:$0xff] }
 0x41e   : > { %11687 = vmatprep.subr.bf16.mxu0 %v12844_v31 }
 0x421   : > { %11688 = vmatpush3.bf16.msra.mxu0 %v12844_v31  ;;  %v12853_v31 = vld [vmem:[%s15834_s5 + $0x1a0] sm:$0xff]  }
 0x422   : > { %11689 = vmatprep.subr.bf16.mxu0 %v12845_v4 }
 0x424   : > { %11658 = vmatmul.mubr.bf16.gmra.mrb[8].mxu0 %v14361_v36  ;;  %v12849_v36 = vld [vmem:[%s15834_s5 + $0x180] sm:$0xff]  }
 0x425   : > { %11661 = vmatprep.mubr.bf16.mxu0 %v14372_v27  ;;  %11690 = vmatpush3.bf16.msra.mxu0 %v12845_v4  ;;  %v16222_v27 = vld [vmem:[#allocation100_spill] sm:$0xff]  ;;  %v16242_v4 = vld [vmem:[#allocation87_spill] sm:$0xff] }
 0x426   : > { %11691 = vmatprep.subr.bf16.mxu0 %v12846_v13 }
 0x429   : > { %11692 = vmatpush3.bf16.msra.mxu0 %v12846_v13  ;;  %v6250_v13 = vpack.c.bf16 %v6224_v57, %v16242_v4  ;;  %v16258_v57 = vld [vmem:[#allocation101_spill] sm:$0xff] }
 0x42a   : > { %11693 = vmatprep.subr.bf16.mxu0 %v12847_v33 }
 0x42c   : > { %11662 = vmatmul.mubr.bf16.gmra.mrb[12].mxu0 %v14603_v0 }
 0x42d   : > { %11665 = vmatprep.mubr.bf16.mxu0 %v14621_v9  ;;  %11694 = vmatpush3.bf16.msra.mxu0 %v12847_v33  ;;  %v16243_v33 = vld [vmem:[#allocation90_spill] sm:$0xff] }
 0x42e   : > { %11695 = vmatprep.subr.bf16.mxu0 %v12848_v5 }
 0x431   : > { %11696 = vmatpush3.bf16.msra.mxu0 %v12848_v5  ;;  %v6251_v5 = vpack.c.bf16 %v6226_v17, %v16243_v33  ;;  %v6238_v17 = vmul.f32 %v16259_v62, %v16258_v57  ;;  %v16261_v33 = vld [vmem:[#allocation102_spill] sm:$0xff]  ;;  %v6527_v57 = vld [vmem:[#allocation2 + $0x67] sm:$0xff] }
 0x432   : > { %11729 = vmatprep.subr.bf16.mxu0 %v12849_v36 }
 0x434   : > { %11666 = vmatmul.mubr.bf16.gmra.mrb[16].mxu0 %v14628_v1 }
 0x435   : > { %11669 = vmatprep.mubr.bf16.mxu0 %v14644_v49 }
 0x43c   : > { %11670 = vmatmul.mubr.bf16.gmra.mrb[20].mxu0 %v16222_v27 }
 0x43d   : > { %11673 = vmatprep.mubr.bf16.mxu0 %v14664_v3 }
 0x444   : > { %11674 = vmatmul.mubr.bf16.gmra.mrb[24].mxu0 %v14668_v39 }
 0x445   : > { %11677 = vmatprep.mubr.bf16.mxu0 %v14680_v10 }
 0x44c   : > { %11678 = vmatmul.mubr.bf16.gmra.mrb[28].mxu0 %v14801_v12 }
 0x44d   : > { %11697 = vmatprep.mubr.bf16.mxu0 %v6245_v41  ;;  %v6230_v41 = vmul.f32 %v16247_v14, %v16246_v47 }
 0x44f   : > { %v6253_v34 = vpack.c.bf16 %v6230_v41, %v16249_v23  ;;  %v6259_v41 = vpack.c.bf16 %v6242_v40, %v14678_v37  ;;  %v16264_v23 = vld [vmem:[#allocation4_spill] sm:$0xff]  ;;  %v16265_v37 = vld [vmem:[#allocation5_spill] sm:$0xff] }
 0x450   : > { %v6528_v40 = vld [vmem:[#allocation2 + $0x6f] sm:$0xff] }
 0x454   : > { %11698 = vmatmul.mubr.bf16.vlgmr.msra.gmra.mrb[0].mxu0 %v6246_v7  ;;  %v12856_v7 = vld [vmem:[%s15834_s5 + $0x1b8] sm:$0xff]  }
 0x455   : > { %11701 = vmatprep.mubr.bf16.mxu0 %v6247_v35  ;;  %11730 = vmatpush3.bf16.msra.mxu0 %v12849_v36  ;;  %v12854_v36 = vld [vmem:[%s15834_s5 + $0x1a8] sm:$0xff]  }
 0x456   : > { %11731 = vmatprep.subr.bf16.mxu0 %v12850_v6  ;;  %v16251_v35 = vld [vmem:[#allocation23_spill] sm:$0xff] }
 0x459   : > { %11732 = vmatpush3.bf16.msra.mxu0 %v12850_v6  ;;  %v6232_v6 = vmul.f32 %v16251_v35, %v16250_v56 }
 0x45a   : > { %11733 = vmatprep.subr.bf16.mxu0 %v12851_v50 }
 0x45c   : > { %11702 = vmatmul.mubr.bf16.gmra.mrb[4].mxu0 %v6248_v60  ;;  %v16255_v60 = vld [vmem:[#allocation98_spill] sm:$0xff] }
 0x45d   : > { %11705 = vmatprep.mubr.bf16.mxu0 %v6249_v2  ;;  %11734 = vmatpush3.bf16.msra.mxu0 %v12851_v50  ;;  %v16254_v50 = vld [vmem:[#allocation95_spill] sm:$0xff]  ;;  %v6255_v30 = vpack.c.bf16 %v6234_v63, %v16255_v60  ;;  %v16256_v2 = vld [vmem:[#allocation97_spill] sm:$0xff] }
 0x45e   : > { %11735 = vmatprep.subr.bf16.mxu0 %v12852_v52  ;;  %v6254_v28 = vpack.c.bf16 %v6232_v6, %v16254_v50  ;;  %v6521_v6 = vld [vmem:[#allocation2 + $0x37] sm:$0xff]  ;;  %v6522_v63 = vld [vmem:[#allocation2 + $0x3f] sm:$0xff]  ;;  %v6524_v60 = vld [vmem:[#allocation2 + $0x4f] sm:$0xff] }
 0x45f   : > { %v6553_v26 = vmul.f32 %v16265_v37, %v6521_v6  ;;  %v16266_v50 = vld [vmem:[#allocation6_spill] sm:$0xff] }
 0x460   : > { %v12861_v37 = vld [vmem:[%s15834_s5 + $0x1e0] sm:$0xff]  }
 0x461   : > { %11736 = vmatpush3.bf16.msra.mxu0 %v12852_v52  ;;  %v16257_v52 = vld [vmem:[#allocation25_spill] sm:$0xff] }
 0x462   : > { %11737 = vmatprep.subr.bf16.mxu0 %v12853_v31  ;;  %v6236_v38 = vmul.f32 %v16257_v52, %v16256_v2 }
 0x464   : > { %11706 = vmatmul.mubr.bf16.gmra.mrb[8].mxu0 %v6250_v13  ;;  %v6257_v13 = vpack.c.bf16 %v6238_v17, %v14660_v11  ;;  %v14875_v11 = vld [vmem:[#allocation2 + $0x109] sm:$0xff] }
 0x465   : > { %11709 = vmatprep.mubr.bf16.mxu0 %v6251_v5  ;;  %11738 = vmatpush3.bf16.msra.mxu0 %v12853_v31  ;;  %v16260_v31 = vld [vmem:[#allocation99_spill] sm:$0xff]  ;;  %v16262_v5 = vld [vmem:[#allocation27_spill] sm:$0xff] }
 0x466   : > { %11739 = vmatprep.subr.bf16.mxu0 %v12854_v36  ;;  %v6256_v4 = vpack.c.bf16 %v6236_v38, %v16260_v31  ;;  %v6525_v38 = vld [vmem:[#allocation2 + $0x57] sm:$0xff]  ;;  %v12858_v17 = vld [vmem:[%s15834_s5 + $0x1c8] sm:$0xff]  }
 0x467   : > { %v16267_v31 = vld [vmem:[#allocation7_spill] sm:$0xff] }
 0x469   : > { %11740 = vmatpush3.bf16.msra.mxu0 %v12854_v36  ;;  %v6240_v36 = vmul.f32 %v16262_v5, %v16261_v33  ;;  %v16268_v33 = vld [vmem:[#allocation8_spill] sm:$0xff] }
 0x46a   : > { %11741 = vmatprep.subr.bf16.mxu0 %v12855_v15 }
 0x46b   : > { %v6258_v47 = vpack.c.bf16 %v6240_v36, %v14666_v43  ;;  %v6523_v43 = vld [vmem:[#allocation2 + $0x47] sm:$0xff]  ;;  %v6559_v36 = vmul.f32 %v16268_v33, %v6527_v57  ;;  %v16272_v57 = vld [vmem:[#allocation12_spill] sm:$0xff] }
 0x46c   : > { %11710 = vmatmul.mubr.bf16.gmra.mrb[12].mxu0 %v6252_v29 }
 0x46d   : > { %11713 = vmatprep.mubr.bf16.mxu0 %v6253_v34  ;;  %11742 = vmatpush3.bf16.msra.mxu0 %v12855_v15  ;;  %v14871_v15 = vld [vmem:[#allocation2 + $0x111] sm:$0xff]  ;;  %v6551_v34 = vmul.f32 %v16264_v23, %v6519_v32  ;;  %v6587_v32 = vpack.c.bf16 %v6528_v40, %v6559_v36  ;;  %v6531_v23 = vld [vmem:[#allocation2 + $0x87] sm:$0xff] }
 0x46e   : > { %11743 = vmatprep.subr.bf16.mxu0 %v12856_v7  ;;  %v6244_v29 = vmul.f32 %v16211_v44, %v14871_v15  ;;  %v6537_v36 = vld [vmem:[#allocation2 + $0xb7] sm:$0xff]  ;;  %v6539_v40 = vld [vmem:[#allocation2 + $0xc7] sm:$0xff] }
 0x470   : > { %v6260_v56 = vpack.c.bf16 %v6244_v29, %v14875_v11  ;;  %v6529_v29 = vld [vmem:[#allocation2 + $0x77] sm:$0xff] }
 0x471   : > { %11744 = vmatpush3.bf16.msra.mxu0 %v12856_v7  ;;  %v6520_v7 = vld [vmem:[#allocation2 + $0x2f] sm:$0xff] }
 0x472   : > { %11777 = vmatprep.subr.bf16.mxu0 %v12857_v61  ;;  %v6583_v8 = vpack.c.bf16 %v6520_v7, %v6551_v34  ;;  %v12860_v34 = vld [vmem:[%s15834_s5 + $0x1d8] sm:$0xff]  }
 0x473   : > { %v16269_v7 = vld [vmem:[#allocation9_spill] sm:$0xff] }
 0x474   : > { %11714 = vmatmul.mubr.bf16.gmra.mrb[16].mxu0 %v6254_v28  ;;  %v6555_v28 = vmul.f32 %v16266_v50, %v6523_v43  ;;  %v6532_v43 = vld [vmem:[#allocation2 + $0x8f] sm:$0xff]  ;;  %v6533_v50 = vld [vmem:[#allocation2 + $0x97] sm:$0xff] }
 0x475   : > { %11717 = vmatprep.mubr.bf16.mxu0 %v6255_v30  ;;  %v6584_v30 = vpack.c.bf16 %v6522_v63, %v6553_v26 }
 0x476   : > { %v6585_v2 = vpack.c.bf16 %v6524_v60, %v6555_v28  ;;  %v6535_v28 = vld [vmem:[#allocation2 + $0xa7] sm:$0xff] }
 0x477   : > { %v12862_v60 = vld [vmem:[%s15834_s5 + $0x1e8] sm:$0xff]  }
 0x47c   : > { %11718 = vmatmul.mubr.bf16.gmra.mrb[20].mxu0 %v6256_v4  ;;  %v6557_v4 = vmul.f32 %v16267_v31, %v6525_v38  ;;  %v6534_v38 = vld [vmem:[#allocation2 + $0x9f] sm:$0xff]  ;;  %v6536_v31 = vld [vmem:[#allocation2 + $0xaf] sm:$0xff] }
 0x47d   : > { %11721 = vmatprep.mubr.bf16.mxu0 %v6257_v13  ;;  %v6526_v13 = vld [vmem:[#allocation2 + $0x5f] sm:$0xff] }
 0x484   : > { %11722 = vmatmul.mubr.bf16.gmra.mrb[24].mxu0 %v6258_v47  ;;  %v12859_v47 = vld [vmem:[%s15834_s5 + $0x1d0] sm:$0xff]  }
 0x485   : > { %11725 = vmatprep.mubr.bf16.mxu0 %v6259_v41  ;;  %v6586_v41 = vpack.c.bf16 %v6526_v13, %v6557_v4  ;;  %v12863_v4 = vld [vmem:[%s15834_s5 + $0x1f0] sm:$0xff]  }
 0x48c   : > { %11726 = vmatmul.mubr.bf16.gmra.mrb[28].mxu0 %v6260_v56  ;;  %v6561_v56 = vmul.f32 %v16269_v7, %v6529_v29  ;;  %v6538_v29 = vld [vmem:[#allocation2 + $0xbf] sm:$0xff] }
 0x48d   : > { %11745 = vmatprep.mubr.bf16.mxu0 %v6583_v8  ;;  %v16270_v8 = vld [vmem:[#allocation10_spill] sm:$0xff] }
 0x48e   : > { %v6563_v6 = vmul.f32 %v16270_v8, %v6531_v23  ;;  %v6571_v23 = vmul.f32 %v13285_v18, %v6539_v40  ;;  %v12865_v7 = vld [vmem:[%s15834_s5 + $0x200] sm:$0xff]   ;;  %v6541_v8 = vld [vmem:[#allocation2 + $0xd7] sm:$0xff]  ;;  %v6861_v40 = vld [vmem:[#allocation2 + $0x48] sm:$0xff] }
 0x490   : > { %v6589_v63 = vpack.c.bf16 %v6532_v43, %v6563_v6  ;;  %v6543_v6 = vld [vmem:[#allocation2 + $0xe7] sm:$0xff]  ;;  %v6573_v43 = vmul.f32 %v13290_v19, %v6541_v8  ;;  %v6549_v19 = vld [vmem:[#allocation2 + $0x117] sm:$0xff] }
 0x491   : > { %v6575_v18 = vmul.f32 %v13295_v20, %v6543_v6  ;;  %v6550_v20 = vld [vmem:[#allocation2 + $0x11f] sm:$0xff] }
 0x492   : > { %v6867_v8 = vld [vmem:[#allocation2 + $0x78] sm:$0xff]  ;;  %v6868_v6 = vld [vmem:[#allocation2 + $0x80] sm:$0xff] }
 0x494   : > { %11746 = vmatmul.mubr.bf16.vlgmr.msra.gmra.mrb[0].mxu0 %v6584_v30  ;;  %v16271_v30 = vld [vmem:[#allocation11_spill] sm:$0xff] }
 0x495   : > { %11749 = vmatprep.mubr.bf16.mxu0 %v6585_v2  ;;  %11778 = vmatpush3.bf16.msra.mxu0 %v12857_v61  ;;  %v6530_v61 = vld [vmem:[#allocation2 + $0x7f] sm:$0xff]  ;;  %v6565_v2 = vmul.f32 %v16271_v30, %v6533_v50 }
 0x496   : > { %11779 = vmatprep.subr.bf16.mxu0 %v12858_v17  ;;  %v6588_v26 = vpack.c.bf16 %v6530_v61, %v6561_v56  ;;  %v6546_v30 = vld [vmem:[#allocation2 + $0xff] sm:$0xff] }
 0x497   : > { %v6590_v13 = vpack.c.bf16 %v6534_v38, %v6565_v2  ;;  %v6579_v2 = vmul.f32 %v13305_v22, %v14753_v45 }
 0x499   : > { %11780 = vmatpush3.bf16.msra.mxu0 %v12858_v17  ;;  %v6567_v17 = vmul.f32 %v16272_v57, %v6535_v28  ;;  %v6545_v28 = vld [vmem:[#allocation2 + $0xf7] sm:$0xff]  ;;  %v6597_v57 = vpack.c.bf16 %v14757_v59, %v6579_v2  ;;  %v12866_v59 = vld [vmem:[%s15834_s5 + $0x208] sm:$0xff]  }
 0x49a   : > { %11781 = vmatprep.subr.bf16.mxu0 %v12859_v47  ;;  %v7166_v2 = vld [vmem:[#allocation2 + $0x41] sm:$0xff] }
 0x49b   : > { %v6591_v33 = vpack.c.bf16 %v6536_v31, %v6567_v17  ;;  %v6581_v17 = vmul.f32 %v13310_v24, %v6549_v19  ;;  %v6857_v31 = vld [vmem:[#allocation2 + $0x28] sm:$0xff]  ;;  %v6863_v24 = vld [vmem:[#allocation2 + $0x58] sm:$0xff] }
 0x49c   : > { %11750 = vmatmul.mubr.bf16.gmra.mrb[4].mxu0 %v6586_v41  ;;  %v16273_v41 = vld [vmem:[#allocation13_spill] sm:$0xff]  ;;  %v7172_v19 = vld [vmem:[#allocation2 + $0x71] sm:$0xff] }
 0x49d   : > { %11753 = vmatprep.mubr.bf16.mxu0 %v6587_v32  ;;  %11782 = vmatpush3.bf16.msra.mxu0 %v12859_v47  ;;  %v12864_v47 = vld [vmem:[%s15834_s5 + $0x1f8] sm:$0xff]   ;;  %v6569_v32 = vmul.f32 %v16273_v41, %v6537_v36  ;;  %v6860_v36 = vld [vmem:[#allocation2 + $0x40] sm:$0xff] }
 0x49e   : > { %11783 = vmatprep.subr.bf16.mxu0 %v12860_v34  ;;  %v6864_v41 = vld [vmem:[#allocation2 + $0x60] sm:$0xff] }
 0x49f   : > { %v6592_v56 = vpack.c.bf16 %v6538_v29, %v6569_v32  ;;  %v6865_v32 = vld [vmem:[#allocation2 + $0x68] sm:$0xff]  ;;  %v6866_v29 = vld [vmem:[#allocation2 + $0x70] sm:$0xff] }
 0x4a1   : > { %11784 = vmatpush3.bf16.msra.mxu0 %v12860_v34  ;;  %v6540_v34 = vld [vmem:[#allocation2 + $0xcf] sm:$0xff] }
 0x4a2   : > { %11785 = vmatprep.subr.bf16.mxu0 %v12861_v37  ;;  %v6593_v61 = vpack.c.bf16 %v6540_v34, %v6571_v23  ;;  %v12867_v23 = vld [vmem:[%s15834_s5 + $0x210] sm:$0xff]   ;;  %v6892_v34 = vpack.c.bf16 %v6864_v41, %v6863_v24 }
 0x4a3   : > { %v7179_v41 = vld [vmem:[#allocation2 + $0xa9] sm:$0xff] }
 0x4a4   : > { %11754 = vmatmul.mubr.bf16.gmra.mrb[8].mxu0 %v6588_v26  ;;  %v6544_v26 = vld [vmem:[#allocation2 + $0xef] sm:$0xff] }
 0x4a5   : > { %11757 = vmatprep.mubr.bf16.mxu0 %v6589_v63  ;;  %11786 = vmatpush3.bf16.msra.mxu0 %v12861_v37  ;;  %v6542_v37 = vld [vmem:[#allocation2 + $0xdf] sm:$0xff]  ;;  %v6595_v50 = vpack.c.bf16 %v6544_v26, %v6575_v18  ;;  %v12871_v18 = vld [vmem:[%s15834_s5 + $0x230] sm:$0xff]  }
 0x4a6   : > { %11787 = vmatprep.subr.bf16.mxu0 %v12862_v60  ;;  %v6594_v63 = vpack.c.bf16 %v6542_v37, %v6573_v43  ;;  %v6894_v43 = vpack.c.bf16 %v6868_v6, %v6867_v8  ;;  %v12870_v37 = vld [vmem:[%s15834_s5 + $0x228] sm:$0xff]   ;;  %v12872_v26 = vld [vmem:[%s15834_s5 + $0x238] sm:$0xff]  }
 0x4a9   : > { %11788 = vmatpush3.bf16.msra.mxu0 %v12862_v60  ;;  %v6577_v60 = vmul.f32 %v13300_v21, %v6545_v28  ;;  %v6859_v21 = vld [vmem:[#allocation2 + $0x38] sm:$0xff]  ;;  %v7163_v28 = vld [vmem:[#allocation2 + $0x29] sm:$0xff] }
 0x4aa   : > { %11789 = vmatprep.subr.bf16.mxu0 %v12863_v4  ;;  %v6890_v22 = vpack.c.bf16 %v6860_v36, %v6859_v21  ;;  %v7173_v21 = vld [vmem:[#allocation2 + $0x79] sm:$0xff] }
 0x4ab   : > { %v6596_v38 = vpack.c.bf16 %v6546_v30, %v6577_v60 }
 0x4ac   : > { %11758 = vmatmul.mubr.bf16.gmra.mrb[12].mxu0 %v6590_v13  ;;  %v6598_v13 = vpack.c.bf16 %v6550_v20, %v6581_v17  ;;  %v7169_v17 = vld [vmem:[#allocation2 + $0x59] sm:$0xff]  ;;  %v7204_v20 = vmul.f32 %v16235_v53, %v7172_v19 }
 0x4ad   : > { %11761 = vmatprep.mubr.bf16.mxu0 %v6591_v33  ;;  %11790 = vmatpush3.bf16.msra.mxu0 %v12863_v4  ;;  %v6858_v4 = vld [vmem:[#allocation2 + $0x30] sm:$0xff] }
 0x4ae   : > { %11791 = vmatprep.subr.bf16.mxu0 %v12864_v47  ;;  %v6889_v33 = vpack.c.bf16 %v6858_v4, %v6857_v31  ;;  %v7171_v31 = vld [vmem:[#allocation2 + $0x69] sm:$0xff] }
 0x4b1   : > { %11792 = vmatpush3.bf16.msra.mxu0 %v12864_v47  ;;  %v6862_v47 = vld [vmem:[#allocation2 + $0x50] sm:$0xff] }
 0x4b2   : > { %11825 = vmatprep.subr.bf16.mxu0 %v12865_v7  ;;  %v6891_v45 = vpack.c.bf16 %v6862_v47, %v6861_v40  ;;  %v7175_v40 = vld [vmem:[#allocation2 + $0x89] sm:$0xff] }
 0x4b4   : > { %11762 = vmatmul.mubr.bf16.gmra.mrb[16].mxu0 %v6592_v56  ;;  %v6893_v56 = vpack.c.bf16 %v6866_v29, %v6865_v32 }
 0x4b5   : > { %11765 = vmatprep.mubr.bf16.mxu0 %v6593_v61  ;;  %v12868_v61 = vld [vmem:[%s15834_s5 + $0x218] sm:$0xff]  }
 0x4bc   : > { %11766 = vmatmul.mubr.bf16.gmra.mrb[20].mxu0 %v6594_v63  ;;  %v7164_v63 = vld [vmem:[#allocation2 + $0x31] sm:$0xff] }
 0x4bd   : > { %11769 = vmatprep.mubr.bf16.mxu0 %v6595_v50  ;;  %v7196_v50 = vmul.f32 %v16224_v55, %v7164_v63 }
 0x4bf   : > { %v7227_v30 = vpack.c.bf16 %v7196_v50, %v7163_v28 }
 0x4c4   : > { %11770 = vmatmul.mubr.bf16.gmra.mrb[24].mxu0 %v6596_v38  ;;  %v7167_v38 = vld [vmem:[#allocation2 + $0x49] sm:$0xff] }
 0x4c5   : > { %11773 = vmatprep.mubr.bf16.mxu0 %v6597_v57 }
 0x4cc   : > { %11774 = vmatmul.mubr.bf16.gmra.mrb[28].mxu0 %v6598_v13  ;;  %v7231_v13 = vpack.c.bf16 %v7204_v20, %v7171_v31  ;;  %v7607_v20 = vld [vmem:[%s15840_s11 + $0x18] sm:$0xff] }
 0x4cd   : > { %11793 = vmatprep.mubr.bf16.mxu0 %v6889_v33  ;;  %v7176_v33 = vld [vmem:[#allocation2 + $0x91] sm:$0xff] }
 0x4ce   : > { %v7208_v36 = vmul.f32 %v16241_v16, %v7176_v33 }
 0x4d4   : > { %11794 = vmatmul.mubr.bf16.vlgmr.msra.gmra.mrb[0].mxu0 %v6890_v22  ;;  %v7233_v22 = vpack.c.bf16 %v7208_v36, %v7175_v40 }
 0x4d5   : > { %11797 = vmatprep.mubr.bf16.mxu0 %v6891_v45  ;;  %11826 = vmatpush3.bf16.msra.mxu0 %v12865_v7  ;;  %v12869_v7 = vld [vmem:[%s15834_s5 + $0x220] sm:$0xff]   ;;  %v7180_v45 = vld [vmem:[#allocation2 + $0xb1] sm:$0xff] }
 0x4d6   : > { %11827 = vmatprep.subr.bf16.mxu0 %v12866_v59  ;;  %v7212_v24 = vmul.f32 %v16247_v14, %v7180_v45 }
 0x4d8   : > { %v7235_v29 = vpack.c.bf16 %v7212_v24, %v7179_v41 }
 0x4d9   : > { %11828 = vmatpush3.bf16.msra.mxu0 %v12866_v59  ;;  %v7177_v59 = vld [vmem:[#allocation2 + $0x99] sm:$0xff] }
 0x4da   : > { %11829 = vmatprep.subr.bf16.mxu0 %v12867_v23 }
 0x4dc   : > { %11798 = vmatmul.mubr.bf16.gmra.mrb[4].mxu0 %v6892_v34  ;;  %v7181_v34 = vld [vmem:[#allocation2 + $0xb9] sm:$0xff] }
 0x4dd   : > { %11801 = vmatprep.mubr.bf16.mxu0 %v6893_v56  ;;  %11830 = vmatpush3.bf16.msra.mxu0 %v12867_v23  ;;  %v7184_v23 = vld [vmem:[#allocation2 + $0xd1] sm:$0xff] }
 0x4de   : > { %11831 = vmatprep.subr.bf16.mxu0 %v12868_v61  ;;  %v7216_v56 = vmul.f32 %v16253_v25, %v7184_v23  ;;  %v7189_v25 = vld [vmem:[#allocation2 + $0xf9] sm:$0xff] }
 0x4e1   : > { %11832 = vmatpush3.bf16.msra.mxu0 %v12868_v61  ;;  %v7183_v61 = vld [vmem:[#allocation2 + $0xc9] sm:$0xff] }
 0x4e2   : > { %11833 = vmatprep.subr.bf16.mxu0 %v12869_v7  ;;  %v7237_v6 = vpack.c.bf16 %v7216_v56, %v7183_v61 }
 0x4e4   : > { %11802 = vmatmul.mubr.bf16.gmra.mrb[8].mxu0 %v6894_v43  ;;  %v7185_v43 = vld [vmem:[#allocation2 + $0xd9] sm:$0xff] }
 0x4e5   : > { %11805 = vmatprep.mubr.bf16.mxu0 %v14603_v0  ;;  %11834 = vmatpush3.bf16.msra.mxu0 %v12869_v7  ;;  %v16274_v0 = vmov 0.0   ;;  %v7188_v7 = vld [vmem:[#allocation2 + $0xf1] sm:$0xff] }
 0x4e6   : > { %11835 = vmatprep.subr.bf16.mxu0 %v12870_v37 }
 0x4e9   : > { %11836 = vmatpush3.bf16.msra.mxu0 %v12870_v37  ;;  %v7220_v37 = vmul.f32 %v16259_v62, %v7188_v7  ;;  %v7193_v62 = vld [vmem:[#allocation2 + $0x119] sm:$0xff] }
 0x4ea   : > { %11837 = vmatprep.subr.bf16.mxu0 %v12871_v18 }
 0x4ec   : > { %11806 = vmatmul.mubr.bf16.gmra.mrb[12].mxu0 %v14621_v9  ;;  %v6887_v9 = vld [vmem:[#allocation2 + $0x118] sm:$0xff] }
 0x4ed   : > { %11809 = vmatprep.mubr.bf16.mxu0 %v14628_v1  ;;  %11838 = vmatpush3.bf16.msra.mxu0 %v12871_v18  ;;  %v6888_v1 = vld [vmem:[#allocation2 + $0x120] sm:$0xff]  ;;  %v7187_v18 = vld [vmem:[#allocation2 + $0xe9] sm:$0xff] }
 0x4ee   : > { %11839 = vmatprep.subr.bf16.mxu0 %v12872_v26  ;;  %v6904_v60 = vpack.c.bf16 %v6888_v1, %v6887_v9  ;;  %v7239_v63 = vpack.c.bf16 %v7220_v37, %v7187_v18  ;;  %v7224_v1 = vmul.f32 %v16263_v48, %v14871_v15 }
 0x4f0   : > { %v7241_v28 = vpack.c.bf16 %v7224_v1, %v14875_v11 }
 0x4f1   : > { %11840 = vmatpush3.bf16.msra.mxu0 %v12872_v26 }
 0x4f2   : > { %11937 = vmatprep.subr.bf16.mxu0 %v16274_v0 }
 0x4f4   : > { %11810 = vmatmul.mubr.bf16.gmra.mrb[16].mxu0 %v14644_v49  ;;  %v7168_v49 = vld [vmem:[#allocation2 + $0x51] sm:$0xff] }
 0x4f5   : > { %11813 = vmatprep.mubr.bf16.mxu0 %v16222_v27  ;;  %v7198_v27 = vmul.f32 %v16227_v42, %v7166_v2  ;;  %v7174_v42 = vld [vmem:[#allocation2 + $0x81] sm:$0xff]  ;;  %v14969_v2 = vpop.f32.mrb[0].mxu1 }
 0x4fc   : > { %11814 = vmatmul.mubr.bf16.gmra.mrb[20].mxu0 %v14664_v3  ;;  %v7165_v3 = vld [vmem:[#allocation2 + $0x39] sm:$0xff] }
 0x4fd   : > { %11817 = vmatprep.mubr.bf16.mxu0 %v14668_v39  ;;  %v7200_v39 = vmul.f32 %v16229_v54, %v7168_v49  ;;  %v7206_v54 = vmul.f32 %v16239_v46, %v7174_v42  ;;  %v7182_v46 = vld [vmem:[#allocation2 + $0xc1] sm:$0xff]  ;;  %v14971_v49 = vpop.f32.mrb[1].mxu1 }
 0x4fe   : > { %v7214_v16 = vmul.f32 %v16251_v35, %v7182_v46  ;;  %v7190_v35 = vld [vmem:[#allocation2 + $0x101] sm:$0xff] }
 0x4ff   : > { %v7229_v57 = vpack.c.bf16 %v7200_v39, %v7167_v38  ;;  %v7232_v47 = vpack.c.bf16 %v7206_v54, %v7173_v21  ;;  %v7222_v9 = vmul.f32 %v16262_v5, %v7190_v35  ;;  %v14973_v5 = vpop.f32.mrb[2].mxu1 }
 0x500   : > { %v7236_v8 = vpack.c.bf16 %v7214_v16, %v7181_v34 }
 0x501   : > { %v7240_v50 = vpack.c.bf16 %v7222_v9, %v7189_v25 }
 0x504   : > { %11818 = vmatmul.mubr.bf16.gmra.mrb[24].mxu0 %v14680_v10  ;;  %v7228_v10 = vpack.c.bf16 %v7198_v27, %v7165_v3  ;;  %v14975_v27 = vpop.f32.mrb[3].mxu1 }
 0x505   : > { %11821 = vmatprep.mubr.bf16.mxu0 %v14801_v12  ;;  %v7170_v12 = vld [vmem:[#allocation2 + $0x61] sm:$0xff]  ;;  %v14977_v48 = vpop.f32.mrb[4].mxu1 }
 0x506   : > { %v7202_v55 = vmul.f32 %v16233_v51, %v7170_v12  ;;  %v7178_v51 = vld [vmem:[#allocation2 + $0xa1] sm:$0xff]  ;;  %v14979_v15 = vpop.f32.mrb[5].mxu1 }
 0x507   : > { %v7210_v53 = vmul.f32 %v16245_v58, %v7178_v51  ;;  %v7186_v58 = vld [vmem:[#allocation2 + $0xe1] sm:$0xff]  ;;  %v14981_v11 = vpop.f32.mrb[6].mxu1 }
 0x508   : > { %v7230_v4 = vpack.c.bf16 %v7202_v55, %v7169_v17  ;;  %v7218_v14 = vmul.f32 %v16257_v52, %v7186_v58  ;;  %v7194_v52 = vld [vmem:[#allocation2 + $0x121] sm:$0xff]  ;;  %v14983_v3 = vpop.f32.mrb[7].mxu1 }
 0x509   : > { %v7234_v32 = vpack.c.bf16 %v7210_v53, %v7177_v59  ;;  %v7605_v17 = vld [vmem:[%s15840_s11 + $0x8] sm:$0xff] }
 0x50a   : > { %v7238_v26 = vpack.c.bf16 %v7218_v14, %v7185_v43  ;;  %v7621_v31 = vpack.c.bf16 %v7607_v20, %v7605_v17 }
 0x50c   : > { %11822 = vmatmul.mubr.bf16.gmra.mrb[28].mxu0 %v6904_v60  ;;  %v7226_v60 = vmul.f32 %v16211_v44, %v7194_v52  ;;  %v14985_v44 = vpop.f32.mrb[8].mxu1  ;;  %7676 = vmatprep.mubr.bf16.mxu1 %v7621_v31 }
 0x50d   : > { %11841 = vmatprep.mubr.bf16.mxu0 %v7227_v30  ;;  %v14987_v39 = vpop.f32.mrb[9].mxu1 }
 0x50e   : > { %v7242_v30 = vpack.c.bf16 %v7226_v60, %v7193_v62  ;;  %v14989_v38 = vpop.f32.mrb[10].mxu1 }
 0x514   : > { %11842 = vmatmul.mubr.bf16.vlgmr.msra.gmra.mrb[0].mxu0 %v7228_v10  ;;  %v14991_v10 = vpop.f32.mrb[11].mxu1 }
 0x515   : > { %11845 = vmatprep.mubr.bf16.mxu0 %v7229_v57  ;;  %v14993_v57 = vpop.f32.mrb[12].mxu1 }
 0x516   : > { %v14995_v12 = vpop.f32.mrb[13].mxu1 }
 0x517   : > { %v14997_v19 = vpop.f32.mrb[14].mxu1 }
 0x518   : > { %v14999_v55 = vpop.f32.mrb[15].mxu1 }
 0x51c   : > { %11846 = vmatmul.mubr.bf16.gmra.mrb[4].mxu0 %v7230_v4  ;;  %v15010_v4 = vld [vmem:[%s15835_s6] ss:$0 sm:$0xff] }
 0x51d   : > { %11849 = vmatprep.mubr.bf16.mxu0 %v7231_v13 }
 0x524   : > { %11850 = vmatmul.mubr.bf16.gmra.mrb[8].mxu0 %v7232_v47 }
 0x525   : > { %11853 = vmatprep.mubr.bf16.mxu0 %v7233_v22 }
 0x52c   : > { %11854 = vmatmul.mubr.bf16.gmra.mrb[12].mxu0 %v7234_v32 }
 0x52d   : > { %11857 = vmatprep.mubr.bf16.mxu0 %v7235_v29 }
 0x534   : > { %11858 = vmatmul.mubr.bf16.gmra.mrb[16].mxu0 %v7236_v8 }
 0x535   : > { %11861 = vmatprep.mubr.bf16.mxu0 %v7237_v6 }
 0x53c   : > { %11862 = vmatmul.mubr.bf16.gmra.mrb[20].mxu0 %v7238_v26 }
 0x53d   : > { %11865 = vmatprep.mubr.bf16.mxu0 %v7239_v63 }
 0x544   : > { %11866 = vmatmul.mubr.bf16.gmra.mrb[24].mxu0 %v7240_v50 }
 0x545   : > { %11869 = vmatprep.mubr.bf16.mxu0 %v7241_v28 }
 0x54c   : > { %11870 = vmatmul.mubr.bf16.gmra.mrb[28].mxu0 %v7242_v30 }
 0x54d   : > { %11945 = vmatprep.mubr.msk.bf16.mxu0 %vm12914_vm3, %v16274_v0 }
 0x5e7   : > { %v11843_v13 = vpop.f32.mrb[0].mxu0 }
 0x5e8   : > { %v7510_v42 = vadd.f32 %v11843_v13, %v15010_v4  ;;  %v7342_v33 = vpop.f32.mrb[1].mxu0 }
 0x5e9   : > { %v7508_v54 = vadd.f32 %v15010_v4, %v7342_v33  ;;  %v11844_v21 = vpop.f32.mrb[2].mxu0 }
 0x5ea   : > { %7542 = vst [vmem:[%s13033_s22 + $0x10] sm:$0xff] %v7510_v42  ;;  %v7511_v36 = vadd.f32 %v11844_v21, %v15010_v4  ;;  %v7345_v40 = vpop.f32.mrb[3].mxu0  ;;  %v7574_v22 = vmax.f32 %v7510_v42, 0.0 }
 0x5eb   : > { %7540 = vst [vmem:[%s13033_s22] sm:$0xff] %v7508_v54  ;;  %v7509_v47 = vadd.f32 %v15010_v4, %v7345_v40  ;;  %v7572_v45 = vmax.f32 %v7508_v54, 0.0 }
 0x5ec   : > { %7543 = vst [vmem:[%s13033_s22 + $0x18] sm:$0xff] %v7511_v36  ;;  %v7575_v51 = vmax.f32 %v7511_v36, 0.0 }
 0x5ed   : > { %7541 = vst [vmem:[%s13033_s22 + $0x8] sm:$0xff] %v7509_v47  ;;  %v7573_v53 = vmax.f32 %v7509_v47, 0.0 }
 0x5ee   : > { %v15020_v59 = vpack.c.bf16 %v7575_v51, %v7574_v22 }
 0x5ef   : > { %v15022_v24 = vpack.c.bf16 %v7573_v53, %v7572_v45  ;;  %v11847_v41 = vpop.f32.mrb[4].mxu0 }
 0x5f0   : > { %v7514_v32 = vadd.f32 %v11847_v41, %v15010_v4  ;;  %v7358_v29 = vpop.f32.mrb[5].mxu0 }
 0x5f1   : > { %v7512_v46 = vadd.f32 %v15010_v4, %v7358_v29  ;;  %v11848_v23 = vpop.f32.mrb[6].mxu0 }
 0x5f2   : > { %7546 = vst [vmem:[%s13033_s22 + $0x30] sm:$0xff] %v7514_v32  ;;  %v7515_v16 = vadd.f32 %v11848_v23, %v15010_v4  ;;  %v7361_v34 = vpop.f32.mrb[7].mxu0  ;;  %v7578_v61 = vmax.f32 %v7514_v32, 0.0 }
 0x5f3   : > { %7544 = vst [vmem:[%s13033_s22 + $0x20] sm:$0xff] %v7512_v46  ;;  %v7513_v56 = vadd.f32 %v15010_v4, %v7361_v34  ;;  %v7576_v6 = vmax.f32 %v7512_v46, 0.0 }
 0x5f4   : > { %7547 = vst [vmem:[%s13033_s22 + $0x38] sm:$0xff] %v7515_v16  ;;  %v7579_v8 = vmax.f32 %v7515_v16, 0.0 }
 0x5f5   : > { %7545 = vst [vmem:[%s13033_s22 + $0x28] sm:$0xff] %v7513_v56  ;;  %v7577_v58 = vmax.f32 %v7513_v56, 0.0 }
 0x5f6   : > { %v15032_v7 = vpack.c.bf16 %v7579_v8, %v7578_v61 }
 0x5f7   : > { %v15034_v14 = vpack.c.bf16 %v7577_v58, %v7576_v6  ;;  %v11851_v43 = vpop.f32.mrb[8].mxu0 }
 0x5f8   : > { %v7518_v37 = vadd.f32 %v11851_v43, %v15010_v4  ;;  %v7374_v18 = vpop.f32.mrb[9].mxu0 }
 0x5f9   : > { %v7516_v26 = vadd.f32 %v15010_v4, %v7374_v18  ;;  %v11852_v63 = vpop.f32.mrb[10].mxu0 }
 0x5fa   : > { %7550 = vst [vmem:[%s13033_s22 + $0x50] sm:$0xff] %v7518_v37  ;;  %v7519_v35 = vadd.f32 %v11852_v63, %v15010_v4  ;;  %v7377_v9 = vpop.f32.mrb[11].mxu0  ;;  %v7582_v1 = vmax.f32 %v7518_v37, 0.0 }
 0x5fb   : > { %7548 = vst [vmem:[%s13033_s22 + $0x40] sm:$0xff] %v7516_v26  ;;  %v7517_v25 = vadd.f32 %v15010_v4, %v7377_v9  ;;  %v7580_v28 = vmax.f32 %v7516_v26, 0.0 }
 0x5fc   : > { %7551 = vst [vmem:[%s13033_s22 + $0x58] sm:$0xff] %v7519_v35  ;;  %v7583_v50 = vmax.f32 %v7519_v35, 0.0 }
 0x5fd   : > { %7549 = vst [vmem:[%s13033_s22 + $0x48] sm:$0xff] %v7517_v25  ;;  %v7581_v52 = vmax.f32 %v7517_v25, 0.0 }
 0x5fe   : > { %v15044_v60 = vpack.c.bf16 %v7583_v50, %v7582_v1 }
 0x5ff   : > { %v15046_v62 = vpack.c.bf16 %v7581_v52, %v7580_v28  ;;  %v11855_v30 = vpop.f32.mrb[12].mxu0 }
 0x600   : > { %v7522_v17 = vadd.f32 %v11855_v30, %v15010_v4  ;;  %v7390_v20 = vpop.f32.mrb[13].mxu0 }
 0x601   : > { %v7520_v31 = vadd.f32 %v15010_v4, %v7390_v20  ;;  %v11856_v13 = vpop.f32.mrb[14].mxu0 }
 0x602   : > { %7554 = vst [vmem:[%s13033_s22 + $0x70] sm:$0xff] %v7522_v17  ;;  %v7523_v42 = vadd.f32 %v11856_v13, %v15010_v4  ;;  %v7393_v33 = vpop.f32.mrb[15].mxu0  ;;  %v7586_v21 = vmax.f32 %v7522_v17, 0.0 }
 0x603   : > { %7552 = vst [vmem:[%s13033_s22 + $0x60] sm:$0xff] %v7520_v31  ;;  %v7521_v54 = vadd.f32 %v15010_v4, %v7393_v33  ;;  %v7584_v40 = vmax.f32 %v7520_v31, 0.0 }
 0x604   : > { %7555 = vst [vmem:[%s13033_s22 + $0x78] sm:$0xff] %v7523_v42  ;;  %v7587_v36 = vmax.f32 %v7523_v42, 0.0 }
 0x605   : > { %7553 = vst [vmem:[%s13033_s22 + $0x68] sm:$0xff] %v7521_v54  ;;  %v7585_v47 = vmax.f32 %v7521_v54, 0.0 }
 0x606   : > { %v15056_v22 = vpack.c.bf16 %v7587_v36, %v7586_v21 }
 0x607   : > { %v15058_v51 = vpack.c.bf16 %v7585_v47, %v7584_v40  ;;  %v11859_v45 = vpop.f32.mrb[16].mxu0 }
 0x608   : > { %v12459_v53 = vadd.f32 %v11859_v45, %v14969_v2  ;;  %v7406_v41 = vpop.f32.mrb[17].mxu0 }
 0x609   : > { %v12460_v32 = vadd.f32 %v7406_v41, %v14971_v49  ;;  %v11860_v29 = vpop.f32.mrb[18].mxu0 }
 0x60a   : > { %v7526_v46 = vadd.f32 %v12459_v53, %v15010_v4  ;;  %v12461_v23 = vadd.f32 %v11860_v29, %v14973_v5  ;;  %v7409_v16 = vpop.f32.mrb[19].mxu0 }
 0x60b   : > { %v7524_v34 = vadd.f32 %v12460_v32, %v15010_v4  ;;  %v12462_v56 = vadd.f32 %v7409_v16, %v14975_v27 }
 0x60c   : > { %7558 = vst [vmem:[%s13033_s22 + $0x90] sm:$0xff] %v7526_v46  ;;  %v7527_v61 = vadd.f32 %v12461_v23, %v15010_v4  ;;  %v7590_v8 = vmax.f32 %v7526_v46, 0.0 }
 0x60d   : > { %7556 = vst [vmem:[%s13033_s22 + $0x80] sm:$0xff] %v7524_v34  ;;  %v7525_v2 = vadd.f32 %v12462_v56, %v15010_v4  ;;  %v7588_v49 = vmax.f32 %v7524_v34, 0.0 }
 0x60e   : > { %7559 = vst [vmem:[%s13033_s22 + $0x98] sm:$0xff] %v7527_v61  ;;  %v7591_v6 = vmax.f32 %v7527_v61, 0.0 }
 0x60f   : > { %7557 = vst [vmem:[%s13033_s22 + $0x88] sm:$0xff] %v7525_v2  ;;  %v7589_v58 = vmax.f32 %v7525_v2, 0.0  ;;  %v11863_v43 = vpop.f32.mrb[20].mxu0 }
 0x610   : > { %v15072_v5 = vpack.c.bf16 %v7591_v6, %v7590_v8  ;;  %v12463_v37 = vadd.f32 %v11863_v43, %v14977_v48  ;;  %v7422_v27 = vpop.f32.mrb[21].mxu0 }
 0x611   : > { %v15075_v18 = vpack.c.bf16 %v7589_v58, %v7588_v49  ;;  %v12464_v26 = vadd.f32 %v7422_v27, %v14979_v15  ;;  %v11864_v63 = vpop.f32.mrb[22].mxu0  ;;  %v7606_v27 = vld [vmem:[%s15840_s11 + $0x10] sm:$0xff] }
 0x612   : > { %v7530_v35 = vadd.f32 %v12463_v37, %v15010_v4  ;;  %v12465_v9 = vadd.f32 %v11864_v63, %v14981_v11  ;;  %v7425_v25 = vpop.f32.mrb[23].mxu0  ;;  %v7611_v63 = vld [vmem:[%s15840_s11 + $0x38] sm:$0xff] }
 0x613   : > { %v7528_v1 = vadd.f32 %v12464_v26, %v15010_v4  ;;  %v12466_v50 = vadd.f32 %v7425_v25, %v14983_v3  ;;  %10759 = vmatprep.subr.bf16.mxu1 %v15075_v18  ;;  %v7609_v26 = vld [vmem:[%s15840_s11 + $0x28] sm:$0xff]  ;;  %v7608_v25 = vld [vmem:[%s15840_s11 + $0x20] sm:$0xff] }
 0x614   : > { %7562 = vst [vmem:[%s13033_s22 + $0xb0] sm:$0xff] %v7530_v35  ;;  %v7531_v48 = vadd.f32 %v12465_v9, %v15010_v4  ;;  %10760 = vmatpush3.bf16.msra.mxu1 %v15022_v24  ;;  %v7594_v28 = vmax.f32 %v7530_v35, 0.0  ;;  %v7623_v9 = vpack.c.bf16 %v7611_v63, %v7609_v26  ;;  %v15277_v26 = vld [vmem:[%s15836_s7] sm:$0xff]  }
 0x615   : > { %7560 = vst [vmem:[%s13033_s22 + $0xa0] sm:$0xff] %v7528_v1  ;;  %v7529_v15 = vadd.f32 %v12466_v50, %v15010_v4  ;;  %10761 = vmatprep.subr.bf16.mxu1 %v15072_v5  ;;  %v7592_v52 = vmax.f32 %v7528_v1, 0.0  ;;  %v7610_v1 = vld [vmem:[%s15840_s11 + $0x30] sm:$0xff]  ;;  %v7613_v50 = vld [vmem:[%s15840_s11 + $0x48] sm:$0xff] }
 0x616   : > { %7563 = vst [vmem:[%s13033_s22 + $0xb8] sm:$0xff] %v7531_v48  ;;  %v7595_v11 = vmax.f32 %v7531_v48, 0.0  ;;  %v7615_v48 = vld [vmem:[%s15840_s11 + $0x58] sm:$0xff] }
 0x617   : > { %7561 = vst [vmem:[%s13033_s22 + $0xa8] sm:$0xff] %v7529_v15  ;;  %v7593_v30 = vmax.f32 %v7529_v15, 0.0  ;;  %v11867_v3 = vpop.f32.mrb[24].mxu0  ;;  %v7622_v15 = vpack.c.bf16 %v7610_v1, %v7608_v25 }
 0x618   : > { %v15091_v17 = vpack.c.bf16 %v7595_v11, %v7594_v28  ;;  %v12467_v20 = vadd.f32 %v11867_v3, %v14985_v44  ;;  %v7438_v31 = vpop.f32.mrb[25].mxu0  ;;  %10762 = vmatpush3.bf16.msra.mxu1 %v15020_v59  ;;  %v7625_v28 = vpack.c.bf16 %v7615_v48, %v7613_v50  ;;  %v7612_v11 = vld [vmem:[%s15840_s11 + $0x40] sm:$0xff]  ;;  %v7619_v3 = vld [vmem:[%s15840_s11 + $0x78] sm:$0xff] }
 0x619   : > { %v15095_v13 = vpack.c.bf16 %v7593_v30, %v7592_v52  ;;  %v12468_v42 = vadd.f32 %v7438_v31, %v14987_v39  ;;  %v11868_v33 = vpop.f32.mrb[26].mxu0  ;;  %v7614_v52 = vld [vmem:[%s15840_s11 + $0x50] sm:$0xff]  ;;  %v7617_v30 = vld [vmem:[%s15840_s11 + $0x68] sm:$0xff] }
 0x61a   : > { %v7534_v54 = vadd.f32 %v12467_v20, %v15010_v4  ;;  %v12469_v21 = vadd.f32 %v11868_v33, %v14989_v38  ;;  %v7441_v36 = vpop.f32.mrb[27].mxu0  ;;  %v7624_v20 = vpack.c.bf16 %v7614_v52, %v7612_v11  ;;  %v7627_v31 = vpack.c.bf16 %v7619_v3, %v7617_v30  ;;  %v7618_v33 = vld [vmem:[%s15840_s11 + $0x70] sm:$0xff] }
 0x61b   : > { %v7532_v40 = vadd.f32 %v12468_v42, %v15010_v4  ;;  %v12470_v47 = vadd.f32 %v7441_v36, %v14991_v10  ;;  %10763 = vmatprep.subr.bf16.mxu1 %v15095_v13  ;;  %v7616_v42 = vld [vmem:[%s15840_s11 + $0x60] sm:$0xff] }
 0x61c   : > { %7566 = vst [vmem:[%s13033_s22 + $0xd0] sm:$0xff] %v7534_v54  ;;  %v7535_v44 = vadd.f32 %v12469_v21, %v15010_v4  ;;  %10764 = vmatpush3.bf16.msra.mxu1 %v15034_v14  ;;  %v7598_v45 = vmax.f32 %v7534_v54, 0.0  ;;  %v10202_v54 = vld [vmem:[%s15840_s11 + $0x88] sm:$0xff]  ;;  %v10204_v21 = vld [vmem:[%s15840_s11 + $0x98] sm:$0xff]  ;;  %v7626_v36 = vpack.c.bf16 %v7618_v33, %v7616_v42 }
 0x61d   : > { %7564 = vst [vmem:[%s13033_s22 + $0xc0] sm:$0xff] %v7532_v40  ;;  %v7533_v39 = vadd.f32 %v12470_v47, %v15010_v4  ;;  %10765 = vmatprep.subr.bf16.mxu1 %v15091_v17  ;;  %v7596_v53 = vmax.f32 %v7532_v40, 0.0  ;;  %v7739_v40 = vpack.c.bf16 %v10204_v21, %v10202_v54  ;;  %v10201_v47 = vld [vmem:[%s15840_s11 + $0x80] sm:$0xff] }
 0x61e   : > { %7567 = vst [vmem:[%s13033_s22 + $0xd8] sm:$0xff] %v7535_v44  ;;  %v7599_v38 = vmax.f32 %v7535_v44, 0.0  ;;  %v10203_v44 = vld [vmem:[%s15840_s11 + $0x90] sm:$0xff] }
 0x61f   : > { %7565 = vst [vmem:[%s13033_s22 + $0xc8] sm:$0xff] %v7533_v39  ;;  %v7597_v41 = vmax.f32 %v7533_v39, 0.0  ;;  %v11871_v10 = vpop.f32.mrb[28].mxu0  ;;  %v10206_v39 = vld [vmem:[%s15840_s11 + $0xa8] sm:$0xff] }
 0x620   : > { %v15111_v32 = vpack.c.bf16 %v7599_v38, %v7598_v45  ;;  %v12471_v29 = vadd.f32 %v11871_v10, %v14993_v57  ;;  %v7454_v46 = vpop.f32.mrb[29].mxu0  ;;  %10766 = vmatpush3.bf16.msra.mxu1 %v15032_v7  ;;  %v10208_v45 = vld [vmem:[%s15840_s11 + $0xb8] sm:$0xff]  ;;  %v7738_v38 = vpack.c.bf16 %v10203_v44, %v10201_v47  ;;  %v10207_v10 = vld [vmem:[%s15840_s11 + $0xb0] sm:$0xff] }
 0x621   : > { %v15115_v23 = vpack.c.bf16 %v7597_v41, %v7596_v53  ;;  %v12472_v16 = vadd.f32 %v7454_v46, %v14995_v12  ;;  %v11872_v34 = vpop.f32.mrb[30].mxu0  ;;  %v7741_v53 = vpack.c.bf16 %v10208_v45, %v10206_v39  ;;  %v10205_v41 = vld [vmem:[%s15840_s11 + $0xa0] sm:$0xff]  ;;  %v10212_v46 = vld [vmem:[%s15840_s11 + $0xd8] sm:$0xff] }
 0x622   : > { %v7538_v56 = vadd.f32 %v12471_v29, %v15010_v4  ;;  %v12473_v61 = vadd.f32 %v11872_v34, %v14997_v19  ;;  %v7457_v2 = vpop.f32.mrb[31].mxu0  ;;  %v10210_v29 = vld [vmem:[%s15840_s11 + $0xc8] sm:$0xff] }
 0x623   : > { %v7536_v8 = vadd.f32 %v12472_v16, %v15010_v4  ;;  %v12474_v6 = vadd.f32 %v7457_v2, %v14999_v55  ;;  %10767 = vmatprep.subr.bf16.mxu1 %v15115_v23  ;;  %v7740_v16 = vpack.c.bf16 %v10207_v10, %v10205_v41  ;;  %v7743_v34 = vpack.c.bf16 %v10212_v46, %v10210_v29  ;;  %v10214_v2 = vld [vmem:[%s15840_s11 + $0xe8] sm:$0xff] }
 0x624   : > { %7570 = vst [vmem:[%s13033_s22 + $0xf0] sm:$0xff] %v7538_v56  ;;  %v7539_v57 = vadd.f32 %v12473_v61, %v15010_v4  ;;  %10768 = vmatpush3.bf16.msra.mxu1 %v15046_v62  ;;  %v7602_v49 = vmax.f32 %v7538_v56, 0.0  ;;  %v10209_v56 = vld [vmem:[%s15840_s11 + $0xc0] sm:$0xff]  ;;  %v10211_v61 = vld [vmem:[%s15840_s11 + $0xd0] sm:$0xff] }
 0x625   : > { %7568 = vst [vmem:[%s13033_s22 + $0xe0] sm:$0xff] %v7536_v8  ;;  %v7537_v12 = vadd.f32 %v12474_v6, %v15010_v4  ;;  %10769 = vmatprep.subr.bf16.mxu1 %v15111_v32  ;;  %v7600_v58 = vmax.f32 %v7536_v8, 0.0  ;;  %v7604_v4 = vld [vmem:[%s15840_s11] sm:$0xff]  ;;  %v10216_v8 = vld [vmem:[%s15840_s11 + $0xf8] sm:$0xff]  ;;  %v7742_v6 = vpack.c.bf16 %v10211_v61, %v10209_v56 }
 0x626   : > { %7571 = vst [vmem:[%s13033_s22 + $0xf8] sm:$0xff] %v7539_v57  ;;  %v7603_v19 = vmax.f32 %v7539_v57, 0.0  ;;  %v7620_v35 = vpack.c.bf16 %v7606_v27, %v7604_v4  ;;  %v7745_v57 = vpack.c.bf16 %v10216_v8, %v10214_v2  ;;  %v15263_v4 = vld [vmem:[%s15836_s7 + $0x30] sm:$0xff]   ;;  %v15270_v27 = vld [vmem:[%s15836_s7 + $0x38] sm:$0xff]  }
 0x627   : > { %7569 = vst [vmem:[%s13033_s22 + $0xe8] sm:$0xff] %v7537_v12  ;;  %v7601_v43 = vmax.f32 %v7537_v12, 0.0  ;;  %v10213_v12 = vld [vmem:[%s15840_s11 + $0xe0] sm:$0xff] }
 0x628   : > { %v15131_v37 = vpack.c.bf16 %v7603_v19, %v7602_v49  ;;  %10770 = vmatpush3.bf16.msra.mxu1 %v15044_v60  ;;  %v10215_v49 = vld [vmem:[%s15840_s11 + $0xf0] sm:$0xff] }
 0x629   : > { %v15134_v55 = vpack.c.bf16 %v7601_v43, %v7600_v58  ;;  %v7744_v19 = vpack.c.bf16 %v10215_v49, %v10213_v12  ;;  %v15249_v58 = vld [vmem:[%s15836_s7 + $0x20] sm:$0xff]   ;;  %v15256_v43 = vld [vmem:[%s15836_s7 + $0x28] sm:$0xff]  }
 0x62b   : > { %10771 = vmatprep.subr.bf16.mxu1 %v15134_v55 }
 0x62c   : > { %10772 = vmatpush3.bf16.msra.mxu1 %v15058_v51 }
 0x62d   : > { %10773 = vmatprep.subr.bf16.mxu1 %v15131_v37 }
 0x630   : > { %10774 = vmatpush3.bf16.msra.mxu1 %v15056_v22 }
 0x631   : > { %10799 = vmatprep.subr.bf16.mxu1 %v15075_v18 }
 0x633   : > { %7677 = vmatmul.mubr.bf16.vlgmr.msra.gmra.mrb[16].mxu1 %v7620_v35 }
 0x634   : > { %10800 = vmatpush3.bf16.msra.mxu1 %v15022_v24  ;;  %7684 = vmatprep.mubr.bf16.mxu1 %v7623_v9 }
 0x635   : > { %10801 = vmatprep.subr.bf16.mxu1 %v15072_v5 }
 0x638   : > { %10802 = vmatpush3.bf16.msra.mxu1 %v15020_v59 }
 0x639   : > { %10803 = vmatprep.subr.bf16.mxu1 %v15095_v13 }
 0x63b   : > { %7685 = vmatmul.mubr.bf16.gmra.mrb[20].mxu1 %v7622_v15 }
 0x63c   : > { %10804 = vmatpush3.bf16.msra.mxu1 %v15034_v14  ;;  %7692 = vmatprep.mubr.bf16.mxu1 %v7625_v28 }
 0x63d   : > { %10805 = vmatprep.subr.bf16.mxu1 %v15091_v17 }
 0x640   : > { %10806 = vmatpush3.bf16.msra.mxu1 %v15032_v7 }
 0x641   : > { %10807 = vmatprep.subr.bf16.mxu1 %v15115_v23 }
 0x643   : > { %7693 = vmatmul.mubr.bf16.gmra.mrb[24].mxu1 %v7624_v20 }
 0x644   : > { %10808 = vmatpush3.bf16.msra.mxu1 %v15046_v62  ;;  %7700 = vmatprep.mubr.bf16.mxu1 %v7627_v31 }
 0x645   : > { %10809 = vmatprep.subr.bf16.mxu1 %v15111_v32 }
 0x648   : > { %10810 = vmatpush3.bf16.msra.mxu1 %v15044_v60 }
 0x649   : > { %10811 = vmatprep.subr.bf16.mxu1 %v15134_v55 }
 0x64b   : > { %7701 = vmatmul.mubr.bf16.gmra.mrb[28].mxu1 %v7626_v36 }
 0x64c   : > { %10812 = vmatpush3.bf16.msra.mxu1 %v15058_v51  ;;  %7778 = vmatprep.mubr.bf16.mxu1 %v7739_v40 }
 0x64d   : > { %10813 = vmatprep.subr.bf16.mxu1 %v15131_v37 }
 0x650   : > { %10814 = vmatpush3.bf16.msra.mxu1 %v15056_v22 }
 0x651   : > { %11873 = vmatprep.subr.bf16.mxu1 %v15249_v58 }
 0x653   : > { %7779 = vmatmul.mubr.bf16.vlgmr.msra.gmra.mrb[32].mxu1 %v7738_v38 }
 0x654   : > { %7786 = vmatprep.mubr.bf16.mxu1 %v7741_v53  ;;  %11874 = vmatpush3.bf16.msra.mxu1 %v15249_v58 }
 0x655   : > { %11875 = vmatprep.subr.bf16.mxu1 %v15256_v43 }
 0x658   : > { %11876 = vmatpush3.bf16.msra.mxu1 %v15256_v43 }
 0x659   : > { %11877 = vmatprep.subr.bf16.mxu1 %v15263_v4 }
 0x65b   : > { %7787 = vmatmul.mubr.bf16.gmra.mrb[36].mxu1 %v7740_v16 }
 0x65c   : > { %7794 = vmatprep.mubr.bf16.mxu1 %v7743_v34  ;;  %11878 = vmatpush3.bf16.msra.mxu1 %v15263_v4 }
 0x65d   : > { %11879 = vmatprep.subr.bf16.mxu1 %v15270_v27 }
 0x660   : > { %11880 = vmatpush3.bf16.msra.mxu1 %v15270_v27 }
 0x661   : > { %11889 = vmatprep.subr.bf16.mxu1 %v15277_v26 }
 0x663   : > { %7795 = vmatmul.mubr.bf16.gmra.mrb[40].mxu1 %v7742_v6 }
 0x664   : > { %7802 = vmatprep.mubr.bf16.mxu1 %v7745_v57 }
 0x66b   : > { %7803 = vmatmul.mubr.bf16.gmra.mrb[44].mxu1 %v7744_v19 }
 0x706   : > { %v10775_v63 = vpop.f32.mrb[16].mxu1 }
 0x707   : > { %v10776_v35 = vpop.f32.mrb[17].mxu1 }
 0x708   : > { %v15280_v9 = vadd.f32 %v10776_v35, %v10775_v63  ;;  %v10778_v25 = vpop.f32.mrb[18].mxu1  ;;  %v15293_v63 = vld [vmem:[%s15836_s7 + $0x8] sm:$0xff]  }
 0x709   : > { %v10779_v1 = vpop.f32.mrb[19].mxu1 }
 0x70a   : > { %v15282_v50 = vadd.f32 %v10779_v1, %v10778_v25 }
 0x70c   : > { %v7709_v48 = vpack.c.bf16 %v15282_v50, %v15280_v9  ;;  %v10241_v50 = vld [vmem:[%s15840_s11 + $0x100] sm:$0xff] }
 0x70e   : > { %v10781_v15 = vpop.f32.mrb[20].mxu1 }
 0x70f   : > { %v10782_v28 = vpop.f32.mrb[21].mxu1 }
 0x710   : > { %v15286_v11 = vadd.f32 %v10782_v28, %v10781_v15  ;;  %v10784_v52 = vpop.f32.mrb[22].mxu1  ;;  %v15301_v28 = vld [vmem:[%s15836_s7 + $0x10] sm:$0xff]  }
 0x711   : > { %v10785_v30 = vpop.f32.mrb[23].mxu1 }
 0x712   : > { %v10786_v3 = vadd.f32 %v10785_v30, %v10784_v52 }
 0x714   : > { %v7710_v20 = vpack.c.bf16 %v10786_v3, %v15286_v11  ;;  %v15308_v3 = vld [vmem:[%s15836_s7 + $0x18] sm:$0xff]  }
 0x716   : > { %v10787_v31 = vpop.f32.mrb[24].mxu1 }
 0x717   : > { %v10788_v42 = vpop.f32.mrb[25].mxu1 }
 0x718   : > { %v10789_v33 = vadd.f32 %v10788_v42, %v10787_v31  ;;  %v10790_v54 = vpop.f32.mrb[26].mxu1 }
 0x719   : > { %v10791_v21 = vpop.f32.mrb[27].mxu1 }
 0x71a   : > { %v10792_v36 = vadd.f32 %v10791_v21, %v10790_v54 }
 0x71c   : > { %v7711_v40 = vpack.c.bf16 %v10792_v36, %v10789_v33 }
 0x71e   : > { %v10793_v47 = vpop.f32.mrb[28].mxu1 }
 0x71f   : > { %v10794_v44 = vpop.f32.mrb[29].mxu1 }
 0x720   : > { %v10795_v39 = vadd.f32 %v10794_v44, %v10793_v47  ;;  %v10796_v45 = vpop.f32.mrb[30].mxu1  ;;  %v10242_v44 = vld [vmem:[%s15840_s11 + $0x108] sm:$0xff] }
 0x721   : > { %v10797_v38 = vpop.f32.mrb[31].mxu1 }
 0x722   : > { %v10798_v53 = vadd.f32 %v10797_v38, %v10796_v45  ;;  %v10248_v45 = vld [vmem:[%s15840_s11 + $0x138] sm:$0xff] }
 0x724   : > { %v7712_v41 = vpack.c.bf16 %v10798_v53, %v10795_v39  ;;  %v10244_v39 = vld [vmem:[%s15840_s11 + $0x118] sm:$0xff] }
 0x725   : > { %v8045_v9 = vpack.c.bf16 %v10244_v39, %v10242_v44 }
 0x726   : > { %v10815_v10 = vpop.f32.mrb[32].mxu1 }
 0x727   : > { %v10816_v29 = vpop.f32.mrb[33].mxu1 }
 0x728   : > { %v10817_v46 = vadd.f32 %v10816_v29, %v10815_v10  ;;  %v10818_v16 = vpop.f32.mrb[34].mxu1  ;;  %v10245_v10 = vld [vmem:[%s15840_s11 + $0x120] sm:$0xff]  ;;  %v10247_v29 = vld [vmem:[%s15840_s11 + $0x130] sm:$0xff] }
 0x729   : > { %v10819_v34 = vpop.f32.mrb[35].mxu1 }
 0x72a   : > { %v10820_v56 = vadd.f32 %v10819_v34, %v10818_v16  ;;  %v10250_v16 = vld [vmem:[%s15840_s11 + $0x148] sm:$0xff]  ;;  %v10252_v34 = vld [vmem:[%s15840_s11 + $0x158] sm:$0xff] }
 0x72c   : > { %v7811_v61 = vpack.c.bf16 %v10820_v56, %v10817_v46  ;;  %v15378_v46 = vld [vmem:[%s15836_s7 + $0x50] sm:$0xff]   ;;  %v8046_v56 = vpack.c.bf16 %v10247_v29, %v10245_v10 }
 0x72e   : > { %v10821_v2 = vpop.f32.mrb[36].mxu1  ;;  %11881 = vmatprep.mubr.msk.bf16.mxu1 %vm1660_vm2, %v7811_v61  ;;  %v8049_v61 = vpack.c.bf16 %v10252_v34, %v10250_v16 }
 0x72f   : > { %v10822_v8 = vpop.f32.mrb[37].mxu1 }
 0x730   : > { %v10823_v6 = vadd.f32 %v10822_v8, %v10821_v2  ;;  %v10824_v57 = vpop.f32.mrb[38].mxu1  ;;  %v15391_v2 = vld [vmem:[%s15836_s7 + $0x58] sm:$0xff]   ;;  %v10249_v8 = vld [vmem:[%s15840_s11 + $0x140] sm:$0xff] }
 0x731   : > { %v10825_v12 = vpop.f32.mrb[39].mxu1 }
 0x732   : > { %v10826_v49 = vadd.f32 %v10825_v12, %v10824_v57  ;;  %v10254_v57 = vld [vmem:[%s15840_s11 + $0x168] sm:$0xff]  ;;  %v10256_v12 = vld [vmem:[%s15840_s11 + $0x178] sm:$0xff] }
 0x734   : > { %v7812_v19 = vpack.c.bf16 %v10826_v49, %v10823_v6  ;;  %v10251_v6 = vld [vmem:[%s15840_s11 + $0x150] sm:$0xff] }
 0x735   : > { %v8048_v49 = vpack.c.bf16 %v10251_v6, %v10249_v8  ;;  %v10281_v6 = vld [vmem:[%s15840_s11 + $0x1c0] sm:$0xff] }
 0x736   : > { %v10827_v35 = vpop.f32.mrb[40].mxu1  ;;  %11882 = vmatmul.mubr.msk.bf16.vlgmr.msra.gmra.mrb[48].mxu1 %vm1660_vm2, %v7812_v19  ;;  %v8051_v19 = vpack.c.bf16 %v10256_v12, %v10254_v57  ;;  %v10283_v57 = vld [vmem:[%s15840_s11 + $0x1d0] sm:$0xff]  ;;  %v10286_v12 = vld [vmem:[%s15840_s11 + $0x1e8] sm:$0xff] }
 0x737   : > { %11890 = vmatpush3.bf16.msra.mxu1 %v15277_v26  ;;  %v10828_v25 = vpop.f32.mrb[41].mxu1 }
 0x738   : > { %v10829_v1 = vadd.f32 %v10828_v25, %v10827_v35  ;;  %v10830_v15 = vpop.f32.mrb[42].mxu1  ;;  %11891 = vmatprep.subr.bf16.mxu1 %v15293_v63  ;;  %v10253_v35 = vld [vmem:[%s15840_s11 + $0x160] sm:$0xff]  ;;  %v10255_v25 = vld [vmem:[%s15840_s11 + $0x170] sm:$0xff] }
 0x739   : > { %v10831_v11 = vpop.f32.mrb[43].mxu1 }
 0x73a   : > { %v10832_v52 = vadd.f32 %v10831_v11, %v10830_v15 }
 0x73b   : > { %11892 = vmatpush3.bf16.msra.mxu1 %v15293_v63 }
 0x73c   : > { %v7813_v30 = vpack.c.bf16 %v10832_v52, %v10829_v1  ;;  %11893 = vmatprep.subr.bf16.mxu1 %v15301_v28  ;;  %v8050_v1 = vpack.c.bf16 %v10255_v25, %v10253_v35  ;;  %v10285_v25 = vld [vmem:[%s15840_s11 + $0x1e0] sm:$0xff] }
 0x73e   : > { %v10833_v31 = vpop.f32.mrb[44].mxu1  ;;  %11885 = vmatprep.mubr.msk.bf16.mxu1 %vm1660_vm2, %v7813_v30 }
 0x73f   : > { %11894 = vmatpush3.bf16.msra.mxu1 %v15301_v28  ;;  %v10834_v42 = vpop.f32.mrb[45].mxu1 }
 0x740   : > { %v10835_v33 = vadd.f32 %v10834_v42, %v10833_v31  ;;  %v10836_v54 = vpop.f32.mrb[46].mxu1  ;;  %11895 = vmatprep.subr.bf16.mxu1 %v15308_v3 }
 0x741   : > { %v10837_v21 = vpop.f32.mrb[47].mxu1 }
 0x742   : > { %v10838_v36 = vadd.f32 %v10837_v21, %v10836_v54 }
 0x743   : > { %11896 = vmatpush3.bf16.msra.mxu1 %v15308_v3 }
 0x744   : > { %v7814_v47 = vpack.c.bf16 %v10838_v36, %v10835_v33  ;;  %10855 = vmatprep.subr.bf16.mxu1 %v15075_v18 }
 0x746   : > { %11886 = vmatmul.mubr.msk.bf16.gmra.mrb[52].mxu1 %vm1660_vm2, %v7814_v47 }
 0x747   : > { %11897 = vmatprep.mubr.msk.bf16.mxu1 %vm1660_vm2, %v7709_v48  ;;  %v10243_v48 = vld [vmem:[%s15840_s11 + $0x110] sm:$0xff] }
 0x748   : > { %v8044_v38 = vpack.c.bf16 %v10243_v48, %v10241_v50 }
 0x74e   : > { %11898 = vmatmul.mubr.msk.bf16.vlgmr.msra.gmra.mrb[48].mxu1 %vm1660_vm2, %v7710_v20  ;;  %v15352_v20 = vld [vmem:[%s15836_s7 + $0x40] sm:$0xff]  }
 0x74f   : > { %10856 = vmatpush3.bf16.msra.mxu1 %v15022_v24  ;;  %11901 = vmatprep.mubr.msk.bf16.mxu1 %vm1660_vm2, %v7711_v40  ;;  %v10246_v40 = vld [vmem:[%s15840_s11 + $0x128] sm:$0xff] }
 0x750   : > { %10857 = vmatprep.subr.bf16.mxu1 %v15072_v5  ;;  %v8047_v53 = vpack.c.bf16 %v10248_v45, %v10246_v40 }
 0x753   : > { %10858 = vmatpush3.bf16.msra.mxu1 %v15020_v59 }
 0x754   : > { %10859 = vmatprep.subr.bf16.mxu1 %v15095_v13 }
 0x756   : > { %11902 = vmatmul.mubr.msk.bf16.gmra.mrb[52].mxu1 %vm1660_vm2, %v7712_v41  ;;  %v15365_v41 = vld [vmem:[%s15836_s7 + $0x48] sm:$0xff]  }
 0x757   : > { %10860 = vmatpush3.bf16.msra.mxu1 %v15034_v14  ;;  %8084 = vmatprep.mubr.bf16.mxu1 %v8045_v9 }
 0x758   : > { %10861 = vmatprep.subr.bf16.mxu1 %v15091_v17 }
 0x75b   : > { %10862 = vmatpush3.bf16.msra.mxu1 %v15032_v7 }
 0x75c   : > { %10863 = vmatprep.subr.bf16.mxu1 %v15115_v23 }
 0x75f   : > { %10864 = vmatpush3.bf16.msra.mxu1 %v15046_v62 }
 0x760   : > { %10865 = vmatprep.subr.bf16.mxu1 %v15111_v32 }
 0x763   : > { %10866 = vmatpush3.bf16.msra.mxu1 %v15044_v60 }
 0x764   : > { %10867 = vmatprep.subr.bf16.mxu1 %v15134_v55 }
 0x767   : > { %10868 = vmatpush3.bf16.msra.mxu1 %v15058_v51 }
 0x768   : > { %10869 = vmatprep.subr.bf16.mxu1 %v15131_v37 }
 0x76b   : > { %10870 = vmatpush3.bf16.msra.mxu1 %v15056_v22 }
 0x76c   : > { %11905 = vmatprep.subr.bf16.mxu1 %v15352_v20 }
 0x76e   : > { %8085 = vmatmul.mubr.bf16.vlgmr.msra.gmra.mrb[56].mxu1 %v8044_v38 }
 0x76f   : > { %11906 = vmatpush3.bf16.msra.mxu1 %v15352_v20  ;;  %8092 = vmatprep.mubr.bf16.mxu1 %v8047_v53 }
 0x770   : > { %11907 = vmatprep.subr.bf16.mxu1 %v15365_v41 }
 0x773   : > { %11908 = vmatpush3.bf16.msra.mxu1 %v15365_v41 }
 0x774   : > { %11909 = vmatprep.subr.bf16.mxu1 %v15378_v46 }
 0x776   : > { %8093 = vmatmul.mubr.bf16.gmra.mrb[60].mxu1 %v8046_v56 }
 0x777   : > { %11910 = vmatpush3.bf16.msra.mxu1 %v15378_v46  ;;  %8100 = vmatprep.mubr.bf16.mxu1 %v8049_v61  ;;  %v10284_v61 = vld [vmem:[%s15840_s11 + $0x1d8] sm:$0xff] }
 0x778   : > { %11911 = vmatprep.subr.bf16.mxu1 %v15391_v2 }
 0x77b   : > { %11912 = vmatpush3.bf16.msra.mxu1 %v15391_v2 }
 0x77c   : > { %10903 = vmatprep.subr.bf16.mxu1 %v15075_v18 }
 0x77e   : > { %8101 = vmatmul.mubr.bf16.gmra.mrb[64].mxu1 %v8048_v49  ;;  %v10288_v49 = vld [vmem:[%s15840_s11 + $0x1f8] sm:$0xff] }
 0x77f   : > { %8108 = vmatprep.mubr.bf16.mxu1 %v8051_v19  ;;  %v8260_v19 = vpack.c.bf16 %v10283_v57, %v10281_v6  ;;  %v8263_v35 = vpack.c.bf16 %v10288_v49, %v10286_v12 }
 0x786   : > { %8109 = vmatmul.mubr.bf16.gmra.mrb[68].mxu1 %v8050_v1  ;;  %v10287_v1 = vld [vmem:[%s15840_s11 + $0x1f0] sm:$0xff] }
 0x841   : > { %v10871_v15 = vpop.f32.mrb[56].mxu1 }
 0x842   : > { %v10872_v11 = vpop.f32.mrb[57].mxu1 }
 0x843   : > { %v10873_v52 = vadd.f32 %v10872_v11, %v10871_v15  ;;  %v10874_v30 = vpop.f32.mrb[58].mxu1  ;;  %v8262_v15 = vpack.c.bf16 %v10287_v1, %v10285_v25  ;;  %v15485_v11 = vld [vmem:[%s15836_s7 + $0x60] sm:$0xff]  }
 0x844   : > { %v10875_v31 = vpop.f32.mrb[59].mxu1 }
 0x845   : > { %v10876_v42 = vadd.f32 %v10875_v31, %v10874_v30  ;;  %v15499_v30 = vld [vmem:[%s15836_s7 + $0x70] sm:$0xff]   ;;  %v15506_v31 = vld [vmem:[%s15836_s7 + $0x78] sm:$0xff]  }
 0x847   : > { %v8117_v33 = vpack.c.bf16 %v10876_v42, %v10873_v52  ;;  %v15492_v52 = vld [vmem:[%s15836_s7 + $0x68] sm:$0xff]  }
 0x849   : > { %v10877_v18 = vpop.f32.mrb[60].mxu1  ;;  %11913 = vmatprep.mubr.msk.bf16.mxu1 %vm1660_vm2, %v8117_v33 }
 0x84a   : > { %v10878_v54 = vpop.f32.mrb[61].mxu1 }
 0x84b   : > { %v10879_v21 = vadd.f32 %v10878_v54, %v10877_v18  ;;  %v10880_v36 = vpop.f32.mrb[62].mxu1 }
 0x84c   : > { %v10881_v47 = vpop.f32.mrb[63].mxu1 }
 0x84d   : > { %v10882_v44 = vadd.f32 %v10881_v47, %v10880_v36 }
 0x84f   : > { %v8118_v39 = vpack.c.bf16 %v10882_v44, %v10879_v21 }
 0x851   : > { %11914 = vmatmul.mubr.msk.bf16.vlgmr.msra.gmra.mrb[48].mxu1 %vm1660_vm2, %v8118_v39  ;;  %v10883_v9 = vpop.f32.mrb[64].mxu1 }
 0x852   : > { %10904 = vmatpush3.bf16.msra.mxu1 %v15022_v24  ;;  %v10884_v50 = vpop.f32.mrb[65].mxu1 }
 0x853   : > { %10905 = vmatprep.subr.bf16.mxu1 %v15072_v5  ;;  %v10885_v48 = vadd.f32 %v10884_v50, %v10883_v9  ;;  %v10886_v40 = vpop.f32.mrb[66].mxu1  ;;  %v10274_v5 = vld [vmem:[%s15840_s11 + $0x188] sm:$0xff] }
 0x854   : > { %v10887_v45 = vpop.f32.mrb[67].mxu1 }
 0x855   : > { %v10888_v38 = vadd.f32 %v10887_v45, %v10886_v40 }
 0x856   : > { %10906 = vmatpush3.bf16.msra.mxu1 %v15020_v59  ;;  %v10276_v59 = vld [vmem:[%s15840_s11 + $0x198] sm:$0xff] }
 0x857   : > { %10907 = vmatprep.subr.bf16.mxu1 %v15095_v13  ;;  %v8119_v53 = vpack.c.bf16 %v10888_v38, %v10885_v48  ;;  %v8257_v56 = vpack.c.bf16 %v10276_v59, %v10274_v5 }
 0x859   : > { %v10889_v10 = vpop.f32.mrb[68].mxu1  ;;  %11917 = vmatprep.mubr.msk.bf16.mxu1 %vm1660_vm2, %v8119_v53 }
 0x85a   : > { %10908 = vmatpush3.bf16.msra.mxu1 %v15034_v14  ;;  %v10890_v29 = vpop.f32.mrb[69].mxu1 }
 0x85b   : > { %10909 = vmatprep.subr.bf16.mxu1 %v15091_v17  ;;  %v10891_v24 = vadd.f32 %v10890_v29, %v10889_v10  ;;  %v10892_v16 = vpop.f32.mrb[70].mxu1  ;;  %v10275_v17 = vld [vmem:[%s15840_s11 + $0x190] sm:$0xff] }
 0x85c   : > { %v10893_v13 = vpop.f32.mrb[71].mxu1 }
 0x85d   : > { %v10894_v34 = vadd.f32 %v10893_v13, %v10892_v16 }
 0x85e   : > { %10910 = vmatpush3.bf16.msra.mxu1 %v15032_v7  ;;  %v10273_v7 = vld [vmem:[%s15840_s11 + $0x180] sm:$0xff] }
 0x85f   : > { %10911 = vmatprep.subr.bf16.mxu1 %v15115_v23  ;;  %v8120_v14 = vpack.c.bf16 %v10894_v34, %v10891_v24  ;;  %v10277_v23 = vld [vmem:[%s15840_s11 + $0x1a0] sm:$0xff] }
 0x861   : > { %11918 = vmatmul.mubr.msk.bf16.gmra.mrb[52].mxu1 %vm1660_vm2, %v8120_v14 }
 0x862   : > { %10912 = vmatpush3.bf16.msra.mxu1 %v15046_v62  ;;  %8296 = vmatprep.mubr.bf16.mxu1 %v8257_v56  ;;  %v10278_v62 = vld [vmem:[%s15840_s11 + $0x1a8] sm:$0xff] }
 0x863   : > { %10913 = vmatprep.subr.bf16.mxu1 %v15111_v32  ;;  %v8256_v32 = vpack.c.bf16 %v10275_v17, %v10273_v7 }
 0x866   : > { %10914 = vmatpush3.bf16.msra.mxu1 %v15044_v60  ;;  %v10280_v60 = vld [vmem:[%s15840_s11 + $0x1b8] sm:$0xff] }
 0x867   : > { %10915 = vmatprep.subr.bf16.mxu1 %v15134_v55  ;;  %v10282_v55 = vld [vmem:[%s15840_s11 + $0x1c8] sm:$0xff] }
 0x868   : > { %v8261_v8 = vpack.c.bf16 %v10284_v61, %v10282_v55 }
 0x86a   : > { %10916 = vmatpush3.bf16.msra.mxu1 %v15058_v51  ;;  %v8259_v51 = vpack.c.bf16 %v10280_v60, %v10278_v62  ;;  %v15522_v62 = vld [vmem:[%s15837_s8] ss:$0 sm:$0xff] }
 0x86b   : > { %10917 = vmatprep.subr.bf16.mxu1 %v15131_v37  ;;  %v10279_v37 = vld [vmem:[%s15840_s11 + $0x1b0] sm:$0xff] }
 0x86e   : > { %10918 = vmatpush3.bf16.msra.mxu1 %v15056_v22  ;;  %v8258_v22 = vpack.c.bf16 %v10279_v37, %v10277_v23 }
 0x86f   : > { %11921 = vmatprep.subr.bf16.mxu1 %v15485_v11 }
 0x871   : > { %8297 = vmatmul.mubr.bf16.vlgmr.msra.gmra.mrb[72].mxu1 %v8256_v32 }
 0x872   : > { %8304 = vmatprep.mubr.bf16.mxu1 %v8259_v51  ;;  %11922 = vmatpush3.bf16.msra.mxu1 %v15485_v11 }
 0x873   : > { %11923 = vmatprep.subr.bf16.mxu1 %v15492_v52 }
 0x876   : > { %11924 = vmatpush3.bf16.msra.mxu1 %v15492_v52 }
 0x877   : > { %11925 = vmatprep.subr.bf16.mxu1 %v15499_v30 }
 0x879   : > { %8305 = vmatmul.mubr.bf16.gmra.mrb[76].mxu1 %v8258_v22 }
 0x87a   : > { %8312 = vmatprep.mubr.bf16.mxu1 %v8261_v8  ;;  %11926 = vmatpush3.bf16.msra.mxu1 %v15499_v30 }
 0x87b   : > { %11927 = vmatprep.subr.bf16.mxu1 %v15506_v31 }
 0x87e   : > { %11928 = vmatpush3.bf16.msra.mxu1 %v15506_v31 }
 0x87f   : > { %11949 = vmatprep.subr.bf16.mxu1 %v16274_v0 }
 0x881   : > { %8313 = vmatmul.mubr.bf16.gmra.mrb[80].mxu1 %v8260_v19 }
 0x882   : > { %8320 = vmatprep.mubr.bf16.mxu1 %v8263_v35 }
 0x889   : > { %8321 = vmatmul.mubr.bf16.gmra.mrb[84].mxu1 %v8262_v15 }
 0x944   : > { %v10919_v42 = vpop.f32.mrb[72].mxu1 }
 0x945   : > { %v10920_v33 = vpop.f32.mrb[73].mxu1 }
 0x946   : > { %v10921_v18 = vadd.f32 %v10920_v33, %v10919_v42  ;;  %v10922_v54 = vpop.f32.mrb[74].mxu1 }
 0x947   : > { %v10923_v21 = vpop.f32.mrb[75].mxu1 }
 0x948   : > { %v10924_v36 = vadd.f32 %v10923_v21, %v10922_v54 }
 0x94a   : > { %v8329_v47 = vpack.c.bf16 %v10924_v36, %v10921_v18 }
 0x94c   : > { %v10925_v44 = vpop.f32.mrb[76].mxu1  ;;  %11929 = vmatprep.mubr.msk.bf16.mxu1 %vm1660_vm2, %v8329_v47 }
 0x94d   : > { %v10926_v39 = vpop.f32.mrb[77].mxu1 }
 0x94e   : > { %v10927_v9 = vadd.f32 %v10926_v39, %v10925_v44  ;;  %v10928_v50 = vpop.f32.mrb[78].mxu1 }
 0x94f   : > { %v10929_v48 = vpop.f32.mrb[79].mxu1 }
 0x950   : > { %v10930_v40 = vadd.f32 %v10929_v48, %v10928_v50  ;;  %v10307_v50 = vld [vmem:[%s15841_s12 + $0x10] sm:$0xff]  ;;  %v10308_v48 = vld [vmem:[%s15841_s12 + $0x18] sm:$0xff] }
 0x952   : > { %v8330_v45 = vpack.c.bf16 %v10930_v40, %v10927_v9  ;;  %v8474_v40 = vld [vmem:[%s15841_s12] sm:$0xff] }
 0x954   : > { %11930 = vmatmul.mubr.msk.bf16.vlgmr.msra.gmra.mrb[48].mxu1 %vm1660_vm2, %v8330_v45  ;;  %v10931_v38 = vpop.f32.mrb[80].mxu1  ;;  %v8475_v45 = vld [vmem:[%s15841_s12 + $0x8] sm:$0xff] }
 0x955   : > { %v10932_v53 = vpop.f32.mrb[81].mxu1 }
 0x956   : > { %v10933_v10 = vadd.f32 %v10932_v53, %v10931_v38  ;;  %v10934_v29 = vpop.f32.mrb[82].mxu1  ;;  %v8529_v38 = vpack.c.bf16 %v10308_v48, %v10307_v50  ;;  %v8476_v53 = vpack.c.bf16 %v8475_v45, %v8474_v40 }
 0x957   : > { %v10935_v24 = vpop.f32.mrb[83].mxu1 }
 0x958   : > { %v10936_v16 = vadd.f32 %v10935_v24, %v10934_v29 }
 0x95a   : > { %v8331_v5 = vpack.c.bf16 %v10936_v16, %v10933_v10 }
 0x95c   : > { %v10937_v59 = vpop.f32.mrb[84].mxu1  ;;  %11933 = vmatprep.mubr.msk.bf16.mxu1 %vm1660_vm2, %v8331_v5 }
 0x95d   : > { %v10938_v13 = vpop.f32.mrb[85].mxu1 }
 0x95e   : > { %v10939_v34 = vadd.f32 %v10938_v13, %v10937_v59  ;;  %v10940_v56 = vpop.f32.mrb[86].mxu1 }
 0x95f   : > { %v10941_v14 = vpop.f32.mrb[87].mxu1 }
 0x960   : > { %v10942_v7 = vadd.f32 %v10941_v14, %v10940_v56 }
 0x962   : > { %v8332_v17 = vpack.c.bf16 %v10942_v7, %v10939_v34  ;;  %v10312_v7 = vld [vmem:[%s15841_s12 + $0x20] sm:$0xff] }
 0x964   : > { %11934 = vmatmul.mubr.msk.bf16.gmra.mrb[52].mxu1 %vm1660_vm2, %v8332_v17  ;;  %v10313_v17 = vld [vmem:[%s15841_s12 + $0x28] sm:$0xff] }
 0x965   : > { %11957 = vmatprep.mubr.msk.bf16.mxu1 %vm12914_vm3, %v16274_v0 }
 0xa27   : > { %v11931_v60 = vpop.f32.mrb[48].mxu1 }
 0xa28   : > { %v8460_v32 = vadd.f32 %v11931_v60, %v15522_v62  ;;  %v8412_v51 = vpop.f32.mrb[49].mxu1  ;;  %v8666_v60 = vpack.c.bf16 %v10313_v17, %v10312_v7 }
 0xa29   : > { %v8458_v23 = vadd.f32 %v15522_v62, %v8412_v51  ;;  %v11932_v37 = vpop.f32.mrb[50].mxu1 }
 0xa2a   : > { %v8461_v55 = vadd.f32 %v11932_v37, %v15522_v62  ;;  %v8415_v61 = vpop.f32.mrb[51].mxu1  ;;  %v8468_v8 = vmax.f32 %v8460_v32, 0.0 }
 0xa2b   : > { %v8459_v22 = vadd.f32 %v15522_v62, %v8415_v61  ;;  %v8466_v57 = vmax.f32 %v8458_v23, 0.0 }
 0xa2c   : > { %v8469_v6 = vmax.f32 %v8461_v55, 0.0 }
 0xa2d   : > { %v8467_v12 = vmax.f32 %v8459_v22, 0.0 }
 0xa2e   : > { %v15528_v49 = vpack.c.bf16 %v8469_v6, %v8468_v8 }
 0xa2f   : > { %v15530_v19 = vpack.c.bf16 %v8467_v12, %v8466_v57 }
 0xa31   : > { %11938 = vmatpush3.bf16.msra.mxu0 %v15530_v19  ;;  %11950 = vmatpush3.bf16.msra.mxu1 %v15530_v19 }
 0xa32   : > { %11939 = vmatprep.subr.bf16.mxu0 %v16274_v0  ;;  %11951 = vmatprep.subr.bf16.mxu1 %v16274_v0 }
 0xa35   : > { %11940 = vmatpush3.bf16.msra.mxu0 %v15528_v49  ;;  %11952 = vmatpush3.bf16.msra.mxu1 %v15528_v49 }
 0xa36   : > { %11941 = vmatprep.subr.bf16.mxu0 %v16274_v0  ;;  %11953 = vmatprep.subr.bf16.mxu1 %v16274_v0 }
 0xa37   : > { %v11935_v35 = vpop.f32.mrb[52].mxu1 }
 0xa38   : > { %v8464_v25 = vadd.f32 %v11935_v35, %v15522_v62  ;;  %v8428_v1 = vpop.f32.mrb[53].mxu1 }
 0xa39   : > { %v8462_v15 = vadd.f32 %v15522_v62, %v8428_v1  ;;  %v11936_v42 = vpop.f32.mrb[54].mxu1 }
 0xa3a   : > { %v8465_v33 = vadd.f32 %v11936_v42, %v15522_v62  ;;  %v8431_v18 = vpop.f32.mrb[55].mxu1  ;;  %v8472_v21 = vmax.f32 %v8464_v25, 0.0  ;;  %v10316_v42 = vld [vmem:[%s15841_s12 + $0x30] sm:$0xff] }
 0xa3b   : > { %v8463_v54 = vadd.f32 %v15522_v62, %v8431_v18  ;;  %v8470_v47 = vmax.f32 %v8462_v15, 0.0 }
 0xa3c   : > { %v8473_v36 = vmax.f32 %v8465_v33, 0.0  ;;  %v10317_v33 = vld [vmem:[%s15841_s12 + $0x38] sm:$0xff] }
 0xa3d   : > { %v8471_v44 = vmax.f32 %v8463_v54, 0.0 }
 0xa3e   : > { %v15544_v39 = vpack.c.bf16 %v8473_v36, %v8472_v21 }
 0xa3f   : > { %v15546_v9 = vpack.c.bf16 %v8471_v44, %v8470_v47 }
 0xa41   : > { %11942 = vmatpush3.bf16.msra.mxu0 %v15546_v9  ;;  %11954 = vmatpush3.bf16.msra.mxu1 %v15546_v9 }
 0xa42   : > { %11943 = vmatprep.subr.bf16.mxu0 %v16274_v0  ;;  %11955 = vmatprep.subr.bf16.mxu1 %v16274_v0 }
 0xa45   : > { %11944 = vmatpush3.bf16.msra.mxu0 %v15544_v39  ;;  %11956 = vmatpush3.bf16.msra.mxu1 %v15544_v39 }
 0xa46   : > { %11961 = vmatprep.subr.bf16.mxu1 %v16274_v0 }
 0xa48   : > { %11958 = vmatmul.mubr.msk.bf16.vlgmr.msra.gmra.mrb[88].mxu1 %vm1660_vm2, %v8529_v38  ;;  %11946 = vmatmul.mubr.msk.bf16.vlgmr.msra.gmra.mrb[32].mxu0 %vm1660_vm2, %v8476_v53 }
 0xa49   : > { %11962 = vmatpush3.bf16.msra.mxu1 %v15249_v58  ;;  %11969 = vmatprep.mubr.msk.bf16.mxu1 %vm12914_vm3, %v16274_v0 }
 0xa4a   : > { %11963 = vmatprep.subr.bf16.mxu1 %v16274_v0 }
 0xa4d   : > { %11964 = vmatpush3.bf16.msra.mxu1 %v15256_v43 }
 0xa4e   : > { %11965 = vmatprep.subr.bf16.mxu1 %v16274_v0 }
 0xa51   : > { %11966 = vmatpush3.bf16.msra.mxu1 %v15263_v4 }
 0xa52   : > { %11967 = vmatprep.subr.bf16.mxu1 %v16274_v0 }
 0xa55   : > { %11968 = vmatpush3.bf16.msra.mxu1 %v15270_v27 }
 0xa56   : > { %11973 = vmatprep.subr.bf16.mxu1 %v16274_v0 }
 0xb1b   : > { %v8567_v10 = vpop.f32.mrb[88].mxu1  ;;  %v8518_v29 = vpop.f32.mrb[32].mxu0 }
 0xb1c   : > { %v11959_v24 = vpop.f32.mrb[89].mxu1  ;;  %v11947_v16 = vpop.f32.mrb[33].mxu0 }
 0xb1d   : > { %v8570_v5 = vpop.f32.mrb[90].mxu1  ;;  %v8521_v59 = vpop.f32.mrb[34].mxu0 }
 0xb1e   : > { %v8574_v13 = vpack.c.bf16 %v8570_v5, %v8567_v10  ;;  %v8525_v34 = vpack.c.bf16 %v8521_v59, %v8518_v29  ;;  %v11960_v56 = vpop.f32.mrb[91].mxu1  ;;  %v11948_v14 = vpop.f32.mrb[35].mxu0 }
 0xb1f   : > { %v10321_v14 = vld [vmem:[%s15842_s13 + $0x8] sm:$0xff] }
 0xb20   : > { %11970 = vmatmul.mubr.msk.bf16.vlgmr.msra.gmra.mrb[92].mxu1 %vm1660_vm2, %v8574_v13  ;;  %v8857_v13 = vld [vmem:[%s15842_s13] sm:$0xff]  ;;  %v8907_v7 = vpack.c.bf16 %v10321_v14, %v10321_v14  ;;  %v12890_v14 = vld [vmem:[%s15836_s7 + $0x28] sm:$0xff]  }
 0xb21   : > { %11974 = vmatpush3.bf16.msra.mxu1 %v15277_v26  ;;  %11981 = vmatprep.mubr.msk.bf16.mxu1 %vm12914_vm3, %v16274_v0  ;;  %v8858_v56 = vpack.c.bf16 %v8857_v13, %v8857_v13  ;;  %v10332_v13 = vld [vmem:[%s15843_s14 + $0x8] sm:$0xff] }
 0xb22   : > { %11975 = vmatprep.subr.bf16.mxu1 %v16274_v0 }
 0xb25   : > { %11976 = vmatpush3.bf16.msra.mxu1 %v15293_v63 }
 0xb26   : > { %11977 = vmatprep.subr.bf16.mxu1 %v16274_v0 }
 0xb29   : > { %11978 = vmatpush3.bf16.msra.mxu1 %v15301_v28 }
 0xb2a   : > { %11979 = vmatprep.subr.bf16.mxu1 %v16274_v0 }
 0xb2d   : > { %11980 = vmatpush3.bf16.msra.mxu1 %v15308_v3 }
 0xb2e   : > { %11985 = vmatprep.subr.bf16.mxu1 %v16274_v0 }
 0xb30   : > { %11982 = vmatmul.mubr.msk.bf16.vlgmr.msra.gmra.mrb[96].mxu1 %vm1660_vm2, %v8525_v34 }
 0xb31   : > { %11986 = vmatpush3.bf16.msra.mxu1 %v15530_v19  ;;  %11993 = vmatprep.mubr.msk.bf16.mxu1 %vm12914_vm3, %v16274_v0 }
 0xb32   : > { %11987 = vmatprep.subr.bf16.mxu1 %v16274_v0 }
 0xb35   : > { %11988 = vmatpush3.bf16.msra.mxu1 %v15528_v49 }
 0xb36   : > { %11989 = vmatprep.subr.bf16.mxu1 %v16274_v0 }
 0xb39   : > { %11990 = vmatpush3.bf16.msra.mxu1 %v15546_v9 }
 0xb3a   : > { %11991 = vmatprep.subr.bf16.mxu1 %v16274_v0 }
 0xb3d   : > { %11992 = vmatpush3.bf16.msra.mxu1 %v15544_v39 }
 0xb3e   : > { %11997 = vmatprep.subr.bf16.mxu1 %v16274_v0 }
 0xb40   : > { %11994 = vmatmul.mubr.msk.bf16.vlgmr.msra.gmra.mrb[100].mxu1 %vm1660_vm2, %v8666_v60 }
 0xb41   : > { %11998 = vmatpush3.bf16.msra.mxu1 %v15352_v20  ;;  %12005 = vmatprep.mubr.msk.bf16.mxu1 %vm12914_vm3, %v16274_v0 }
 0xb42   : > { %11999 = vmatprep.subr.bf16.mxu1 %v16274_v0 }
 0xb45   : > { %12000 = vmatpush3.bf16.msra.mxu1 %v15365_v41 }
 0xb46   : > { %12001 = vmatprep.subr.bf16.mxu1 %v16274_v0 }
 0xb49   : > { %12002 = vmatpush3.bf16.msra.mxu1 %v15378_v46 }
 0xb4a   : > { %12003 = vmatprep.subr.bf16.mxu1 %v16274_v0 }
 0xb4d   : > { %12004 = vmatpush3.bf16.msra.mxu1 %v15391_v2 }
 0xb4e   : > { %12009 = vmatprep.subr.bf16.mxu1 %v16274_v0 }
 0xbf3   : > { %v8612_v32 = vpop.f32.mrb[92].mxu1 }
 0xbf4   : > { %v11971_v51 = vpop.f32.mrb[93].mxu1 }
 0xbf5   : > { %v8615_v23 = vpop.f32.mrb[94].mxu1 }
 0xbf6   : > { %v11972_v37 = vpop.f32.mrb[95].mxu1 }
 0xc03   : > { %v8656_v55 = vpop.f32.mrb[96].mxu1 }
 0xc04   : > { %v8657_v61 = vadd.f32 %v8656_v55, %v8612_v32  ;;  %v11983_v22 = vpop.f32.mrb[97].mxu1 }
 0xc05   : > { %v8659_v8 = vpop.f32.mrb[98].mxu1 }
 0xc06   : > { %v8660_v6 = vadd.f32 %v8659_v8, %v8615_v23  ;;  %v11984_v57 = vpop.f32.mrb[99].mxu1 }
 0xc13   : > { %v8704_v12 = vpop.f32.mrb[100].mxu1 }
 0xc14   : > { %v11995_v35 = vpop.f32.mrb[101].mxu1 }
 0xc15   : > { %v8707_v25 = vpop.f32.mrb[102].mxu1 }
 0xc16   : > { %v8711_v1 = vpack.c.bf16 %v8707_v25, %v8704_v12  ;;  %v11996_v15 = vpop.f32.mrb[103].mxu1 }
 0xc18   : > { %12006 = vmatmul.mubr.msk.bf16.vlgmr.msra.gmra.mrb[104].mxu1 %vm1660_vm2, %v8711_v1 }
 0xc19   : > { %12010 = vmatpush3.bf16.msra.mxu1 %v15530_v19  ;;  %12017 = vmatprep.mubr.msk.bf16.mxu1 %vm12914_vm3, %v16274_v0  ;;  %v8761_v19 = vpack.c.bf16 %v10317_v33, %v10316_v42  ;;  %v10328_v33 = vld [vmem:[%s15842_s13 + $0x18] sm:$0xff] }
 0xc1a   : > { %12011 = vmatprep.subr.bf16.mxu1 %v16274_v0 }
 0xc1d   : > { %12012 = vmatpush3.bf16.msra.mxu1 %v15528_v49 }
 0xc1e   : > { %12013 = vmatprep.subr.bf16.mxu1 %v16274_v0 }
 0xc21   : > { %12014 = vmatpush3.bf16.msra.mxu1 %v15546_v9 }
 0xc22   : > { %12015 = vmatprep.subr.bf16.mxu1 %v16274_v0 }
 0xc25   : > { %12016 = vmatpush3.bf16.msra.mxu1 %v15544_v39 }
 0xc26   : > { %12021 = vmatprep.subr.bf16.mxu1 %v16274_v0 }
 0xc28   : > { %12018 = vmatmul.mubr.msk.bf16.vlgmr.msra.gmra.mrb[108].mxu1 %vm1660_vm2, %v8761_v19  ;;  %v9131_v19 = vpack.c.bf16 %v10328_v33, %v10328_v33 }
 0xc29   : > { %12022 = vmatpush3.bf16.msra.mxu1 %v15485_v11  ;;  %12029 = vmatprep.mubr.msk.bf16.mxu1 %vm12914_vm3, %v16274_v0 }
 0xc2a   : > { %12023 = vmatprep.subr.bf16.mxu1 %v16274_v0 }
 0xc2d   : > { %12024 = vmatpush3.bf16.msra.mxu1 %v15492_v52 }
 0xc2e   : > { %12025 = vmatprep.subr.bf16.mxu1 %v16274_v0 }
 0xc31   : > { %12026 = vmatpush3.bf16.msra.mxu1 %v15499_v30 }
 0xc32   : > { %12027 = vmatprep.subr.bf16.mxu1 %v16274_v0 }
 0xc35   : > { %12028 = vmatpush3.bf16.msra.mxu1 %v15506_v31 }
 0xc36   : > { %12033 = vmatprep.subr.bf16.mxu1 %v16274_v0 }
 0xceb   : > { %v8749_v49 = vpop.f32.mrb[104].mxu1 }
 0xcec   : > { %v8756_v18 = vadd.f32 %v8749_v49, %v8657_v61  ;;  %v12007_v54 = vpop.f32.mrb[105].mxu1 }
 0xced   : > { %v8752_v21 = vpop.f32.mrb[106].mxu1 }
 0xcee   : > { %v8757_v36 = vadd.f32 %v8752_v21, %v8660_v6  ;;  %v12008_v47 = vpop.f32.mrb[107].mxu1 }
 0xcfb   : > { %v8799_v44 = vpop.f32.mrb[108].mxu1 }
 0xcfc   : > { %v12019_v39 = vpop.f32.mrb[109].mxu1 }
 0xcfd   : > { %v8802_v9 = vpop.f32.mrb[110].mxu1 }
 0xcfe   : > { %v8806_v50 = vpack.c.bf16 %v8802_v9, %v8799_v44  ;;  %v12020_v48 = vpop.f32.mrb[111].mxu1 }
 0xd00   : > { %12030 = vmatmul.mubr.msk.bf16.vlgmr.msra.gmra.mrb[112].mxu1 %vm1660_vm2, %v8806_v50 }
 0xd01   : > { %12035 = vmatprep.mubr.msk.bf16.mxu1 %vm12914_vm3, %v16274_v0 }
 0xdd3   : > { %v8844_v40 = vpop.f32.mrb[112].mxu1 }
 0xdd4   : > { %v8851_v45 = vadd.f32 %v8844_v40, %v8756_v18  ;;  %v12031_v38 = vpop.f32.mrb[113].mxu1 }
 0xdd5   : > { %v8847_v53 = vpop.f32.mrb[114].mxu1 }
 0xdd6   : > { %v8853_v10 = vadd.f32 %v15522_v62, %v8851_v45  ;;  %v8852_v29 = vadd.f32 %v8847_v53, %v8757_v36  ;;  %v12032_v24 = vpop.f32.mrb[115].mxu1 }
 0xdd7   : > { %v9222_v24 = vld [vmem:[%s15843_s14] sm:$0xff] }
 0xdd8   : > { %v8854_v16 = vadd.f32 %v15522_v62, %v8852_v29  ;;  %v8855_v5 = vmax.f32 %v8853_v10, 0.0 }
 0xdda   : > { %v8856_v59 = vmax.f32 %v8854_v16, 0.0 }
 0xddc   : > { %v15654_v34 = vpack.c.bf16 %v8856_v59, %v8855_v5  ;;  %v9223_v59 = vpack.c.bf16 %v9222_v24, %v9222_v24 }
 0xdde   : > { %12034 = vmatpush3.bf16.msra.mxu1 %v15654_v34 }
 0xddf   : > { %12039 = vmatprep.subr.bf16.mxu1 %v16274_v0 }
 0xde1   : > { %12036 = vmatmul.mubr.msk.bf16.vlgmr.msra.gmra.mrb[116].mxu1 %vm8860_vm4, %v8858_v56  ;;  %v12889_v56 = vld [vmem:[%s15836_s7 + $0x20] sm:$0xff]  }
 0xde2   : > { %12040 = vmatpush3.bf16.msra.mxu1 %v15654_v34  ;;  %12041 = vmatprep.mubr.msk.bf16.mxu1 %vm12914_vm3, %v16274_v0 }
 0xde3   : > { %12045 = vmatprep.subr.bf16.mxu1 %v16274_v0 }
 0xde9   : > { %12042 = vmatmul.mubr.msk.bf16.vlgmr.msra.gmra.mrb[120].mxu1 %vm8860_vm4, %v8907_v7  ;;  %v12891_v7 = vld [vmem:[%s15836_s7 + $0x30] sm:$0xff]  }
 0xdea   : > { %12046 = vmatpush3.bf16.msra.mxu1 %v15249_v58  ;;  %12053 = vmatprep.mubr.msk.bf16.mxu1 %vm12914_vm3, %v16274_v0 }
 0xdeb   : > { %12047 = vmatprep.subr.bf16.mxu1 %v16274_v0 }
 0xdee   : > { %12048 = vmatpush3.bf16.msra.mxu1 %v15256_v43 }
 0xdef   : > { %12049 = vmatprep.subr.bf16.mxu1 %v16274_v0 }
 0xdf2   : > { %12050 = vmatpush3.bf16.msra.mxu1 %v15263_v4 }
 0xdf3   : > { %12051 = vmatprep.subr.bf16.mxu1 %v16274_v0 }
 0xdf6   : > { %12052 = vmatpush3.bf16.msra.mxu1 %v15270_v27  ;;  %v10325_v27 = vld [vmem:[%s15842_s13 + $0x10] sm:$0xff] }
 0xdf7   : > { %12057 = vmatprep.subr.bf16.mxu1 %v16274_v0 }
 0xeb4   : > { %v8898_v17 = vpop.f32.mrb[116].mxu1 }
 0xeb5   : > { %v12037_v60 = vpop.f32.mrb[117].mxu1  ;;  %v8904_v4 = vpack.c.bf16 %v8898_v17, %v8898_v17  ;;  %v12892_v17 = vld [vmem:[%s15836_s7 + $0x38] sm:$0xff]  }
 0xeb6   : > { %v8901_v58 = vpop.f32.mrb[118].mxu1 }
 0xeb7   : > { %v12038_v32 = vpop.f32.mrb[119].mxu1 }
 0xebc   : > { %v8945_v51 = vpop.f32.mrb[120].mxu1 }
 0xebd   : > { %v8951_v23 = vpack.c.bf16 %v8945_v51, %v8945_v51  ;;  %v12043_v37 = vpop.f32.mrb[121].mxu1 }
 0xebe   : > { %v8948_v55 = vpop.f32.mrb[122].mxu1 }
 0xebf   : > { %12054 = vmatmul.mubr.msk.bf16.vlgmr.msra.gmra.mrb[124].mxu1 %vm1660_vm2, %v8951_v23  ;;  %v12044_v43 = vpop.f32.mrb[123].mxu1 }
 0xec0   : > { %12058 = vmatpush3.bf16.msra.mxu1 %v15277_v26  ;;  %12065 = vmatprep.mubr.msk.bf16.mxu1 %vm12914_vm3, %v16274_v0  ;;  %v9040_v26 = vpack.c.bf16 %v10325_v27, %v10325_v27  ;;  %v12893_v27 = vld [vmem:[%s15836_s7] sm:$0xff]  }
 0xec1   : > { %12059 = vmatprep.subr.bf16.mxu1 %v16274_v0 }
 0xec4   : > { %12060 = vmatpush3.bf16.msra.mxu1 %v15293_v63 }
 0xec5   : > { %12061 = vmatprep.subr.bf16.mxu1 %v16274_v0 }
 0xec8   : > { %12062 = vmatpush3.bf16.msra.mxu1 %v15301_v28 }
 0xec9   : > { %12063 = vmatprep.subr.bf16.mxu1 %v16274_v0 }
 0xecc   : > { %12064 = vmatpush3.bf16.msra.mxu1 %v15308_v3 }
 0xecd   : > { %12069 = vmatprep.subr.bf16.mxu1 %v16274_v0 }
 0xecf   : > { %12066 = vmatmul.mubr.msk.bf16.vlgmr.msra.gmra.mrb[128].mxu1 %vm1660_vm2, %v8904_v4 }
 0xed0   : > { %12070 = vmatpush3.bf16.msra.mxu1 %v15654_v34  ;;  %12071 = vmatprep.mubr.msk.bf16.mxu1 %vm12914_vm3, %v16274_v0 }
 0xed1   : > { %12075 = vmatprep.subr.bf16.mxu1 %v16274_v0 }
 0xed7   : > { %12072 = vmatmul.mubr.msk.bf16.vlgmr.msra.gmra.mrb[132].mxu1 %vm8860_vm4, %v9040_v26  ;;  %v12894_v26 = vld [vmem:[%s15836_s7 + $0x8] sm:$0xff]  }
 0xed8   : > { %12076 = vmatpush3.bf16.msra.mxu1 %v15352_v20  ;;  %12083 = vmatprep.mubr.msk.bf16.mxu1 %vm12914_vm3, %v16274_v0 }
 0xed9   : > { %12077 = vmatprep.subr.bf16.mxu1 %v16274_v0 }
 0xedc   : > { %12078 = vmatpush3.bf16.msra.mxu1 %v15365_v41 }
 0xedd   : > { %12079 = vmatprep.subr.bf16.mxu1 %v16274_v0 }
 0xee0   : > { %12080 = vmatpush3.bf16.msra.mxu1 %v15378_v46 }
 0xee1   : > { %12081 = vmatprep.subr.bf16.mxu1 %v16274_v0 }
 0xee4   : > { %12082 = vmatpush3.bf16.msra.mxu1 %v15391_v2 }
 0xee5   : > { %12087 = vmatprep.subr.bf16.mxu1 %v16274_v0 }
 0xf92   : > { %v8989_v63 = vpop.f32.mrb[124].mxu1 }
 0xf93   : > { %v12055_v28 = vpop.f32.mrb[125].mxu1 }
 0xf94   : > { %v8992_v3 = vpop.f32.mrb[126].mxu1  ;;  %v12896_v28 = vld [vmem:[%s15836_s7 + $0x18] sm:$0xff]  }
 0xf95   : > { %v12056_v61 = vpop.f32.mrb[127].mxu1 }
 0xf96   : > { %v10336_v61 = vld [vmem:[%s15843_s14 + $0x10] sm:$0xff] }
 0xfa2   : > { %v9032_v22 = vpop.f32.mrb[128].mxu1 }
 0xfa3   : > { %v9033_v8 = vadd.f32 %v9032_v22, %v8989_v63  ;;  %v12067_v6 = vpop.f32.mrb[129].mxu1  ;;  %v12895_v63 = vld [vmem:[%s15836_s7 + $0x10] sm:$0xff]   ;;  %v9409_v22 = vpack.c.bf16 %v10336_v61, %v10336_v61 }
 0xfa4   : > { %v9035_v57 = vpop.f32.mrb[130].mxu1 }
 0xfa5   : > { %v12068_v12 = vpop.f32.mrb[131].mxu1 }
 0xfaa   : > { %v9078_v35 = vpop.f32.mrb[132].mxu1 }
 0xfab   : > { %v9084_v25 = vpack.c.bf16 %v9078_v35, %v9078_v35  ;;  %v12073_v1 = vpop.f32.mrb[133].mxu1 }
 0xfac   : > { %v9081_v15 = vpop.f32.mrb[134].mxu1 }
 0xfad   : > { %12084 = vmatmul.mubr.msk.bf16.vlgmr.msra.gmra.mrb[136].mxu1 %vm1660_vm2, %v9084_v25  ;;  %v12074_v42 = vpop.f32.mrb[135].mxu1 }
 0xfae   : > { %12088 = vmatpush3.bf16.msra.mxu1 %v15654_v34  ;;  %12089 = vmatprep.mubr.msk.bf16.mxu1 %vm12914_vm3, %v16274_v0  ;;  %v9276_v34 = vpack.c.bf16 %v10332_v13, %v10332_v13 }
 0xfaf   : > { %12093 = vmatprep.subr.bf16.mxu1 %v16274_v0 }
 0xfb5   : > { %12090 = vmatmul.mubr.msk.bf16.vlgmr.msra.gmra.mrb[140].mxu1 %vm8860_vm4, %v9131_v19 }
 0xfb6   : > { %12094 = vmatpush3.bf16.msra.mxu1 %v15485_v11  ;;  %12101 = vmatprep.mubr.msk.bf16.mxu1 %vm12914_vm3, %v16274_v0 }
 0xfb7   : > { %12095 = vmatprep.subr.bf16.mxu1 %v16274_v0 }
 0xfba   : > { %12096 = vmatpush3.bf16.msra.mxu1 %v15492_v52 }
 0xfbb   : > { %12097 = vmatprep.subr.bf16.mxu1 %v16274_v0 }
 0xfbe   : > { %12098 = vmatpush3.bf16.msra.mxu1 %v15499_v30 }
 0xfbf   : > { %12099 = vmatprep.subr.bf16.mxu1 %v16274_v0 }
 0xfc2   : > { %12100 = vmatpush3.bf16.msra.mxu1 %v15506_v31 }
 0xfc3   : > { %12105 = vmatprep.subr.bf16.mxu1 %v16274_v0 }
0x1080   : > { %v9122_v49 = vpop.f32.mrb[136].mxu1 }
0x1081   : > { %v9128_v18 = vadd.f32 %v9122_v49, %v9033_v8  ;;  %v12085_v54 = vpop.f32.mrb[137].mxu1 }
0x1082   : > { %v9125_v21 = vpop.f32.mrb[138].mxu1 }
0x1083   : > { %v12086_v36 = vpop.f32.mrb[139].mxu1 }
0x1088   : > { %v9169_v47 = vpop.f32.mrb[140].mxu1 }
0x1089   : > { %v9175_v44 = vpack.c.bf16 %v9169_v47, %v9169_v47  ;;  %v12091_v39 = vpop.f32.mrb[141].mxu1 }
0x108a   : > { %v9172_v9 = vpop.f32.mrb[142].mxu1 }
0x108b   : > { %12102 = vmatmul.mubr.msk.bf16.vlgmr.msra.gmra.mrb[144].mxu1 %vm1660_vm2, %v9175_v44  ;;  %v12092_v50 = vpop.f32.mrb[143].mxu1 }
0x108c   : > { %12107 = vmatprep.mubr.msk.bf16.mxu1 %vm12914_vm3, %v16274_v0 }
0x115e   : > { %v9213_v48 = vpop.f32.mrb[144].mxu1 }
0x115f   : > { %v9219_v40 = vadd.f32 %v9213_v48, %v9128_v18  ;;  %v12103_v45 = vpop.f32.mrb[145].mxu1 }
0x1160   : > { %v9216_v38 = vpop.f32.mrb[146].mxu1  ;;  %v9591_v45 = vld [vmem:[%s15838_s9] sm:$0x1] }
0x1161   : > { %v9220_v53 = vadd.f32 %v15522_v62, %v9219_v40  ;;  %v12104_v10 = vpop.f32.mrb[147].mxu1 }
0x1163   : > { %v9221_v29 = vmax.f32 %v9220_v53, 0.0 }
0x1165   : > { %v9224_v16 = vpack.c.bf16 %v9221_v29, %v9221_v29  ;;  %v9597_v29 = vld [vmem:[#allocation3] sm:$0x1] }
0x1167   : > { %v15733_v5 = vsel %vm9229_vm5, %v9224_v16, 0 }
0x1168   : > { %12106 = vmatpush3.bf16.msra.mxu1 %v15733_v5 }
0x1169   : > { %12111 = vmatprep.subr.bf16.mxu1 %v16274_v0 }
0x116b   : > { %12108 = vmatmul.mubr.msk.bf16.vlgmr.msra.gmra.mrb[148].mxu1 %vm9225_vm6, %v9223_v59 }
0x116c   : > { %12112 = vmatpush3.bf16.msra.mxu1 %v15733_v5  ;;  %12113 = vmatprep.mubr.msk.bf16.mxu1 %vm12914_vm3, %v16274_v0 }
0x116d   : > { %12117 = vmatprep.subr.bf16.mxu1 %v16274_v0 }
0x1173   : > { %12114 = vmatmul.mubr.msk.bf16.vlgmr.msra.gmra.mrb[152].mxu1 %vm9225_vm6, %v9276_v34 }
0x1174   : > { %12118 = vmatpush3.bf16.msra.mxu1 %v12889_v56  ;;  %12125 = vmatprep.mubr.msk.bf16.mxu1 %vm12914_vm3, %v16274_v0 }
0x1175   : > { %12119 = vmatprep.subr.bf16.mxu1 %v16274_v0 }
0x1178   : > { %12120 = vmatpush3.bf16.msra.mxu1 %v12890_v14 }
0x1179   : > { %12121 = vmatprep.subr.bf16.mxu1 %v16274_v0 }
0x117c   : > { %12122 = vmatpush3.bf16.msra.mxu1 %v12891_v7 }
0x117d   : > { %12123 = vmatprep.subr.bf16.mxu1 %v16274_v0 }
0x1180   : > { %12124 = vmatpush3.bf16.msra.mxu1 %v12892_v17 }
0x1181   : > { %12129 = vmatprep.subr.bf16.mxu1 %v16274_v0 }
0x123e   : > { %v9267_v60 = vpop.f32.mrb[148].mxu1 }
0x123f   : > { %v12109_v58 = vpop.f32.mrb[149].mxu1  ;;  %v9273_v3 = vpack.c.bf16 %v9267_v60, %v9267_v60 }
0x1240   : > { %v9270_v32 = vpop.f32.mrb[150].mxu1 }
0x1241   : > { %v12110_v51 = vpop.f32.mrb[151].mxu1 }
0x1246   : > { %v9314_v23 = vpop.f32.mrb[152].mxu1 }
0x1247   : > { %v9320_v37 = vpack.c.bf16 %v9314_v23, %v9314_v23  ;;  %v12115_v55 = vpop.f32.mrb[153].mxu1 }
0x1248   : > { %v9317_v43 = vpop.f32.mrb[154].mxu1 }
0x1249   : > { %12126 = vmatmul.mubr.msk.bf16.vlgmr.msra.gmra.mrb[156].mxu1 %vm1660_vm2, %v9320_v37  ;;  %v12116_v4 = vpop.f32.mrb[155].mxu1 }
0x124a   : > { %12130 = vmatpush3.bf16.msra.mxu1 %v12893_v27  ;;  %12137 = vmatprep.mubr.msk.bf16.mxu1 %vm12914_vm3, %v16274_v0 }
0x124b   : > { %12131 = vmatprep.subr.bf16.mxu1 %v16274_v0 }
0x124e   : > { %12132 = vmatpush3.bf16.msra.mxu1 %v12894_v26 }
0x124f   : > { %12133 = vmatprep.subr.bf16.mxu1 %v16274_v0 }
0x1252   : > { %12134 = vmatpush3.bf16.msra.mxu1 %v12895_v63 }
0x1253   : > { %12135 = vmatprep.subr.bf16.mxu1 %v16274_v0 }
0x1256   : > { %12136 = vmatpush3.bf16.msra.mxu1 %v12896_v28 }
0x1257   : > { %12141 = vmatprep.subr.bf16.mxu1 %v16274_v0 }
0x1259   : > { %12138 = vmatmul.mubr.msk.bf16.vlgmr.msra.gmra.mrb[160].mxu1 %vm1660_vm2, %v9273_v3 }
0x125a   : > { %12142 = vmatpush3.bf16.msra.mxu1 %v15733_v5  ;;  %12143 = vmatprep.mubr.msk.bf16.mxu1 %vm12914_vm3, %v16274_v0 }
0x125b   : > { %12147 = vmatprep.subr.bf16.mxu1 %v16274_v0 }
0x1261   : > { %12144 = vmatmul.mubr.msk.bf16.vlgmr.msra.gmra.mrb[164].mxu1 %vm9225_vm6, %v9409_v22 }
0x1262   : > { %12148 = vmatpush3.bf16.msra.mxu1 %v15352_v20  ;;  %12155 = vmatprep.mubr.msk.bf16.mxu1 %vm12914_vm3, %v16274_v0 }
0x1263   : > { %12149 = vmatprep.subr.bf16.mxu1 %v16274_v0 }
0x1266   : > { %12150 = vmatpush3.bf16.msra.mxu1 %v15365_v41 }
0x1267   : > { %12151 = vmatprep.subr.bf16.mxu1 %v16274_v0 }
0x126a   : > { %12152 = vmatpush3.bf16.msra.mxu1 %v15378_v46 }
0x126b   : > { %12153 = vmatprep.subr.bf16.mxu1 %v16274_v0 }
0x126e   : > { %12154 = vmatpush3.bf16.msra.mxu1 %v15391_v2  ;;  %v10339_v2 = vld [vmem:[%s15843_s14 + $0x18] sm:$0xff] }
0x126f   : > { %12159 = vmatprep.subr.bf16.mxu1 %v16274_v0  ;;  %v9500_v49 = vpack.c.bf16 %v10339_v2, %v10339_v2 }
0x131c   : > { %v9358_v8 = vpop.f32.mrb[156].mxu1 }
0x131d   : > { %v12127_v6 = vpop.f32.mrb[157].mxu1 }
0x131e   : > { %v9361_v20 = vpop.f32.mrb[158].mxu1 }
0x131f   : > { %v12128_v57 = vpop.f32.mrb[159].mxu1 }
0x132c   : > { %v9401_v12 = vpop.f32.mrb[160].mxu1 }
0x132d   : > { %v9402_v35 = vadd.f32 %v9401_v12, %v9358_v8  ;;  %v12139_v25 = vpop.f32.mrb[161].mxu1 }
0x132e   : > { %v9404_v1 = vpop.f32.mrb[162].mxu1 }
0x132f   : > { %v12140_v15 = vpop.f32.mrb[163].mxu1 }
0x1334   : > { %v9447_v41 = vpop.f32.mrb[164].mxu1 }
0x1335   : > { %v9453_v42 = vpack.c.bf16 %v9447_v41, %v9447_v41  ;;  %v12145_v33 = vpop.f32.mrb[165].mxu1 }
0x1336   : > { %v9450_v19 = vpop.f32.mrb[166].mxu1 }
0x1337   : > { %12156 = vmatmul.mubr.msk.bf16.vlgmr.msra.gmra.mrb[168].mxu1 %vm1660_vm2, %v9453_v42  ;;  %v12146_v46 = vpop.f32.mrb[167].mxu1 }
0x1338   : > { %12160 = vmatpush3.bf16.msra.mxu1 %v15733_v5  ;;  %12161 = vmatprep.mubr.msk.bf16.mxu1 %vm12914_vm3, %v16274_v0 }
0x1339   : > { %12165 = vmatprep.subr.bf16.mxu1 %v16274_v0 }
0x133f   : > { %12162 = vmatmul.mubr.msk.bf16.vlgmr.msra.gmra.mrb[172].mxu1 %vm9225_vm6, %v9500_v49 }
0x1340   : > { %12166 = vmatpush3.bf16.msra.mxu1 %v15485_v11  ;;  %12173 = vmatprep.mubr.msk.bf16.mxu1 %vm12914_vm3, %v16274_v0 }
0x1341   : > { %12167 = vmatprep.subr.bf16.mxu1 %v16274_v0 }
0x1344   : > { %12168 = vmatpush3.bf16.msra.mxu1 %v15492_v52 }
0x1345   : > { %12169 = vmatprep.subr.bf16.mxu1 %v16274_v0 }
0x1348   : > { %12170 = vmatpush3.bf16.msra.mxu1 %v15499_v30 }
0x1349   : > { %12171 = vmatprep.subr.bf16.mxu1 %v16274_v0 }
0x134c   : > { %12172 = vmatpush3.bf16.msra.mxu1 %v15506_v31 }
0x140a   : > { %v9491_v18 = vpop.f32.mrb[168].mxu1 }
0x140b   : > { %v9497_v54 = vadd.f32 %v9491_v18, %v9402_v35  ;;  %v12157_v21 = vpop.f32.mrb[169].mxu1 }
0x140c   : > { %v9494_v36 = vpop.f32.mrb[170].mxu1 }
0x140d   : > { %v12158_v11 = vpop.f32.mrb[171].mxu1 }
0x1412   : > { %v9538_v47 = vpop.f32.mrb[172].mxu1 }
0x1413   : > { %v9544_v44 = vpack.c.bf16 %v9538_v47, %v9538_v47  ;;  %v12163_v39 = vpop.f32.mrb[173].mxu1 }
0x1414   : > { %v9541_v9 = vpop.f32.mrb[174].mxu1 }
0x1415   : > { %12174 = vmatmul.mubr.msk.bf16.vlgmr.msra.gmra.mrb[176].mxu1 %vm1660_vm2, %v9544_v44  ;;  %v12164_v52 = vpop.f32.mrb[175].mxu1 }
0x14e8   : > { %v9582_v50 = vpop.f32.mrb[176].mxu1 }
0x14e9   : > { %v9588_v48 = vadd.f32 %v9582_v50, %v9497_v54  ;;  %v12175_v40 = vpop.f32.mrb[177].mxu1 }
0x14ea   : > { %v9585_v30 = vpop.f32.mrb[178].mxu1 }
0x14eb   : > { %v9589_v0 = vadd.f32 %v15522_v62, %v9588_v48  ;;  %v12176_v31 = vpop.f32.mrb[179].mxu1 }
0x14ed   : > { %v9590_v38 = vmax.f32 %v9589_v0, 0.0 }
0x14ef   : > { %v9592_v53 = vmul.f32 %v9591_v45, %v9590_v38 }
0x14f1   : > { %v9594_v10 = vsel %vm9593_vm7, %v9592_v53, 0.0 }
0x14f2   : > { %9595 = vadd.xlane.f32.xlu0 %v9594_v10 }
0x157f   : > { %v9596_v24 = vpop.xlane.xlu0 %9595 }
0x1580   : > { %v9598_v16 = vadd.f32 %v9597_v29, %v9596_v24 }
0x1582   : > { %12741 = vpush %v9598_v16 }
0x15b3   : > { %s12742_s29 = spop %12741 }
0x15b4   : > { %v9601_v5 = vstv %s12742_s29 }
0x15b5   : > { %9604 = vst [vmem:[%s13028_s19] sm:$0xff] %v9601_v5 }
0x15b6 PF: > { %s29_s23 = sadd.s32 1, %s12907_s23  }
0x15b7   : > { %p26_p5 = scmp.ge.s32.totalorder %s29_s23, 4  }
0x15b9   :  { %28 = sbr.rel (!%p26_p5) target bundleno = 3 (0x3), region = 171 }

</bundles_post_ra>
